<compile_context>
chip_gen: v6e
topology: v6e:2x2x1
jax: 0.10.0
libtpu: 0.0.40
codegen_flags: <defaults>
</compile_context>

<pallas_src>
import numpy as np
import jax
import jax.numpy as jnp
from jax import lax
from jax.experimental import pallas as pl
from jax.experimental.pallas import tpu as pltpu


# ----------------------------------------------------------------------------
# Pallas kernel: linear_in + PE + num_layers encoder layers + linear_out
# (with /100 and additive correction folded in).  One grid step = one tile of
# TT rows of the T ("batch") axis; attention runs over the B axis.
# ----------------------------------------------------------------------------
def _make_encoder_kernel(num_layers, nhead, B, H, F, OPAD):
    assert H % nhead == 0
    hd = H // nhead
    scale = 1.0 / float(np.sqrt(hd))

    def _ln(x2d, g_ref, b_ref):
        m = jnp.mean(x2d, axis=-1, keepdims=True)
        d = x2d - m
        v = jnp.mean(d * d, axis=-1, keepdims=True)
        return d * lax.rsqrt(v + 1e-5) * g_ref[...] + b_ref[...]

    def kernel(x_ref, pe_ref, w_in_ref, b_in_ref, *rest):
        layer_refs = [rest[12 * l:12 * (l + 1)] for l in range(num_layers)]
        w_out_ref = rest[12 * num_layers + 0]
        b_out_ref = rest[12 * num_layers + 1]
        add_ref = rest[12 * num_layers + 2]
        out_ref = rest[12 * num_layers + 3]

        TT = x_ref.shape[0]
        D = x_ref.shape[2]
        R = TT * B

        # ---- linear_in over the whole tile as ONE matmul ----
        x2d = x_ref[...].reshape(R, D)
        h2d = jnp.dot(x2d, w_in_ref[...],
                      preferred_element_type=jnp.float32) + b_in_ref[...]
        # positional encoding: indexed by the T axis, broadcast over B
        h2d = (h2d.reshape(TT, B, H) + pe_ref[...][:, None, :]).reshape(R, H)

        for (wqkv_ref, bqkv_ref, wo_ref, bo_ref, g1_ref, be1_ref,
             w1_ref, b1_ref, w2_ref, b2_ref, g2_ref, be2_ref) in layer_refs:
            # ---- multi-head self-attention (post-LN encoder layer) ----
            qkv = jnp.dot(h2d, wqkv_ref[...],
                          preferred_element_type=jnp.float32) + bqkv_ref[...]
            qkv3 = qkv.reshape(TT, B, 3 * H)
            ctx_heads = []
            for hh in range(nhead):
                q_h = qkv3[:, :, hh * hd:(hh + 1) * hd]              # (TT,B,hd)
                k_h = qkv3[:, :, H + hh * hd:H + (hh + 1) * hd]
                v_h = qkv3[:, :, 2 * H + hh * hd:2 * H + (hh + 1) * hd]
                # attention over the B axis; B and hd are tiny, so keep the
                # score/context math on the VPU (broadcast + lane reduce)
                s = jnp.sum(q_h[:, :, None, :] * k_h[:, None, :, :],
                            axis=-1) * scale                         # (TT,B,B)
                s = s - jnp.max(s, axis=-1, keepdims=True)
                p = jnp.exp(s)
                p = p / jnp.sum(p, axis=-1, keepdims=True)
                ctx_heads.append(
                    jnp.sum(p[:, :, :, None] * v_h[:, None, :, :], axis=2))
            ctx = jnp.concatenate(ctx_heads, axis=-1).reshape(R, H)
            attn = jnp.dot(ctx, wo_ref[...],
                           preferred_element_type=jnp.float32) + bo_ref[...]
            h2d = _ln(h2d + attn, g1_ref, be1_ref)
            # ---- feed-forward (ReLU) ----
            ff = jnp.dot(h2d, w1_ref[...],
                         preferred_element_type=jnp.float32) + b1_ref[...]
            ff = jnp.maximum(ff, 0.0)
            ff = jnp.dot(ff, w2_ref[...],
                         preferred_element_type=jnp.float32) + b2_ref[...]
            h2d = _ln(h2d + ff, g2_ref, be2_ref)

        # ---- linear_out (/100 pre-folded, lane-padded) + additive state ----
        out2d = jnp.dot(h2d, w_out_ref[...],
                        preferred_element_type=jnp.float32) + b_out_ref[...]
        out_ref[...] = out2d.reshape(TT, B, OPAD) + add_ref[...][None, :, :]

    return kernel


# ----------------------------------------------------------------------------
# Full forward pass (wrapper): preprocessing glue + pallas_call
# ----------------------------------------------------------------------------
def transformer_forward(initial_state, actions, params, nhead):
    f32 = jnp.float32
    initial_state = initial_state.astype(f32)
    actions = actions.astype(f32)

    orig = initial_state                                  # "clone" before rescale
    st = initial_state.at[:, 1].set(initial_state[:, 1] / 3.0)
    st = st.at[:, 2].set(initial_state[:, 2] / 30.0)
    act = (actions + 5.0) / 10.0

    B, T, _ = act.shape
    S = st.shape[-1]
    D = S + act.shape[-1]
    H = params["w_in"].shape[0]
    O = params["w_out"].shape[0]
    F = params["layers"][0]["w1"].shape[0]
    L = len(params["layers"])
    OPAD = 128

    combined = jnp.concatenate(
        [jnp.broadcast_to(st[:, None, :], (B, T, S)), act], axis=-1)  # (B,T,D)
    # batch_first=False semantics: B is the attention axis, T is the batch axis
    x_tb = jnp.transpose(combined, (1, 0, 2))                         # (T,B,D)

    TT = 8 if T >= 8 else T
    T_pad = ((T + TT - 1) // TT) * TT
    pe = params["pe"][:T].astype(f32)
    if T_pad != T:
        x_tb = jnp.pad(x_tb, ((0, T_pad - T), (0, 0), (0, 0)))
        pe = jnp.pad(pe, ((0, T_pad - T), (0, 0)))

    inputs = [x_tb, pe,
              params["w_in"].T.astype(f32),                 # (D, H)
              params["b_in"].reshape(1, H).astype(f32)]
    for lp in params["layers"]:
        inputs += [lp["w_qkv"].T.astype(f32),               # (H, 3H)
                   lp["b_qkv"].reshape(1, 3 * H).astype(f32),
                   lp["w_o"].T.astype(f32),                 # (H, H)
                   lp["b_o"].reshape(1, H).astype(f32),
                   lp["ln1_g"].reshape(1, H).astype(f32),
                   lp["ln1_b"].reshape(1, H).astype(f32),
                   lp["w1"].T.astype(f32),                  # (H, F)
                   lp["b1"].reshape(1, F).astype(f32),
                   lp["w2"].T.astype(f32),                  # (F, H)
                   lp["b2"].reshape(1, H).astype(f32),
                   lp["ln2_g"].reshape(1, H).astype(f32),
                   lp["ln2_b"].reshape(1, H).astype(f32)]
    # /100 folded into a lane-padded output projection (lane-dense store)
    w_out_pad = jnp.zeros((H, OPAD), f32).at[:, :O].set(params["w_out"].T / 100.0)
    b_out_pad = jnp.zeros((1, OPAD), f32).at[0, :O].set(params["b_out"] / 100.0)
    # additive ORIGINAL voltage / temperature, broadcast over T in the kernel
    addv = jnp.zeros((B, OPAD), f32).at[:, 0].set(orig[:, 1]).at[:, 1].set(orig[:, 2])
    inputs += [w_out_pad, b_out_pad, addv]

    kernel = _make_encoder_kernel(L, nhead, B, H, F, OPAD)

    in_specs = [pl.BlockSpec((TT, B, D), lambda i: (i, 0, 0)),
                pl.BlockSpec((TT, H), lambda i: (i, 0))]
    for a in inputs[2:]:
        nd = a.ndim
        in_specs.append(pl.BlockSpec(a.shape, lambda i, nd=nd: (0,) * nd))

    out_pad = pl.pallas_call(
        kernel,
        grid=(T_pad // TT,),
        in_specs=in_specs,
        out_specs=pl.BlockSpec((TT, B, OPAD), lambda i: (i, 0, 0)),
        out_shape=jax.ShapeDtypeStruct((T_pad, B, OPAD), f32),
        compiler_params=pltpu.CompilerParams(
            dimension_semantics=("parallel",)),
    )(*inputs)

    # back to batch-first (B, T, O); drop lane padding and T padding
    return jnp.transpose(out_pad[:T, :, :O], (1, 0, 2))


# ----------------------------------------------------------------------------
# Deterministic parameter init (same shapes as the nn.Module's parameters)
# ----------------------------------------------------------------------------
def init_params(key, S, A, H, O, nhead, num_layers, F, max_len=150):
    D = S + A

    def unif(k, shape, bound):
        return jax.random.uniform(k, shape, jnp.float32, -bound, bound)

    keys = iter(jax.random.split(key, 5 + 8 * num_layers))
    bd, bh, bf = 1.0 / np.sqrt(D), 1.0 / np.sqrt(H), 1.0 / np.sqrt(F)
    params = {
        "w_in": unif(next(keys), (H, D), bd),
        "b_in": unif(next(keys), (H,), bd),
        # module initializes PE to zeros; use small randoms to exercise the path
        "pe": 0.02 * jax.random.normal(next(keys), (max_len, H), jnp.float32),
        "w_out": unif(next(keys), (O, H), bh),
        "b_out": unif(next(keys), (O,), bh),
        "layers": [],
    }
    for _ in range(num_layers):
        params["layers"].append({
            "w_qkv": unif(next(keys), (3 * H, H), bh),
            "b_qkv": unif(next(keys), (3 * H,), bh),
            "w_o": unif(next(keys), (H, H), bh),
            "b_o": unif(next(keys), (H,), bh),
            "ln1_g": jnp.ones((H,), jnp.float32),
            "ln1_b": jnp.zeros((H,), jnp.float32),
            "w1": unif(next(keys), (F, H), bh),
            "b1": unif(next(keys), (F,), bh),
            "w2": unif(next(keys), (H, F), bf),
            "b2": unif(next(keys), (H,), bf),
            "ln2_g": jnp.ones((H,), jnp.float32),
            "ln2_b": jnp.zeros((H,), jnp.float32),
        })
    return params


# ----------------------------------------------------------------------------
# Pure-JAX reference (mirrors the PyTorch forward, incl. batch_first=False)
# ----------------------------------------------------------------------------
def _layer_norm_ref(x, g, b, eps=1e-5):
    m = jnp.mean(x, axis=-1, keepdims=True)
    v = jnp.mean((x - m) ** 2, axis=-1, keepdims=True)
    return (x - m) / jnp.sqrt(v + eps) * g + b


def reference_forward(initial_state, actions, params, nhead):
    initial_state = initial_state.astype(jnp.float32)
    actions = actions.astype(jnp.float32)
    orig = initial_state
    st = initial_state.at[:, 1].set(initial_state[:, 1] / 3.0)
    st = st.at[:, 2].set(initial_state[:, 2] / 30.0)
    act = (actions + 5.0) / 10.0
    B, T, _ = act.shape
    S = st.shape[-1]
    x = jnp.concatenate([jnp.broadcast_to(st[:, None, :], (B, T, S)), act], -1)
    H = params["w_in"].shape[0]
    hd = H // nhead
    seq = x @ params["w_in"].T + params["b_in"]            # (B, T, H)
    seq = seq + params["pe"][:T][None, :, :]
    # batch_first=False: dim 0 (B) = sequence, dim 1 (T) = batch
    for lp in params["layers"]:
        qkv = seq @ lp["w_qkv"].T + lp["b_qkv"]
        q, k, v = qkv[..., :H], qkv[..., H:2 * H], qkv[..., 2 * H:]
        Sx, N = seq.shape[0], seq.shape[1]
        q = q.reshape(Sx, N, nhead, hd)
        k = k.reshape(Sx, N, nhead, hd)
        v = v.reshape(Sx, N, nhead, hd)
        sc = jnp.einsum('snhd,unhd->nhsu', q, k) / np.sqrt(hd)
        pr = jax.nn.softmax(sc, axis=-1)
        ctx = jnp.einsum('nhsu,unhd->snhd', pr, v).reshape(Sx, N, H)
        attn = ctx @ lp["w_o"].T + lp["b_o"]
        seq = _layer_norm_ref(seq + attn, lp["ln1_g"], lp["ln1_b"])
        ff = jnp.maximum(seq @ lp["w1"].T + lp["b1"], 0.0) @ lp["w2"].T + lp["b2"]
        seq = _layer_norm_ref(seq + ff, lp["ln2_g"], lp["ln2_b"])
    out = (seq @ params["w_out"].T + params["b_out"]) / 100.0
    out = out.at[:, :, 0].add(orig[:, 1][:, None])
    out = out.at[:, :, 1].add(orig[:, 2][:, None])
    return out


if __name__ == "__main__":
    # initial_state: (B, S)  (needs >= 3 state columns), actions: (B, T, A)
    B, S_dim, A_dim = 2, 4, 4
    T = 16
    H, O, nhead, L, F = 32, 2, 4, 2, 64

    key = jax.random.PRNGKey(0)
    kp, ks, ka = jax.random.split(key, 3)
    params = init_params(kp, S_dim, A_dim, H, O, nhead, L, F)
    initial_state = jax.random.normal(ks, (B, S_dim), jnp.float32)
    actions = jax.random.normal(ka, (B, T, A_dim), jnp.float32)

    out = transformer_forward(initial_state, actions, params, nhead)
    out = jax.block_until_ready(out)

    ref = reference_forward(initial_state, actions, params, nhead)
    assert out.shape == (B, T, O)
    err = float(jnp.max(jnp.abs(out - ref)))
    assert err < 1e-4, f"max abs err {err}"
    print("KERNEL_OK")
</pallas_src>

<mosaic_0001>
module attributes {stable_mosaic.version = 11 : i64} {
  func.func @kernel(%arg0: i32, %arg1: memref<8x2x8xf32, #tpu.memory_space<vmem>>, %arg2: memref<8x32xf32, #tpu.memory_space<vmem>>, %arg3: memref<8x32xf32, #tpu.memory_space<vmem>>, %arg4: memref<1x32xf32, #tpu.memory_space<vmem>>, %arg5: memref<32x96xf32, #tpu.memory_space<vmem>>, %arg6: memref<1x96xf32, #tpu.memory_space<vmem>>, %arg7: memref<32x32xf32, #tpu.memory_space<vmem>>, %arg8: memref<1x32xf32, #tpu.memory_space<vmem>>, %arg9: memref<1x32xf32, #tpu.memory_space<vmem>>, %arg10: memref<1x32xf32, #tpu.memory_space<vmem>>, %arg11: memref<32x64xf32, #tpu.memory_space<vmem>>, %arg12: memref<1x64xf32, #tpu.memory_space<vmem>>, %arg13: memref<64x32xf32, #tpu.memory_space<vmem>>, %arg14: memref<1x32xf32, #tpu.memory_space<vmem>>, %arg15: memref<1x32xf32, #tpu.memory_space<vmem>>, %arg16: memref<1x32xf32, #tpu.memory_space<vmem>>, %arg17: memref<32x96xf32, #tpu.memory_space<vmem>>, %arg18: memref<1x96xf32, #tpu.memory_space<vmem>>, %arg19: memref<32x32xf32, #tpu.memory_space<vmem>>, %arg20: memref<1x32xf32, #tpu.memory_space<vmem>>, %arg21: memref<1x32xf32, #tpu.memory_space<vmem>>, %arg22: memref<1x32xf32, #tpu.memory_space<vmem>>, %arg23: memref<32x64xf32, #tpu.memory_space<vmem>>, %arg24: memref<1x64xf32, #tpu.memory_space<vmem>>, %arg25: memref<64x32xf32, #tpu.memory_space<vmem>>, %arg26: memref<1x32xf32, #tpu.memory_space<vmem>>, %arg27: memref<1x32xf32, #tpu.memory_space<vmem>>, %arg28: memref<1x32xf32, #tpu.memory_space<vmem>>, %arg29: memref<32x128xf32, #tpu.memory_space<vmem>>, %arg30: memref<1x128xf32, #tpu.memory_space<vmem>>, %arg31: memref<2x128xf32, #tpu.memory_space<vmem>>, %arg32: memref<8x2x128xf32, #tpu.memory_space<vmem>>) attributes {dimension_semantics = [#tpu.dimension_semantics<parallel>], iteration_bounds = array<i64: 2>, scalar_prefetch = 0 : i64, scratch_operands = 0 : i64, tpu.core_type = #tpu.core_type<tc>, window_params = [{transform_indices = @transform_0, window_bounds = array<i64: 8, 2, 8>}, {transform_indices = @transform_1, window_bounds = array<i64: 8, 32>}, {pipeline_mode = #tpu.pipeline_mode<synchronous>, transform_indices = @transform_2, window_bounds = array<i64: 8, 32>}, {pipeline_mode = #tpu.pipeline_mode<synchronous>, transform_indices = @transform_3, window_bounds = array<i64: 1, 32>}, {pipeline_mode = #tpu.pipeline_mode<synchronous>, transform_indices = @transform_4, window_bounds = array<i64: 32, 96>}, {pipeline_mode = #tpu.pipeline_mode<synchronous>, transform_indices = @transform_5, window_bounds = array<i64: 1, 96>}, {pipeline_mode = #tpu.pipeline_mode<synchronous>, transform_indices = @transform_6, window_bounds = array<i64: 32, 32>}, {pipeline_mode = #tpu.pipeline_mode<synchronous>, transform_indices = @transform_7, window_bounds = array<i64: 1, 32>}, {pipeline_mode = #tpu.pipeline_mode<synchronous>, transform_indices = @transform_8, window_bounds = array<i64: 1, 32>}, {pipeline_mode = #tpu.pipeline_mode<synchronous>, transform_indices = @transform_9, window_bounds = array<i64: 1, 32>}, {pipeline_mode = #tpu.pipeline_mode<synchronous>, transform_indices = @transform_10, window_bounds = array<i64: 32, 64>}, {pipeline_mode = #tpu.pipeline_mode<synchronous>, transform_indices = @transform_11, window_bounds = array<i64: 1, 64>}, {pipeline_mode = #tpu.pipeline_mode<synchronous>, transform_indices = @transform_12, window_bounds = array<i64: 64, 32>}, {pipeline_mode = #tpu.pipeline_mode<synchronous>, transform_indices = @transform_13, window_bounds = array<i64: 1, 32>}, {pipeline_mode = #tpu.pipeline_mode<synchronous>, transform_indices = @transform_14, window_bounds = array<i64: 1, 32>}, {pipeline_mode = #tpu.pipeline_mode<synchronous>, transform_indices = @transform_15, window_bounds = array<i64: 1, 32>}, {pipeline_mode = #tpu.pipeline_mode<synchronous>, transform_indices = @transform_16, window_bounds = array<i64: 32, 96>}, {pipeline_mode = #tpu.pipeline_mode<synchronous>, transform_indices = @transform_17, window_bounds = array<i64: 1, 96>}, {pipeline_mode = #tpu.pipeline_mode<synchronous>, transform_indices = @transform_18, window_bounds = array<i64: 32, 32>}, {pipeline_mode = #tpu.pipeline_mode<synchronous>, transform_indices = @transform_19, window_bounds = array<i64: 1, 32>}, {pipeline_mode = #tpu.pipeline_mode<synchronous>, transform_indices = @transform_20, window_bounds = array<i64: 1, 32>}, {pipeline_mode = #tpu.pipeline_mode<synchronous>, transform_indices = @transform_21, window_bounds = array<i64: 1, 32>}, {pipeline_mode = #tpu.pipeline_mode<synchronous>, transform_indices = @transform_22, window_bounds = array<i64: 32, 64>}, {pipeline_mode = #tpu.pipeline_mode<synchronous>, transform_indices = @transform_23, window_bounds = array<i64: 1, 64>}, {pipeline_mode = #tpu.pipeline_mode<synchronous>, transform_indices = @transform_24, window_bounds = array<i64: 64, 32>}, {pipeline_mode = #tpu.pipeline_mode<synchronous>, transform_indices = @transform_25, window_bounds = array<i64: 1, 32>}, {pipeline_mode = #tpu.pipeline_mode<synchronous>, transform_indices = @transform_26, window_bounds = array<i64: 1, 32>}, {pipeline_mode = #tpu.pipeline_mode<synchronous>, transform_indices = @transform_27, window_bounds = array<i64: 1, 32>}, {pipeline_mode = #tpu.pipeline_mode<synchronous>, transform_indices = @transform_28, window_bounds = array<i64: 32, 128>}, {pipeline_mode = #tpu.pipeline_mode<synchronous>, transform_indices = @transform_29, window_bounds = array<i64: 1, 128>}, {pipeline_mode = #tpu.pipeline_mode<synchronous>, transform_indices = @transform_30, window_bounds = array<i64: 2, 128>}, {transform_indices = @transform_31, window_bounds = array<i64: 8, 2, 128>}]} {
    %c0 = arith.constant 0 : index
    %c0_0 = arith.constant 0 : index
    %c0_1 = arith.constant 0 : index
    %0 = vector.load %arg1[%c0, %c0_0, %c0_1] : memref<8x2x8xf32, #tpu.memory_space<vmem>>, vector<8x2x8xf32>
    %1 = vector.shape_cast %0 : vector<8x2x8xf32> to vector<16x8xf32>
    %c0_2 = arith.constant 0 : index
    %c0_3 = arith.constant 0 : index
    %2 = vector.load %arg3[%c0_2, %c0_3] : memref<8x32xf32, #tpu.memory_space<vmem>>, vector<8x32xf32>
    %cst = arith.constant dense<0.000000e+00> : vector<16x32xf32>
    %3 = tpu.matmul %1, %2, %cst {dimension_numbers = #tpu.dot_dimension_numbers<[1], [0], [0], [1], [0, 0, 1, 1], [], []>} : vector<16x8xf32>, vector<8x32xf32>, vector<16x32xf32> -> vector<16x32xf32>
    %c0_4 = arith.constant 0 : index
    %c0_5 = arith.constant 0 : index
    %4 = vector.load %arg4[%c0_4, %c0_5] : memref<1x32xf32, #tpu.memory_space<vmem>>, vector<1x32xf32>
    %5 = vector.broadcast %4 : vector<1x32xf32> to vector<16x32xf32>
    %6 = arith.addf %3, %5 : vector<16x32xf32>
    %7 = vector.shape_cast %6 : vector<16x32xf32> to vector<8x2x32xf32>
    %c0_6 = arith.constant 0 : index
    %c0_7 = arith.constant 0 : index
    %8 = vector.load %arg2[%c0_6, %c0_7] : memref<8x32xf32, #tpu.memory_space<vmem>>, vector<8x32xf32>
    %9 = vector.shape_cast %8 : vector<8x32xf32> to vector<8x1x32xf32>
    %10 = vector.broadcast %9 : vector<8x1x32xf32> to vector<8x2x32xf32>
    %11 = arith.addf %7, %10 : vector<8x2x32xf32>
    %12 = vector.shape_cast %11 : vector<8x2x32xf32> to vector<16x32xf32>
    %c0_8 = arith.constant 0 : index
    %c0_9 = arith.constant 0 : index
    %13 = vector.load %arg5[%c0_8, %c0_9] : memref<32x96xf32, #tpu.memory_space<vmem>>, vector<32x96xf32>
    %cst_10 = arith.constant dense<0.000000e+00> : vector<16x96xf32>
    %14 = tpu.matmul %12, %13, %cst_10 {dimension_numbers = #tpu.dot_dimension_numbers<[1], [0], [0], [1], [0, 0, 1, 1], [], []>} : vector<16x32xf32>, vector<32x96xf32>, vector<16x96xf32> -> vector<16x96xf32>
    %c0_11 = arith.constant 0 : index
    %c0_12 = arith.constant 0 : index
    %15 = vector.load %arg6[%c0_11, %c0_12] : memref<1x96xf32, #tpu.memory_space<vmem>>, vector<1x96xf32>
    %16 = vector.broadcast %15 : vector<1x96xf32> to vector<16x96xf32>
    %17 = arith.addf %14, %16 : vector<16x96xf32>
    %18 = vector.shape_cast %17 : vector<16x96xf32> to vector<8x2x96xf32>
    %19 = vector.extract_strided_slice %18 {offsets = [0, 0, 0], sizes = [8, 2, 8], strides = [1, 1, 1]} : vector<8x2x96xf32> to vector<8x2x8xf32>
    %20 = vector.extract_strided_slice %18 {offsets = [0, 0, 32], sizes = [8, 2, 8], strides = [1, 1, 1]} : vector<8x2x96xf32> to vector<8x2x8xf32>
    %21 = vector.extract_strided_slice %18 {offsets = [0, 0, 64], sizes = [8, 2, 8], strides = [1, 1, 1]} : vector<8x2x96xf32> to vector<8x2x8xf32>
    %22 = vector.shape_cast %19 : vector<8x2x8xf32> to vector<8x2x1x8xf32>
    %23 = vector.shape_cast %20 : vector<8x2x8xf32> to vector<8x1x2x8xf32>
    %24 = vector.broadcast %22 : vector<8x2x1x8xf32> to vector<8x2x2x8xf32>
    %25 = vector.broadcast %23 : vector<8x1x2x8xf32> to vector<8x2x2x8xf32>
    %26 = arith.mulf %24, %25 : vector<8x2x2x8xf32>
    %cst_13 = arith.constant dense<0.000000e+00> : vector<8x2x2xf32>
    %27 = vector.multi_reduction <add>, %26, %cst_13 [3] : vector<8x2x2x8xf32> to vector<8x2x2xf32>
    %cst_14 = arith.constant 0.353553385 : f32
    %28 = vector.broadcast %cst_14 : f32 to vector<8x2x2xf32>
    %29 = arith.mulf %27, %28 : vector<8x2x2xf32>
    %cst_15 = arith.constant dense<0xFF800000> : vector<8x2xf32>
    %30 = vector.multi_reduction <maximumf>, %29, %cst_15 [2] : vector<8x2x2xf32> to vector<8x2xf32>
    %31 = vector.shape_cast %30 : vector<8x2xf32> to vector<8x2x1xf32>
    %32 = vector.broadcast %31 : vector<8x2x1xf32> to vector<8x2x2xf32>
    %33 = arith.subf %29, %32 : vector<8x2x2xf32>
    %34 = math.exp %33 : vector<8x2x2xf32>
    %cst_16 = arith.constant dense<0.000000e+00> : vector<8x2xf32>
    %35 = vector.multi_reduction <add>, %34, %cst_16 [2] : vector<8x2x2xf32> to vector<8x2xf32>
    %36 = vector.shape_cast %35 : vector<8x2xf32> to vector<8x2x1xf32>
    %37 = vector.broadcast %36 : vector<8x2x1xf32> to vector<8x2x2xf32>
    %38 = arith.divf %34, %37 : vector<8x2x2xf32>
    %39 = vector.shape_cast %38 : vector<8x2x2xf32> to vector<8x2x2x1xf32>
    %40 = vector.shape_cast %21 : vector<8x2x8xf32> to vector<8x1x2x8xf32>
    %41 = vector.broadcast %39 : vector<8x2x2x1xf32> to vector<8x2x2x8xf32>
    %42 = vector.broadcast %40 : vector<8x1x2x8xf32> to vector<8x2x2x8xf32>
    %43 = arith.mulf %41, %42 : vector<8x2x2x8xf32>
    %cst_17 = arith.constant dense<0.000000e+00> : vector<8x2x8xf32>
    %44 = vector.multi_reduction <add>, %43, %cst_17 [2] : vector<8x2x2x8xf32> to vector<8x2x8xf32>
    %45 = vector.extract_strided_slice %18 {offsets = [0, 0, 8], sizes = [8, 2, 8], strides = [1, 1, 1]} : vector<8x2x96xf32> to vector<8x2x8xf32>
    %46 = vector.extract_strided_slice %18 {offsets = [0, 0, 40], sizes = [8, 2, 8], strides = [1, 1, 1]} : vector<8x2x96xf32> to vector<8x2x8xf32>
    %47 = vector.extract_strided_slice %18 {offsets = [0, 0, 72], sizes = [8, 2, 8], strides = [1, 1, 1]} : vector<8x2x96xf32> to vector<8x2x8xf32>
    %48 = vector.shape_cast %45 : vector<8x2x8xf32> to vector<8x2x1x8xf32>
    %49 = vector.shape_cast %46 : vector<8x2x8xf32> to vector<8x1x2x8xf32>
    %50 = vector.broadcast %48 : vector<8x2x1x8xf32> to vector<8x2x2x8xf32>
    %51 = vector.broadcast %49 : vector<8x1x2x8xf32> to vector<8x2x2x8xf32>
    %52 = arith.mulf %50, %51 : vector<8x2x2x8xf32>
    %cst_18 = arith.constant dense<0.000000e+00> : vector<8x2x2xf32>
    %53 = vector.multi_reduction <add>, %52, %cst_18 [3] : vector<8x2x2x8xf32> to vector<8x2x2xf32>
    %cst_19 = arith.constant 0.353553385 : f32
    %54 = vector.broadcast %cst_19 : f32 to vector<8x2x2xf32>
    %55 = arith.mulf %53, %54 : vector<8x2x2xf32>
    %cst_20 = arith.constant dense<0xFF800000> : vector<8x2xf32>
    %56 = vector.multi_reduction <maximumf>, %55, %cst_20 [2] : vector<8x2x2xf32> to vector<8x2xf32>
    %57 = vector.shape_cast %56 : vector<8x2xf32> to vector<8x2x1xf32>
    %58 = vector.broadcast %57 : vector<8x2x1xf32> to vector<8x2x2xf32>
    %59 = arith.subf %55, %58 : vector<8x2x2xf32>
    %60 = math.exp %59 : vector<8x2x2xf32>
    %cst_21 = arith.constant dense<0.000000e+00> : vector<8x2xf32>
    %61 = vector.multi_reduction <add>, %60, %cst_21 [2] : vector<8x2x2xf32> to vector<8x2xf32>
    %62 = vector.shape_cast %61 : vector<8x2xf32> to vector<8x2x1xf32>
    %63 = vector.broadcast %62 : vector<8x2x1xf32> to vector<8x2x2xf32>
    %64 = arith.divf %60, %63 : vector<8x2x2xf32>
    %65 = vector.shape_cast %64 : vector<8x2x2xf32> to vector<8x2x2x1xf32>
    %66 = vector.shape_cast %47 : vector<8x2x8xf32> to vector<8x1x2x8xf32>
    %67 = vector.broadcast %65 : vector<8x2x2x1xf32> to vector<8x2x2x8xf32>
    %68 = vector.broadcast %66 : vector<8x1x2x8xf32> to vector<8x2x2x8xf32>
    %69 = arith.mulf %67, %68 : vector<8x2x2x8xf32>
    %cst_22 = arith.constant dense<0.000000e+00> : vector<8x2x8xf32>
    %70 = vector.multi_reduction <add>, %69, %cst_22 [2] : vector<8x2x2x8xf32> to vector<8x2x8xf32>
    %71 = vector.extract_strided_slice %18 {offsets = [0, 0, 16], sizes = [8, 2, 8], strides = [1, 1, 1]} : vector<8x2x96xf32> to vector<8x2x8xf32>
    %72 = vector.extract_strided_slice %18 {offsets = [0, 0, 48], sizes = [8, 2, 8], strides = [1, 1, 1]} : vector<8x2x96xf32> to vector<8x2x8xf32>
    %73 = vector.extract_strided_slice %18 {offsets = [0, 0, 80], sizes = [8, 2, 8], strides = [1, 1, 1]} : vector<8x2x96xf32> to vector<8x2x8xf32>
    %74 = vector.shape_cast %71 : vector<8x2x8xf32> to vector<8x2x1x8xf32>
    %75 = vector.shape_cast %72 : vector<8x2x8xf32> to vector<8x1x2x8xf32>
    %76 = vector.broadcast %74 : vector<8x2x1x8xf32> to vector<8x2x2x8xf32>
    %77 = vector.broadcast %75 : vector<8x1x2x8xf32> to vector<8x2x2x8xf32>
    %78 = arith.mulf %76, %77 : vector<8x2x2x8xf32>
    %cst_23 = arith.constant dense<0.000000e+00> : vector<8x2x2xf32>
    %79 = vector.multi_reduction <add>, %78, %cst_23 [3] : vector<8x2x2x8xf32> to vector<8x2x2xf32>
    %cst_24 = arith.constant 0.353553385 : f32
    %80 = vector.broadcast %cst_24 : f32 to vector<8x2x2xf32>
    %81 = arith.mulf %79, %80 : vector<8x2x2xf32>
    %cst_25 = arith.constant dense<0xFF800000> : vector<8x2xf32>
    %82 = vector.multi_reduction <maximumf>, %81, %cst_25 [2] : vector<8x2x2xf32> to vector<8x2xf32>
    %83 = vector.shape_cast %82 : vector<8x2xf32> to vector<8x2x1xf32>
    %84 = vector.broadcast %83 : vector<8x2x1xf32> to vector<8x2x2xf32>
    %85 = arith.subf %81, %84 : vector<8x2x2xf32>
    %86 = math.exp %85 : vector<8x2x2xf32>
    %cst_26 = arith.constant dense<0.000000e+00> : vector<8x2xf32>
    %87 = vector.multi_reduction <add>, %86, %cst_26 [2] : vector<8x2x2xf32> to vector<8x2xf32>
    %88 = vector.shape_cast %87 : vector<8x2xf32> to vector<8x2x1xf32>
    %89 = vector.broadcast %88 : vector<8x2x1xf32> to vector<8x2x2xf32>
    %90 = arith.divf %86, %89 : vector<8x2x2xf32>
    %91 = vector.shape_cast %90 : vector<8x2x2xf32> to vector<8x2x2x1xf32>
    %92 = vector.shape_cast %73 : vector<8x2x8xf32> to vector<8x1x2x8xf32>
    %93 = vector.broadcast %91 : vector<8x2x2x1xf32> to vector<8x2x2x8xf32>
    %94 = vector.broadcast %92 : vector<8x1x2x8xf32> to vector<8x2x2x8xf32>
    %95 = arith.mulf %93, %94 : vector<8x2x2x8xf32>
    %cst_27 = arith.constant dense<0.000000e+00> : vector<8x2x8xf32>
    %96 = vector.multi_reduction <add>, %95, %cst_27 [2] : vector<8x2x2x8xf32> to vector<8x2x8xf32>
    %97 = vector.extract_strided_slice %18 {offsets = [0, 0, 24], sizes = [8, 2, 8], strides = [1, 1, 1]} : vector<8x2x96xf32> to vector<8x2x8xf32>
    %98 = vector.extract_strided_slice %18 {offsets = [0, 0, 56], sizes = [8, 2, 8], strides = [1, 1, 1]} : vector<8x2x96xf32> to vector<8x2x8xf32>
    %99 = vector.extract_strided_slice %18 {offsets = [0, 0, 88], sizes = [8, 2, 8], strides = [1, 1, 1]} : vector<8x2x96xf32> to vector<8x2x8xf32>
    %100 = vector.shape_cast %97 : vector<8x2x8xf32> to vector<8x2x1x8xf32>
    %101 = vector.shape_cast %98 : vector<8x2x8xf32> to vector<8x1x2x8xf32>
    %102 = vector.broadcast %100 : vector<8x2x1x8xf32> to vector<8x2x2x8xf32>
    %103 = vector.broadcast %101 : vector<8x1x2x8xf32> to vector<8x2x2x8xf32>
    %104 = arith.mulf %102, %103 : vector<8x2x2x8xf32>
    %cst_28 = arith.constant dense<0.000000e+00> : vector<8x2x2xf32>
    %105 = vector.multi_reduction <add>, %104, %cst_28 [3] : vector<8x2x2x8xf32> to vector<8x2x2xf32>
    %cst_29 = arith.constant 0.353553385 : f32
    %106 = vector.broadcast %cst_29 : f32 to vector<8x2x2xf32>
    %107 = arith.mulf %105, %106 : vector<8x2x2xf32>
    %cst_30 = arith.constant dense<0xFF800000> : vector<8x2xf32>
    %108 = vector.multi_reduction <maximumf>, %107, %cst_30 [2] : vector<8x2x2xf32> to vector<8x2xf32>
    %109 = vector.shape_cast %108 : vector<8x2xf32> to vector<8x2x1xf32>
    %110 = vector.broadcast %109 : vector<8x2x1xf32> to vector<8x2x2xf32>
    %111 = arith.subf %107, %110 : vector<8x2x2xf32>
    %112 = math.exp %111 : vector<8x2x2xf32>
    %cst_31 = arith.constant dense<0.000000e+00> : vector<8x2xf32>
    %113 = vector.multi_reduction <add>, %112, %cst_31 [2] : vector<8x2x2xf32> to vector<8x2xf32>
    %114 = vector.shape_cast %113 : vector<8x2xf32> to vector<8x2x1xf32>
    %115 = vector.broadcast %114 : vector<8x2x1xf32> to vector<8x2x2xf32>
    %116 = arith.divf %112, %115 : vector<8x2x2xf32>
    %117 = vector.shape_cast %116 : vector<8x2x2xf32> to vector<8x2x2x1xf32>
    %118 = vector.shape_cast %99 : vector<8x2x8xf32> to vector<8x1x2x8xf32>
    %119 = vector.broadcast %117 : vector<8x2x2x1xf32> to vector<8x2x2x8xf32>
    %120 = vector.broadcast %118 : vector<8x1x2x8xf32> to vector<8x2x2x8xf32>
    %121 = arith.mulf %119, %120 : vector<8x2x2x8xf32>
    %cst_32 = arith.constant dense<0.000000e+00> : vector<8x2x8xf32>
    %122 = vector.multi_reduction <add>, %121, %cst_32 [2] : vector<8x2x2x8xf32> to vector<8x2x8xf32>
    %123 = tpu.concatenate %44, %70, %96, %122 in 2 : vector<8x2x8xf32>, vector<8x2x8xf32>, vector<8x2x8xf32>, vector<8x2x8xf32> -> vector<8x2x32xf32>
    %124 = vector.shape_cast %123 : vector<8x2x32xf32> to vector<16x32xf32>
    %c0_33 = arith.constant 0 : index
    %c0_34 = arith.constant 0 : index
    %125 = vector.load %arg7[%c0_33, %c0_34] : memref<32x32xf32, #tpu.memory_space<vmem>>, vector<32x32xf32>
    %cst_35 = arith.constant dense<0.000000e+00> : vector<16x32xf32>
    %126 = tpu.matmul %124, %125, %cst_35 {dimension_numbers = #tpu.dot_dimension_numbers<[1], [0], [0], [1], [0, 0, 1, 1], [], []>} : vector<16x32xf32>, vector<32x32xf32>, vector<16x32xf32> -> vector<16x32xf32>
    %c0_36 = arith.constant 0 : index
    %c0_37 = arith.constant 0 : index
    %127 = vector.load %arg8[%c0_36, %c0_37] : memref<1x32xf32, #tpu.memory_space<vmem>>, vector<1x32xf32>
    %128 = vector.broadcast %127 : vector<1x32xf32> to vector<16x32xf32>
    %129 = arith.addf %126, %128 : vector<16x32xf32>
    %130 = arith.addf %12, %129 : vector<16x32xf32>
    %cst_38 = arith.constant dense<0.000000e+00> : vector<16xf32>
    %131 = vector.multi_reduction <add>, %130, %cst_38 [1] : vector<16x32xf32> to vector<16xf32>
    %132 = vector.shape_cast %131 : vector<16xf32> to vector<16x1xf32>
    %cst_39 = arith.constant 3.200000e+01 : f32
    %133 = vector.broadcast %cst_39 : f32 to vector<16x1xf32>
    %134 = arith.divf %132, %133 : vector<16x1xf32>
    %135 = vector.broadcast %134 : vector<16x1xf32> to vector<16x32xf32>
    %136 = arith.subf %130, %135 : vector<16x32xf32>
    %137 = arith.mulf %136, %136 : vector<16x32xf32>
    %cst_40 = arith.constant dense<0.000000e+00> : vector<16xf32>
    %138 = vector.multi_reduction <add>, %137, %cst_40 [1] : vector<16x32xf32> to vector<16xf32>
    %139 = vector.shape_cast %138 : vector<16xf32> to vector<16x1xf32>
    %cst_41 = arith.constant 3.200000e+01 : f32
    %140 = vector.broadcast %cst_41 : f32 to vector<16x1xf32>
    %141 = arith.divf %139, %140 : vector<16x1xf32>
    %cst_42 = arith.constant 9.99999974E-6 : f32
    %142 = vector.broadcast %cst_42 : f32 to vector<16x1xf32>
    %143 = arith.addf %141, %142 : vector<16x1xf32>
    %144 = math.rsqrt %143 : vector<16x1xf32>
    %145 = vector.broadcast %144 : vector<16x1xf32> to vector<16x32xf32>
    %146 = arith.mulf %136, %145 : vector<16x32xf32>
    %c0_43 = arith.constant 0 : index
    %c0_44 = arith.constant 0 : index
    %147 = vector.load %arg9[%c0_43, %c0_44] : memref<1x32xf32, #tpu.memory_space<vmem>>, vector<1x32xf32>
    %148 = vector.broadcast %147 : vector<1x32xf32> to vector<16x32xf32>
    %149 = arith.mulf %146, %148 : vector<16x32xf32>
    %c0_45 = arith.constant 0 : index
    %c0_46 = arith.constant 0 : index
    %150 = vector.load %arg10[%c0_45, %c0_46] : memref<1x32xf32, #tpu.memory_space<vmem>>, vector<1x32xf32>
    %151 = vector.broadcast %150 : vector<1x32xf32> to vector<16x32xf32>
    %152 = arith.addf %149, %151 : vector<16x32xf32>
    %c0_47 = arith.constant 0 : index
    %c0_48 = arith.constant 0 : index
    %153 = vector.load %arg11[%c0_47, %c0_48] : memref<32x64xf32, #tpu.memory_space<vmem>>, vector<32x64xf32>
    %cst_49 = arith.constant dense<0.000000e+00> : vector<16x64xf32>
    %154 = tpu.matmul %152, %153, %cst_49 {dimension_numbers = #tpu.dot_dimension_numbers<[1], [0], [0], [1], [0, 0, 1, 1], [], []>} : vector<16x32xf32>, vector<32x64xf32>, vector<16x64xf32> -> vector<16x64xf32>
    %c0_50 = arith.constant 0 : index
    %c0_51 = arith.constant 0 : index
    %155 = vector.load %arg12[%c0_50, %c0_51] : memref<1x64xf32, #tpu.memory_space<vmem>>, vector<1x64xf32>
    %156 = vector.broadcast %155 : vector<1x64xf32> to vector<16x64xf32>
    %157 = arith.addf %154, %156 : vector<16x64xf32>
    %cst_52 = arith.constant 0.000000e+00 : f32
    %158 = vector.broadcast %cst_52 : f32 to vector<16x64xf32>
    %159 = arith.maximumf %157, %158 : vector<16x64xf32>
    %c0_53 = arith.constant 0 : index
    %c0_54 = arith.constant 0 : index
    %160 = vector.load %arg13[%c0_53, %c0_54] : memref<64x32xf32, #tpu.memory_space<vmem>>, vector<64x32xf32>
    %cst_55 = arith.constant dense<0.000000e+00> : vector<16x32xf32>
    %161 = tpu.matmul %159, %160, %cst_55 {dimension_numbers = #tpu.dot_dimension_numbers<[1], [0], [0], [1], [0, 0, 1, 1], [], []>} : vector<16x64xf32>, vector<64x32xf32>, vector<16x32xf32> -> vector<16x32xf32>
    %c0_56 = arith.constant 0 : index
    %c0_57 = arith.constant 0 : index
    %162 = vector.load %arg14[%c0_56, %c0_57] : memref<1x32xf32, #tpu.memory_space<vmem>>, vector<1x32xf32>
    %163 = vector.broadcast %162 : vector<1x32xf32> to vector<16x32xf32>
    %164 = arith.addf %161, %163 : vector<16x32xf32>
    %165 = arith.addf %152, %164 : vector<16x32xf32>
    %cst_58 = arith.constant dense<0.000000e+00> : vector<16xf32>
    %166 = vector.multi_reduction <add>, %165, %cst_58 [1] : vector<16x32xf32> to vector<16xf32>
    %167 = vector.shape_cast %166 : vector<16xf32> to vector<16x1xf32>
    %cst_59 = arith.constant 3.200000e+01 : f32
    %168 = vector.broadcast %cst_59 : f32 to vector<16x1xf32>
    %169 = arith.divf %167, %168 : vector<16x1xf32>
    %170 = vector.broadcast %169 : vector<16x1xf32> to vector<16x32xf32>
    %171 = arith.subf %165, %170 : vector<16x32xf32>
    %172 = arith.mulf %171, %171 : vector<16x32xf32>
    %cst_60 = arith.constant dense<0.000000e+00> : vector<16xf32>
    %173 = vector.multi_reduction <add>, %172, %cst_60 [1] : vector<16x32xf32> to vector<16xf32>
    %174 = vector.shape_cast %173 : vector<16xf32> to vector<16x1xf32>
    %cst_61 = arith.constant 3.200000e+01 : f32
    %175 = vector.broadcast %cst_61 : f32 to vector<16x1xf32>
    %176 = arith.divf %174, %175 : vector<16x1xf32>
    %cst_62 = arith.constant 9.99999974E-6 : f32
    %177 = vector.broadcast %cst_62 : f32 to vector<16x1xf32>
    %178 = arith.addf %176, %177 : vector<16x1xf32>
    %179 = math.rsqrt %178 : vector<16x1xf32>
    %180 = vector.broadcast %179 : vector<16x1xf32> to vector<16x32xf32>
    %181 = arith.mulf %171, %180 : vector<16x32xf32>
    %c0_63 = arith.constant 0 : index
    %c0_64 = arith.constant 0 : index
    %182 = vector.load %arg15[%c0_63, %c0_64] : memref<1x32xf32, #tpu.memory_space<vmem>>, vector<1x32xf32>
    %183 = vector.broadcast %182 : vector<1x32xf32> to vector<16x32xf32>
    %184 = arith.mulf %181, %183 : vector<16x32xf32>
    %c0_65 = arith.constant 0 : index
    %c0_66 = arith.constant 0 : index
    %185 = vector.load %arg16[%c0_65, %c0_66] : memref<1x32xf32, #tpu.memory_space<vmem>>, vector<1x32xf32>
    %186 = vector.broadcast %185 : vector<1x32xf32> to vector<16x32xf32>
    %187 = arith.addf %184, %186 : vector<16x32xf32>
    %c0_67 = arith.constant 0 : index
    %c0_68 = arith.constant 0 : index
    %188 = vector.load %arg17[%c0_67, %c0_68] : memref<32x96xf32, #tpu.memory_space<vmem>>, vector<32x96xf32>
    %cst_69 = arith.constant dense<0.000000e+00> : vector<16x96xf32>
    %189 = tpu.matmul %187, %188, %cst_69 {dimension_numbers = #tpu.dot_dimension_numbers<[1], [0], [0], [1], [0, 0, 1, 1], [], []>} : vector<16x32xf32>, vector<32x96xf32>, vector<16x96xf32> -> vector<16x96xf32>
    %c0_70 = arith.constant 0 : index
    %c0_71 = arith.constant 0 : index
    %190 = vector.load %arg18[%c0_70, %c0_71] : memref<1x96xf32, #tpu.memory_space<vmem>>, vector<1x96xf32>
    %191 = vector.broadcast %190 : vector<1x96xf32> to vector<16x96xf32>
    %192 = arith.addf %189, %191 : vector<16x96xf32>
    %193 = vector.shape_cast %192 : vector<16x96xf32> to vector<8x2x96xf32>
    %194 = vector.extract_strided_slice %193 {offsets = [0, 0, 0], sizes = [8, 2, 8], strides = [1, 1, 1]} : vector<8x2x96xf32> to vector<8x2x8xf32>
    %195 = vector.extract_strided_slice %193 {offsets = [0, 0, 32], sizes = [8, 2, 8], strides = [1, 1, 1]} : vector<8x2x96xf32> to vector<8x2x8xf32>
    %196 = vector.extract_strided_slice %193 {offsets = [0, 0, 64], sizes = [8, 2, 8], strides = [1, 1, 1]} : vector<8x2x96xf32> to vector<8x2x8xf32>
    %197 = vector.shape_cast %194 : vector<8x2x8xf32> to vector<8x2x1x8xf32>
    %198 = vector.shape_cast %195 : vector<8x2x8xf32> to vector<8x1x2x8xf32>
    %199 = vector.broadcast %197 : vector<8x2x1x8xf32> to vector<8x2x2x8xf32>
    %200 = vector.broadcast %198 : vector<8x1x2x8xf32> to vector<8x2x2x8xf32>
    %201 = arith.mulf %199, %200 : vector<8x2x2x8xf32>
    %cst_72 = arith.constant dense<0.000000e+00> : vector<8x2x2xf32>
    %202 = vector.multi_reduction <add>, %201, %cst_72 [3] : vector<8x2x2x8xf32> to vector<8x2x2xf32>
    %cst_73 = arith.constant 0.353553385 : f32
    %203 = vector.broadcast %cst_73 : f32 to vector<8x2x2xf32>
    %204 = arith.mulf %202, %203 : vector<8x2x2xf32>
    %cst_74 = arith.constant dense<0xFF800000> : vector<8x2xf32>
    %205 = vector.multi_reduction <maximumf>, %204, %cst_74 [2] : vector<8x2x2xf32> to vector<8x2xf32>
    %206 = vector.shape_cast %205 : vector<8x2xf32> to vector<8x2x1xf32>
    %207 = vector.broadcast %206 : vector<8x2x1xf32> to vector<8x2x2xf32>
    %208 = arith.subf %204, %207 : vector<8x2x2xf32>
    %209 = math.exp %208 : vector<8x2x2xf32>
    %cst_75 = arith.constant dense<0.000000e+00> : vector<8x2xf32>
    %210 = vector.multi_reduction <add>, %209, %cst_75 [2] : vector<8x2x2xf32> to vector<8x2xf32>
    %211 = vector.shape_cast %210 : vector<8x2xf32> to vector<8x2x1xf32>
    %212 = vector.broadcast %211 : vector<8x2x1xf32> to vector<8x2x2xf32>
    %213 = arith.divf %209, %212 : vector<8x2x2xf32>
    %214 = vector.shape_cast %213 : vector<8x2x2xf32> to vector<8x2x2x1xf32>
    %215 = vector.shape_cast %196 : vector<8x2x8xf32> to vector<8x1x2x8xf32>
    %216 = vector.broadcast %214 : vector<8x2x2x1xf32> to vector<8x2x2x8xf32>
    %217 = vector.broadcast %215 : vector<8x1x2x8xf32> to vector<8x2x2x8xf32>
    %218 = arith.mulf %216, %217 : vector<8x2x2x8xf32>
    %cst_76 = arith.constant dense<0.000000e+00> : vector<8x2x8xf32>
    %219 = vector.multi_reduction <add>, %218, %cst_76 [2] : vector<8x2x2x8xf32> to vector<8x2x8xf32>
    %220 = vector.extract_strided_slice %193 {offsets = [0, 0, 8], sizes = [8, 2, 8], strides = [1, 1, 1]} : vector<8x2x96xf32> to vector<8x2x8xf32>
    %221 = vector.extract_strided_slice %193 {offsets = [0, 0, 40], sizes = [8, 2, 8], strides = [1, 1, 1]} : vector<8x2x96xf32> to vector<8x2x8xf32>
    %222 = vector.extract_strided_slice %193 {offsets = [0, 0, 72], sizes = [8, 2, 8], strides = [1, 1, 1]} : vector<8x2x96xf32> to vector<8x2x8xf32>
    %223 = vector.shape_cast %220 : vector<8x2x8xf32> to vector<8x2x1x8xf32>
    %224 = vector.shape_cast %221 : vector<8x2x8xf32> to vector<8x1x2x8xf32>
    %225 = vector.broadcast %223 : vector<8x2x1x8xf32> to vector<8x2x2x8xf32>
    %226 = vector.broadcast %224 : vector<8x1x2x8xf32> to vector<8x2x2x8xf32>
    %227 = arith.mulf %225, %226 : vector<8x2x2x8xf32>
    %cst_77 = arith.constant dense<0.000000e+00> : vector<8x2x2xf32>
    %228 = vector.multi_reduction <add>, %227, %cst_77 [3] : vector<8x2x2x8xf32> to vector<8x2x2xf32>
    %cst_78 = arith.constant 0.353553385 : f32
    %229 = vector.broadcast %cst_78 : f32 to vector<8x2x2xf32>
    %230 = arith.mulf %228, %229 : vector<8x2x2xf32>
    %cst_79 = arith.constant dense<0xFF800000> : vector<8x2xf32>
    %231 = vector.multi_reduction <maximumf>, %230, %cst_79 [2] : vector<8x2x2xf32> to vector<8x2xf32>
    %232 = vector.shape_cast %231 : vector<8x2xf32> to vector<8x2x1xf32>
    %233 = vector.broadcast %232 : vector<8x2x1xf32> to vector<8x2x2xf32>
    %234 = arith.subf %230, %233 : vector<8x2x2xf32>
    %235 = math.exp %234 : vector<8x2x2xf32>
    %cst_80 = arith.constant dense<0.000000e+00> : vector<8x2xf32>
    %236 = vector.multi_reduction <add>, %235, %cst_80 [2] : vector<8x2x2xf32> to vector<8x2xf32>
    %237 = vector.shape_cast %236 : vector<8x2xf32> to vector<8x2x1xf32>
    %238 = vector.broadcast %237 : vector<8x2x1xf32> to vector<8x2x2xf32>
    %239 = arith.divf %235, %238 : vector<8x2x2xf32>
    %240 = vector.shape_cast %239 : vector<8x2x2xf32> to vector<8x2x2x1xf32>
    %241 = vector.shape_cast %222 : vector<8x2x8xf32> to vector<8x1x2x8xf32>
    %242 = vector.broadcast %240 : vector<8x2x2x1xf32> to vector<8x2x2x8xf32>
    %243 = vector.broadcast %241 : vector<8x1x2x8xf32> to vector<8x2x2x8xf32>
    %244 = arith.mulf %242, %243 : vector<8x2x2x8xf32>
    %cst_81 = arith.constant dense<0.000000e+00> : vector<8x2x8xf32>
    %245 = vector.multi_reduction <add>, %244, %cst_81 [2] : vector<8x2x2x8xf32> to vector<8x2x8xf32>
    %246 = vector.extract_strided_slice %193 {offsets = [0, 0, 16], sizes = [8, 2, 8], strides = [1, 1, 1]} : vector<8x2x96xf32> to vector<8x2x8xf32>
    %247 = vector.extract_strided_slice %193 {offsets = [0, 0, 48], sizes = [8, 2, 8], strides = [1, 1, 1]} : vector<8x2x96xf32> to vector<8x2x8xf32>
    %248 = vector.extract_strided_slice %193 {offsets = [0, 0, 80], sizes = [8, 2, 8], strides = [1, 1, 1]} : vector<8x2x96xf32> to vector<8x2x8xf32>
    %249 = vector.shape_cast %246 : vector<8x2x8xf32> to vector<8x2x1x8xf32>
    %250 = vector.shape_cast %247 : vector<8x2x8xf32> to vector<8x1x2x8xf32>
    %251 = vector.broadcast %249 : vector<8x2x1x8xf32> to vector<8x2x2x8xf32>
    %252 = vector.broadcast %250 : vector<8x1x2x8xf32> to vector<8x2x2x8xf32>
    %253 = arith.mulf %251, %252 : vector<8x2x2x8xf32>
    %cst_82 = arith.constant dense<0.000000e+00> : vector<8x2x2xf32>
    %254 = vector.multi_reduction <add>, %253, %cst_82 [3] : vector<8x2x2x8xf32> to vector<8x2x2xf32>
    %cst_83 = arith.constant 0.353553385 : f32
    %255 = vector.broadcast %cst_83 : f32 to vector<8x2x2xf32>
    %256 = arith.mulf %254, %255 : vector<8x2x2xf32>
    %cst_84 = arith.constant dense<0xFF800000> : vector<8x2xf32>
    %257 = vector.multi_reduction <maximumf>, %256, %cst_84 [2] : vector<8x2x2xf32> to vector<8x2xf32>
    %258 = vector.shape_cast %257 : vector<8x2xf32> to vector<8x2x1xf32>
    %259 = vector.broadcast %258 : vector<8x2x1xf32> to vector<8x2x2xf32>
    %260 = arith.subf %256, %259 : vector<8x2x2xf32>
    %261 = math.exp %260 : vector<8x2x2xf32>
    %cst_85 = arith.constant dense<0.000000e+00> : vector<8x2xf32>
    %262 = vector.multi_reduction <add>, %261, %cst_85 [2] : vector<8x2x2xf32> to vector<8x2xf32>
    %263 = vector.shape_cast %262 : vector<8x2xf32> to vector<8x2x1xf32>
    %264 = vector.broadcast %263 : vector<8x2x1xf32> to vector<8x2x2xf32>
    %265 = arith.divf %261, %264 : vector<8x2x2xf32>
    %266 = vector.shape_cast %265 : vector<8x2x2xf32> to vector<8x2x2x1xf32>
    %267 = vector.shape_cast %248 : vector<8x2x8xf32> to vector<8x1x2x8xf32>
    %268 = vector.broadcast %266 : vector<8x2x2x1xf32> to vector<8x2x2x8xf32>
    %269 = vector.broadcast %267 : vector<8x1x2x8xf32> to vector<8x2x2x8xf32>
    %270 = arith.mulf %268, %269 : vector<8x2x2x8xf32>
    %cst_86 = arith.constant dense<0.000000e+00> : vector<8x2x8xf32>
    %271 = vector.multi_reduction <add>, %270, %cst_86 [2] : vector<8x2x2x8xf32> to vector<8x2x8xf32>
    %272 = vector.extract_strided_slice %193 {offsets = [0, 0, 24], sizes = [8, 2, 8], strides = [1, 1, 1]} : vector<8x2x96xf32> to vector<8x2x8xf32>
    %273 = vector.extract_strided_slice %193 {offsets = [0, 0, 56], sizes = [8, 2, 8], strides = [1, 1, 1]} : vector<8x2x96xf32> to vector<8x2x8xf32>
    %274 = vector.extract_strided_slice %193 {offsets = [0, 0, 88], sizes = [8, 2, 8], strides = [1, 1, 1]} : vector<8x2x96xf32> to vector<8x2x8xf32>
    %275 = vector.shape_cast %272 : vector<8x2x8xf32> to vector<8x2x1x8xf32>
    %276 = vector.shape_cast %273 : vector<8x2x8xf32> to vector<8x1x2x8xf32>
    %277 = vector.broadcast %275 : vector<8x2x1x8xf32> to vector<8x2x2x8xf32>
    %278 = vector.broadcast %276 : vector<8x1x2x8xf32> to vector<8x2x2x8xf32>
    %279 = arith.mulf %277, %278 : vector<8x2x2x8xf32>
    %cst_87 = arith.constant dense<0.000000e+00> : vector<8x2x2xf32>
    %280 = vector.multi_reduction <add>, %279, %cst_87 [3] : vector<8x2x2x8xf32> to vector<8x2x2xf32>
    %cst_88 = arith.constant 0.353553385 : f32
    %281 = vector.broadcast %cst_88 : f32 to vector<8x2x2xf32>
    %282 = arith.mulf %280, %281 : vector<8x2x2xf32>
    %cst_89 = arith.constant dense<0xFF800000> : vector<8x2xf32>
    %283 = vector.multi_reduction <maximumf>, %282, %cst_89 [2] : vector<8x2x2xf32> to vector<8x2xf32>
    %284 = vector.shape_cast %283 : vector<8x2xf32> to vector<8x2x1xf32>
    %285 = vector.broadcast %284 : vector<8x2x1xf32> to vector<8x2x2xf32>
    %286 = arith.subf %282, %285 : vector<8x2x2xf32>
    %287 = math.exp %286 : vector<8x2x2xf32>
    %cst_90 = arith.constant dense<0.000000e+00> : vector<8x2xf32>
    %288 = vector.multi_reduction <add>, %287, %cst_90 [2] : vector<8x2x2xf32> to vector<8x2xf32>
    %289 = vector.shape_cast %288 : vector<8x2xf32> to vector<8x2x1xf32>
    %290 = vector.broadcast %289 : vector<8x2x1xf32> to vector<8x2x2xf32>
    %291 = arith.divf %287, %290 : vector<8x2x2xf32>
    %292 = vector.shape_cast %291 : vector<8x2x2xf32> to vector<8x2x2x1xf32>
    %293 = vector.shape_cast %274 : vector<8x2x8xf32> to vector<8x1x2x8xf32>
    %294 = vector.broadcast %292 : vector<8x2x2x1xf32> to vector<8x2x2x8xf32>
    %295 = vector.broadcast %293 : vector<8x1x2x8xf32> to vector<8x2x2x8xf32>
    %296 = arith.mulf %294, %295 : vector<8x2x2x8xf32>
    %cst_91 = arith.constant dense<0.000000e+00> : vector<8x2x8xf32>
    %297 = vector.multi_reduction <add>, %296, %cst_91 [2] : vector<8x2x2x8xf32> to vector<8x2x8xf32>
    %298 = tpu.concatenate %219, %245, %271, %297 in 2 : vector<8x2x8xf32>, vector<8x2x8xf32>, vector<8x2x8xf32>, vector<8x2x8xf32> -> vector<8x2x32xf32>
    %299 = vector.shape_cast %298 : vector<8x2x32xf32> to vector<16x32xf32>
    %c0_92 = arith.constant 0 : index
    %c0_93 = arith.constant 0 : index
    %300 = vector.load %arg19[%c0_92, %c0_93] : memref<32x32xf32, #tpu.memory_space<vmem>>, vector<32x32xf32>
    %cst_94 = arith.constant dense<0.000000e+00> : vector<16x32xf32>
    %301 = tpu.matmul %299, %300, %cst_94 {dimension_numbers = #tpu.dot_dimension_numbers<[1], [0], [0], [1], [0, 0, 1, 1], [], []>} : vector<16x32xf32>, vector<32x32xf32>, vector<16x32xf32> -> vector<16x32xf32>
    %c0_95 = arith.constant 0 : index
    %c0_96 = arith.constant 0 : index
    %302 = vector.load %arg20[%c0_95, %c0_96] : memref<1x32xf32, #tpu.memory_space<vmem>>, vector<1x32xf32>
    %303 = vector.broadcast %302 : vector<1x32xf32> to vector<16x32xf32>
    %304 = arith.addf %301, %303 : vector<16x32xf32>
    %305 = arith.addf %187, %304 : vector<16x32xf32>
    %cst_97 = arith.constant dense<0.000000e+00> : vector<16xf32>
    %306 = vector.multi_reduction <add>, %305, %cst_97 [1] : vector<16x32xf32> to vector<16xf32>
    %307 = vector.shape_cast %306 : vector<16xf32> to vector<16x1xf32>
    %cst_98 = arith.constant 3.200000e+01 : f32
    %308 = vector.broadcast %cst_98 : f32 to vector<16x1xf32>
    %309 = arith.divf %307, %308 : vector<16x1xf32>
    %310 = vector.broadcast %309 : vector<16x1xf32> to vector<16x32xf32>
    %311 = arith.subf %305, %310 : vector<16x32xf32>
    %312 = arith.mulf %311, %311 : vector<16x32xf32>
    %cst_99 = arith.constant dense<0.000000e+00> : vector<16xf32>
    %313 = vector.multi_reduction <add>, %312, %cst_99 [1] : vector<16x32xf32> to vector<16xf32>
    %314 = vector.shape_cast %313 : vector<16xf32> to vector<16x1xf32>
    %cst_100 = arith.constant 3.200000e+01 : f32
    %315 = vector.broadcast %cst_100 : f32 to vector<16x1xf32>
    %316 = arith.divf %314, %315 : vector<16x1xf32>
    %cst_101 = arith.constant 9.99999974E-6 : f32
    %317 = vector.broadcast %cst_101 : f32 to vector<16x1xf32>
    %318 = arith.addf %316, %317 : vector<16x1xf32>
    %319 = math.rsqrt %318 : vector<16x1xf32>
    %320 = vector.broadcast %319 : vector<16x1xf32> to vector<16x32xf32>
    %321 = arith.mulf %311, %320 : vector<16x32xf32>
    %c0_102 = arith.constant 0 : index
    %c0_103 = arith.constant 0 : index
    %322 = vector.load %arg21[%c0_102, %c0_103] : memref<1x32xf32, #tpu.memory_space<vmem>>, vector<1x32xf32>
    %323 = vector.broadcast %322 : vector<1x32xf32> to vector<16x32xf32>
    %324 = arith.mulf %321, %323 : vector<16x32xf32>
    %c0_104 = arith.constant 0 : index
    %c0_105 = arith.constant 0 : index
    %325 = vector.load %arg22[%c0_104, %c0_105] : memref<1x32xf32, #tpu.memory_space<vmem>>, vector<1x32xf32>
    %326 = vector.broadcast %325 : vector<1x32xf32> to vector<16x32xf32>
    %327 = arith.addf %324, %326 : vector<16x32xf32>
    %c0_106 = arith.constant 0 : index
    %c0_107 = arith.constant 0 : index
    %328 = vector.load %arg23[%c0_106, %c0_107] : memref<32x64xf32, #tpu.memory_space<vmem>>, vector<32x64xf32>
    %cst_108 = arith.constant dense<0.000000e+00> : vector<16x64xf32>
    %329 = tpu.matmul %327, %328, %cst_108 {dimension_numbers = #tpu.dot_dimension_numbers<[1], [0], [0], [1], [0, 0, 1, 1], [], []>} : vector<16x32xf32>, vector<32x64xf32>, vector<16x64xf32> -> vector<16x64xf32>
    %c0_109 = arith.constant 0 : index
    %c0_110 = arith.constant 0 : index
    %330 = vector.load %arg24[%c0_109, %c0_110] : memref<1x64xf32, #tpu.memory_space<vmem>>, vector<1x64xf32>
    %331 = vector.broadcast %330 : vector<1x64xf32> to vector<16x64xf32>
    %332 = arith.addf %329, %331 : vector<16x64xf32>
    %cst_111 = arith.constant 0.000000e+00 : f32
    %333 = vector.broadcast %cst_111 : f32 to vector<16x64xf32>
    %334 = arith.maximumf %332, %333 : vector<16x64xf32>
    %c0_112 = arith.constant 0 : index
    %c0_113 = arith.constant 0 : index
    %335 = vector.load %arg25[%c0_112, %c0_113] : memref<64x32xf32, #tpu.memory_space<vmem>>, vector<64x32xf32>
    %cst_114 = arith.constant dense<0.000000e+00> : vector<16x32xf32>
    %336 = tpu.matmul %334, %335, %cst_114 {dimension_numbers = #tpu.dot_dimension_numbers<[1], [0], [0], [1], [0, 0, 1, 1], [], []>} : vector<16x64xf32>, vector<64x32xf32>, vector<16x32xf32> -> vector<16x32xf32>
    %c0_115 = arith.constant 0 : index
    %c0_116 = arith.constant 0 : index
    %337 = vector.load %arg26[%c0_115, %c0_116] : memref<1x32xf32, #tpu.memory_space<vmem>>, vector<1x32xf32>
    %338 = vector.broadcast %337 : vector<1x32xf32> to vector<16x32xf32>
    %339 = arith.addf %336, %338 : vector<16x32xf32>
    %340 = arith.addf %327, %339 : vector<16x32xf32>
    %cst_117 = arith.constant dense<0.000000e+00> : vector<16xf32>
    %341 = vector.multi_reduction <add>, %340, %cst_117 [1] : vector<16x32xf32> to vector<16xf32>
    %342 = vector.shape_cast %341 : vector<16xf32> to vector<16x1xf32>
    %cst_118 = arith.constant 3.200000e+01 : f32
    %343 = vector.broadcast %cst_118 : f32 to vector<16x1xf32>
    %344 = arith.divf %342, %343 : vector<16x1xf32>
    %345 = vector.broadcast %344 : vector<16x1xf32> to vector<16x32xf32>
    %346 = arith.subf %340, %345 : vector<16x32xf32>
    %347 = arith.mulf %346, %346 : vector<16x32xf32>
    %cst_119 = arith.constant dense<0.000000e+00> : vector<16xf32>
    %348 = vector.multi_reduction <add>, %347, %cst_119 [1] : vector<16x32xf32> to vector<16xf32>
    %349 = vector.shape_cast %348 : vector<16xf32> to vector<16x1xf32>
    %cst_120 = arith.constant 3.200000e+01 : f32
    %350 = vector.broadcast %cst_120 : f32 to vector<16x1xf32>
    %351 = arith.divf %349, %350 : vector<16x1xf32>
    %cst_121 = arith.constant 9.99999974E-6 : f32
    %352 = vector.broadcast %cst_121 : f32 to vector<16x1xf32>
    %353 = arith.addf %351, %352 : vector<16x1xf32>
    %354 = math.rsqrt %353 : vector<16x1xf32>
    %355 = vector.broadcast %354 : vector<16x1xf32> to vector<16x32xf32>
    %356 = arith.mulf %346, %355 : vector<16x32xf32>
    %c0_122 = arith.constant 0 : index
    %c0_123 = arith.constant 0 : index
    %357 = vector.load %arg27[%c0_122, %c0_123] : memref<1x32xf32, #tpu.memory_space<vmem>>, vector<1x32xf32>
    %358 = vector.broadcast %357 : vector<1x32xf32> to vector<16x32xf32>
    %359 = arith.mulf %356, %358 : vector<16x32xf32>
    %c0_124 = arith.constant 0 : index
    %c0_125 = arith.constant 0 : index
    %360 = vector.load %arg28[%c0_124, %c0_125] : memref<1x32xf32, #tpu.memory_space<vmem>>, vector<1x32xf32>
    %361 = vector.broadcast %360 : vector<1x32xf32> to vector<16x32xf32>
    %362 = arith.addf %359, %361 : vector<16x32xf32>
    %c0_126 = arith.constant 0 : index
    %c0_127 = arith.constant 0 : index
    %363 = vector.load %arg29[%c0_126, %c0_127] : memref<32x128xf32, #tpu.memory_space<vmem>>, vector<32x128xf32>
    %cst_128 = arith.constant dense<0.000000e+00> : vector<16x128xf32>
    %364 = tpu.matmul %362, %363, %cst_128 {dimension_numbers = #tpu.dot_dimension_numbers<[1], [0], [0], [1], [0, 0, 1, 1], [], []>} : vector<16x32xf32>, vector<32x128xf32>, vector<16x128xf32> -> vector<16x128xf32>
    %c0_129 = arith.constant 0 : index
    %c0_130 = arith.constant 0 : index
    %365 = vector.load %arg30[%c0_129, %c0_130] : memref<1x128xf32, #tpu.memory_space<vmem>>, vector<1x128xf32>
    %366 = vector.broadcast %365 : vector<1x128xf32> to vector<16x128xf32>
    %367 = arith.addf %364, %366 : vector<16x128xf32>
    %368 = vector.shape_cast %367 : vector<16x128xf32> to vector<8x2x128xf32>
    %c0_131 = arith.constant 0 : index
    %c0_132 = arith.constant 0 : index
    %369 = vector.load %arg31[%c0_131, %c0_132] : memref<2x128xf32, #tpu.memory_space<vmem>>, vector<2x128xf32>
    %370 = vector.shape_cast %369 : vector<2x128xf32> to vector<1x2x128xf32>
    %371 = vector.broadcast %370 : vector<1x2x128xf32> to vector<8x2x128xf32>
    %372 = arith.addf %368, %371 : vector<8x2x128xf32>
    %c0_133 = arith.constant 0 : index
    %c0_134 = arith.constant 0 : index
    %c0_135 = arith.constant 0 : index
    %373 = vector.load %arg32[%c0_133, %c0_134, %c0_135] : memref<8x2x128xf32, #tpu.memory_space<vmem>>, vector<8x2x128xf32>
    tpu.vector_store %arg32[%c0_133, %c0_134, %c0_135], %372 {strides = array<i32>} : memref<8x2x128xf32, #tpu.memory_space<vmem>>, vector<8x2x128xf32>,
    return
  }
  func.func @transform_0(%arg0: i32) -> (i32, i32, i32) {
    %c0_i32 = arith.constant 0 : i32
    %c0_i32_0 = arith.constant 0 : i32
    %c0_i32_1 = arith.constant 0 : i32
    return %arg0, %c0_i32, %c0_i32_0 : i32, i32, i32
  }
  func.func @transform_1(%arg0: i32) -> (i32, i32) {
    %c0_i32 = arith.constant 0 : i32
    %c0_i32_0 = arith.constant 0 : i32
    return %arg0, %c0_i32 : i32, i32
  }
  func.func @transform_2(%arg0: i32) -> (i32, i32) {
    %c0_i32 = arith.constant 0 : i32
    %c0_i32_0 = arith.constant 0 : i32
    %c0_i32_1 = arith.constant 0 : i32
    return %c0_i32, %c0_i32_0 : i32, i32
  }
  func.func @transform_3(%arg0: i32) -> (i32, i32) {
    %c0_i32 = arith.constant 0 : i32
    %c0_i32_0 = arith.constant 0 : i32
    %c0_i32_1 = arith.constant 0 : i32
    return %c0_i32, %c0_i32_0 : i32, i32
  }
  func.func @transform_4(%arg0: i32) -> (i32, i32) {
    %c0_i32 = arith.constant 0 : i32
    %c0_i32_0 = arith.constant 0 : i32
    %c0_i32_1 = arith.constant 0 : i32
    return %c0_i32, %c0_i32_0 : i32, i32
  }
  func.func @transform_5(%arg0: i32) -> (i32, i32) {
    %c0_i32 = arith.constant 0 : i32
    %c0_i32_0 = arith.constant 0 : i32
    %c0_i32_1 = arith.constant 0 : i32
    return %c0_i32, %c0_i32_0 : i32, i32
  }
  func.func @transform_6(%arg0: i32) -> (i32, i32) {
    %c0_i32 = arith.constant 0 : i32
    %c0_i32_0 = arith.constant 0 : i32
    %c0_i32_1 = arith.constant 0 : i32
    return %c0_i32, %c0_i32_0 : i32, i32
  }
  func.func @transform_7(%arg0: i32) -> (i32, i32) {
    %c0_i32 = arith.constant 0 : i32
    %c0_i32_0 = arith.constant 0 : i32
    %c0_i32_1 = arith.constant 0 : i32
    return %c0_i32, %c0_i32_0 : i32, i32
  }
  func.func @transform_8(%arg0: i32) -> (i32, i32) {
    %c0_i32 = arith.constant 0 : i32
    %c0_i32_0 = arith.constant 0 : i32
    %c0_i32_1 = arith.constant 0 : i32
    return %c0_i32, %c0_i32_0 : i32, i32
  }
  func.func @transform_9(%arg0: i32) -> (i32, i32) {
    %c0_i32 = arith.constant 0 : i32
    %c0_i32_0 = arith.constant 0 : i32
    %c0_i32_1 = arith.constant 0 : i32
    return %c0_i32, %c0_i32_0 : i32, i32
  }
  func.func @transform_10(%arg0: i32) -> (i32, i32) {
    %c0_i32 = arith.constant 0 : i32
    %c0_i32_0 = arith.constant 0 : i32
    %c0_i32_1 = arith.constant 0 : i32
    return %c0_i32, %c0_i32_0 : i32, i32
  }
  func.func @transform_11(%arg0: i32) -> (i32, i32) {
    %c0_i32 = arith.constant 0 : i32
    %c0_i32_0 = arith.constant 0 : i32
    %c0_i32_1 = arith.constant 0 : i32
    return %c0_i32, %c0_i32_0 : i32, i32
  }
  func.func @transform_12(%arg0: i32) -> (i32, i32) {
    %c0_i32 = arith.constant 0 : i32
    %c0_i32_0 = arith.constant 0 : i32
    %c0_i32_1 = arith.constant 0 : i32
    return %c0_i32, %c0_i32_0 : i32, i32
  }
  func.func @transform_13(%arg0: i32) -> (i32, i32) {
    %c0_i32 = arith.constant 0 : i32
    %c0_i32_0 = arith.constant 0 : i32
    %c0_i32_1 = arith.constant 0 : i32
    return %c0_i32, %c0_i32_0 : i32, i32
  }
  func.func @transform_14(%arg0: i32) -> (i32, i32) {
    %c0_i32 = arith.constant 0 : i32
    %c0_i32_0 = arith.constant 0 : i32
    %c0_i32_1 = arith.constant 0 : i32
    return %c0_i32, %c0_i32_0 : i32, i32
  }
  func.func @transform_15(%arg0: i32) -> (i32, i32) {
    %c0_i32 = arith.constant 0 : i32
    %c0_i32_0 = arith.constant 0 : i32
    %c0_i32_1 = arith.constant 0 : i32
    return %c0_i32, %c0_i32_0 : i32, i32
  }
  func.func @transform_16(%arg0: i32) -> (i32, i32) {
    %c0_i32 = arith.constant 0 : i32
    %c0_i32_0 = arith.constant 0 : i32
    %c0_i32_1 = arith.constant 0 : i32
    return %c0_i32, %c0_i32_0 : i32, i32
  }
  func.func @transform_17(%arg0: i32) -> (i32, i32) {
    %c0_i32 = arith.constant 0 : i32
    %c0_i32_0 = arith.constant 0 : i32
    %c0_i32_1 = arith.constant 0 : i32
    return %c0_i32, %c0_i32_0 : i32, i32
  }
  func.func @transform_18(%arg0: i32) -> (i32, i32) {
    %c0_i32 = arith.constant 0 : i32
    %c0_i32_0 = arith.constant 0 : i32
    %c0_i32_1 = arith.constant 0 : i32
    return %c0_i32, %c0_i32_0 : i32, i32
  }
  func.func @transform_19(%arg0: i32) -> (i32, i32) {
    %c0_i32 = arith.constant 0 : i32
    %c0_i32_0 = arith.constant 0 : i32
    %c0_i32_1 = arith.constant 0 : i32
    return %c0_i32, %c0_i32_0 : i32, i32
  }
  func.func @transform_20(%arg0: i32) -> (i32, i32) {
    %c0_i32 = arith.constant 0 : i32
    %c0_i32_0 = arith.constant 0 : i32
    %c0_i32_1 = arith.constant 0 : i32
    return %c0_i32, %c0_i32_0 : i32, i32
  }
  func.func @transform_21(%arg0: i32) -> (i32, i32) {
    %c0_i32 = arith.constant 0 : i32
    %c0_i32_0 = arith.constant 0 : i32
    %c0_i32_1 = arith.constant 0 : i32
    return %c0_i32, %c0_i32_0 : i32, i32
  }
  func.func @transform_22(%arg0: i32) -> (i32, i32) {
    %c0_i32 = arith.constant 0 : i32
    %c0_i32_0 = arith.constant 0 : i32
    %c0_i32_1 = arith.constant 0 : i32
    return %c0_i32, %c0_i32_0 : i32, i32
  }
  func.func @transform_23(%arg0: i32) -> (i32, i32) {
    %c0_i32 = arith.constant 0 : i32
    %c0_i32_0 = arith.constant 0 : i32
    %c0_i32_1 = arith.constant 0 : i32
    return %c0_i32, %c0_i32_0 : i32, i32
  }
  func.func @transform_24(%arg0: i32) -> (i32, i32) {
    %c0_i32 = arith.constant 0 : i32
    %c0_i32_0 = arith.constant 0 : i32
    %c0_i32_1 = arith.constant 0 : i32
    return %c0_i32, %c0_i32_0 : i32, i32
  }
  func.func @transform_25(%arg0: i32) -> (i32, i32) {
    %c0_i32 = arith.constant 0 : i32
    %c0_i32_0 = arith.constant 0 : i32
    %c0_i32_1 = arith.constant 0 : i32
    return %c0_i32, %c0_i32_0 : i32, i32
  }
  func.func @transform_26(%arg0: i32) -> (i32, i32) {
    %c0_i32 = arith.constant 0 : i32
    %c0_i32_0 = arith.constant 0 : i32
    %c0_i32_1 = arith.constant 0 : i32
    return %c0_i32, %c0_i32_0 : i32, i32
  }
  func.func @transform_27(%arg0: i32) -> (i32, i32) {
    %c0_i32 = arith.constant 0 : i32
    %c0_i32_0 = arith.constant 0 : i32
    %c0_i32_1 = arith.constant 0 : i32
    return %c0_i32, %c0_i32_0 : i32, i32
  }
  func.func @transform_28(%arg0: i32) -> (i32, i32) {
    %c0_i32 = arith.constant 0 : i32
    %c0_i32_0 = arith.constant 0 : i32
    %c0_i32_1 = arith.constant 0 : i32
    return %c0_i32, %c0_i32_0 : i32, i32
  }
  func.func @transform_29(%arg0: i32) -> (i32, i32) {
    %c0_i32 = arith.constant 0 : i32
    %c0_i32_0 = arith.constant 0 : i32
    %c0_i32_1 = arith.constant 0 : i32
    return %c0_i32, %c0_i32_0 : i32, i32
  }
  func.func @transform_30(%arg0: i32) -> (i32, i32) {
    %c0_i32 = arith.constant 0 : i32
    %c0_i32_0 = arith.constant 0 : i32
    %c0_i32_1 = arith.constant 0 : i32
    return %c0_i32, %c0_i32_0 : i32, i32
  }
  func.func @transform_31(%arg0: i32) -> (i32, i32, i32) {
    %c0_i32 = arith.constant 0 : i32
    %c0_i32_0 = arith.constant 0 : i32
    %c0_i32_1 = arith.constant 0 : i32
    return %arg0, %c0_i32, %c0_i32_0 : i32, i32, i32
  }
}

</mosaic_0001>

<bundles_post_ra>
// kernel: tpu_custom_call.1
= control target key start
LH: loop header
LB: loop body
LE: loop exit
PB: predicated region body
PF: predicated region fallthrough
CT: control target
= control target key end

     0   :  { %s14213_s6 = smov 1   ;;  %s14214_s10 = smov 2   ;;  %s18467_s0 = inlined_call_operand.smem [shape: u32[32], index: -1, kind: input, shape index: {}] }
   0x1   :  { %s14292_s5 = sld [smem:[%s18467_s0]]   ;;  %s14215_s14 = smov 3  }
   0x2   :  { %s14297_s9 = sld [smem:[%s18467_s0 + %s14213_s6]]   ;;  %s14216_s18 = smov 4  }
   0x3   :  { %s14302_s13 = sld [smem:[%s18467_s0 + %s14214_s10]]   ;;  %s14217_s22 = smov 5  }
   0x4   :  { %s14307_s17 = sld [smem:[%s18467_s0 + %s14215_s14]]   ;;  %s14218_s26 = smov 6  }
   0x5   :  { %s14312_s21 = sld [smem:[%s18467_s0 + %s14216_s18]]   ;;  %s14219_s30 = smov 7  }
   0x6   :  { %s14317_s25 = sld [smem:[%s18467_s0 + %s14217_s22]]   ;;  %s14220_s4 = smov 8  }
   0x7   :  { %18696 = sst [smem:[#allocation44_spill]] %s14292_s5  ;;  %s14221_s10 = smov 9  }
   0x8   :  { %18697 = sst [smem:[#allocation45_spill]] %s14297_s9  ;;  %s14222_s15 = smov 10  }
   0x9   :  { %18698 = sst [smem:[#allocation46_spill]] %s14302_s13  ;;  %s14223_s20 = smov 11  }
   0xa   :  { %s14322_s29 = sld [smem:[%s18467_s0 + %s14218_s26]]   ;;  %s14224_s26 = smov 12  }
   0xb   :  { %18699 = sst [smem:[#allocation47_spill]] %s14312_s21  ;;  %s14225_s1 = smov 13  }
   0xc   :  { %s14327_s3 = sld [smem:[%s18467_s0 + %s14219_s30]]   ;;  %s14226_s7 = smov 14  }
   0xd   :  { %s14332_s8 = sld [smem:[%s18467_s0 + %s14220_s4]]   ;;  %s14228_s22 = smov 16  }
   0xe   :  { %s14337_s14 = sld [smem:[%s18467_s0 + %s14221_s10]]   ;;  %s14229_s28 = smov 17  }
   0xf   :  { %s14342_s19 = sld [smem:[%s18467_s0 + %s14222_s15]]   ;;  %s14227_s15 = smov 15  }
  0x10   :  { %18700 = sst [smem:[#allocation48_spill]] %s14322_s29 }
  0x11   :  { %s14347_s24 = sld [smem:[%s18467_s0 + %s14223_s20]]  }
  0x12   :  { %18701 = sst [smem:[#allocation49_spill]] %s14327_s3 }
  0x13   :  { %18702 = sst [smem:[#allocation50_spill]] %s14332_s8 }
  0x14   :  { %s14352_s30 = sld [smem:[%s18467_s0 + %s14224_s26]]  }
  0x15   :  { %18703 = sst [smem:[#allocation51_spill]] %s14342_s19 }
  0x16   :  { %s14357_s6 = sld [smem:[%s18467_s0 + %s14225_s1]]  }
  0x17   :  { %s14362_s12 = sld [smem:[%s18467_s0 + %s14226_s7]]   ;;  %s14230_s7 = smov 18  }
  0x18   :  { %s14367_s20 = sld [smem:[%s18467_s0 + %s14227_s15]]   ;;  %s14231_s15 = smov 19  }
  0x19   :  { %s14372_s27 = sld [smem:[%s18467_s0 + %s14228_s22]]   ;;  %s14232_s22 = smov 20  }
  0x1a   :  { %18704 = sst [smem:[#allocation52_spill]] %s14352_s30 }
  0x1b   :  { %s14377_s4 = sld [smem:[%s18467_s0 + %s14229_s28]]   ;;  %s14233_s28 = smov 21  }
  0x1c   :  { %18705 = sst [smem:[#allocation53_spill]] %s14357_s6 }
  0x1d   :  { %18706 = sst [smem:[#allocation54_spill]] %s14362_s12 }
  0x1e   :  { %s14382_s6 = sld [smem:[%s18467_s0 + %s14230_s7]]   ;;  %s14234_s7 = smov 22  }
  0x1f   :  { %18707 = sst [smem:[#allocation55_spill]] %s14372_s27 }
  0x20   :  { %s14387_s30 = sld [smem:[%s18467_s0 + %s14231_s15]]   ;;  %s14235_s15 = smov 23  }
  0x21   :  { %18708 = sst [smem:[#allocation56_spill]] %s14377_s4 }
  0x22   :  { %s14392_s27 = sld [smem:[%s18467_s0 + %s14232_s22]]   ;;  %s14236_s22 = smov 24  }
  0x23   :  { %s14397_s19 = sld [smem:[%s18467_s0 + %s14233_s28]]   ;;  %s14237_s28 = smov 25  }
  0x24   :  { %18709 = sst [smem:[#allocation57_spill]] %s14382_s6 }
  0x25   :  { %s14402_s6 = sld [smem:[%s18467_s0 + %s14234_s7]]   ;;  %s14238_s7 = smov 26  }
  0x26   :  { %s14407_s29 = sld [smem:[%s18467_s0 + %s14235_s15]]   ;;  %s14239_s15 = smov 27  }
  0x27   :  { %s14412_s21 = sld [smem:[%s18467_s0 + %s14236_s22]]   ;;  %s14240_s22 = smov 28  }
  0x28   :  { %18710 = sst [smem:[#allocation58_spill]] %s14392_s27 }
  0x29   :  { %s14417_s5 = sld [smem:[%s18467_s0 + %s14237_s28]]   ;;  %s14241_s28 = smov 29  }
  0x2a   :  { %s14427_s9 = sld [smem:[%s18467_s0 + %s14239_s15]]   ;;  %s14243_s15 = smov 31  }
  0x2b   :  { %18711 = sst [smem:[#allocation59_spill]] %s14402_s6 }
  0x2c   :  { %18712 = sst [smem:[#allocation60_spill]] %s14407_s29 }
  0x2d   :  { %18713 = sst [smem:[#allocation61_spill]] %s14412_s21 }
  0x2e   :  { %s14422_s6 = sld [smem:[%s18467_s0 + %s14238_s7]]   ;;  %s14242_s7 = smov 30  }
  0x2f   :  { %18714 = sst [smem:[#allocation62_spill]] %s14417_s5 }
  0x30   :  { %18716 = sst [smem:[#allocation64_spill]] %s14427_s9 }
  0x31   :  { %s14432_s21 = sld [smem:[%s18467_s0 + %s14240_s22]]  }
  0x32   :  { %s14437_s29 = sld [smem:[%s18467_s0 + %s14241_s28]]  }
  0x33   :  { %s14447_s27 = sld [smem:[%s18467_s0 + %s14243_s15]]  }
  0x34   :  { %18715 = sst [smem:[#allocation63_spill]] %s14422_s6 }
  0x35   :  { %s14442_s6 = sld [smem:[%s18467_s0 + %s14242_s7]]  }
  0x39   :  { %18718 = sst [smem:[#allocation66_spill]] %s14447_s27 }
  0x3b   :  { %18717 = sst [smem:[#allocation65_spill]] %s14442_s6 }
  0x3c   :  { %68 = vsyncpa [#allocation3], 0 }
  0x3d   :  { %70 = vsyncpa [#allocation3 + $0x1], 0 }
  0x3e   :  { %71 = vsyncpa [#allocation6], 0 }
  0x3f   :  { %72 = vsyncpa [#allocation9], 0 }
  0x40   :  { %73 = vsyncpa [#allocation12], 0 }
  0x41   :  { %74 = vsyncpa [#allocation15], 0 }
  0x42   :  { %75 = vsyncpa [#allocation18], 0 }
  0x43   :  { %76 = vsyncpa [#allocation21], 0 }
  0x44   :  { %77 = vsyncpa [#allocation24], 0 }
  0x45   :  { %78 = vsyncpa [#allocation27], 0 }
  0x46   :  { %79 = vsyncpa [#allocation30], 0 }
  0x47   :  { %80 = vsyncpa [#allocation4], 0 }
  0x48   :  { %82 = vsyncpa [#allocation4 + $0x1], 0  ;;  %s14449_s22 = smov 0   ;;  %s14451_s23 = smov 0  }
  0x49   :  { %s14453_s26 = smov 0   ;;  %s14455_s0 = smov 0  }
  0x4a LB: > { %s14244_s28 = smov [#allocation5]   ;;  %s14470_s2 = sadd.s32 4294967295, %s14211_s0   ;;  %s14211_s0 = sphi %s14455_s0, %s19161_s0   ;;  %s14207_s26 = sphi %s14453_s26, %s19160_s26   ;;  %s14203_s23 = sphi %s14451_s23, %s19159_s23   ;;  %s14199_s22 = sphi %s14449_s22, %s19158_s22  }
  0x4b   : > { %s793_s1 = sshll.u32 %s14244_s28, 4  ;;  %p12532_p0 = scmp.ge.s32.totalorder %s14211_s0, 1  ;;  %s794_s1 = int_to_ptr.vmem [resolvable:$true] %s793_s1 }
  0x4c   : > { %p18478_p1 = scmp.eq.s32.totalorder %s14470_s2, 0  ;;  %p780_p2 = scmp.lt.s32.totalorder %s14211_s0, 3 }
  0x4d   : > { %s14245_s10 = smov [#allocation8]   ;;  %s14246_s15 = smov [#allocation11]  }
  0x4e   : > { %p14475_p3 = pnand %p12532_p0, %p780_p2  ;;  %s818_s11 = sshll.u32 %s14245_s10, 4  ;;  %s819_s11 = int_to_ptr.vmem [resolvable:$true] %s818_s11 }
  0x4f   : > { %s843_s16 = sshll.u32 %s14246_s15, 4  ;;  %s14247_s28 = smov [#allocation14]   ;;  %s14488_s16 = int_to_ptr.vmem [resolvable:$true] %s843_s16 }
  0x50   : > { %s18719_s7 = scalar_select %p14475_p3, 1, 0 }
  0x51   : > { %p12882_p5 = pneg %p14475_p3  ;;  %s14490_s27 = sshll.u32 %s14247_s28, 4  ;;  %s869_s27 = int_to_ptr.vmem [resolvable:$true] %s14490_s27 }
  0x52   : > { %s13626_s10 = scalar_lea.vmem %s794_s1, 128  ;;  %p13634_p11 = scmp.lt.s32.totalorder %s794_s1, %s794_s1 }
  0x53   : > { %p14484_p6 = pnand %p12882_p5, %p18478_p1  ;;  %p13627_p8 = scmp.ne.s32.totalorder %s794_s1, %s13626_s10 }
  0x54   : > { %p13635_p12 = scmp.lt.s32.totalorder %s13626_s10, %s13626_s10 }
  0x55   : > { %p14494_p7 = pneg %p14484_p6 }
  0x56   : > { %p13636_p13 = por %p13635_p12, %p13634_p11 }
  0x57   : > { %p13629_p9 = pnand %p13627_p8, %p14494_p7 }
  0x59   : > { %p13630_p10 = pneg %p13629_p9 }
  0x5b   : > { %p13637_p0 = pnand %p13636_p13, %p13630_p10 }
  0x5d   : > { %13640 = shalt.err (!%p13637_p0)
}
  0x5e   : > { %s18722_s13 = sld [smem:[#allocation46_spill]]  ;;  %s13652_s15 = scalar_lea.vmem %s819_s11, 16 }
  0x5f   : > { %p13653_p2 = scmp.ne.s32.totalorder %s819_s11, %s13652_s15  ;;  %s13659_s28 = scalar_lea.vmem %s819_s11, 32 }
  0x60   : > { %p13660_p1 = scmp.lt.s32.totalorder %s819_s11, %s819_s11  ;;  %p13661_p3 = scmp.lt.s32.totalorder %s13659_s28, %s13652_s15 }
  0x61   : > { %p13655_p5 = pnand %p13653_p2, %p14494_p7 }
  0x62   : > { %p13662_p8 = por %p13661_p3, %p13660_p1 }
  0x63   : > { %p13656_p4 = pneg %p13655_p5 }
  0x64   : > { %12885 = dma.hbm_to_vmem [thread:$0]  (!%p14484_p6), %s18722_s13, 128, %s794_s1, [#allocation6]  }
  0x65   : > { %p13663_p9 = pnand %p13662_p8, %p13656_p4 }
  0x67   : > { %13666 = shalt.err (!%p13663_p9)
}
  0x68   : > { %12891 = dma.hbm_to_vmem [thread:$0]  (!%p14484_p6), %s14317_s25, 16, %s819_s11, [#allocation9]  }
  0x69   : > { %s13678_s1 = scalar_lea.vmem %s14488_s16, 16  ;;  %s13685_s10 = scalar_lea.vmem %s14488_s16, 32 }
  0x6a   : > { %p13679_p10 = scmp.ne.s32.totalorder %s14488_s16, %s13678_s1  ;;  %p13686_p13 = scmp.lt.s32.totalorder %s14488_s16, %s14488_s16 }
  0x6b   : > { %p13687_p1 = scmp.lt.s32.totalorder %s13685_s10, %s13678_s1 }
  0x6c   : > { %p13681_p11 = pnand %p13679_p10, %p14494_p7 }
  0x6d   : > { %p13688_p3 = por %p13687_p1, %p13686_p13 }
  0x6e   : > { %p13682_p12 = pneg %p13681_p11 }
  0x70   : > { %p13689_p4 = pnand %p13688_p3, %p13682_p12 }
  0x72   : > { %13692 = shalt.err (!%p13689_p4)
}
  0x73   : > { %s18723_s8 = sld [smem:[#allocation50_spill]]  ;;  %s14248_s11 = smov [#allocation17]  }
  0x74   : > { %s896_s15 = sshll.u32 %s14248_s11, 4  ;;  %s13704_s28 = scalar_lea.vmem %s869_s27, 16  ;;  %s897_s15 = int_to_ptr.vmem [resolvable:$true] %s896_s15 }
  0x75   : > { %p13705_p0 = scmp.ne.s32.totalorder %s869_s27, %s13704_s28  ;;  %s13711_s13 = scalar_lea.vmem %s869_s27, 32 }
  0x76   : > { %p13712_p8 = scmp.lt.s32.totalorder %s869_s27, %s869_s27  ;;  %p13713_p9 = scmp.lt.s32.totalorder %s13711_s13, %s13704_s28 }
  0x77   : > { %p13707_p2 = pnand %p13705_p0, %p14494_p7 }
  0x78   : > { %p13714_p10 = por %p13713_p9, %p13712_p8 }
  0x79   : > { %12897 = dma.hbm_to_vmem [thread:$0]  (!%p14484_p6), %s18723_s8, 16, %s14488_s16, [#allocation12]  }
  0x7a   : > { %p13708_p5 = pneg %p13707_p2 }
  0x7c   : > { %p13715_p11 = pnand %p13714_p10, %p13708_p5 }
  0x7e   : > { %13718 = shalt.err (!%p13715_p11)
}
  0x7f   : > { %12903 = dma.hbm_to_vmem [thread:$0]  (!%p14484_p6), %s14347_s24, 16, %s869_s27, [#allocation15]  }
  0x80   : > { %s13730_s16 = scalar_lea.vmem %s897_s15, 16  ;;  %s13737_s1 = scalar_lea.vmem %s897_s15, 32 }
  0x81   : > { %p13731_p12 = scmp.ne.s32.totalorder %s897_s15, %s13730_s16  ;;  %p13738_p3 = scmp.lt.s32.totalorder %s897_s15, %s897_s15 }
  0x82   : > { %p13739_p4 = scmp.lt.s32.totalorder %s13737_s1, %s13730_s16 }
  0x83   : > { %p13733_p13 = pnand %p13731_p12, %p14494_p7 }
  0x84   : > { %p13740_p0 = por %p13739_p4, %p13738_p3 }
  0x85   : > { %p13734_p1 = pneg %p13733_p13 }
  0x87   : > { %p13741_p2 = pnand %p13740_p0, %p13734_p1 }
  0x89   : > { %13744 = shalt.err (!%p13741_p2)
}
  0x8a   : > { %12909 = dma.hbm_to_vmem [thread:$0]  (!%p14484_p6), %s14367_s20, 16, %s897_s15, [#allocation18]  }
  0x8b   : > { %s14249_s13 = smov [#allocation20]   ;;  %s14250_s27 = smov [#allocation23]  }
  0x8c   : > { %s924_s10 = sshll.u32 %s14249_s13, 4  ;;  %s946_s11 = sshll.u32 %s14250_s27, 4  ;;  %s925_s10 = int_to_ptr.vmem [resolvable:$true] %s924_s10  ;;  %s947_s11 = int_to_ptr.vmem [resolvable:$true] %s946_s11 }
  0x8d   : > { %s13756_s28 = scalar_lea.vmem %s925_s10, 16  ;;  %s13763_s8 = scalar_lea.vmem %s925_s10, 32 }
  0x8e   : > { %p13757_p5 = scmp.ne.s32.totalorder %s925_s10, %s13756_s28  ;;  %p13764_p10 = scmp.lt.s32.totalorder %s925_s10, %s925_s10 }
  0x8f   : > { %p13765_p11 = scmp.lt.s32.totalorder %s13763_s8, %s13756_s28 }
  0x90   : > { %p13759_p8 = pnand %p13757_p5, %p14494_p7 }
  0x91   : > { %p13766_p12 = por %p13765_p11, %p13764_p10 }
  0x92   : > { %p13760_p9 = pneg %p13759_p8 }
  0x94   : > { %p13767_p13 = pnand %p13766_p12, %p13760_p9 }
  0x96   : > { %13770 = shalt.err (!%p13767_p13)
}
  0x97   : > { %12915 = dma.hbm_to_vmem [thread:$0]  (!%p14484_p6), %s14387_s30, 16, %s925_s10, [#allocation21]  }
  0x98   : > { %s13782_s15 = scalar_lea.vmem %s947_s11, 16  ;;  %s13789_s16 = scalar_lea.vmem %s947_s11, 32 }
  0x99   : > { %p13783_p1 = scmp.ne.s32.totalorder %s947_s11, %s13782_s15  ;;  %p13790_p0 = scmp.lt.s32.totalorder %s947_s11, %s947_s11 }
  0x9a   : > { %p13791_p2 = scmp.lt.s32.totalorder %s13789_s16, %s13782_s15 }
  0x9b   : > { %p13785_p3 = pnand %p13783_p1, %p14494_p7 }
  0x9c   : > { %p13792_p5 = por %p13791_p2, %p13790_p0 }
  0x9d   : > { %p13786_p4 = pneg %p13785_p3 }
  0x9f   : > { %p13793_p8 = pnand %p13792_p5, %p13786_p4 }
  0xa1   : > { %13796 = shalt.err (!%p13793_p8)
}
  0xa2   : > { %12921 = dma.hbm_to_vmem [thread:$0]  (!%p14484_p6), %s14397_s19, 16, %s947_s11, [#allocation24]  }
  0xa3   : > { %s14251_s8 = smov [#allocation26]   ;;  %s14252_s13 = smov [#allocation29]  }
  0xa4   : > { %s974_s1 = sshll.u32 %s14251_s8, 4  ;;  %s996_s10 = sshll.u32 %s14252_s13, 4  ;;  %s975_s1 = int_to_ptr.vmem [resolvable:$true] %s974_s1  ;;  %s997_s10 = int_to_ptr.vmem [resolvable:$true] %s996_s10 }
  0xa5   : > { %s13808_s27 = scalar_lea.vmem %s975_s1, 16  ;;  %s13815_s28 = scalar_lea.vmem %s975_s1, 32 }
  0xa6   : > { %p13809_p9 = scmp.ne.s32.totalorder %s975_s1, %s13808_s27  ;;  %p13816_p12 = scmp.lt.s32.totalorder %s975_s1, %s975_s1 }
  0xa7   : > { %p13817_p13 = scmp.lt.s32.totalorder %s13815_s28, %s13808_s27 }
  0xa8   : > { %p13811_p10 = pnand %p13809_p9, %p14494_p7 }
  0xa9   : > { %p13818_p1 = por %p13817_p13, %p13816_p12 }
  0xaa   : > { %p13812_p11 = pneg %p13811_p10 }
  0xac   : > { %p13819_p3 = pnand %p13818_p1, %p13812_p11 }
  0xae   : > { %13822 = shalt.err (!%p13819_p3)
}
  0xaf   : > { %s18724_s5 = sld [smem:[#allocation62_spill]]  ;;  %s13834_s11 = scalar_lea.vmem %s997_s10, 16 }
  0xb0   : > { %p13835_p4 = scmp.ne.s32.totalorder %s997_s10, %s13834_s11  ;;  %s13841_s15 = scalar_lea.vmem %s997_s10, 32 }
  0xb1   : > { %p13842_p5 = scmp.lt.s32.totalorder %s997_s10, %s997_s10  ;;  %p13843_p8 = scmp.lt.s32.totalorder %s13841_s15, %s13834_s11 }
  0xb2   : > { %p13837_p0 = pnand %p13835_p4, %p14494_p7 }
  0xb3   : > { %p13844_p9 = por %p13843_p8, %p13842_p5 }
  0xb4   : > { %p13838_p2 = pneg %p13837_p0 }
  0xb5   : > { %12927 = dma.hbm_to_vmem [thread:$0]  (!%p14484_p6), %s18724_s5, 16, %s975_s1, [#allocation27]  }
  0xb6   : > { %p13845_p10 = pnand %p13844_p9, %p13838_p2 }
  0xb8   : > { %13848 = shalt.err (!%p13845_p10)
}
  0xb9   : > { %s18725_s9 = sld [smem:[#allocation64_spill]]  ;;  %s14253_s16 = smov [#allocation7]  }
  0xba   : > { %s804_s8 = sshll.u32 %s14253_s16, 4  ;;  %s14254_s1 = smov [#allocation10]   ;;  %s805_s8 = int_to_ptr.vmem [resolvable:$true] %s804_s8 }
  0xbb   : > { %s832_s13 = sshll.u32 %s14254_s1, 4  ;;  %s13860_s27 = scalar_lea.vmem %s805_s8, 16  ;;  %s833_s13 = int_to_ptr.vmem [resolvable:$true] %s832_s13 }
  0xbc   : > { %p13861_p11 = scmp.ne.s32.totalorder %s805_s8, %s13860_s27  ;;  %s13867_s28 = scalar_lea.vmem %s805_s8, 32 }
  0xbd   : > { %p13868_p1 = scmp.lt.s32.totalorder %s805_s8, %s805_s8  ;;  %p13869_p3 = scmp.lt.s32.totalorder %s13867_s28, %s13860_s27 }
  0xbe   : > { %p13863_p12 = pnand %p13861_p11, %p14494_p7 }
  0xbf   : > { %12933 = dma.hbm_to_vmem [thread:$0]  (!%p14484_p6), %s18725_s9, 16, %s997_s10, [#allocation30]  }
  0xc0   : > { %p13864_p13 = pneg %p13863_p12  ;;  %p13870_p4 = por %p13869_p3, %p13868_p1 }
  0xc2   : > { %p13871_p0 = pnand %p13870_p4, %p13864_p13 }
  0xc4   : > { %13874 = shalt.err (!%p13871_p0)
}
  0xc5   : > { %12888 = dma.hbm_to_vmem [thread:$0]  (!%p14484_p6), %s14307_s17, 16, %s805_s8, [#allocation6]  }
  0xc6   : > { %s13886_s10 = scalar_lea.vmem %s833_s13, 16  ;;  %s13893_s11 = scalar_lea.vmem %s833_s13, 32 }
  0xc7   : > { %p13887_p2 = scmp.ne.s32.totalorder %s833_s13, %s13886_s10  ;;  %p13894_p9 = scmp.lt.s32.totalorder %s833_s13, %s833_s13 }
  0xc8   : > { %p13895_p10 = scmp.lt.s32.totalorder %s13893_s11, %s13886_s10 }
  0xc9   : > { %p13889_p5 = pnand %p13887_p2, %p14494_p7 }
  0xca   : > { %p13896_p11 = por %p13895_p10, %p13894_p9 }
  0xcb   : > { %p13890_p8 = pneg %p13889_p5 }
  0xcd   : > { %p13897_p12 = pnand %p13896_p11, %p13890_p8 }
  0xcf   : > { %13900 = shalt.err (!%p13897_p12)
}
  0xd0   : > { %s18726_s3 = sld [smem:[#allocation49_spill]]  ;;  %s14255_s15 = smov [#allocation13]  }
  0xd1   : > { %s854_s16 = sshll.u32 %s14255_s15, 4  ;;  %s14256_s8 = smov [#allocation16]   ;;  %s855_s16 = int_to_ptr.vmem [resolvable:$true] %s854_s16 }
  0xd2   : > { %s885_s1 = sshll.u32 %s14256_s8, 4  ;;  %s13912_s27 = scalar_lea.vmem %s855_s16, 16  ;;  %s886_s1 = int_to_ptr.vmem [resolvable:$true] %s885_s1 }
  0xd3   : > { %p13913_p13 = scmp.ne.s32.totalorder %s855_s16, %s13912_s27  ;;  %s13919_s28 = scalar_lea.vmem %s855_s16, 32 }
  0xd4   : > { %p13920_p4 = scmp.lt.s32.totalorder %s855_s16, %s855_s16  ;;  %p13921_p0 = scmp.lt.s32.totalorder %s13919_s28, %s13912_s27 }
  0xd5   : > { %p13915_p1 = pnand %p13913_p13, %p14494_p7 }
  0xd6   : > { %12894 = dma.hbm_to_vmem [thread:$0]  (!%p14484_p6), %s18726_s3, 16, %s833_s13, [#allocation9]  }
  0xd7   : > { %p13916_p3 = pneg %p13915_p1  ;;  %p13922_p2 = por %p13921_p0, %p13920_p4 }
  0xd9   : > { %p13923_p5 = pnand %p13922_p2, %p13916_p3 }
  0xdb   : > { %13926 = shalt.err (!%p13923_p5)
}
  0xdc   : > { %12900 = dma.hbm_to_vmem [thread:$0]  (!%p14484_p6), %s14337_s14, 16, %s855_s16, [#allocation12]  }
  0xdd   : > { %s13938_s13 = scalar_lea.vmem %s886_s1, 16  ;;  %s13945_s10 = scalar_lea.vmem %s886_s1, 32 }
  0xde   : > { %p13939_p8 = scmp.ne.s32.totalorder %s886_s1, %s13938_s13  ;;  %p13946_p11 = scmp.lt.s32.totalorder %s886_s1, %s886_s1 }
  0xdf   : > { %p13947_p12 = scmp.lt.s32.totalorder %s13945_s10, %s13938_s13 }
  0xe0   : > { %p13941_p9 = pnand %p13939_p8, %p14494_p7 }
  0xe1   : > { %p13948_p13 = por %p13947_p12, %p13946_p11 }
  0xe2   : > { %p13942_p10 = pneg %p13941_p9 }
  0xe4   : > { %p13949_p1 = pnand %p13948_p13, %p13942_p10 }
  0xe6   : > { %13952 = shalt.err (!%p13949_p1)
}
  0xe7   : > { %s18727_s12 = sld [smem:[#allocation54_spill]]  ;;  %s14257_s11 = smov [#allocation19]  }
  0xe8   : > { %s910_s15 = sshll.u32 %s14257_s11, 4  ;;  %s14258_s16 = smov [#allocation22]   ;;  %s911_s15 = int_to_ptr.vmem [resolvable:$true] %s910_s15 }
  0xe9   : > { %s935_s8 = sshll.u32 %s14258_s16, 4  ;;  %s13964_s27 = scalar_lea.vmem %s911_s15, 16  ;;  %s936_s8 = int_to_ptr.vmem [resolvable:$true] %s935_s8 }
  0xea   : > { %p13965_p3 = scmp.ne.s32.totalorder %s911_s15, %s13964_s27  ;;  %s13971_s28 = scalar_lea.vmem %s911_s15, 32 }
  0xeb   : > { %p13972_p2 = scmp.lt.s32.totalorder %s911_s15, %s911_s15  ;;  %p13973_p5 = scmp.lt.s32.totalorder %s13971_s28, %s13964_s27 }
  0xec   : > { %p13967_p4 = pnand %p13965_p3, %p14494_p7 }
  0xed   : > { %12906 = dma.hbm_to_vmem [thread:$0]  (!%p14484_p6), %s18727_s12, 16, %s886_s1, [#allocation15]  }
  0xee   : > { %p13968_p0 = pneg %p13967_p4  ;;  %p13974_p8 = por %p13973_p5, %p13972_p2 }
  0xf0   : > { %p13975_p9 = pnand %p13974_p8, %p13968_p0 }
  0xf2   : > { %13978 = shalt.err (!%p13975_p9)
}
  0xf3   : > { %s18728_s4 = sld [smem:[#allocation56_spill]]  ;;  %s13990_s1 = scalar_lea.vmem %s936_s8, 16 }
  0xf4   : > { %p13991_p10 = scmp.ne.s32.totalorder %s936_s8, %s13990_s1  ;;  %s13997_s13 = scalar_lea.vmem %s936_s8, 32 }
  0xf5   : > { %p13998_p13 = scmp.lt.s32.totalorder %s936_s8, %s936_s8  ;;  %p13999_p1 = scmp.lt.s32.totalorder %s13997_s13, %s13990_s1 }
  0xf6   : > { %p13993_p11 = pnand %p13991_p10, %p14494_p7 }
  0xf7   : > { %p14000_p3 = por %p13999_p1, %p13998_p13 }
  0xf8   : > { %p13994_p12 = pneg %p13993_p11 }
  0xf9   : > { %12912 = dma.hbm_to_vmem [thread:$0]  (!%p14484_p6), %s18728_s4, 16, %s911_s15, [#allocation18]  }
  0xfa   : > { %p14001_p4 = pnand %p14000_p3, %p13994_p12 }
  0xfc   : > { %14004 = shalt.err (!%p14001_p4)
}
  0xfd   : > { %s18729_s10 = sld [smem:[#allocation58_spill]]  ;;  %s14259_s11 = smov [#allocation25]  }
  0xfe   : > { %s960_s16 = sshll.u32 %s14259_s11, 4  ;;  %s14260_s15 = smov [#allocation28]   ;;  %s961_s16 = int_to_ptr.vmem [resolvable:$true] %s960_s16 }
  0xff   : > { %s985_s27 = sshll.u32 %s14260_s15, 4  ;;  %s14016_s28 = scalar_lea.vmem %s961_s16, 16  ;;  %s986_s27 = int_to_ptr.vmem [resolvable:$true] %s985_s27 }
 0x100   : > { %p14017_p0 = scmp.ne.s32.totalorder %s961_s16, %s14016_s28  ;;  %s14023_s3 = scalar_lea.vmem %s961_s16, 32 }
 0x101   : > { %p14024_p8 = scmp.lt.s32.totalorder %s961_s16, %s961_s16  ;;  %p14025_p9 = scmp.lt.s32.totalorder %s14023_s3, %s14016_s28 }
 0x102   : > { %p14019_p2 = pnand %p14017_p0, %p14494_p7 }
 0x103   : > { %12918 = dma.hbm_to_vmem [thread:$0]  (!%p14484_p6), %s18729_s10, 16, %s936_s8, [#allocation21]  }
 0x104   : > { %p14020_p5 = pneg %p14019_p2  ;;  %p14026_p10 = por %p14025_p9, %p14024_p8 }
 0x106   : > { %p14027_p11 = pnand %p14026_p10, %p14020_p5 }
 0x108   : > { %14030 = shalt.err (!%p14027_p11)
}
 0x109   : > { %s18730_s1 = sld [smem:[#allocation60_spill]]  ;;  %s14042_s8 = scalar_lea.vmem %s986_s27, 16 }
 0x10a   : > { %p14043_p12 = scmp.ne.s32.totalorder %s986_s27, %s14042_s8  ;;  %s14049_s13 = scalar_lea.vmem %s986_s27, 32 }
 0x10b   : > { %p14050_p3 = scmp.lt.s32.totalorder %s986_s27, %s986_s27  ;;  %p14051_p4 = scmp.lt.s32.totalorder %s14049_s13, %s14042_s8 }
 0x10c   : > { %p14045_p13 = pnand %p14043_p12, %p14494_p7 }
 0x10d   : > { %p14052_p0 = por %p14051_p4, %p14050_p3 }
 0x10e   : > { %p14046_p1 = pneg %p14045_p13 }
 0x10f   : > { %12924 = dma.hbm_to_vmem [thread:$0]  (!%p14484_p6), %s18730_s1, 16, %s961_s16, [#allocation24]  }
 0x110   : > { %p14053_p2 = pnand %p14052_p0, %p14046_p1 }
 0x112   : > { %14056 = shalt.err (!%p14053_p2)
}
 0x113   : > { %s18731_s3 = sld [smem:[#allocation63_spill]]  ;;  %s14261_s10 = smov [#allocation31]  }
 0x114   : > { %s1010_s11 = sshll.u32 %s14261_s10, 4  ;;  %s1011_s11 = int_to_ptr.vmem [resolvable:$true] %s1010_s11 }
 0x115   : > { %s14068_s16 = scalar_lea.vmem %s1011_s11, 16  ;;  %s14075_s15 = scalar_lea.vmem %s1011_s11, 32 }
 0x116   : > { %p14069_p5 = scmp.ne.s32.totalorder %s1011_s11, %s14068_s16  ;;  %p14076_p10 = scmp.lt.s32.totalorder %s1011_s11, %s1011_s11 }
 0x117   : > { %p14077_p11 = scmp.lt.s32.totalorder %s14075_s15, %s14068_s16 }
 0x118   : > { %p14071_p8 = pnand %p14069_p5, %p14494_p7 }
 0x119   : > { %12930 = dma.hbm_to_vmem [thread:$0]  (!%p14484_p6), %s18731_s3, 16, %s986_s27, [#allocation27]  }
 0x11a   : > { %p14072_p9 = pneg %p14071_p8  ;;  %p14078_p12 = por %p14077_p11, %p14076_p10 }
 0x11c   : > { %p14079_p13 = pnand %p14078_p12, %p14072_p9 }
 0x11e   : > { %14082 = shalt.err (!%p14079_p13)
}
 0x11f   : > { %12936 = dma.hbm_to_vmem [thread:$0]  (!%p14484_p6), %s14437_s29, 16, %s1011_s11, [#allocation30]  }
 0x120   : > { %s12531_s6 = sadd.s32 4294967294, %s14211_s0   ;;  %s14597_s27 = sadd.s32 1, %s14211_s0  }
 0x121   : > { %s118_s18 = ssub.s32 %s14211_s0, %s14597_s27  ;;  %s121_s28 = sadd.s32 1, %s14207_s26 }
 0x122   : > { %s18732_s1 = sld [smem:[#allocation45_spill]]  ;;  %p119_p7 = scmp.eq.s32.totalorder %s118_s18, 0 }
 0x123   : > { %p128_p1 = scmp.ne.s32.totalorder %s14207_s26, %s14203_s23  ;;  %p129_p3 = scmp.eq.s32.totalorder %s14211_s0, 0 }
 0x124   : > { %p134_p4 = scmp.ne.s32.totalorder %s14203_s23, %s14199_s22  ;;  %p18734_p2 = scmp.eq.s32.totalorder %s14470_s2, 0 }
 0x125   : > { %s14608_s8 = scalar_select %p119_p7, %s14207_s26, %s121_s28  }
 0x126   : > { %p14610_p0 = por %p129_p3, %p128_p1  ;;  %p14616_p6 = por %p18734_p2, %p134_p4 }
 0x127   : > { %p767_p5 = scmp.eq.s32.totalorder %s14470_s2, 1  ;;  %p773_p8 = scmp.eq.s32.totalorder %s12531_s6, 1 }
 0x128   : > { %s18735_s3 = scalar_select %p14616_p6, 1, 0 }
 0x129   : > { %p12963_p9 = scmp.lt.s32.totalorder %s14211_s0, 2  ;;  %s1033_s10 = sand.u32 1, %s14207_s26  }
 0x12a   : > { %p14623_p10 = por %p767_p5, %p128_p1  ;;  %p14627_p11 = por %p773_p8, %p134_p4 }
 0x12b   : > { %s12552_s15 = sshll.u32 %s1033_s10, 3  ;;  %s12553_s18 = sshll.u32 %s14211_s0, 7 }
 0x12c   : > { %s18736_s11 = scalar_select %p14623_p10, 1, 0 }
 0x12d   : > { %s18737_s16 = scalar_select %p14627_p11, 1, 0 }
 0x12e   : > { %s14633_s28 = scalar_lea.hbm %s18732_s1, %s12553_s18  ;;  %s1037_s6 = scalar_lea.vmem [#allocation2], %s12552_s15 }
 0x12f   : > { %s1044_s4 = sshll.u32 %s1037_s6, 4  ;;  %p14637_p12 = pnand %p12963_p9, %p14610_p0  ;;  %s1045_s4 = int_to_ptr.vmem [resolvable:$true] %s1044_s4 }
 0x130   : > { %s1034_s9 = scalar_lea.sflag [#allocation3], %s1033_s10  ;;  %s14083_s12 = scalar_lea.hbm %s14633_s28, 128 }
 0x131   : > { %s18738_s5 = scalar_select %p14637_p12, 1, 0 }
 0x132   : > { %p14084_p13 = scmp.ne.s32.totalorder %s14633_s28, %s14083_s12  ;;  %p14085_p7 = pneg %p14637_p12 }
 0x133   : > { %s14088_s18 = scalar_lea.hbm %s18732_s1, 256  ;;  %p14089_p4 = scmp.lt.s32.totalorder %s14633_s28, %s18732_s1 }
 0x134   : > { %p14086_p1 = pnand %p14085_p7, %p14084_p13  ;;  %p14090_p2 = scmp.lt.s32.totalorder %s14088_s18, %s14083_s12 }
 0x136   : > { %p14087_p3 = pneg %p14086_p1  ;;  %p14091_p5 = por %p14090_p2, %p14089_p4 }
 0x138   : > { %p14092_p8 = pnand %p14091_p5, %p14087_p3 }
 0x13a   : > { %14095 = shalt.err (!%p14092_p8)
}
 0x13b   : > { %s14096_s15 = scalar_lea.vmem %s1045_s4, 128  ;;  %s14262_s13 = smov [#allocation2]  }
 0x13c   : > { %p14097_p11 = scmp.ne.s32.totalorder %s1045_s4, %s14096_s15  ;;  %s14101_s6 = sshll.u32 %s14262_s13, 4  ;;  %s14102_s6 = int_to_ptr.vmem [resolvable:$false] %s14101_s6 }
 0x13d   : > { %s14103_s10 = scalar_lea.vmem %s14102_s6, 256  ;;  %p14104_p10 = scmp.lt.s32.totalorder %s1045_s4, %s14102_s6 }
 0x13e   : > { %p14099_p0 = pnand %p14097_p11, %p14085_p7  ;;  %p14105_p6 = scmp.lt.s32.totalorder %s14103_s10, %s14096_s15 }
 0x140   : > { %p14100_p9 = pneg %p14099_p0  ;;  %p14106_p12 = por %p14105_p6, %p14104_p10 }
 0x142   : > { %p14107_p13 = pnand %p14106_p12, %p14100_p9 }
 0x144   : > { %14110 = shalt.err (!%p14107_p13)
}
 0x145   : > { %p18739_p1 = scmp.ne.s32.totalorder %s18738_s5, 0  ;;  %p18740_p3 = scmp.ne.s32.totalorder %s18719_s7, 0 }
 0x147   : > { %12940 = dma.hbm_to_vmem [thread:$0]  (!%p18739_p1), %s14633_s28, 128, %s1045_s4, %s1034_s9  }
 0x148   : > { %1053 = sbr.rel (%p18740_p3) target bundleno = 6554 (0x199a), region = 144 }
 0x14d   : > { %s14654_s12 = sand.u32 1, %s14203_s23   ;;  %p18741_p6 = scmp.ne.s32.totalorder %s18735_s3, 0 }
 0x14e   : > { %s12555_s18 = sshll.u32 %s14654_s12, 3  ;;  %s1056_s13 = scalar_lea.sflag [#allocation3], %s14654_s12 }
 0x14f   : > { %s14658_s6 = scalar_lea.vmem [#allocation2], %s12555_s18 }
 0x150   : > { %14154 = dma.done.wait (%p18741_p6), %s1056_s13, 128  }
 0x151   : > { %14156 = vsyncadd (%p18741_p6), %s1056_s13, 4294967168  ;;  %p18742_p10 = scmp.eq.s32.totalorder %s14470_s2, 0 }
 0x153   : > { %14158 = dma.done.wait (%p18742_p10), [#allocation6], 144   ;;  %p18743_p11 = pmov %p18742_p10 }
 0x154   : > { %p18744_p12 = pmov %p18742_p10 }
 0x155   : > { %14160 = vsyncadd (%p18743_p11), [#allocation6], 4294967152 }
 0x156   : > { %14162 = dma.done.wait (%p18744_p12), [#allocation9], 32   ;;  %p18745_p7 = pmov %p18742_p10 }
 0x158   : > { %14164 = vsyncadd (%p18745_p7), [#allocation9], 4294967264  ;;  %p18746_p4 = pmov %p18745_p7 }
 0x15a   : > { %14166 = dma.done.wait (%p18746_p4), [#allocation12], 32   ;;  %p18747_p2 = pmov %p18746_p4 }
 0x15c   : > { %14168 = vsyncadd (%p18747_p2), [#allocation12], 4294967264  ;;  %p18748_p5 = pmov %p18747_p2 }
 0x15d   : > { %p18749_p8 = pmov %p18747_p2 }
 0x15e   : > { %14170 = dma.done.wait (%p18748_p5), [#allocation15], 32  }
 0x15f   : > { %14172 = vsyncadd (%p18749_p8), [#allocation15], 4294967264  ;;  %p18750_p0 = pmov %p18747_p2 }
 0x161   : > { %14174 = dma.done.wait (%p18750_p0), [#allocation18], 32   ;;  %p18751_p9 = pmov %p18750_p0 }
 0x162   : > { %p18752_p13 = pmov %p18750_p0 }
 0x163   : > { %14176 = vsyncadd (%p18751_p9), [#allocation18], 4294967264 }
 0x164   : > { %14178 = dma.done.wait (%p18752_p13), [#allocation21], 32   ;;  %p18753_p1 = pmov %p18750_p0 }
 0x165   : > { %p18754_p3 = pmov %p18750_p0 }
 0x166   : > { %14180 = vsyncadd (%p18753_p1), [#allocation21], 4294967264 }
 0x167   : > { %14182 = dma.done.wait (%p18754_p3), [#allocation24], 32   ;;  %p18755_p6 = pmov %p18750_p0 }
 0x168   : > { %p18756_p10 = pmov %p18750_p0 }
 0x169   : > { %14184 = vsyncadd (%p18755_p6), [#allocation24], 4294967264 }
 0x16a   : > { %14186 = dma.done.wait (%p18756_p10), [#allocation27], 32   ;;  %p18757_p11 = pmov %p18750_p0 }
 0x16b   : > { %p18758_p12 = pmov %p18750_p0 }
 0x16c   : > { %14188 = vsyncadd (%p18757_p11), [#allocation27], 4294967264 }
 0x16d   : > { %14190 = dma.done.wait (%p18758_p12), [#allocation30], 32   ;;  %p18759_p7 = pmov %p18750_p0 }
 0x16e   : > { %s18760_s5 = sld [smem:[#allocation44_spill]]  ;;  %s12575_s9 = sshll.u32 %s14470_s2, 3  ;;  %v18483_v0 = vlaneseq  ;;  %v14263_v1 = vmov 1983009808   ;;  %v1230_v6 = vld [vmem:[#allocation5] sm:$0xff]  ;;  %vm1280_vm0 = vcmask 64512  }
 0x16f   : > { %14192 = vsyncadd (%p18759_p7), [#allocation30], 4294967264  ;;  %p1216_p4 = scmp.lt.s32.totalorder %s12575_s9, 15  ;;  %v1249_v2 = vunpack.c.l.s4 %v14263_v1  ;;  %12686 = vmatprep.subr.mxu0 %v1230_v6  ;;  %s18763_s3 = sld [smem:[#allocation47_spill]]  ;;  %v14264_v29 = vmov 1966171168  }
 0x170   : > { %v14702_v3 = vshrl.u32 %v18483_v0, 7  ;;  %12687 = vmatpush3.msra.mxu0 %v1230_v6  ;;  %v1408_v30 = vunpack.c.l.s4 %v14264_v29  ;;  %v1404_v32 = vld [vmem:[%s14658_s6] sm:$0xff]  ;;  %v12577_v41 = vld [vmem:[#allocation7] ss:$0 sm:$0xff]  ;;  %vm1556_vm1 = vcmask 261120   ;;  %s14265_s28 = smov 96  }
 0x171   : > { %s19163_s9 = smov (!%p1216_p4, %s12575_s9), 15  ;;  %v1250_v4 = vunpack.c.0.s8 %v1249_v2  ;;  %v1406_v33 = vcombine.high %v1404_v32, %v1404_v32  ;;  %s14266_s15 = smov 56   ;;  %vm1912_vm2 = vcmask 58368   ;;  %vm2059_vm3 = vcmask 1041409  }
 0x172   : > { %18761 = vst [vmem:[#allocation67_spill] sm:$0xff] %v14702_v3  ;;  %s12576_s4 = sshll.u32 %s19163_s9, 1  ;;  %v1409_v31 = vunpack.c.0.s8 %v1408_v30  ;;  %v14729_v48 = vsub.s32 0, %v14702_v3  ;;  %s14267_s10 = smov 48   ;;  %vm2076_vm4 = vcmask 9216   ;;  %vm5621_vm5 = vcmask 130048  }
 0x173   : > { %v14706_v5 = vsub.s32 %v1250_v4, %v14702_v3  ;;  %s14268_s18 = smov 40   ;;  %s14269_s13 = smov 120   ;;  %vm5630_vm6 = vcmask 195584   ;;  %vm6307_vm7 = vcmask 523264  }
 0x174   : > { %s1219_s7 = scalar_lea.vmem %s18760_s5, %s12576_s4  ;;  %v14720_v34 = vsub.s32 %v1409_v31, %v14702_v3  ;;  %s14270_s6 = smov 112  }
 0x175   : > { %18762 = vst [vmem:[#allocation68_spill] sm:$0xff] %v14706_v5  ;;  %v1222_v7 = vld [vmem:[%s1219_s7] sm:$0x3]  ;;  %v1223_v8 = vld [vmem:[%s1219_s7 + $0x2] sm:$0x3]  ;;  %v1506_v25 = vld [vmem:[%s18763_s3 + $0x18] sm:$0xff] }
 0x176   : > { %v1224_v9 = vld [vmem:[%s1219_s7 + $0x4] sm:$0x3]  ;;  %v1225_v10 = vld [vmem:[%s1219_s7 + $0x6] sm:$0x3]  ;;  %v1246_v11 = vcombine.low %v1222_v7, %v1223_v8  ;;  %v1226_v12 = vld [vmem:[%s1219_s7 + $0x8] sm:$0x3]  ;;  %12691 = vmatprep.subr.mxu1 %v1506_v25  ;;  %v1420_v35 = vrot.slane %v1406_v33, %v14720_v34  ;;  %v1413_v36 = vrot.slane %v1404_v32, %v14720_v34 }
 0x177   : > { %v1247_v13 = vcombine.low %v1224_v9, %v1225_v10  ;;  %v1227_v14 = vld [vmem:[%s1219_s7 + $0xa] sm:$0x3]  ;;  %v1228_v15 = vld [vmem:[%s1219_s7 + $0xc] sm:$0x3]  ;;  %v1229_v16 = vld [vmem:[%s1219_s7 + $0xe] sm:$0x3]  ;;  %12692 = vmatpush3.msra.mxu1 %v1506_v25 }
 0x178   : > { %v1254_v17 = vrot.slane %v1246_v11, %v14706_v5  ;;  %v1263_v18 = vcombine.low %v1226_v12, %v1227_v14  ;;  %v1264_v19 = vcombine.low %v1228_v15, %v1229_v16  ;;  %v1505_v26 = vld [vmem:[%s18763_s3 + $0x10] sm:$0xff]  ;;  %v1504_v27 = vld [vmem:[%s18763_s3 + $0x8] sm:$0xff]  ;;  %v1503_v28 = vld [vmem:[%s18763_s3] sm:$0xff]  ;;  %18764 = vst [vmem:[#allocation69_spill] sm:$0xff] %v14720_v34  ;;  %v1422_v37 = vcombine.high %v1420_v35, %v1420_v35  ;;  %s18584_s5 = smov 104   ;;  %s18582_s9 = smov 64  }
 0x179   : > { %v1261_v20 = vrot.slane %v1247_v13, %v14706_v5  ;;  %12693 = vmatprep.subr.mxu1 %v1505_v26  ;;  %v1421_v38 = vcombine.high %v1413_v36, %v1413_v36  ;;  %v1436_v39 = vrot.slane %v1420_v35, %v14720_v34  ;;  %v1429_v42 = vrot.slane %v1413_v36, %v14720_v34  ;;  %s18590_s4 = smov 8   ;;  %s18588_s7 = smov 16  }
 0x17a   : > { %v1271_v21 = vrot.slane %v1263_v18, %v14706_v5  ;;  %v1278_v22 = vrot.slane %v1264_v19, %v14706_v5  ;;  %12694 = vmatpush3.msra.mxu1 %v1505_v26  ;;  %v1450_v40 = vrot.slane %v1422_v37, %v14720_v34  ;;  %p19154_p5 = scmp.ne.s32.totalorder %s18736_s11, 0 }
 0x17b   : > { %v1262_v23 = vcombine.low %v1254_v17, %v1261_v20  ;;  %12695 = vmatprep.subr.mxu1 %v1504_v27  ;;  %v1443_v43 = vrot.slane %v1421_v38, %v14720_v34  ;;  %v1452_v45 = vcombine.high %v1436_v39, %v1436_v39  ;;  %v1451_v50 = vcombine.high %v1429_v42, %v1429_v42 }
 0x17c   : > { %v1279_v24 = vcombine.low %v1271_v21, %v1278_v22  ;;  %12696 = vmatpush3.msra.mxu1 %v1504_v27  ;;  %v1454_v47 = vcombine.high %v1450_v40, %v1450_v40  ;;  %v1478_v55 = vrot.slane %v1450_v40, %v14729_v48  ;;  %v1474_v61 = vrot.slane %v1436_v39, %v14729_v48 }
 0x17d   : > { %12688 = vmatprep.mubr.msk.f32.mxu0 %vm1280_vm0, %v1262_v23  ;;  %12697 = vmatprep.subr.mxu1 %v1503_v28  ;;  %v1453_v54 = vcombine.high %v1443_v43, %v1443_v43  ;;  %v1482_v56 = vrot.slane %v1452_v45, %v14729_v48  ;;  %v1458_v63 = vrot.slane %v1429_v42, %v14729_v48 }
 0x17e   : > { %12689 = vmatmul.mubr.msk.f32.vlgmr.msra.gmra.mxu0 %vm1280_vm0, %v1279_v24  ;;  %12698 = vmatpush3.msra.mxu1 %v1503_v28  ;;  %v1486_v59 = vrot.slane %v1454_v47, %v14729_v48  ;;  %v1462_v1 = vrot.slane %v1443_v43, %v14729_v48  ;;  %v1466_v6 = vrot.slane %v1451_v50, %v14729_v48  ;;  %v12580_v28 = vld [vmem:[#allocation8] ss:$0 sm:$0xff] }
 0x17f   : > { %v1470_v7 = vrot.slane %v1453_v54, %v14729_v48 }
 0x23e   : > { %v12690_v44 = vpop.f32.mrf.mxu0 }
 0x23f   : > { %v1357_v46 = vadd.f32 %v12690_v44, %v12577_v41 }
 0x240   : > { %v1351_v49 = vpop.f32.mrf.mxu0 }
 0x241   : > { %v1379_v51 = vcombine.high %v1357_v46, %v1357_v46  ;;  %v1386_v52 = vrot.slane %v1357_v46, %v14706_v5  ;;  %v1352_v53 = vadd.f32 %v12577_v41, %v1351_v49 }
 0x243   : > { %v1393_v57 = vrot.slane %v1379_v51, %v14706_v5  ;;  %v1394_v58 = vcombine.high %v1386_v52, %v1386_v52  ;;  %v1362_v60 = vcombine.high %v1352_v53, %v1352_v53  ;;  %v1369_v62 = vrot.slane %v1352_v53, %v14706_v5 }
 0x244   : > { %v14749_v13 = vadd.f32 %v1474_v61, %v1386_v52 }
 0x245   : > { %v1395_v2 = vcombine.high %v1393_v57, %v1393_v57  ;;  %v1376_v4 = vrot.slane %v1362_v60, %v14706_v5  ;;  %v14743_v8 = vadd.f32 %v1478_v55, %v1394_v58  ;;  %v1377_v9 = vcombine.high %v1369_v62, %v1369_v62 }
 0x246   : > { %v14745_v10 = vadd.f32 %v1482_v56, %v1393_v57  ;;  %18768 = vst [vmem:[#allocation73_spill] sm:$0xff] %v14749_v13  ;;  %v14751_v14 = vadd.f32 %v1458_v63, %v1369_v62 }
 0x247   : > { %18765 = vst [vmem:[#allocation70_spill] sm:$0xff] %v14743_v8  ;;  %v14747_v11 = vadd.f32 %v1486_v59, %v1395_v2  ;;  %v1378_v12 = vcombine.high %v1376_v4, %v1376_v4  ;;  %v14753_v15 = vadd.f32 %v1462_v1, %v1377_v9  ;;  %v14757_v17 = vadd.f32 %v1466_v6, %v1376_v4 }
 0x248   : > { %18766 = vst [vmem:[#allocation71_spill] sm:$0xff] %v14745_v10  ;;  %18769 = vst [vmem:[#allocation74_spill] sm:$0xff] %v14751_v14  ;;  %v1539_v19 = vcombine.low %v14749_v13, %v14743_v8 }
 0x249   : > { %18767 = vst [vmem:[#allocation72_spill] sm:$0xff] %v14747_v11  ;;  %18770 = vst [vmem:[#allocation75_spill] sm:$0xff] %v14753_v15  ;;  %v1540_v16 = vcombine.low %v14745_v10, %v14747_v11  ;;  %v14759_v18 = vadd.f32 %v1470_v7, %v1378_v12  ;;  %v1522_v20 = vcombine.low %v14751_v14, %v14753_v15 }
 0x24a   : > { %18771 = vst [vmem:[#allocation76_spill] sm:$0xff] %v14757_v17  ;;  %v1547_v25 = vrot.slane %v1539_v19, %v14706_v5 }
 0x24b   : > { %18772 = vst [vmem:[#allocation77_spill] sm:$0xff] %v14759_v18  ;;  %v1523_v21 = vcombine.low %v14757_v17, %v14759_v18  ;;  %v1554_v22 = vrot.slane %v1540_v16, %v14706_v5  ;;  %v1530_v23 = vrot.slane %v1522_v20, %v14706_v5 }
 0x24d   : > { %v1537_v24 = vrot.slane %v1523_v21, %v14706_v5  ;;  %v1555_v27 = vcombine.low %v1547_v25, %v1554_v22 }
 0x24f   : > { %v1538_v26 = vcombine.low %v1530_v23, %v1537_v24 }
 0x251   : > { %12699 = vmatprep.mubr.msk.f32.mxu1 %vm1556_vm1, %v1538_v26 }
 0x252   : > { %12700 = vmatmul.mubr.msk.f32.vlgmr.msra.gmra.mxu1 %vm1556_vm1, %v1555_v27 }
 0x312   : > { %v12701_v29 = vpop.f32.mrf.mxu1 }
 0x313   : > { %v1633_v30 = vadd.f32 %v12701_v29, %v12580_v28 }
 0x314   : > { %v1627_v36 = vpop.f32.mrf.mxu1 }
 0x315   : > { %v1662_v31 = vrot.slane %v1633_v30, %v14706_v5  ;;  %v1628_v37 = vadd.f32 %v12580_v28, %v1627_v36  ;;  %v1655_v38 = vcombine.high %v1633_v30, %v1633_v30 }
 0x317   : > { %v14774_v32 = vcombine.high %v1662_v31, %v1662_v31  ;;  %v14777_v33 = vrot.slane %v1662_v31, %v14706_v5  ;;  %v1638_v39 = vcombine.high %v1628_v37, %v1628_v37  ;;  %v14794_v40 = vrot.slane %v1628_v37, %v14706_v5 }
 0x318   : > { %v14799_v41 = vrot.slane %v1655_v38, %v14706_v5  ;;  %v1710_v53 = vrot.slane %v1662_v31, %v14720_v34 }
 0x319   : > { %18773 = vst [vmem:[#allocation78_spill] sm:$0xff] %v14777_v33  ;;  %v14781_v35 = vrot.slane %v14774_v32, %v14706_v5  ;;  %1880 = vrot.lane.b32.xlu0 %v14777_v33, %s14265_s28  ;;  %v14802_v42 = vrot.slane %v1638_v39, %v14706_v5  ;;  %v14808_v43 = vrot.slane %v14794_v40, %v14706_v5 }
 0x31a   : > { %v14814_v44 = vcombine.high %v14799_v41, %v14799_v41  ;;  %v14824_v46 = vrot.slane %v14799_v41, %v14706_v5  ;;  %v14834_v49 = vcombine.high %v14794_v40, %v14794_v40  ;;  %v1711_v54 = vcombine.high %v1710_v53, %v1710_v53 }
 0x31b   : > { %18774 = vst [vmem:[#allocation79_spill] sm:$0xff] %v14781_v35  ;;  %1882 = vrot.lane.b32.xlu1 %v14781_v35, %s14265_s28  ;;  %18775 = vst [vmem:[#allocation80_spill] sm:$0xff] %v14808_v43  ;;  %v14818_v45 = vrot.slane %v14802_v42, %v14706_v5  ;;  %v14866_v51 = vcombine.high %v14802_v42, %v14802_v42  ;;  %v1771_v55 = vrot.slane %v1710_v53, %v14729_v48 }
 0x31c   : > { %18777 = vst [vmem:[#allocation82_spill] sm:$0xff] %v14824_v46  ;;  %v14830_v47 = vrot.slane %v14814_v44, %v14706_v5  ;;  %v14842_v50 = vrot.slane %v14834_v49, %v14706_v5  ;;  %v1775_v56 = vrot.slane %v1711_v54, %v14729_v48  ;;  %v1678_v1 = vrot.slane %v14794_v40, %v14720_v34 }
 0x31d   : > { %3517 = vrot.lane.b32.xlu0 %v14777_v33, %s14266_s15  ;;  %18776 = vst [vmem:[#allocation81_spill] sm:$0xff] %v14818_v45  ;;  %v14874_v52 = vrot.slane %v14866_v51, %v14706_v5  ;;  %v1718_v4 = vrot.slane %v14774_v32, %v14720_v34  ;;  %v1726_v19 = vrot.slane %v14799_v41, %v14720_v34 }
 0x31e   : > { %18778 = vst [vmem:[#allocation83_spill] sm:$0xff] %v14830_v47  ;;  %18779 = vst [vmem:[#allocation84_spill] sm:$0xff] %v14842_v50  ;;  %v1679_v6 = vcombine.high %v1678_v1, %v1678_v1  ;;  %v1739_v12 = vrot.slane %v1678_v1, %v14729_v48 }
 0x31f   : > { %3519 = vrot.lane.b32.xlu1 %v14781_v35, %s14266_s15  ;;  %18780 = vst [vmem:[#allocation85_spill] sm:$0xff] %v14874_v52  ;;  %v1719_v9 = vcombine.high %v1718_v4, %v1718_v4  ;;  %v1779_v23 = vrot.slane %v1718_v4, %v14729_v48  ;;  %v1727_v25 = vcombine.high %v1726_v19, %v1726_v19 }
 0x320   : > { %v1743_v16 = vrot.slane %v1679_v6, %v14729_v48  ;;  %v1787_v29 = vrot.slane %v1726_v19, %v14729_v48  ;;  %v1694_v6 = vrot.slane %v14802_v42, %v14720_v34 }
 0x321   : > { %4405 = vrot.lane.b32.xlu0 %v14777_v33, %s14267_s10  ;;  %v1783_v24 = vrot.slane %v1719_v9, %v14729_v48  ;;  %v1791_v30 = vrot.slane %v1727_v25, %v14729_v48 }
 0x323   : > { %4407 = vrot.lane.b32.xlu1 %v14781_v35, %s14267_s10 }
 0x325   : > { %5293 = vrot.lane.b32.xlu0 %v14777_v33, %s14268_s18 }
 0x327   : > { %5295 = vrot.lane.b32.xlu1 %v14781_v35, %s14268_s18 }
 0x329   : > { %1872 = vrot.lane.b32.xlu0 %v14808_v43, %s14265_s28 }
 0x32b   : > { %1876 = vrot.lane.b32.xlu1 %v14818_v45, %s14265_s28 }
 0x32d   : > { %1884 = vrot.lane.b32.xlu0 %v14824_v46, %s14265_s28 }
 0x32f   : > { %1886 = vrot.lane.b32.xlu1 %v14830_v47, %s14265_s28 }
 0x331   : > { %3509 = vrot.lane.b32.xlu0 %v14808_v43, %s14266_s15 }
 0x333   : > { %3511 = vrot.lane.b32.xlu1 %v14842_v50, %s14266_s15 }
 0x335   : > { %3521 = vrot.lane.b32.xlu0 %v14824_v46, %s14266_s15 }
 0x337   : > { %3523 = vrot.lane.b32.xlu1 %v14830_v47, %s14266_s15 }
 0x339   : > { %4397 = vrot.lane.b32.xlu0 %v14808_v43, %s14267_s10 }
 0x33b   : > { %4399 = vrot.lane.b32.xlu1 %v14842_v50, %s14267_s10 }
 0x33d   : > { %4409 = vrot.lane.b32.xlu0 %v14824_v46, %s14267_s10 }
 0x33f   : > { %4411 = vrot.lane.b32.xlu1 %v14830_v47, %s14267_s10 }
 0x341   : > { %5285 = vrot.lane.b32.xlu0 %v14808_v43, %s14268_s18 }
 0x343   : > { %5287 = vrot.lane.b32.xlu1 %v14842_v50, %s14268_s18 }
 0x345   : > { %5297 = vrot.lane.b32.xlu0 %v14824_v46, %s14268_s18 }
 0x347   : > { %5299 = vrot.lane.b32.xlu1 %v14830_v47, %s14268_s18 }
 0x349   : > { %1874 = vrot.lane.b32.xlu0 %v14842_v50, %s14265_s28 }
 0x34b   : > { %1878 = vrot.lane.b32.xlu1 %v14874_v52, %s14265_s28 }
 0x34d   : > { %3513 = vrot.lane.b32.xlu0 %v14818_v45, %s14266_s15 }
 0x34f   : > { %3515 = vrot.lane.b32.xlu1 %v14874_v52, %s14266_s15 }
 0x351   : > { %4401 = vrot.lane.b32.xlu0 %v14818_v45, %s14267_s10 }
 0x353   : > { %4403 = vrot.lane.b32.xlu1 %v14874_v52, %s14267_s10 }
 0x355   : > { %5289 = vrot.lane.b32.xlu0 %v14818_v45, %s14268_s18 }
 0x357   : > { %5291 = vrot.lane.b32.xlu1 %v14874_v52, %s14268_s18 }
 0x38b   : > { %v1881_v57 = vpop.permute.xlu0 %1880 }
 0x38c   : > { %v1904_v58 = vmul.f32 %v1881_v57, %v1771_v55  ;;  %v1905_v59 = vmul.f32 %v1881_v57, %v1775_v56 }
 0x38d   : > { %v1883_v22 = vpop.permute.xlu1 %1882 }
 0x38e   : > { %2789 = vrot.lane.b32.xlu0 %v1904_v58, %s14269_s13  ;;  %2791 = vrot.lane.b32.xlu1 %v1905_v59, %s14269_s13  ;;  %v1940_v61 = vsel %vm1912_vm2, %v1905_v59, 0.0  ;;  %v1937_v62 = vsel %vm1912_vm2, %v1904_v58, 0.0  ;;  %v1906_v26 = vmul.f32 %v1883_v22, %v1779_v23  ;;  %v1907_v27 = vmul.f32 %v1883_v22, %v1783_v24 }
 0x38f   : > { %v14901_v60 = vpop.permute.xlu0 %3517 }
 0x390   : > { %18781 = vst [vmem:[#allocation86_spill] sm:$0xff] %v14901_v60  ;;  %v1946_v41 = vsel %vm1912_vm2, %v1907_v27, 0.0  ;;  %v1943_v56 = vsel %vm1912_vm2, %v1906_v26, 0.0 }
 0x391   : > { %v14946_v40 = vpop.permute.xlu1 %3519 }
 0x392   : > { %3677 = vrot.lane.b32.xlu0 %v1904_v58, %s14270_s6  ;;  %3679 = vrot.lane.b32.xlu1 %v1905_v59, %s14270_s6  ;;  %18787 = vst [vmem:[#allocation92_spill] sm:$0xff] %v14946_v40 }
 0x393   : > { %v14905_v63 = vpop.permute.xlu0 %4405 }
 0x394   : > { %18782 = vst [vmem:[#allocation87_spill] sm:$0xff] %v14905_v63 }
 0x395   : > { %v14954_v57 = vpop.permute.xlu1 %4407 }
 0x396   : > { %4565 = vrot.lane.b32.xlu0 %v1904_v58, %s18584_s5  ;;  %4567 = vrot.lane.b32.xlu1 %v1905_v59, %s18584_s5  ;;  %18789 = vst [vmem:[#allocation94_spill] sm:$0xff] %v14954_v57 }
 0x397   : > { %v14909_v2 = vpop.permute.xlu0 %5293 }
 0x398   : > { %18783 = vst [vmem:[#allocation88_spill] sm:$0xff] %v14909_v2 }
 0x39b   : > { %v1873_v7 = vpop.permute.xlu0 %1872 }
 0x39c   : > { %v1896_v20 = vmul.f32 %v1873_v7, %v1739_v12  ;;  %v1897_v21 = vmul.f32 %v1873_v7, %v1743_v16  ;;  %v1695_v12 = vcombine.high %v1694_v6, %v1694_v6  ;;  %v1734_v16 = vrot.slane %v14814_v44, %v14720_v34 }
 0x39e   : > { %v1916_v38 = vsel %vm1912_vm2, %v1897_v21, 0.0  ;;  %v1913_v53 = vsel %vm1912_vm2, %v1896_v20, 0.0  ;;  %v1759_v24 = vrot.slane %v1695_v12, %v14729_v48  ;;  %v1735_v25 = vcombine.high %v1734_v16, %v1734_v16 }
 0x39f   : > { %v1885_v28 = vpop.permute.xlu0 %1884  ;;  %v1795_v44 = vrot.slane %v1734_v16, %v14729_v48 }
 0x3a0   : > { %v1908_v31 = vmul.f32 %v1885_v28, %v1787_v29  ;;  %v1909_v32 = vmul.f32 %v1885_v28, %v1791_v30  ;;  %v1799_v28 = vrot.slane %v1735_v25, %v14729_v48 }
 0x3a2   : > { %v1952_v55 = vsel %vm1912_vm2, %v1909_v32, 0.0  ;;  %v1949_v58 = vsel %vm1912_vm2, %v1908_v31, 0.0 }
 0x3a3   : > { %v14939_v36 = vpop.permute.xlu0 %3509 }
 0x3a4   : > { %18784 = vst [vmem:[#allocation89_spill] sm:$0xff] %v14939_v36 }
 0x3a7   : > { %v14941_v37 = vpop.permute.xlu0 %3521 }
 0x3a8   : > { %18785 = vst [vmem:[#allocation90_spill] sm:$0xff] %v14941_v37 }
 0x3ab   : > { %v14944_v39 = vpop.permute.xlu0 %4397 }
 0x3ac   : > { %18786 = vst [vmem:[#allocation91_spill] sm:$0xff] %v14944_v39 }
 0x3af   : > { %v14950_v54 = vpop.permute.xlu0 %4409 }
 0x3b0   : > { %18788 = vst [vmem:[#allocation93_spill] sm:$0xff] %v14950_v54 }
 0x3b3   : > { %v14957_v59 = vpop.permute.xlu0 %5285 }
 0x3b4   : > { %18790 = vst [vmem:[#allocation95_spill] sm:$0xff] %v14957_v59 }
 0x3b5   : > { %1941 = vadd.xlane.f32.xlu0 %v1940_v61  ;;  %v14959_v61 = vpop.permute.xlu1 %5295 }
 0x3b6   : > { %18791 = vst [vmem:[#allocation96_spill] sm:$0xff] %v14959_v61 }
 0x3b7   : > { %v14963_v1 = vpop.permute.xlu0 %5297 }
 0x3b8   : > { %18792 = vst [vmem:[#allocation97_spill] sm:$0xff] %v14963_v1 }
 0x3b9   : > { %v1877_v4 = vpop.permute.xlu1 %1876 }
 0x3ba   : > { %1938 = vadd.xlane.f32.xlu1 %v1937_v62  ;;  %v1686_v62 = vrot.slane %v14834_v49, %v14720_v34  ;;  %v1755_v49 = vrot.slane %v1694_v6, %v14729_v48 }
 0x3bb   : > { %v1875_v9 = vpop.permute.xlu0 %1874 }
 0x3bc   : > { %v1687_v7 = vcombine.high %v1686_v62, %v1686_v62  ;;  %v1747_v19 = vrot.slane %v1686_v62, %v14729_v48  ;;  %v1900_v42 = vmul.f32 %v1877_v4, %v1755_v49 }
 0x3be   : > { %v1898_v22 = vmul.f32 %v1875_v9, %v1747_v19 }
 0x3c0   : > { %v1919_v49 = vsel %vm1912_vm2, %v1898_v22, 0.0 }
 0x3cb   : > { %2773 = vrot.lane.b32.xlu0 %v1896_v20, %s14269_s13  ;;  %2775 = vrot.lane.b32.xlu1 %v1897_v21, %s14269_s13 }
 0x3cf   : > { %2793 = vrot.lane.b32.xlu0 %v1906_v26, %s14269_s13  ;;  %2795 = vrot.lane.b32.xlu1 %v1907_v27, %s14269_s13 }
 0x3d3   : > { %2797 = vrot.lane.b32.xlu0 %v1908_v31, %s14269_s13  ;;  %2799 = vrot.lane.b32.xlu1 %v1909_v32, %s14269_s13 }
 0x3d7   : > { %3661 = vrot.lane.b32.xlu0 %v1896_v20, %s14270_s6  ;;  %3663 = vrot.lane.b32.xlu1 %v1897_v21, %s14270_s6 }
 0x3db   : > { %3681 = vrot.lane.b32.xlu0 %v1906_v26, %s14270_s6  ;;  %3683 = vrot.lane.b32.xlu1 %v1907_v27, %s14270_s6 }
 0x3df   : > { %3685 = vrot.lane.b32.xlu0 %v1908_v31, %s14270_s6  ;;  %3687 = vrot.lane.b32.xlu1 %v1909_v32, %s14270_s6 }
 0x3e3   : > { %4549 = vrot.lane.b32.xlu0 %v1896_v20, %s18584_s5  ;;  %4551 = vrot.lane.b32.xlu1 %v1897_v21, %s18584_s5  ;;  %v1751_v20 = vrot.slane %v1687_v7, %v14729_v48  ;;  %v1887_v21 = vpop.permute.xlu1 %1886 }
 0x3e4   : > { %v1910_v29 = vmul.f32 %v1887_v21, %v1795_v44  ;;  %v1911_v30 = vmul.f32 %v1887_v21, %v1799_v28  ;;  %v1925_v44 = vsel %vm1912_vm2, %v1900_v42, 0.0 }
 0x3e5   : > { %v1899_v23 = vmul.f32 %v1875_v9, %v1751_v20 }
 0x3e6   : > { %v1958_v25 = vsel %vm1912_vm2, %v1911_v30, 0.0 }
 0x3e7   : > { %4569 = vrot.lane.b32.xlu0 %v1906_v26, %s18584_s5  ;;  %4571 = vrot.lane.b32.xlu1 %v1907_v27, %s18584_s5  ;;  %v1901_v26 = vmul.f32 %v1877_v4, %v1759_v24  ;;  %v14975_v27 = vpop.permute.xlu1 %3511  ;;  %v1922_v19 = vsel %vm1912_vm2, %v1899_v23, 0.0 }
 0x3e8   : > { %18793 = vst [vmem:[#allocation98_spill] sm:$0xff] %v14975_v27 }
 0x3e9   : > { %v1928_v20 = vsel %vm1912_vm2, %v1901_v26, 0.0 }
 0x3eb   : > { %4573 = vrot.lane.b32.xlu0 %v1908_v31, %s18584_s5  ;;  %4575 = vrot.lane.b32.xlu1 %v1909_v32, %s18584_s5  ;;  %v14983_v31 = vpop.permute.xlu1 %3523 }
 0x3ec   : > { %18794 = vst [vmem:[#allocation99_spill] sm:$0xff] %v14983_v31 }
 0x3ef   : > { %v14987_v32 = vpop.permute.xlu1 %4399 }
 0x3f0   : > { %18795 = vst [vmem:[#allocation100_spill] sm:$0xff] %v14987_v32 }
 0x40a   : > { %1917 = vadd.xlane.f32.xlu0 %v1916_v38  ;;  %v14993_v38 = vpop.permute.xlu1 %4411 }
 0x40b   : > { %18796 = vst [vmem:[#allocation101_spill] sm:$0xff] %v14993_v38 }
 0x40e   : > { %1947 = vadd.xlane.f32.xlu0 %v1946_v41  ;;  %v14997_v41 = vpop.permute.xlu1 %5287 }
 0x40f   : > { %1914 = vadd.xlane.f32.xlu1 %v1913_v53  ;;  %18797 = vst [vmem:[#allocation102_spill] sm:$0xff] %v14997_v41 }
 0x412   : > { %1953 = vadd.xlane.f32.xlu0 %v1952_v55  ;;  %v15003_v53 = vpop.permute.xlu1 %5299 }
 0x413   : > { %1944 = vadd.xlane.f32.xlu1 %v1943_v56  ;;  %18798 = vst [vmem:[#allocation103_spill] sm:$0xff] %v15003_v53  ;;  %v15005_v56 = vpop.permute.xlu0 %3513 }
 0x414   : > { %18799 = vst [vmem:[#allocation104_spill] sm:$0xff] %v15005_v56 }
 0x416   : > { %v1879_v55 = vpop.permute.xlu1 %1878 }
 0x417   : > { %1950 = vadd.xlane.f32.xlu1 %v1949_v58  ;;  %v15009_v62 = vpop.permute.xlu0 %4401 }
 0x418   : > { %18801 = vst [vmem:[#allocation106_spill] sm:$0xff] %v15009_v62 }
 0x41a   : > { %v15007_v58 = vpop.permute.xlu1 %3515 }
 0x41b   : > { %18800 = vst [vmem:[#allocation105_spill] sm:$0xff] %v15007_v58  ;;  %v15013_v6 = vpop.permute.xlu0 %5289 }
 0x41c   : > { %18803 = vst [vmem:[#allocation108_spill] sm:$0xff] %v15013_v6 }
 0x41e   : > { %v15011_v4 = vpop.permute.xlu1 %4403 }
 0x41f   : > { %18802 = vst [vmem:[#allocation107_spill] sm:$0xff] %v15011_v4  ;;  %v2790_v7 = vpop.permute.xlu0 %2789 }
 0x420   : > { %v2845_v41 = vsel %vm1912_vm2, %v2790_v7, 0.0 }
 0x422   : > { %v15015_v9 = vpop.permute.xlu1 %5291 }
 0x423   : > { %18804 = vst [vmem:[#allocation109_spill] sm:$0xff] %v15015_v9  ;;  %v15017_v16 = vpop.permute.xlu0 %3677 }
 0x426   : > { %v2792_v12 = vpop.permute.xlu1 %2791 }
 0x427   : > { %v15022_v24 = vpop.permute.xlu0 %4565  ;;  %v2848_v4 = vsel %vm1912_vm2, %v2792_v12, 0.0  ;;  %v3733_v12 = vsel %vm1912_vm2, %v15017_v16, 0.0 }
 0x428   : > { %2777 = vrot.lane.b32.xlu0 %v1898_v22, %s14269_s13  ;;  %2779 = vrot.lane.b32.xlu1 %v1899_v23, %s14269_s13 }
 0x42a   : > { %v3680_v21 = vpop.permute.xlu1 %3679 }
 0x42b   : > { %v3736_v6 = vsel %vm1912_vm2, %v3680_v21, 0.0 }
 0x42c   : > { %2781 = vrot.lane.b32.xlu0 %v1900_v42, %s14269_s13  ;;  %2783 = vrot.lane.b32.xlu1 %v1901_v26, %s14269_s13 }
 0x42e   : > { %v4568_v0 = vpop.permute.xlu1 %4567 }
 0x430   : > { %2801 = vrot.lane.b32.xlu0 %v1910_v29, %s14269_s13  ;;  %2803 = vrot.lane.b32.xlu1 %v1911_v30, %s14269_s13 }
 0x434   : > { %3665 = vrot.lane.b32.xlu0 %v1898_v22, %s14270_s6  ;;  %3667 = vrot.lane.b32.xlu1 %v1899_v23, %s14270_s6 }
 0x438   : > { %3669 = vrot.lane.b32.xlu0 %v1900_v42, %s14270_s6  ;;  %3671 = vrot.lane.b32.xlu1 %v1901_v26, %s14270_s6 }
 0x43c   : > { %3689 = vrot.lane.b32.xlu0 %v1910_v29, %s14270_s6  ;;  %3691 = vrot.lane.b32.xlu1 %v1911_v30, %s14270_s6 }
 0x43e   : > { %v15026_v28 = vpop.xlane.xlu0 %1941 }
 0x440   : > { %4553 = vrot.lane.b32.xlu0 %v1898_v22, %s18584_s5  ;;  %4555 = vrot.lane.b32.xlu1 %v1899_v23, %s18584_s5  ;;  %v1955_v23 = vsel %vm1912_vm2, %v1910_v29, 0.0  ;;  %v1702_v22 = vrot.slane %v14866_v51, %v14720_v34 }
 0x442   : > { %v1703_v18 = vcombine.high %v1702_v22, %v1702_v22 }
 0x444   : > { %4557 = vrot.lane.b32.xlu0 %v1900_v42, %s18584_s5  ;;  %4559 = vrot.lane.b32.xlu1 %v1901_v26, %s18584_s5  ;;  %v15029_v26 = vpop.xlane.xlu1 %1938  ;;  %v1767_v42 = vrot.slane %v1703_v18, %v14729_v48 }
 0x446   : > { %v1903_v15 = vmul.f32 %v1879_v55, %v1767_v42 }
 0x448   : > { %4577 = vrot.lane.b32.xlu0 %v1910_v29, %s18584_s5  ;;  %4579 = vrot.lane.b32.xlu1 %v1911_v30, %s18584_s5  ;;  %v1763_v30 = vrot.slane %v1702_v22, %v14729_v48  ;;  %v1934_v5 = vsel %vm1912_vm2, %v1903_v15, 0.0 }
 0x467   : > { %1923 = vadd.xlane.f32.xlu0 %v1922_v19  ;;  %v2774_v19 = vpop.permute.xlu0 %2773 }
 0x46b   : > { %1929 = vadd.xlane.f32.xlu0 %v1928_v20  ;;  %v2776_v20 = vpop.permute.xlu1 %2775 }
 0x46c   : > { %1920 = vadd.xlane.f32.xlu1 %v1919_v49  ;;  %v2794_v49 = vpop.permute.xlu0 %2793 }
 0x46f   : > { %1959 = vadd.xlane.f32.xlu0 %v1958_v25  ;;  %v2796_v25 = vpop.permute.xlu1 %2795 }
 0x470   : > { %1926 = vadd.xlane.f32.xlu1 %v1925_v44  ;;  %v2798_v17 = vpop.permute.xlu0 %2797  ;;  %v1902_v44 = vmul.f32 %v1879_v55, %v1763_v30 }
 0x472   : > { %v1931_v58 = vsel %vm1912_vm2, %v1902_v44, 0.0 }
 0x473   : > { %v2800_v29 = vpop.permute.xlu1 %2799 }
 0x474   : > { %1956 = vadd.xlane.f32.xlu1 %v1955_v23  ;;  %v3662_v23 = vpop.permute.xlu0 %3661  ;;  %v2860_v16 = vsel %vm1912_vm2, %v2800_v29, 0.0 }
 0x477   : > { %v3664_v51 = vpop.permute.xlu1 %3663 }
 0x478   : > { %v3682_v18 = vpop.permute.xlu0 %3681 }
 0x47b   : > { %v3684_v22 = vpop.permute.xlu1 %3683 }
 0x47c   : > { %v15041_v34 = vpop.permute.xlu0 %3685 }
 0x47f   : > { %v3688_v55 = vpop.permute.xlu1 %3687 }
 0x480   : > { %v15043_v30 = vpop.permute.xlu0 %4549 }
 0x483   : > { %v4552_v42 = vpop.permute.xlu1 %4551 }
 0x484   : > { %v15045_v14 = vpop.permute.xlu0 %4569 }
 0x485   : > { %2785 = vrot.lane.b32.xlu0 %v1902_v44, %s14269_s13  ;;  %2787 = vrot.lane.b32.xlu1 %v1903_v15, %s14269_s13 }
 0x487   : > { %v4572_v11 = vpop.permute.xlu1 %4571 }
 0x488   : > { %v15047_v10 = vpop.permute.xlu0 %4573 }
 0x489   : > { %3673 = vrot.lane.b32.xlu0 %v1902_v44, %s14270_s6  ;;  %3675 = vrot.lane.b32.xlu1 %v1903_v15, %s14270_s6 }
 0x48b   : > { %v15051_v13 = vpop.permute.xlu1 %4575 }
 0x48d   : > { %4561 = vrot.lane.b32.xlu0 %v1902_v44, %s18584_s5  ;;  %4563 = vrot.lane.b32.xlu1 %v1903_v15, %s18584_s5  ;;  %s18940_s5 = sld [smem:[#allocation48_spill]] }
 0x493   : > { %v15049_v8 = vpop.xlane.xlu0 %1917 }
 0x497   : > { %v15057_v53 = vpop.xlane.xlu0 %1947 }
 0x498   : > { %v15054_v9 = vpop.xlane.xlu1 %1914 }
 0x49b   : > { %v15064_v15 = vpop.xlane.xlu0 %1953 }
 0x49c   : > { %v15062_v38 = vpop.xlane.xlu1 %1944 }
 0x49f   : > { %v2778_v21 = vpop.permute.xlu0 %2777 }
 0x4a3   : > { %v2782_v44 = vpop.permute.xlu0 %2781 }
 0x4ac   : > { %1935 = vadd.xlane.f32.xlu0 %v1934_v5  ;;  %v4624_v5 = vsel %vm1912_vm2, %v4568_v0, 0.0  ;;  %v2824_v0 = vsel %vm1912_vm2, %v2776_v20, 0.0  ;;  %v3709_v20 = vsel %vm1912_vm2, %v3662_v23, 0.0  ;;  %v4630_v23 = vsel %vm1912_vm2, %v4572_v11, 0.0 }
 0x4ad   : > { %v4633_v11 = vsel %vm1912_vm2, %v15047_v10, 0.0 }
 0x4b0   : > { %2849 = vadd.xlane.f32.xlu0 %v2848_v4  ;;  %v15069_v4 = vpop.xlane.xlu1 %1950 }
 0x4b1   : > { %1932 = vadd.xlane.f32.xlu1 %v1931_v58  ;;  %v2821_v58 = vsel %vm1912_vm2, %v2774_v19, 0.0 }
 0x4b4   : > { %3737 = vadd.xlane.f32.xlu0 %v3736_v6  ;;  %v4621_v6 = vsel %vm1912_vm2, %v15022_v24, 0.0  ;;  %v2780_v7 = vpop.permute.xlu1 %2779  ;;  %v2857_v24 = vsel %vm1912_vm2, %v2798_v17, 0.0  ;;  %v3745_v17 = vsel %vm1912_vm2, %v15041_v34, 0.0  ;;  %v2827_v34 = vsel %vm1912_vm2, %v2778_v21, 0.0 }
 0x4b5   : > { %2846 = vadd.xlane.f32.xlu1 %v2845_v41  ;;  %v2854_v41 = vsel %vm1912_vm2, %v2796_v25, 0.0  ;;  %v3742_v25 = vsel %vm1912_vm2, %v3684_v22, 0.0  ;;  %v4597_v22 = vsel %vm1912_vm2, %v15043_v30, 0.0  ;;  %v2830_v30 = vsel %vm1912_vm2, %v2780_v7, 0.0 }
 0x4b8   : > { %4625 = vadd.xlane.f32.xlu0 %v4624_v5  ;;  %v2851_v5 = vsel %vm1912_vm2, %v2794_v49, 0.0  ;;  %v2784_v19 = vpop.permute.xlu1 %2783  ;;  %v3739_v49 = vsel %vm1912_vm2, %v3682_v18, 0.0  ;;  %v4636_v18 = vsel %vm1912_vm2, %v15051_v13, 0.0 }
 0x4b9   : > { %3734 = vadd.xlane.f32.xlu1 %v3733_v12  ;;  %v3712_v12 = vsel %vm1912_vm2, %v3664_v51, 0.0 }
 0x4bc   : > { %2822 = vadd.xlane.f32.xlu0 %v2821_v58  ;;  %v2802_v58 = vpop.permute.xlu0 %2801 }
 0x4bd   : > { %4622 = vadd.xlane.f32.xlu1 %v4621_v6  ;;  %v2804_v6 = vpop.permute.xlu1 %2803 }
 0x4c0   : > { %2855 = vadd.xlane.f32.xlu0 %v2854_v41  ;;  %v3666_v29 = vpop.permute.xlu0 %3665  ;;  %v3748_v41 = vsel %vm1912_vm2, %v3688_v55, 0.0 }
 0x4c1   : > { %2825 = vadd.xlane.f32.xlu1 %v2824_v0  ;;  %v3668_v51 = vpop.permute.xlu1 %3667  ;;  %v4600_v0 = vsel %vm1912_vm2, %v4552_v42, 0.0  ;;  %v4627_v42 = vsel %vm1912_vm2, %v15045_v14, 0.0  ;;  %v2836_v14 = vsel %vm1912_vm2, %v2784_v19, 0.0  ;;  %v3715_v10 = vsel %vm1912_vm2, %v3666_v29, 0.0 }
 0x4c2   : > { %v3718_v7 = vsel %vm1912_vm2, %v3668_v51, 0.0 }
 0x4c4   : > { %2861 = vadd.xlane.f32.xlu0 %v2860_v16  ;;  %v3670_v16 = vpop.permute.xlu0 %3669 }
 0x4c5   : > { %2852 = vadd.xlane.f32.xlu1 %v2851_v5  ;;  %v3672_v55 = vpop.permute.xlu1 %3671 }
 0x4c6   : > { %v3724_v19 = vsel %vm1912_vm2, %v3672_v55, 0.0 }
 0x4c8   : > { %3713 = vadd.xlane.f32.xlu0 %v3712_v12  ;;  %v3690_v5 = vpop.permute.xlu0 %3689 }
 0x4c9   : > { %2858 = vadd.xlane.f32.xlu1 %v2857_v24  ;;  %v3692_v12 = vpop.permute.xlu1 %3691 }
 0x4ca   : > { %v3754_v29 = vsel %vm1912_vm2, %v3692_v12, 0.0 }
 0x4cc   : > { %3743 = vadd.xlane.f32.xlu0 %v3742_v25  ;;  %v4554_v24 = vpop.permute.xlu0 %4553  ;;  %v2833_v25 = vsel %vm1912_vm2, %v2782_v44, 0.0 }
 0x4cd   : > { %3710 = vadd.xlane.f32.xlu1 %v3709_v20  ;;  %v4556_v13 = vpop.permute.xlu1 %4555  ;;  %v4603_v51 = vsel %vm1912_vm2, %v4554_v24, 0.0 }
 0x4d0   : > { %3749 = vadd.xlane.f32.xlu0 %v3748_v41  ;;  %v4558_v20 = vpop.permute.xlu0 %4557  ;;  %v2863_v41 = vsel %vm1912_vm2, %v2802_v58, 0.0 }
 0x4d1   : > { %3740 = vadd.xlane.f32.xlu1 %v3739_v49  ;;  %v4560_v21 = vpop.permute.xlu1 %4559  ;;  %v2866_v49 = vsel %vm1912_vm2, %v2804_v6, 0.0  ;;  %v3751_v6 = vsel %vm1912_vm2, %v3690_v5, 0.0  ;;  %v4609_v55 = vsel %vm1912_vm2, %v4558_v20, 0.0  ;;  %v15121_v20 = vmul.f32 0.35355338, %v15029_v26 }
 0x4d2   : > { %v4612_v5 = vsel %vm1912_vm2, %v4560_v21, 0.0 }
 0x4d4   : > { %4601 = vadd.xlane.f32.xlu0 %v4600_v0  ;;  %v4578_v0 = vpop.permute.xlu0 %4577 }
 0x4d5   : > { %3746 = vadd.xlane.f32.xlu1 %v3745_v17  ;;  %v3721_v17 = vsel %vm1912_vm2, %v3670_v16, 0.0  ;;  %v4606_v16 = vsel %vm1912_vm2, %v4556_v13, 0.0  ;;  %v4639_v12 = vsel %vm1912_vm2, %v4578_v0, 0.0  ;;  %v15127_v0 = vmul.f32 0.35355338, %v15026_v28 }
 0x4d8   : > { %4631 = vadd.xlane.f32.xlu0 %v4630_v23  ;;  %v4580_v23 = vpop.permute.xlu1 %4579 }
 0x4d9   : > { %4598 = vadd.xlane.f32.xlu1 %v4597_v22 }
 0x4dc   : > { %4637 = vadd.xlane.f32.xlu0 %v4636_v18 }
 0x4dd   : > { %4628 = vadd.xlane.f32.xlu1 %v4627_v42 }
 0x4e0   : > { %2828 = vadd.xlane.f32.xlu0 %v2827_v34 }
 0x4e1   : > { %4634 = vadd.xlane.f32.xlu1 %v4633_v11 }
 0x4e4   : > { %2831 = vadd.xlane.f32.xlu0 %v2830_v30 }
 0x4e5   : > { %2834 = vadd.xlane.f32.xlu1 %v2833_v25  ;;  %v18805_v25 = vlaneseq }
 0x4e8   : > { %2837 = vadd.xlane.f32.xlu0 %v2836_v14  ;;  %v1994_v14 = vand.u32 127, %v18805_v25 }
 0x4e9   : > { %2864 = vadd.xlane.f32.xlu1 %v2863_v41  ;;  %v4642_v41 = vsel %vm1912_vm2, %v4580_v23, 0.0  ;;  %v15137_v23 = vmul.f32 0.35355338, %v15054_v9 }
 0x4ea   : > { %v15124_v21 = vsub.s32 %v1994_v14, %v14702_v3 }
 0x4ec   : > { %2867 = vadd.xlane.f32.xlu0 %v2866_v49  ;;  %18806 = vst [vmem:[#allocation110_spill] sm:$0xff] %v15124_v21  ;;  %v2030_v26 = vrot.slane %v15121_v20, %v15124_v21  ;;  %v2034_v28 = vrot.slane %v15127_v0, %v15124_v21 }
 0x4ed   : > { %3716 = vadd.xlane.f32.xlu1 %v3715_v10 }
 0x4f0   : > { %v1924_v44 = vpop.xlane.xlu0 %1923  ;;  %3719 = vadd.xlane.f32.xlu0 %v3718_v7  ;;  %v15131_v7 = vmul.f32 0.35355338, %v15062_v38  ;;  %v15145_v38 = vmul.f32 0.35355338, %v15049_v8  ;;  %v2064_v8 = vsel %vm2059_vm3, %v2034_v28, %v2030_v26 }
 0x4f1   : > { %3722 = vadd.xlane.f32.xlu1 %v3721_v17 }
 0x4f4   : > { %v15106_v58 = vpop.xlane.xlu0 %1929  ;;  %3725 = vadd.xlane.f32.xlu0 %v3724_v19 }
 0x4f5   : > { %v1921_v22 = vpop.xlane.xlu1 %1920  ;;  %3752 = vadd.xlane.f32.xlu1 %v3751_v6  ;;  %v15140_v6 = vmul.f32 0.35355338, %v15057_v53  ;;  %v1998_v53 = vrot.slane %v15137_v23, %v15124_v21 }
 0x4f8   : > { %v15110_v18 = vpop.xlane.xlu0 %1959  ;;  %3755 = vadd.xlane.f32.xlu0 %v3754_v29 }
 0x4f9   : > { %v1927_v42 = vpop.xlane.xlu1 %1926  ;;  %4604 = vadd.xlane.f32.xlu1 %v4603_v51  ;;  %v2038_v51 = vrot.slane %v15131_v7, %v15124_v21 }
 0x4fc   : > { %4607 = vadd.xlane.f32.xlu0 %v4606_v16  ;;  %v2786_v34 = vpop.permute.xlu0 %2785  ;;  %v15150_v16 = vmul.f32 0.35355338, %v1921_v22  ;;  %v2002_v22 = vrot.slane %v15145_v38, %v15124_v21 }
 0x4fd   : > { %v1957_v11 = vpop.xlane.xlu1 %1956  ;;  %4610 = vadd.xlane.f32.xlu1 %v4609_v55  ;;  %v2839_v13 = vsel %vm1912_vm2, %v2786_v34, 0.0  ;;  %v15156_v34 = vmul.f32 0.35355338, %v15069_v4 }
 0x4fe   : > { %v2006_v4 = vrot.slane %v15150_v16, %v15124_v21  ;;  %v15171_v14 = vmul.f32 0.35355338, %v1957_v11 }
 0x500   : > { %4613 = vadd.xlane.f32.xlu0 %v4612_v5  ;;  %v3674_v24 = vpop.permute.xlu0 %3673  ;;  %v2042_v5 = vrot.slane %v15140_v6, %v15124_v21 }
 0x501   : > { %4640 = vadd.xlane.f32.xlu1 %v4639_v12  ;;  %v2788_v30 = vpop.permute.xlu1 %2787  ;;  %v3727_v17 = vsel %vm1912_vm2, %v3674_v24, 0.0  ;;  %v15161_v12 = vmul.f32 0.35355338, %v1924_v44  ;;  %v2089_v24 = vsel %vm2076_vm4, %v2064_v8, -inf  ;;  %v2046_v44 = vrot.slane %v15156_v34, %v15124_v21 }
 0x502   : > { %v2842_v10 = vsel %vm1912_vm2, %v2788_v30, 0.0  ;;  %v15166_v30 = vmul.f32 0.35355338, %v15064_v15  ;;  %v2060_v15 = vsel %vm2059_vm3, %v2002_v22, %v1998_v53 }
 0x504   : > { %4643 = vadd.xlane.f32.xlu0 %v4642_v41  ;;  %v4562_v19 = vpop.permute.xlu0 %4561  ;;  %v2065_v41 = vsel %vm2059_vm3, %v2042_v5, %v2038_v51  ;;  %v2050_v11 = vrot.slane %v15166_v30, %v15124_v21 }
 0x505   : > { %2840 = vadd.xlane.f32.xlu1 %v2839_v13  ;;  %v3676_v49 = vpop.permute.xlu1 %3675  ;;  %v4615_v55 = vsel %vm1912_vm2, %v4562_v19, 0.0  ;;  %v15177_v13 = vmul.f32 0.35355338, %v1927_v42  ;;  %v2092_v26 = vsel %vm2076_vm4, %v2065_v41, -inf  ;;  %v2054_v42 = vrot.slane %v15171_v14, %v15124_v21 }
 0x506   : > { %v3730_v29 = vsel %vm1912_vm2, %v3676_v49, 0.0  ;;  %v2010_v49 = vrot.slane %v15161_v12, %v15124_v21  ;;  %v2077_v19 = vsel %vm2076_vm4, %v2060_v15, -inf }
 0x508   : > { %2843 = vadd.xlane.f32.xlu0 %v2842_v10  ;;  %v15183_v10 = vmul.f32 0.35355338, %v15110_v18  ;;  %v2061_v28 = vsel %vm2059_vm3, %v2010_v49, %v2006_v4  ;;  %v2014_v18 = vrot.slane %v15177_v13, %v15124_v21 }
 0x509   : > { %3728 = vadd.xlane.f32.xlu1 %v3727_v17  ;;  %v4564_v9 = vpop.permute.xlu1 %4563  ;;  %v15188_v17 = vmul.f32 0.35355338, %v15106_v58 }
 0x50a   : > { %v4618_v25 = vsel %vm1912_vm2, %v4564_v9, 0.0  ;;  %v2058_v58 = vrot.slane %v15183_v10, %v15124_v21  ;;  %v2080_v9 = vsel %vm2076_vm4, %v2061_v28, -inf }
 0x50b   : > { %v2018_v51 = vrot.slane %v15188_v17, %v15124_v21 }
 0x50c   : > { %3731 = vadd.xlane.f32.xlu0 %v3730_v29  ;;  %v2066_v29 = vsel %vm2059_vm3, %v2050_v11, %v2046_v44  ;;  %v2067_v53 = vsel %vm2059_vm3, %v2058_v58, %v2054_v42 }
 0x50d   : > { %4616 = vadd.xlane.f32.xlu1 %v4615_v55  ;;  %v2095_v55 = vsel %vm2076_vm4, %v2066_v29, -inf  ;;  %v2062_v8 = vsel %vm2059_vm3, %v2018_v51, %v2014_v18  ;;  %v2098_v5 = vsel %vm2076_vm4, %v2067_v53, -inf }
 0x50e   : > { %v2083_v22 = vsel %vm2076_vm4, %v2062_v8, -inf }
 0x510   : > { %4619 = vadd.xlane.f32.xlu0 %v4618_v25  ;;  %v14272_v25 = vmov 0  }
 0x511   : > { %2090 = vmax.xlane.f32.xlu1 %v2089_v24  ;;  %13084 = vset.pattern.permute.xlu0 %v14272_v25 }
 0x512   : > { %13085 = vset.pattern.permute.xlu1 %v14272_v25 }
 0x514   : > { %2093 = vmax.xlane.f32.xlu0 %v2092_v26 }
 0x515   : > { %2078 = vmax.xlane.f32.xlu1 %v2077_v19 }
 0x518   : > { %2081 = vmax.xlane.f32.xlu0 %v2080_v9 }
 0x519   : > { %2096 = vmax.xlane.f32.xlu1 %v2095_v55 }
 0x51c   : > { %2099 = vmax.xlane.f32.xlu0 %v2098_v5 }
 0x51d   : > { %2084 = vmax.xlane.f32.xlu1 %v2083_v22 }
 0x535   : > { %v1936_v4 = vpop.xlane.xlu0 %1935 }
 0x536   : > { %v15208_v24 = vmul.f32 0.35355338, %v1936_v4 }
 0x538   : > { %v2026_v49 = vrot.slane %v15208_v24, %v15124_v21 }
 0x539   : > { %v2850_v41 = vpop.xlane.xlu0 %2849 }
 0x53a   : > { %v1933_v44 = vpop.xlane.xlu1 %1932  ;;  %v15214_v11 = vmul.f32 0.35355338, %v2850_v41 }
 0x53b   : > { %v15210_v15 = vmul.f32 0.35355338, %v1933_v44 }
 0x53c   : > { %v2940_v58 = vrot.slane %v15214_v11, %v15124_v21 }
 0x53d   : > { %v2022_v26 = vrot.slane %v15210_v15, %v15124_v21  ;;  %v3738_v42 = vpop.xlane.xlu0 %3737 }
 0x53e   : > { %v2847_v19 = vpop.xlane.xlu1 %2846  ;;  %v15224_v51 = vmul.f32 0.35355338, %v3738_v42 }
 0x53f   : > { %v15218_v28 = vmul.f32 0.35355338, %v2847_v19  ;;  %v2063_v18 = vsel %vm2059_vm3, %v2026_v49, %v2022_v26 }
 0x540   : > { %v2086_v29 = vsel %vm2076_vm4, %v2063_v18, -inf  ;;  %v3828_v25 = vrot.slane %v15224_v51, %v15124_v21 }
 0x541   : > { %v2936_v9 = vrot.slane %v15218_v28, %v15124_v21  ;;  %2087 = vmax.xlane.f32.xlu0 %v2086_v29  ;;  %v4626_v55 = vpop.xlane.xlu0 %4625 }
 0x542   : > { %v3735_v53 = vpop.xlane.xlu1 %3734  ;;  %v15234_v4 = vmul.f32 0.35355338, %v4626_v55 }
 0x543   : > { %v15228_v8 = vmul.f32 0.35355338, %v3735_v53  ;;  %v2969_v5 = vsel %vm2059_vm3, %v2940_v58, %v2936_v9 }
 0x544   : > { %v2993_v22 = vsel %vm2076_vm4, %v2969_v5, -inf  ;;  %v4716_v18 = vrot.slane %v15234_v4, %v15124_v21 }
 0x545   : > { %v3824_v41 = vrot.slane %v15228_v8, %v15124_v21  ;;  %2994 = vmax.xlane.f32.xlu1 %v2993_v22  ;;  %v2823_v44 = vpop.xlane.xlu0 %2822 }
 0x546   : > { %v4623_v49 = vpop.xlane.xlu1 %4622  ;;  %v15244_v29 = vmul.f32 0.35355338, %v2823_v44 }
 0x547   : > { %v15238_v26 = vmul.f32 0.35355338, %v4623_v49  ;;  %v3857_v42 = vsel %vm2059_vm3, %v3828_v25, %v3824_v41 }
 0x548   : > { %v3881_v19 = vsel %vm2076_vm4, %v3857_v42, -inf  ;;  %v2904_v25 = vrot.slane %v15244_v29, %v15124_v21 }
 0x549   : > { %v4712_v58 = vrot.slane %v15238_v26, %v15124_v21  ;;  %3882 = vmax.xlane.f32.xlu1 %v3881_v19  ;;  %v2856_v9 = vpop.xlane.xlu0 %2855 }
 0x54a   : > { %v2826_v55 = vpop.xlane.xlu1 %2825  ;;  %v15254_v41 = vmul.f32 0.35355338, %v2856_v9 }
 0x54b   : > { %v15248_v53 = vmul.f32 0.35355338, %v2826_v55  ;;  %v4745_v5 = vsel %vm2059_vm3, %v4716_v18, %v4712_v58 }
 0x54c   : > { %v4769_v22 = vsel %vm2076_vm4, %v4745_v5, -inf  ;;  %v2948_v18 = vrot.slane %v15254_v41, %v15124_v21 }
 0x54d   : > { %v2908_v44 = vrot.slane %v15248_v53, %v15124_v21  ;;  %4770 = vmax.xlane.f32.xlu1 %v4769_v22  ;;  %v2862_v49 = vpop.xlane.xlu0 %2861 }
 0x54e   : > { %v2853_v42 = vpop.xlane.xlu1 %2852  ;;  %v15264_v58 = vmul.f32 0.35355338, %v2862_v49 }
 0x54f   : > { %v15258_v19 = vmul.f32 0.35355338, %v2853_v42  ;;  %v2965_v55 = vsel %vm2059_vm3, %v2908_v44, %v2904_v25 }
 0x550   : > { %v2981_v62 = vsel %vm2076_vm4, %v2965_v55, -inf  ;;  %v2956_v25 = vrot.slane %v15264_v58, %v15124_v21 }
 0x551   : > { %v2944_v9 = vrot.slane %v15258_v19, %v15124_v21  ;;  %2982 = vmax.xlane.f32.xlu1 %v2981_v62  ;;  %v3714_v5 = vpop.xlane.xlu0 %3713 }
 0x552   : > { %v2859_v32 = vpop.xlane.xlu1 %2858  ;;  %v15274_v44 = vmul.f32 0.35355338, %v3714_v5 }
 0x553   : > { %v15268_v22 = vmul.f32 0.35355338, %v2859_v32  ;;  %v2970_v42 = vsel %vm2059_vm3, %v2948_v18, %v2944_v9 }
 0x554   : > { %v2996_v31 = vsel %vm2076_vm4, %v2970_v42, -inf  ;;  %v3796_v18 = vrot.slane %v15274_v44, %v15124_v21 }
 0x555   : > { %v2952_v49 = vrot.slane %v15268_v22, %v15124_v21  ;;  %2997 = vmax.xlane.f32.xlu0 %v2996_v31  ;;  %v3744_v55 = vpop.xlane.xlu0 %3743 }
 0x556   : > { %v3711_v56 = vpop.xlane.xlu1 %3710  ;;  %v15284_v9 = vmul.f32 0.35355338, %v3744_v55 }
 0x557   : > { %v15278_v62 = vmul.f32 0.35355338, %v3711_v56  ;;  %v2971_v32 = vsel %vm2059_vm3, %v2956_v25, %v2952_v49 }
 0x558   : > { %v2999_v27 = vsel %vm2076_vm4, %v2971_v32, -inf  ;;  %v3836_v25 = vrot.slane %v15284_v9, %v15124_v21 }
 0x559   : > { %v3792_v5 = vrot.slane %v15278_v62, %v15124_v21  ;;  %3000 = vmax.xlane.f32.xlu1 %v2999_v27  ;;  %v3750_v42 = vpop.xlane.xlu0 %3749 }
 0x55a   : > { %v3741_v1 = vpop.xlane.xlu1 %3740  ;;  %v15294_v49 = vmul.f32 0.35355338, %v3750_v42 }
 0x55b   : > { %v15288_v31 = vmul.f32 0.35355338, %v3741_v1  ;;  %v3853_v56 = vsel %vm2059_vm3, %v3796_v18, %v3792_v5 }
 0x55c   : > { %v3869_v61 = vsel %vm2076_vm4, %v3853_v56, -inf  ;;  %v3844_v18 = vrot.slane %v15294_v49, %v15124_v21 }
 0x55d   : > { %v3832_v55 = vrot.slane %v15288_v31, %v15124_v21  ;;  %3870 = vmax.xlane.f32.xlu1 %v3869_v61  ;;  %v4602_v32 = vpop.xlane.xlu0 %4601 }
 0x55e   : > { %v3747_v59 = vpop.xlane.xlu1 %3746  ;;  %v15304_v5 = vmul.f32 0.35355338, %v4602_v32 }
 0x55f   : > { %v15298_v27 = vmul.f32 0.35355338, %v3747_v59  ;;  %v3858_v1 = vsel %vm2059_vm3, %v3836_v25, %v3832_v55 }
 0x560   : > { %v3884_v54 = vsel %vm2076_vm4, %v3858_v1, -inf  ;;  %v4684_v25 = vrot.slane %v15304_v5, %v15124_v21 }
 0x561   : > { %v3840_v42 = vrot.slane %v15298_v27, %v15124_v21  ;;  %3885 = vmax.xlane.f32.xlu0 %v3884_v54  ;;  %v4632_v56 = vpop.xlane.xlu0 %4631 }
 0x562   : > { %v4599_v57 = vpop.xlane.xlu1 %4598  ;;  %v15314_v55 = vmul.f32 0.35355338, %v4632_v56 }
 0x563   : > { %v15308_v61 = vmul.f32 0.35355338, %v4599_v57  ;;  %v3859_v59 = vsel %vm2059_vm3, %v3844_v18, %v3840_v42 }
 0x564   : > { %v3887_v39 = vsel %vm2076_vm4, %v3859_v59, -inf  ;;  %v4724_v18 = vrot.slane %v15314_v55, %v15124_v21 }
 0x565   : > { %v4680_v32 = vrot.slane %v15308_v61, %v15124_v21  ;;  %3888 = vmax.xlane.f32.xlu1 %v3887_v39  ;;  %v4638_v1 = vpop.xlane.xlu0 %4637 }
 0x566   : > { %v4629_v37 = vpop.xlane.xlu1 %4628  ;;  %v15324_v42 = vmul.f32 0.35355338, %v4638_v1 }
 0x567   : > { %v15318_v54 = vmul.f32 0.35355338, %v4629_v37  ;;  %v4741_v57 = vsel %vm2059_vm3, %v4684_v25, %v4680_v32 }
 0x568   : > { %v4757_v40 = vsel %vm2076_vm4, %v4741_v57, -inf  ;;  %v4732_v32 = vrot.slane %v15324_v42, %v15124_v21 }
 0x569   : > { %v4720_v56 = vrot.slane %v15318_v54, %v15124_v21  ;;  %4758 = vmax.xlane.f32.xlu1 %v4757_v40  ;;  %v2829_v59 = vpop.xlane.xlu0 %2828 }
 0x56a   : > { %v4635_v36 = vpop.xlane.xlu1 %4634  ;;  %v15331_v2 = vmul.f32 0.35355338, %v2829_v59 }
 0x56b   : > { %v15328_v39 = vmul.f32 0.35355338, %v4635_v36  ;;  %v4746_v37 = vsel %vm2059_vm3, %v4724_v18, %v4720_v56 }
 0x56c   : > { %v4772_v25 = vsel %vm2076_vm4, %v4746_v37, -inf  ;;  %v2912_v18 = vrot.slane %v15331_v2, %v15124_v21 }
 0x56d   : > { %v4728_v1 = vrot.slane %v15328_v39, %v15124_v21  ;;  %4773 = vmax.xlane.f32.xlu0 %v4772_v25  ;;  %v2832_v57 = vpop.xlane.xlu0 %2831 }
 0x56e   : > { %v15338_v47 = vmul.f32 0.35355338, %v2832_v57  ;;  %v2835_v40 = vpop.xlane.xlu1 %2834 }
 0x56f   : > { %v4747_v36 = vsel %vm2059_vm3, %v4732_v32, %v4728_v1  ;;  %v15345_v59 = vmul.f32 0.35355338, %v2835_v40 }
 0x570   : > { %v2916_v56 = vrot.slane %v15338_v47, %v15124_v21  ;;  %v4775_v37 = vsel %vm2076_vm4, %v4747_v36, -inf }
 0x571   : > { %4776 = vmax.xlane.f32.xlu1 %v4775_v37  ;;  %v2838_v63 = vpop.xlane.xlu0 %2837  ;;  %v2920_v32 = vrot.slane %v15345_v59, %v15124_v21 }
 0x572   : > { %v15348_v35 = vmul.f32 0.35355338, %v2838_v63  ;;  %v2865_v25 = vpop.xlane.xlu1 %2864  ;;  %v2966_v57 = vsel %vm2059_vm3, %v2916_v56, %v2912_v18 }
 0x573   : > { %v2984_v60 = vsel %vm2076_vm4, %v2966_v57, -inf  ;;  %v15356_v46 = vmul.f32 0.35355338, %v2865_v25 }
 0x574   : > { %18807 = vst [vmem:[#allocation111_spill] sm:$0xff] %v15348_v35  ;;  %v2924_v1 = vrot.slane %v15348_v35, %v15124_v21  ;;  %2985 = vmax.xlane.f32.xlu0 %v2984_v60 }
 0x575   : > { %v2868_v40 = vpop.xlane.xlu0 %2867  ;;  %v2960_v18 = vrot.slane %v15356_v46, %v15124_v21 }
 0x576   : > { %v15358_v36 = vmul.f32 0.35355338, %v2868_v40  ;;  %v3717_v37 = vpop.xlane.xlu1 %3716  ;;  %v2967_v63 = vsel %vm2059_vm3, %v2924_v1, %v2920_v32 }
 0x577   : > { %v2987_v52 = vsel %vm2076_vm4, %v2967_v63, -inf  ;;  %v15366_v57 = vmul.f32 0.35355338, %v3717_v37 }
 0x578   : > { %18808 = vst [vmem:[#allocation112_spill] sm:$0xff] %v15358_v36  ;;  %v2964_v56 = vrot.slane %v15358_v36, %v15124_v21  ;;  %2988 = vmax.xlane.f32.xlu1 %v2987_v52 }
 0x579   : > { %18809 = vst [vmem:[#allocation113_spill] sm:$0xff] %v15366_v57  ;;  %v3720_v25 = vpop.xlane.xlu0 %3719  ;;  %v3800_v32 = vrot.slane %v15366_v57, %v15124_v21 }
 0x57a   : > { %v15368_v33 = vmul.f32 0.35355338, %v3720_v25  ;;  %v3723_v60 = vpop.xlane.xlu1 %3722  ;;  %v2972_v40 = vsel %vm2059_vm3, %v2964_v56, %v2960_v18 }
 0x57b   : > { %v3002_v50 = vsel %vm2076_vm4, %v2972_v40, -inf  ;;  %v15376_v63 = vmul.f32 0.35355338, %v3723_v60 }
 0x57c   : > { %18810 = vst [vmem:[#allocation114_spill] sm:$0xff] %v15368_v33  ;;  %v3804_v1 = vrot.slane %v15368_v33, %v15124_v21  ;;  %3003 = vmax.xlane.f32.xlu0 %v3002_v50 }
 0x57d   : > { %18811 = vst [vmem:[#allocation115_spill] sm:$0xff] %v15376_v63  ;;  %v3726_v37 = vpop.xlane.xlu0 %3725  ;;  %v3808_v18 = vrot.slane %v15376_v63, %v15124_v21 }
 0x57e   : > { %v15378_v45 = vmul.f32 0.35355338, %v3726_v37  ;;  %v3753_v52 = vpop.xlane.xlu1 %3752  ;;  %v3854_v25 = vsel %vm2059_vm3, %v3804_v1, %v3800_v32 }
 0x57f   : > { %v3872_v43 = vsel %vm2076_vm4, %v3854_v25, -inf  ;;  %v15386_v40 = vmul.f32 0.35355338, %v3753_v52 }
 0x580   : > { %18812 = vst [vmem:[#allocation116_spill] sm:$0xff] %v15378_v45  ;;  %v3812_v56 = vrot.slane %v15378_v45, %v15124_v21  ;;  %3873 = vmax.xlane.f32.xlu0 %v3872_v43 }
 0x581   : > { %18813 = vst [vmem:[#allocation117_spill] sm:$0xff] %v15386_v40  ;;  %v3756_v60 = vpop.xlane.xlu0 %3755  ;;  %v3848_v32 = vrot.slane %v15386_v40, %v15124_v21 }
 0x582   : > { %v15388_v33 = vmul.f32 0.35355338, %v3756_v60  ;;  %v4605_v50 = vpop.xlane.xlu1 %4604  ;;  %v3855_v37 = vsel %vm2059_vm3, %v3812_v56, %v3808_v18 }
 0x583   : > { %v3875_v36 = vsel %vm2076_vm4, %v3855_v37, -inf  ;;  %v15396_v25 = vmul.f32 0.35355338, %v4605_v50 }
 0x584   : > { %18814 = vst [vmem:[#allocation118_spill] sm:$0xff] %v15388_v33  ;;  %v3852_v1 = vrot.slane %v15388_v33, %v15124_v21  ;;  %3876 = vmax.xlane.f32.xlu1 %v3875_v36 }
 0x585   : > { %18815 = vst [vmem:[#allocation119_spill] sm:$0xff] %v15396_v25  ;;  %v4608_v52 = vpop.xlane.xlu0 %4607  ;;  %v4688_v18 = vrot.slane %v15396_v25, %v15124_v21 }
 0x586   : > { %v15398_v45 = vmul.f32 0.35355338, %v4608_v52  ;;  %v4611_v43 = vpop.xlane.xlu1 %4610  ;;  %v3860_v60 = vsel %vm2059_vm3, %v3852_v1, %v3848_v32 }
 0x587   : > { %v3890_v63 = vsel %vm2076_vm4, %v3860_v60, -inf  ;;  %v15406_v37 = vmul.f32 0.35355338, %v4611_v43 }
 0x588   : > { %18816 = vst [vmem:[#allocation120_spill] sm:$0xff] %v15398_v45  ;;  %v4692_v56 = vrot.slane %v15398_v45, %v15124_v21  ;;  %3891 = vmax.xlane.f32.xlu0 %v3890_v63 }
 0x589   : > { %18817 = vst [vmem:[#allocation121_spill] sm:$0xff] %v15406_v37  ;;  %v4614_v50 = vpop.xlane.xlu0 %4613  ;;  %v4696_v32 = vrot.slane %v15406_v37, %v15124_v21 }
 0x58a   : > { %v15408_v33 = vmul.f32 0.35355338, %v4614_v50  ;;  %v4641_v36 = vpop.xlane.xlu1 %4640  ;;  %v4742_v52 = vsel %vm2059_vm3, %v4692_v56, %v4688_v18 }
 0x58b   : > { %v4760_v40 = vsel %vm2076_vm4, %v4742_v52, -inf  ;;  %v15416_v60 = vmul.f32 0.35355338, %v4641_v36 }
 0x58c   : > { %18818 = vst [vmem:[#allocation122_spill] sm:$0xff] %v15408_v33  ;;  %v4700_v1 = vrot.slane %v15408_v33, %v15124_v21  ;;  %4761 = vmax.xlane.f32.xlu0 %v4760_v40 }
 0x58d   : > { %18819 = vst [vmem:[#allocation123_spill] sm:$0xff] %v15416_v60  ;;  %v4644_v43 = vpop.xlane.xlu0 %4643  ;;  %v4736_v18 = vrot.slane %v15416_v60, %v15124_v21 }
 0x58e   : > { %v15418_v45 = vmul.f32 0.35355338, %v4644_v43  ;;  %v2841_v63 = vpop.xlane.xlu1 %2840  ;;  %v4743_v50 = vsel %vm2059_vm3, %v4700_v1, %v4696_v32 }
 0x58f   : > { %v4763_v25 = vsel %vm2076_vm4, %v4743_v50, -inf  ;;  %v15426_v52 = vmul.f32 0.35355338, %v2841_v63 }
 0x590   : > { %18820 = vst [vmem:[#allocation124_spill] sm:$0xff] %v15418_v45  ;;  %v4740_v56 = vrot.slane %v15418_v45, %v15124_v21  ;;  %4764 = vmax.xlane.f32.xlu1 %v4763_v25 }
 0x591   : > { %18821 = vst [vmem:[#allocation125_spill] sm:$0xff] %v15426_v52  ;;  %v2844_v36 = vpop.xlane.xlu0 %2843  ;;  %v2928_v32 = vrot.slane %v15426_v52, %v15124_v21 }
 0x592   : > { %v15428_v33 = vmul.f32 0.35355338, %v2844_v36  ;;  %v3729_v40 = vpop.xlane.xlu1 %3728  ;;  %v4748_v43 = vsel %vm2059_vm3, %v4740_v56, %v4736_v18  ;;  %v15443_v18 = vsub.s32 1, %v14702_v3 }
 0x593   : > { %v4778_v37 = vsel %vm2076_vm4, %v4748_v43, -inf  ;;  %v15436_v50 = vmul.f32 0.35355338, %v3729_v40 }
 0x594   : > { %18822 = vst [vmem:[#allocation126_spill] sm:$0xff] %v15428_v33  ;;  %v2932_v1 = vrot.slane %v15428_v33, %v15124_v21  ;;  %4779 = vmax.xlane.f32.xlu0 %v4778_v37 }
 0x595   : > { %18823 = vst [vmem:[#allocation127_spill] sm:$0xff] %v15436_v50  ;;  %v3732_v63 = vpop.xlane.xlu0 %3731  ;;  %v3816_v56 = vrot.slane %v15436_v50, %v15124_v21 }
 0x596   : > { %v15438_v45 = vmul.f32 0.35355338, %v3732_v63  ;;  %v4617_v25 = vpop.xlane.xlu1 %4616  ;;  %v2968_v36 = vsel %vm2059_vm3, %v2932_v1, %v2928_v32 }
 0x597   : > { %v2990_v60 = vsel %vm2076_vm4, %v2968_v36, -inf  ;;  %v15449_v40 = vmul.f32 0.35355338, %v4617_v25 }
 0x598   : > { %18824 = vst [vmem:[#allocation128_spill] sm:$0xff] %v15438_v45  ;;  %v3820_v43 = vrot.slane %v15438_v45, %v15124_v21  ;;  %2991 = vmax.xlane.f32.xlu0 %v2990_v60 }
 0x599   : > { %18825 = vst [vmem:[#allocation129_spill] sm:$0xff] %v15449_v40  ;;  %v4620_v37 = vpop.xlane.xlu0 %4619  ;;  %v4704_v3 = vrot.slane %v15449_v40, %v15124_v21 }
 0x59a   : > { %v15451_v63 = vmul.f32 0.35355338, %v4620_v37  ;;  %v2091_v33 = vpop.xlane.xlu1 %2090  ;;  %v3856_v32 = vsel %vm2059_vm3, %v3820_v43, %v3816_v56 }
 0x59b   : > { %v2148_v1 = vrot.slane %v2091_v33, %v15443_v18  ;;  %v3878_v36 = vsel %vm2076_vm4, %v3856_v32, -inf  ;;  %v2144_v25 = vrot.slane %v2091_v33, %v14729_v48 }
 0x59c   : > { %18826 = vst [vmem:[#allocation130_spill] sm:$0xff] %v15451_v63  ;;  %v4708_v52 = vrot.slane %v15451_v63, %v15124_v21  ;;  %3879 = vmax.xlane.f32.xlu0 %v3878_v36 }
 0x59d   : > { %v2198_v60 = vsub.f32 %v15127_v0, %v2148_v1  ;;  %v2094_v37 = vpop.xlane.xlu0 %2093  ;;  %v2197_v40 = vsub.f32 %v15121_v20, %v2144_v25 }
 0x59e   : > { %v2079_v45 = vpop.xlane.xlu1 %2078  ;;  %v4744_v50 = vsel %vm2059_vm3, %v4708_v52, %v4704_v3  ;;  %v2156_v43 = vrot.slane %v2094_v37, %v15443_v18  ;;  %v2152_v63 = vrot.slane %v2094_v37, %v14729_v48 }
 0x59f   : > { %v2223_v56 = vmul.f32 1.442695, %v2198_v60  ;;  %v2116_v32 = vrot.slane %v2079_v45, %v15443_v18  ;;  %v4766_v35 = vsel %vm2076_vm4, %v4744_v50, -inf  ;;  %v2112_v21 = vrot.slane %v2079_v45, %v14729_v48 }
 0x5a0   : > { %4767 = vmax.xlane.f32.xlu0 %v4766_v35  ;;  %v2200_v0 = vsub.f32 %v15140_v6, %v2156_v43  ;;  %v2221_v60 = vmul.f32 1.442695, %v2197_v40 }
 0x5a1   : > { %v2190_v36 = vsub.f32 %v15145_v38, %v2116_v32  ;;  %13087 = vpow2.f32 %v2223_v56  ;;  %v2082_v3 = vpop.xlane.xlu0 %2081  ;;  %v2189_v50 = vsub.f32 %v15137_v23, %v2112_v21  ;;  %v2199_v38 = vsub.f32 %v15131_v7, %v2152_v63 }
 0x5a2   : > { %v2097_v33 = vpop.xlane.xlu1 %2096  ;;  %v2227_v57 = vmul.f32 1.442695, %v2200_v0  ;;  %v2124_v45 = vrot.slane %v2082_v3, %v15443_v18  ;;  %v2120_v43 = vrot.slane %v2082_v3, %v14729_v48 }
 0x5a3   : > { %v2207_v1 = vmul.f32 1.442695, %v2190_v36  ;;  %v2164_v52 = vrot.slane %v2097_v33, %v15443_v18  ;;  %v2205_v6 = vmul.f32 1.442695, %v2189_v50  ;;  %v2160_v25 = vrot.slane %v2097_v33, %v14729_v48 }
 0x5a4   : > { %v2192_v40 = vsub.f32 %v15161_v12, %v2124_v45  ;;  %v2225_v23 = vmul.f32 1.442695, %v2199_v38  ;;  %v2191_v12 = vsub.f32 %v15150_v16, %v2120_v43 }
 0x5a5   : > { %13089 = vpow2.f32 %v2207_v1  ;;  %v2202_v20 = vsub.f32 %v15166_v30, %v2164_v52  ;;  %v2100_v21 = vpop.xlane.xlu0 %2099  ;;  %v2201_v30 = vsub.f32 %v15156_v34, %v2160_v25 }
 0x5a6   : > { %v2085_v35 = vpop.xlane.xlu1 %2084  ;;  %13091 = vpow2.f32 %v2221_v60  ;;  %v2211_v36 = vmul.f32 1.442695, %v2192_v40  ;;  %v2172_v7 = vrot.slane %v2100_v21, %v15443_v18  ;;  %v2209_v3 = vmul.f32 1.442695, %v2191_v12 }
 0x5a7   : > { %13093 = vpow2.f32 %v2227_v57  ;;  %v2231_v56 = vmul.f32 1.442695, %v2202_v20  ;;  %v2132_v37 = vrot.slane %v2085_v35, %v15443_v18  ;;  %v2229_v63 = vmul.f32 1.442695, %v2201_v30 }
 0x5a8   : > { %13095 = vpow2.f32 %v2205_v6  ;;  %v2128_v33 = vrot.slane %v2085_v35, %v14729_v48  ;;  %v2204_v0 = vsub.f32 %v15183_v10, %v2172_v7  ;;  %v2168_v52 = vrot.slane %v2100_v21, %v14729_v48 }
 0x5a9   : > { %13097 = vpow2.f32 %v2231_v56  ;;  %v2194_v57 = vsub.f32 %v15188_v17, %v2132_v37 }
 0x5aa   : > { %13099 = vpow2.f32 %v2225_v23  ;;  %v2193_v17 = vsub.f32 %v15177_v13, %v2128_v33  ;;  %v2235_v16 = vmul.f32 1.442695, %v2204_v0  ;;  %v2203_v10 = vsub.f32 %v15171_v14, %v2168_v52 }
 0x5ab   : > { %13101 = vpow2.f32 %v2211_v36  ;;  %v2215_v34 = vmul.f32 1.442695, %v2194_v57 }
 0x5ac   : > { %13103 = vpow2.f32 %v2229_v63  ;;  %v2213_v45 = vmul.f32 1.442695, %v2193_v17  ;;  %v2233_v35 = vmul.f32 1.442695, %v2203_v10 }
 0x5ad   : > { %13105 = vpow2.f32 %v2215_v34 }
 0x5ae   : > { %v15481_v32 = vpop.eup %13087  ;;  %13107 = vpow2.f32 %v2209_v3 }
 0x5af   : > { %18827 = vst [vmem:[#allocation131_spill] sm:$0xff] %v15481_v32  ;;  %2281 = vperm.xlu1 %13085, %v15481_v32   ;;  %13109 = vpow2.f32 %v2235_v16 }
 0x5b0   : > { %13111 = vpow2.f32 %v2213_v45 }
 0x5b1   : > { %13113 = vpow2.f32 %v2233_v35 }
 0x5b2   : > { %v15489_v1 = vpop.eup %13089 }
 0x5b3   : > { %2257 = vperm.xlu1 %13085, %v15489_v1   ;;  %v15494_v60 = vpop.eup %13091 }
 0x5b4   : > { %18828 = vst [vmem:[#allocation132_spill] sm:$0xff] %v15494_v60  ;;  %v15497_v50 = vpop.eup %13093 }
 0x5b5   : > { %18829 = vst [vmem:[#allocation133_spill] sm:$0xff] %v15497_v50  ;;  %v15501_v20 = vpop.eup %13095 }
 0x5b6   : > { %2278 = vperm.xlu0 %13084, %v15494_v60   ;;  %v15504_v13 = vpop.eup %13097 }
 0x5b7   : > { %2287 = vperm.xlu1 %13085, %v15497_v50   ;;  %18830 = vst [vmem:[#allocation134_spill] sm:$0xff] %v15504_v13  ;;  %v15507_v38 = vpop.eup %13099 }
 0x5b8   : > { %18831 = vst [vmem:[#allocation135_spill] sm:$0xff] %v15507_v38  ;;  %v15510_v6 = vpop.eup %13101 }
 0x5b9   : > { %v15513_v14 = vpop.eup %13103 }
 0x5ba   : > { %2254 = vperm.xlu0 %13084, %v15501_v20   ;;  %18832 = vst [vmem:[#allocation136_spill] sm:$0xff] %v15513_v14  ;;  %v15516_v25 = vpop.eup %13105 }
 0x5bb   : > { %2293 = vperm.xlu1 %13085, %v15504_v13   ;;  %v15519_v40 = vpop.eup %13107 }
 0x5bc   : > { %v15522_v56 = vpop.eup %13109 }
 0x5bd   : > { %18833 = vst [vmem:[#allocation137_spill] sm:$0xff] %v15522_v56  ;;  %v15525_v37 = vpop.eup %13111 }
 0x5be   : > { %2284 = vperm.xlu0 %13084, %v15507_v38   ;;  %v15532_v7 = vpop.eup %13113  ;;  %v18864_v38 = vld [vmem:[#allocation126_spill] sm:$0xff] }
 0x5bf   : > { %2263 = vperm.xlu1 %13085, %v15510_v6   ;;  %18834 = vst [vmem:[#allocation138_spill] sm:$0xff] %v15532_v7 }
 0x5c2   : > { %2290 = vperm.xlu0 %13084, %v15513_v14  }
 0x5c3   : > { %2269 = vperm.xlu1 %13085, %v15516_v25  }
 0x5c6   : > { %2260 = vperm.xlu0 %13084, %v15519_v40  }
 0x5c7   : > { %2299 = vperm.xlu1 %13085, %v15522_v56  }
 0x5ca   : > { %v2088_v21 = vpop.xlane.xlu0 %2087  ;;  %2266 = vperm.xlu0 %13084, %v15525_v37  }
 0x5cb   : > { %v2136_v23 = vrot.slane %v2088_v21, %v14729_v48  ;;  %v2140_v43 = vrot.slane %v2088_v21, %v15443_v18 }
 0x5cd   : > { %v2195_v30 = vsub.f32 %v15210_v15, %v2136_v23  ;;  %v2196_v36 = vsub.f32 %v15208_v24, %v2140_v43 }
 0x5ce   : > { %v2995_v57 = vpop.xlane.xlu1 %2994  ;;  %2296 = vperm.xlu0 %13084, %v15532_v7   ;;  %v18858_v7 = vld [vmem:[#allocation124_spill] sm:$0xff] }
 0x5cf   : > { %v2217_v12 = vmul.f32 1.442695, %v2195_v30  ;;  %v2219_v63 = vmul.f32 1.442695, %v2196_v36  ;;  %v3048_v33 = vrot.slane %v2995_v57, %v14729_v48  ;;  %v3052_v0 = vrot.slane %v2995_v57, %v15443_v18 }
 0x5d1   : > { %13115 = vpow2.f32 %v2217_v12  ;;  %v3101_v34 = vsub.f32 %v15218_v28, %v3048_v33  ;;  %v3102_v3 = vsub.f32 %v15214_v11, %v3052_v0 }
 0x5d2   : > { %13117 = vpow2.f32 %v2219_v63  ;;  %v3883_v15 = vpop.xlane.xlu1 %3882 }
 0x5d3   : > { %v3125_v52 = vmul.f32 1.442695, %v3101_v34  ;;  %v3936_v24 = vrot.slane %v3883_v15, %v14729_v48  ;;  %v3940_v17 = vrot.slane %v3883_v15, %v15443_v18  ;;  %v3127_v10 = vmul.f32 1.442695, %v3102_v3 }
 0x5d5   : > { %13119 = vpow2.f32 %v3125_v52  ;;  %v3989_v16 = vsub.f32 %v15228_v8, %v3936_v24  ;;  %v3990_v45 = vsub.f32 %v15224_v51, %v3940_v17 }
 0x5d6   : > { %v4771_v35 = vpop.xlane.xlu1 %4770 }
 0x5d7   : > { %v4013_v21 = vmul.f32 1.442695, %v3989_v16  ;;  %v4824_v23 = vrot.slane %v4771_v35, %v14729_v48  ;;  %v4828_v28 = vrot.slane %v4771_v35, %v15443_v18  ;;  %v4015_v30 = vmul.f32 1.442695, %v3990_v45 }
 0x5d9   : > { %13121 = vpow2.f32 %v4013_v21  ;;  %v4877_v11 = vsub.f32 %v15238_v26, %v4824_v23  ;;  %v4878_v43 = vsub.f32 %v15234_v4, %v4828_v28 }
 0x5da   : > { %13123 = vpow2.f32 %v3127_v10  ;;  %v2983_v36 = vpop.xlane.xlu1 %2982 }
 0x5db   : > { %v4901_v57 = vmul.f32 1.442695, %v4877_v11  ;;  %v3016_v8 = vrot.slane %v2983_v36, %v14729_v48  ;;  %v3020_v12 = vrot.slane %v2983_v36, %v15443_v18  ;;  %v4903_v51 = vmul.f32 1.442695, %v4878_v43 }
 0x5dd   : > { %13125 = vpow2.f32 %v4901_v57  ;;  %v3094_v63 = vsub.f32 %v15248_v53, %v3020_v12  ;;  %v3093_v0 = vsub.f32 %v15244_v29, %v3016_v8 }
 0x5de   : > { %v15550_v33 = vpop.eup %13115  ;;  %13127 = vpow2.f32 %v4015_v30  ;;  %v2998_v26 = vpop.xlane.xlu0 %2997 }
 0x5df   : > { %v15553_v34 = vpop.eup %13117  ;;  %v3111_v4 = vmul.f32 1.442695, %v3094_v63  ;;  %v3056_v3 = vrot.slane %v2998_v26, %v14729_v48  ;;  %v3060_v15 = vrot.slane %v2998_v26, %v15443_v18  ;;  %2272 = vperm.xlu0 %13084, %v15550_v33   ;;  %13129 = vpow2.f32 %v4903_v51 }
 0x5e0   : > { %2275 = vperm.xlu1 %13085, %v15553_v34   ;;  %v3109_v24 = vmul.f32 1.442695, %v3093_v0 }
 0x5e1   : > { %v3103_v53 = vsub.f32 %v15258_v19, %v3056_v3  ;;  %13131 = vpow2.f32 %v3111_v4  ;;  %v3104_v29 = vsub.f32 %v15254_v41, %v3060_v15 }
 0x5e2   : > { %v15560_v52 = vpop.eup %13119  ;;  %v3001_v17 = vpop.xlane.xlu1 %3000 }
 0x5e3   : > { %v3129_v16 = vmul.f32 1.442695, %v3103_v53  ;;  %v3064_v10 = vrot.slane %v3001_v17, %v14729_v48  ;;  %v3068_v45 = vrot.slane %v3001_v17, %v15443_v18  ;;  %v3131_v19 = vmul.f32 1.442695, %v3104_v29 }
 0x5e4   : > { %3182 = vperm.xlu1 %13085, %v15560_v52  }
 0x5e5   : > { %13133 = vpow2.f32 %v3129_v16  ;;  %v3105_v35 = vsub.f32 %v15268_v22, %v3064_v10  ;;  %v3106_v23 = vsub.f32 %v15264_v58, %v3068_v45 }
 0x5e6   : > { %v15567_v21 = vpop.eup %13121  ;;  %13135 = vpow2.f32 %v3109_v24  ;;  %v3871_v28 = vpop.xlane.xlu1 %3870 }
 0x5e7   : > { %v15570_v11 = vpop.eup %13123  ;;  %v3133_v41 = vmul.f32 1.442695, %v3105_v35  ;;  %v3904_v43 = vrot.slane %v3871_v28, %v14729_v48  ;;  %v3908_v30 = vrot.slane %v3871_v28, %v15443_v18  ;;  %4070 = vperm.xlu0 %13084, %v15567_v21   ;;  %v3135_v57 = vmul.f32 1.442695, %v3106_v23 }
 0x5e8   : > { %3185 = vperm.xlu1 %13085, %v15570_v11  }
 0x5e9   : > { %13137 = vpow2.f32 %v3133_v41  ;;  %v3981_v22 = vsub.f32 %v15278_v62, %v3904_v43  ;;  %v3982_v58 = vsub.f32 %v15274_v44, %v3908_v30 }
 0x5ea   : > { %v15577_v36 = vpop.eup %13125  ;;  %13139 = vpow2.f32 %v3131_v19  ;;  %v3886_v8 = vpop.xlane.xlu0 %3885 }
 0x5eb   : > { %v15580_v12 = vpop.eup %13127  ;;  %v3997_v51 = vmul.f32 1.442695, %v3981_v22  ;;  %v3944_v63 = vrot.slane %v3886_v8, %v14729_v48  ;;  %v3948_v0 = vrot.slane %v3886_v8, %v15443_v18  ;;  %4958 = vperm.xlu0 %13084, %v15577_v36   ;;  %v3999_v4 = vmul.f32 1.442695, %v3982_v58 }
 0x5ec   : > { %4073 = vperm.xlu1 %13085, %v15580_v12   ;;  %v15587_v26 = vpop.eup %13129 }
 0x5ed   : > { %13141 = vpow2.f32 %v3997_v51  ;;  %v3991_v62 = vsub.f32 %v15288_v31, %v3944_v63  ;;  %v3992_v44 = vsub.f32 %v15284_v9, %v3948_v0 }
 0x5ee   : > { %13143 = vpow2.f32 %v3135_v57  ;;  %v3889_v3 = vpop.xlane.xlu1 %3888  ;;  %v15590_v15 = vpop.eup %13131 }
 0x5ef   : > { %v4017_v53 = vmul.f32 1.442695, %v3991_v62  ;;  %v3952_v24 = vrot.slane %v3889_v3, %v14729_v48  ;;  %v3956_v29 = vrot.slane %v3889_v3, %v15443_v18  ;;  %3161 = vperm.xlu0 %13084, %v15590_v15   ;;  %v4019_v16 = vmul.f32 1.442695, %v3992_v44 }
 0x5f0   : > { %4961 = vperm.xlu1 %13085, %v15587_v26  }
 0x5f1   : > { %13145 = vpow2.f32 %v4017_v53  ;;  %v3993_v31 = vsub.f32 %v15298_v27, %v3952_v24  ;;  %v3994_v9 = vsub.f32 %v15294_v49, %v3956_v29 }
 0x5f2   : > { %v15597_v17 = vpop.eup %13133  ;;  %13147 = vpow2.f32 %v3999_v4  ;;  %v4759_v10 = vpop.xlane.xlu1 %4758 }
 0x5f3   : > { %v15600_v45 = vpop.eup %13135  ;;  %v4021_v35 = vmul.f32 1.442695, %v3993_v31  ;;  %v4792_v19 = vrot.slane %v4759_v10, %v14729_v48  ;;  %v4796_v23 = vrot.slane %v4759_v10, %v15443_v18  ;;  %3188 = vperm.xlu0 %13084, %v15597_v17   ;;  %v4023_v41 = vmul.f32 1.442695, %v3994_v9 }
 0x5f4   : > { %3158 = vperm.xlu1 %13085, %v15600_v45  }
 0x5f5   : > { %13149 = vpow2.f32 %v4021_v35  ;;  %v4869_v27 = vsub.f32 %v15308_v61, %v4792_v19  ;;  %v4870_v49 = vsub.f32 %v15304_v5, %v4796_v23 }
 0x5f6   : > { %v15607_v28 = vpop.eup %13137  ;;  %13151 = vpow2.f32 %v4019_v16  ;;  %v4774_v43 = vpop.xlane.xlu0 %4773 }
 0x5f7   : > { %v15610_v30 = vpop.eup %13139  ;;  %v4885_v22 = vmul.f32 1.442695, %v4869_v27  ;;  %v4832_v57 = vrot.slane %v4774_v43, %v14729_v48  ;;  %v4836_v58 = vrot.slane %v4774_v43, %v15443_v18  ;;  %3194 = vperm.xlu0 %13084, %v15607_v28   ;;  %v4887_v51 = vmul.f32 1.442695, %v4870_v49 }
 0x5f8   : > { %3191 = vperm.xlu1 %13085, %v15610_v30  }
 0x5f9   : > { %13153 = vpow2.f32 %v4885_v22  ;;  %v4879_v61 = vsub.f32 %v15318_v54, %v4832_v57  ;;  %v4880_v5 = vsub.f32 %v15314_v55, %v4836_v58 }
 0x5fa   : > { %v15617_v8 = vpop.eup %13141  ;;  %13155 = vpow2.f32 %v4023_v41  ;;  %v4777_v63 = vpop.xlane.xlu1 %4776 }
 0x5fb   : > { %v15620_v0 = vpop.eup %13143  ;;  %v4905_v62 = vmul.f32 1.442695, %v4879_v61  ;;  %v4840_v4 = vrot.slane %v4777_v63, %v14729_v48  ;;  %v4844_v44 = vrot.slane %v4777_v63, %v15443_v18  ;;  %4046 = vperm.xlu0 %13084, %v15617_v8   ;;  %v4907_v55 = vmul.f32 1.442695, %v4880_v5 }
 0x5fc   : > { %3197 = vperm.xlu1 %13085, %v15620_v0  }
 0x5fd   : > { %13157 = vpow2.f32 %v4905_v62  ;;  %v4881_v54 = vsub.f32 %v15328_v39, %v4840_v4  ;;  %v2986_v3 = vpop.xlane.xlu0 %2985  ;;  %v4882_v24 = vsub.f32 %v15324_v42, %v4844_v44 }
 0x5fe   : > { %v15627_v53 = vpop.eup %13145  ;;  %13159 = vpow2.f32 %v4887_v51  ;;  %v3024_v29 = vrot.slane %v2986_v3, %v14729_v48  ;;  %v3028_v9 = vrot.slane %v2986_v3, %v15443_v18 }
 0x5ff   : > { %v15631_v31 = vpop.eup %13147  ;;  %v4909_v16 = vmul.f32 1.442695, %v4881_v54  ;;  %4076 = vperm.xlu0 %13084, %v15627_v53   ;;  %v4911_v10 = vmul.f32 1.442695, %v4882_v24  ;;  %v18836_v24 = vld [vmem:[#allocation111_spill] sm:$0xff] }
 0x600   : > { %4049 = vperm.xlu1 %13085, %v15631_v31   ;;  %v3095_v35 = vsub.f32 %v15331_v2, %v3024_v29  ;;  %v3096_v23 = vsub.f32 %v15338_v47, %v3028_v9 }
 0x601   : > { %13161 = vpow2.f32 %v4909_v16  ;;  %v2989_v42 = vpop.xlane.xlu1 %2988 }
 0x602   : > { %v15636_v39 = vpop.eup %13149  ;;  %13163 = vpow2.f32 %v4907_v55  ;;  %v3113_v49 = vmul.f32 1.442695, %v3095_v35  ;;  %v3032_v43 = vrot.slane %v2989_v42, %v14729_v48  ;;  %v3115_v58 = vmul.f32 1.442695, %v3096_v23  ;;  %v18837_v35 = vld [vmem:[#allocation115_spill] sm:$0xff]  ;;  %v18838_v23 = vld [vmem:[#allocation112_spill] sm:$0xff] }
 0x603   : > { %v15639_v19 = vpop.eup %13151  ;;  %4082 = vperm.xlu0 %13084, %v15636_v39   ;;  %13165 = vpow2.f32 %v4911_v10  ;;  %v3036_v47 = vrot.slane %v2989_v42, %v15443_v18 }
 0x604   : > { %4079 = vperm.xlu1 %13085, %v15639_v19   ;;  %13167 = vpow2.f32 %v3113_v49  ;;  %v3097_v5 = vsub.f32 %v15345_v59, %v3032_v43 }
 0x605   : > { %v3004_v27 = vpop.xlane.xlu0 %3003  ;;  %v3098_v59 = vsub.f32 %v18836_v24, %v3036_v47 }
 0x606   : > { %v15644_v41 = vpop.eup %13153  ;;  %v3072_v22 = vrot.slane %v3004_v27, %v14729_v48  ;;  %v3076_v54 = vrot.slane %v3004_v27, %v15443_v18  ;;  %v3117_v29 = vmul.f32 1.442695, %v3097_v5  ;;  %v18839_v5 = vld [vmem:[#allocation117_spill] sm:$0xff] }
 0x607   : > { %v15648_v57 = vpop.eup %13155  ;;  %4934 = vperm.xlu0 %13084, %v15644_v41  }
 0x608   : > { %v3107_v2 = vsub.f32 %v15356_v46, %v3072_v22  ;;  %4085 = vperm.xlu1 %13085, %v15648_v57   ;;  %v18835_v46 = vld [vmem:[#allocation113_spill] sm:$0xff]  ;;  %v3108_v27 = vsub.f32 %v18838_v23, %v3076_v54  ;;  %v3119_v22 = vmul.f32 1.442695, %v3098_v59 }
 0x609   : > { %v3874_v61 = vpop.xlane.xlu0 %3873 }
 0x60a   : > { %v15654_v51 = vpop.eup %13157  ;;  %v3137_v63 = vmul.f32 1.442695, %v3107_v2  ;;  %v3912_v62 = vrot.slane %v3874_v61, %v14729_v48  ;;  %v3916_v49 = vrot.slane %v3874_v61, %v15443_v18 }
 0x60b   : > { %v15658_v4 = vpop.eup %13159  ;;  %4964 = vperm.xlu0 %13084, %v15654_v51  }
 0x60c   : > { %13169 = vpow2.f32 %v3137_v63  ;;  %v3983_v44 = vsub.f32 %v18835_v46, %v3912_v62  ;;  %4937 = vperm.xlu1 %13085, %v15658_v4   ;;  %v3139_v62 = vmul.f32 1.442695, %v3108_v27  ;;  %v18840_v46 = vld [vmem:[#allocation114_spill] sm:$0xff] }
 0x60d   : > { %13171 = vpow2.f32 %v3115_v58  ;;  %v3877_v3 = vpop.xlane.xlu1 %3876 }
 0x60e   : > { %v15664_v55 = vpop.eup %13161  ;;  %v4001_v16 = vmul.f32 1.442695, %v3983_v44  ;;  %v3920_v9 = vrot.slane %v3877_v3, %v14729_v48  ;;  %v3984_v44 = vsub.f32 %v18840_v46, %v3916_v49  ;;  %v3924_v61 = vrot.slane %v3877_v3, %v15443_v18  ;;  %v18844_v49 = vld [vmem:[#allocation116_spill] sm:$0xff] }
 0x60f   : > { %v15668_v10 = vpop.eup %13163  ;;  %4970 = vperm.xlu0 %13084, %v15664_v55  }
 0x610   : > { %13173 = vpow2.f32 %v4001_v16  ;;  %v3985_v42 = vsub.f32 %v18837_v35, %v3920_v9  ;;  %4967 = vperm.xlu1 %13085, %v15668_v10   ;;  %v15676_v47 = vpop.eup %13165  ;;  %v18841_v16 = vld [vmem:[#allocation119_spill] sm:$0xff] }
 0x611   : > { %v3892_v43 = vpop.xlane.xlu0 %3891  ;;  %13175 = vpow2.f32 %v3117_v29  ;;  %v15683_v29 = vpop.eup %13167 }
 0x612   : > { %v4005_v2 = vmul.f32 1.442695, %v3985_v42  ;;  %v3960_v58 = vrot.slane %v3892_v43, %v14729_v48  ;;  %v4003_v42 = vmul.f32 1.442695, %v3984_v44  ;;  %v3964_v3 = vrot.slane %v3892_v43, %v15443_v18 }
 0x614   : > { %13177 = vpow2.f32 %v4005_v2  ;;  %v3995_v63 = vsub.f32 %v18839_v5, %v3960_v58  ;;  %4973 = vperm.xlu1 %13085, %v15676_v47   ;;  %v18845_v5 = vld [vmem:[#allocation121_spill] sm:$0xff] }
 0x615   : > { %v4762_v24 = vpop.xlane.xlu0 %4761  ;;  %13179 = vpow2.f32 %v3119_v22  ;;  %v3986_v22 = vsub.f32 %v18844_v49, %v3924_v61  ;;  %v18847_v61 = vld [vmem:[#allocation118_spill] sm:$0xff]  ;;  %v18848_v49 = vld [vmem:[#allocation123_spill] sm:$0xff] }
 0x616   : > { %v4025_v54 = vmul.f32 1.442695, %v3995_v63  ;;  %v4800_v59 = vrot.slane %v4762_v24, %v14729_v48 }
 0x618   : > { %13181 = vpow2.f32 %v4025_v54  ;;  %v4871_v9 = vsub.f32 %v18841_v16, %v4800_v59  ;;  %3164 = vperm.xlu1 %13085, %v15683_v29   ;;  %v4007_v54 = vmul.f32 1.442695, %v3986_v22  ;;  %v3996_v59 = vsub.f32 %v18847_v61, %v3964_v3 }
 0x619   : > { %v15687_v35 = vpop.eup %13169  ;;  %13183 = vpow2.f32 %v3139_v62  ;;  %v4765_v23 = vpop.xlane.xlu1 %4764  ;;  %v4804_v62 = vrot.slane %v4762_v24, %v15443_v18 }
 0x61a   : > { %18842 = vst [vmem:[#allocation113_spill] sm:$0xff] %v15687_v35  ;;  %v15689_v27 = vpop.eup %13171  ;;  %v4889_v2 = vmul.f32 1.442695, %v4871_v9  ;;  %v4808_v58 = vrot.slane %v4765_v23, %v14729_v48  ;;  %3200 = vperm.xlu0 %13084, %v15687_v35   ;;  %v4027_v22 = vmul.f32 1.442695, %v3996_v59  ;;  %v4812_v3 = vrot.slane %v4765_v23, %v15443_v18 }
 0x61b   : > { %18843 = vst [vmem:[#allocation111_spill] sm:$0xff] %v15689_v27 }
 0x61c   : > { %13185 = vpow2.f32 %v4889_v2  ;;  %v4873_v63 = vsub.f32 %v18845_v5, %v4808_v58  ;;  %3167 = vperm.xlu1 %13085, %v15689_v27  }
 0x61d   : > { %v15697_v46 = vpop.eup %13173  ;;  %13187 = vpow2.f32 %v4003_v42  ;;  %v4780_v44 = vpop.xlane.xlu0 %4779  ;;  %v18850_v42 = vld [vmem:[#allocation120_spill] sm:$0xff] }
 0x61e   : > { %18846 = vst [vmem:[#allocation115_spill] sm:$0xff] %v15697_v46  ;;  %v4893_v43 = vmul.f32 1.442695, %v4873_v63  ;;  %v4848_v16 = vrot.slane %v4780_v44, %v14729_v48  ;;  %4052 = vperm.xlu0 %13084, %v15697_v46   ;;  %v15703_v9 = vpop.eup %13175  ;;  %v4872_v24 = vsub.f32 %v18850_v42, %v4804_v62  ;;  %v18854_v62 = vld [vmem:[#allocation122_spill] sm:$0xff]  ;;  %v4852_v59 = vrot.slane %v4780_v44, %v15443_v18 }
 0x620   : > { %13189 = vpow2.f32 %v4893_v43  ;;  %v4883_v2 = vsub.f32 %v18848_v49, %v4848_v16  ;;  %3170 = vperm.xlu1 %13085, %v15703_v9   ;;  %v4891_v16 = vmul.f32 1.442695, %v4872_v24 }
 0x621   : > { %v15707_v58 = vpop.eup %13177  ;;  %v2992_v5 = vpop.xlane.xlu0 %2991  ;;  %13191 = vpow2.f32 %v4007_v54  ;;  %v4874_v54 = vsub.f32 %v18854_v62, %v4812_v3 }
 0x622   : > { %18849 = vst [vmem:[#allocation112_spill] sm:$0xff] %v15707_v58  ;;  %v4913_v63 = vmul.f32 1.442695, %v4883_v2  ;;  %4058 = vperm.xlu0 %13084, %v15707_v58   ;;  %v15712_v61 = vpop.eup %13179  ;;  %v18855_v2 = vld [vmem:[#allocation127_spill] sm:$0xff]  ;;  %v3040_v3 = vrot.slane %v2992_v5, %v14729_v48 }
 0x623   : > { %18851 = vst [vmem:[#allocation117_spill] sm:$0xff] %v15712_v61  ;;  %v4895_v13 = vmul.f32 1.442695, %v4874_v54  ;;  %v3044_v54 = vrot.slane %v2992_v5, %v15443_v18 }
 0x624   : > { %13193 = vpow2.f32 %v4913_v63  ;;  %3173 = vperm.xlu1 %13085, %v15712_v61  }
 0x625   : > { %v15715_v43 = vpop.eup %13181  ;;  %v3880_v49 = vpop.xlane.xlu0 %3879  ;;  %13195 = vpow2.f32 %v4027_v22  ;;  %v4884_v22 = vsub.f32 %v18858_v7, %v4852_v59  ;;  %v18861_v7 = vld [vmem:[#allocation125_spill] sm:$0xff]  ;;  %v3100_v60 = vsub.f32 %v18864_v38, %v3044_v54 }
 0x626   : > { %18852 = vst [vmem:[#allocation114_spill] sm:$0xff] %v15715_v43  ;;  %v15717_v56 = vpop.eup %13183  ;;  %v3928_v23 = vrot.slane %v3880_v49, %v14729_v48  ;;  %4088 = vperm.xlu0 %13084, %v15715_v43   ;;  %13197 = vpow2.f32 %v4891_v16  ;;  %v3099_v59 = vsub.f32 %v18861_v7, %v3040_v3 }
 0x627   : > { %18853 = vst [vmem:[#allocation119_spill] sm:$0xff] %v15717_v56  ;;  %v4915_v14 = vmul.f32 1.442695, %v4884_v22 }
 0x628   : > { %v3987_v42 = vsub.f32 %v18855_v2, %v3928_v23  ;;  %3203 = vperm.xlu1 %13085, %v15717_v56   ;;  %v18860_v2 = vld [vmem:[#allocation129_spill] sm:$0xff] }
 0x629   : > { %v15725_v63 = vpop.eup %13185  ;;  %v4768_v44 = vpop.xlane.xlu0 %4767 }
 0x62a   : > { %18856 = vst [vmem:[#allocation116_spill] sm:$0xff] %v15725_v63  ;;  %v15727_v24 = vpop.eup %13187  ;;  %v4009_v62 = vmul.f32 1.442695, %v3987_v42  ;;  %4940 = vperm.xlu0 %13084, %v15725_v63   ;;  %v4816_v50 = vrot.slane %v4768_v44, %v14729_v48  ;;  %v15750_v22 = vpop.permute.xlu1 %2281 }
 0x62b   : > { %18857 = vst [vmem:[#allocation121_spill] sm:$0xff] %v15727_v24 }
 0x62c   : > { %13199 = vpow2.f32 %v4009_v62  ;;  %4055 = vperm.xlu1 %13085, %v15727_v24   ;;  %v4875_v16 = vsub.f32 %v18860_v2, %v4816_v50  ;;  %v3121_v50 = vmul.f32 1.442695, %v3099_v59  ;;  %v3123_v2 = vmul.f32 1.442695, %v3100_v60  ;;  %v18869_v59 = vld [vmem:[#allocation130_spill] sm:$0xff] }
 0x62d   : > { %v15734_v23 = vpop.eup %13189  ;;  %13201 = vpow2.f32 %v4895_v13  ;;  %v3932_v13 = vrot.slane %v3880_v49, %v15443_v18 }
 0x62e   : > { %18859 = vst [vmem:[#allocation118_spill] sm:$0xff] %v15734_v23  ;;  %4946 = vperm.xlu0 %13084, %v15734_v23   ;;  %v15740_v42 = vpop.eup %13191  ;;  %v4897_v32 = vmul.f32 1.442695, %v4875_v16  ;;  %v18867_v16 = vld [vmem:[#allocation128_spill] sm:$0xff]  ;;  %v15762_v54 = vpop.permute.xlu1 %2257 }
 0x62f   : > { %18862 = vst [vmem:[#allocation123_spill] sm:$0xff] %v15740_v42 }
 0x630   : > { %4061 = vperm.xlu1 %13085, %v15740_v42   ;;  %13203 = vpow2.f32 %v4897_v32  ;;  %v3988_v32 = vsub.f32 %v18867_v16, %v3932_v13 }
 0x631   : > { %v15743_v62 = vpop.eup %13193  ;;  %13205 = vpow2.f32 %v4915_v14  ;;  %v4820_v14 = vrot.slane %v4768_v44, %v15443_v18  ;;  %v15757_v38 = vpop.permute.xlu0 %2278 }
 0x632   : > { %18863 = vst [vmem:[#allocation120_spill] sm:$0xff] %v15743_v62  ;;  %4976 = vperm.xlu0 %13084, %v15743_v62   ;;  %v15748_v5 = vpop.eup %13195  ;;  %13207 = vpow2.f32 %v3121_v50  ;;  %v4011_v7 = vmul.f32 1.442695, %v3988_v32 }
 0x633   : > { %18865 = vst [vmem:[#allocation122_spill] sm:$0xff] %v15748_v5  ;;  %v15753_v3 = vpop.eup %13197  ;;  %13209 = vpow2.f32 %v3123_v2  ;;  %v4876_v62 = vsub.f32 %v18869_v59, %v4820_v14 }
 0x634   : > { %4091 = vperm.xlu1 %13085, %v15748_v5   ;;  %18866 = vst [vmem:[#allocation127_spill] sm:$0xff] %v15753_v3  ;;  %13211 = vpow2.f32 %v4011_v7 }
 0x635   : > { %v15768_v60 = vpop.permute.xlu0 %2254  ;;  %v4899_v13 = vmul.f32 1.442695, %v4876_v62 }
 0x637   : > { %13213 = vpow2.f32 %v4899_v13 }
 0x638   : > { %4943 = vperm.xlu1 %13085, %v15753_v3   ;;  %v2288_v3 = vpop.permute.xlu1 %2287 }
 0x639   : > { %v15760_v49 = vpop.eup %13199  ;;  %v2285_v2 = vpop.permute.xlu0 %2284 }
 0x63a   : > { %18868 = vst [vmem:[#allocation124_spill] sm:$0xff] %v15760_v49  ;;  %4064 = vperm.xlu0 %13084, %v15760_v49   ;;  %v15766_v50 = vpop.eup %13201 }
 0x63b   : > { %18870 = vst [vmem:[#allocation129_spill] sm:$0xff] %v15766_v50 }
 0x63c   : > { %4949 = vperm.xlu1 %13085, %v15766_v50   ;;  %v15780_v14 = vpop.permute.xlu1 %2293  ;;  %v18877_v50 = vld [vmem:[#allocation110_spill] sm:$0xff] }
 0x63d   : > { %v15771_v44 = vpop.eup %13203  ;;  %v15784_v49 = vpop.permute.xlu0 %2290  ;;  %v2344_v23 = vrot.slane %v2285_v2, %v18877_v50  ;;  %v2348_v63 = vrot.slane %v2288_v3, %v18877_v50 }
 0x63e   : > { %18871 = vst [vmem:[#allocation125_spill] sm:$0xff] %v15771_v44  ;;  %v15773_v16 = vpop.eup %13205  ;;  %4952 = vperm.xlu0 %13084, %v15771_v44  }
 0x63f   : > { %18872 = vst [vmem:[#allocation126_spill] sm:$0xff] %v15773_v16  ;;  %v15777_v32 = vpop.eup %13207  ;;  %v2370_v43 = vsel %vm2059_vm3, %v2348_v63, %v2344_v23 }
 0x640   : > { %4979 = vperm.xlu1 %13085, %v15773_v16   ;;  %18873 = vst [vmem:[#allocation128_spill] sm:$0xff] %v15777_v32  ;;  %v15782_v59 = vpop.eup %13209  ;;  %v2264_v7 = vpop.permute.xlu1 %2263  ;;  %v2396_v58 = vsel %vm2076_vm4, %v2370_v43, 0.0 }
 0x641   : > { %18874 = vst [vmem:[#allocation130_spill] sm:$0xff] %v15782_v59  ;;  %v15787_v62 = vpop.eup %13211  ;;  %v2261_v44 = vpop.permute.xlu0 %2260  ;;  %v2316_v24 = vrot.slane %v2264_v7, %v18877_v50  ;;  %v2336_v7 = vrot.slane %v15757_v38, %v18877_v50 }
 0x642   : > { %18875 = vst [vmem:[#allocation139_spill] sm:$0xff] %v15787_v62 }
 0x644   : > { %3176 = vperm.xlu1 %13085, %v15777_v32   ;;  %v15790_v13 = vpop.eup %13213  ;;  %v15793_v16 = vpop.permute.xlu1 %2269 }
 0x645   : > { %18876 = vst [vmem:[#allocation140_spill] sm:$0xff] %v15790_v13  ;;  %v15795_v32 = vpop.permute.xlu0 %2266 }
 0x648   : > { %3179 = vperm.xlu1 %13085, %v15782_v59   ;;  %v2300_v5 = vpop.permute.xlu1 %2299  ;;  %v2312_v59 = vrot.slane %v2261_v44, %v18877_v50 }
 0x649   : > { %v2297_v42 = vpop.permute.xlu0 %2296  ;;  %v2364_v3 = vrot.slane %v2300_v5, %v18877_v50 }
 0x64a   : > { %v2366_v46 = vsel %vm2059_vm3, %v2316_v24, %v2312_v59 }
 0x64b   : > { %v2384_v44 = vsel %vm2076_vm4, %v2366_v46, 0.0 }
 0x64c   : > { %4067 = vperm.xlu1 %13085, %v15787_v62  }
 0x650   : > { %4955 = vperm.xlu1 %13085, %v15790_v13   ;;  %v2360_v13 = vrot.slane %v2297_v42, %v18877_v50 }
 0x652   : > { %v2372_v43 = vsel %vm2059_vm3, %v2364_v3, %v2360_v13  ;;  %v2340_v13 = vrot.slane %v15750_v22, %v18877_v50  ;;  %v2304_v3 = vrot.slane %v15768_v60, %v18877_v50 }
 0x65a   : > { %v2273_v56 = vpop.permute.xlu0 %2272 }
 0x65b   : > { %v2276_v62 = vpop.permute.xlu1 %2275  ;;  %v2328_v63 = vrot.slane %v2273_v56, %v18877_v50 }
 0x65c   : > { %v2332_v61 = vrot.slane %v2276_v62, %v18877_v50 }
 0x65d   : > { %2397 = vadd.xlane.f32.xlu0 %v2396_v58  ;;  %v2402_v58 = vsel %vm2076_vm4, %v2372_v43, 0.0 }
 0x65e   : > { %v2368_v59 = vsel %vm2059_vm3, %v2332_v61, %v2328_v63 }
 0x65f   : > { %v15805_v2 = vpop.permute.xlu1 %3182  ;;  %v2390_v46 = vsel %vm2076_vm4, %v2368_v59, 0.0  ;;  %v2308_v59 = vrot.slane %v15762_v54, %v18877_v50  ;;  %v2356_v54 = vrot.slane %v15780_v14, %v18877_v50 }
 0x661   : > { %2385 = vadd.xlane.f32.xlu0 %v2384_v44  ;;  %v2365_v60 = vsel %vm2059_vm3, %v2308_v59, %v2304_v3 }
 0x662   : > { %v15811_v23 = vpop.permute.xlu0 %4070 }
 0x663   : > { %v3186_v42 = vpop.permute.xlu1 %3185 }
 0x665   : > { %2403 = vadd.xlane.f32.xlu0 %v2402_v58  ;;  %v2369_v58 = vsel %vm2059_vm3, %v2340_v13, %v2336_v7 }
 0x666   : > { %v15815_v24 = vpop.permute.xlu0 %4958  ;;  %v2393_v22 = vsel %vm2076_vm4, %v2369_v58, 0.0  ;;  %v2381_v58 = vsel %vm2076_vm4, %v2365_v60, 0.0  ;;  %v3240_v60 = vrot.slane %v15805_v2, %v18877_v50 }
 0x667   : > { %v4074_v5 = vpop.permute.xlu1 %4073 }
 0x669   : > { %2391 = vadd.xlane.f32.xlu0 %v2390_v46 }
 0x66a   : > { %v3162_v56 = vpop.permute.xlu0 %3161 }
 0x66b   : > { %v15819_v62 = vpop.permute.xlu1 %4961  ;;  %v3212_v61 = vrot.slane %v3162_v56, %v18877_v50  ;;  %v2352_v56 = vrot.slane %v15784_v49, %v18877_v50  ;;  %v2320_v49 = vrot.slane %v15795_v32, %v18877_v50 }
 0x66e   : > { %v3189_v43 = vpop.permute.xlu0 %3188 }
 0x66f   : > { %v3159_v44 = vpop.permute.xlu1 %3158 }
 0x670   : > { %v3208_v63 = vrot.slane %v3159_v44, %v18877_v50  ;;  %v3248_v44 = vrot.slane %v3189_v43, %v18877_v50  ;;  %v2371_v43 = vsel %vm2059_vm3, %v2356_v54, %v2352_v56  ;;  %v4132_v56 = vrot.slane %v4074_v5, %v18877_v50 }
 0x671   : > { %v5020_v5 = vrot.slane %v15819_v62, %v18877_v50 }
 0x672   : > { %v3269_v46 = vsel %vm2059_vm3, %v3212_v61, %v3208_v63  ;;  %v3195_v35 = vpop.permute.xlu0 %3194 }
 0x673   : > { %v3192_v38 = vpop.permute.xlu1 %3191  ;;  %v3285_v27 = vsel %vm2076_vm4, %v3269_v46, 0.0  ;;  %v2399_v46 = vsel %vm2076_vm4, %v2371_v43, 0.0 }
 0x674   : > { %v3252_v7 = vrot.slane %v3192_v38, %v18877_v50  ;;  %2394 = vadd.xlane.f32.xlu1 %v2393_v22  ;;  %3286 = vadd.xlane.f32.xlu0 %v3285_v27  ;;  %v2324_v27 = vrot.slane %v15793_v16, %v18877_v50  ;;  %v3244_v38 = vrot.slane %v3186_v42, %v18877_v50 }
 0x675   : > { %v4128_v42 = vrot.slane %v15811_v23, %v18877_v50 }
 0x676   : > { %v3274_v13 = vsel %vm2059_vm3, %v3252_v7, %v3248_v44  ;;  %v4047_v63 = vpop.permute.xlu0 %4046  ;;  %v2367_v22 = vsel %vm2059_vm3, %v2324_v27, %v2320_v49 }
 0x677   : > { %v3198_v61 = vpop.permute.xlu1 %3197  ;;  %v3300_v3 = vsel %vm2076_vm4, %v3274_v13, 0.0  ;;  %v2387_v7 = vsel %vm2076_vm4, %v2367_v22, 0.0  ;;  %v3273_v13 = vsel %vm2059_vm3, %v3244_v38, %v3240_v60  ;;  %v4161_v27 = vsel %vm2059_vm3, %v4132_v56, %v4128_v42 }
 0x678   : > { %2382 = vadd.xlane.f32.xlu1 %v2381_v58  ;;  %3301 = vadd.xlane.f32.xlu0 %v3300_v3  ;;  %v3297_v49 = vsel %vm2076_vm4, %v3273_v13, 0.0  ;;  %v4185_v23 = vsel %vm2076_vm4, %v4161_v27, 0.0  ;;  %v3260_v38 = vrot.slane %v3198_v61, %v18877_v50  ;;  %v4096_v61 = vrot.slane %v4047_v63, %v18877_v50 }
 0x67a   : > { %v4077_v14 = vpop.permute.xlu0 %4076 }
 0x67b   : > { %v4050_v59 = vpop.permute.xlu1 %4049  ;;  %v4136_v16 = vrot.slane %v4077_v14, %v18877_v50  ;;  %v5016_v14 = vrot.slane %v15815_v24, %v18877_v50 }
 0x67c   : > { %2400 = vadd.xlane.f32.xlu1 %v2399_v46 }
 0x67d   : > { %v5049_v22 = vsel %vm2059_vm3, %v5020_v5, %v5016_v14 }
 0x67e   : > { %v4083_v44 = vpop.permute.xlu0 %4082  ;;  %v5073_v62 = vsel %vm2076_vm4, %v5049_v22, 0.0 }
 0x67f   : > { %v4080_v32 = vpop.permute.xlu1 %4079  ;;  %v4144_v5 = vrot.slane %v4083_v44, %v18877_v50 }
 0x680   : > { %v4140_v54 = vrot.slane %v4080_v32, %v18877_v50  ;;  %2388 = vadd.xlane.f32.xlu1 %v2387_v7  ;;  %v3256_v32 = vrot.slane %v3195_v35, %v18877_v50 }
 0x682   : > { %v4162_v58 = vsel %vm2059_vm3, %v4140_v54, %v4136_v16  ;;  %v4935_v2 = vpop.permute.xlu0 %4934  ;;  %v4100_v16 = vrot.slane %v4050_v59, %v18877_v50  ;;  %v3275_v54 = vsel %vm2059_vm3, %v3260_v38, %v3256_v32 }
 0x683   : > { %v4086_v3 = vpop.permute.xlu1 %4085  ;;  %v4188_v43 = vsel %vm2076_vm4, %v4162_v58, 0.0  ;;  %v3303_v58 = vsel %vm2076_vm4, %v3275_v54, 0.0  ;;  %v4984_v22 = vrot.slane %v4935_v2, %v18877_v50 }
 0x684   : > { %3298 = vadd.xlane.f32.xlu1 %v3297_v49  ;;  %4189 = vadd.xlane.f32.xlu0 %v4188_v43  ;;  %v4148_v49 = vrot.slane %v4086_v3, %v18877_v50  ;;  %v4157_v59 = vsel %vm2059_vm3, %v4100_v16, %v4096_v61 }
 0x685   : > { %v4173_v14 = vsel %vm2076_vm4, %v4157_v59, 0.0 }
 0x686   : > { %v4965_v60 = vpop.permute.xlu0 %4964 }
 0x687   : > { %v4938_v46 = vpop.permute.xlu1 %4937  ;;  %v5024_v56 = vrot.slane %v4965_v60, %v18877_v50 }
 0x688   : > { %4186 = vadd.xlane.f32.xlu1 %v4185_v23  ;;  %v4988_v63 = vrot.slane %v4938_v46, %v18877_v50  ;;  %v4163_v23 = vsel %vm2059_vm3, %v4148_v49, %v4144_v5 }
 0x689   : > { %v4191_v3 = vsel %vm2076_vm4, %v4163_v23, 0.0 }
 0x68a   : > { %v4971_v43 = vpop.permute.xlu0 %4970 }
 0x68b   : > { %v4968_v7 = vpop.permute.xlu1 %4967  ;;  %v5032_v44 = vrot.slane %v4971_v43, %v18877_v50 }
 0x68c   : > { %v5028_v24 = vrot.slane %v4968_v7, %v18877_v50  ;;  %5074 = vadd.xlane.f32.xlu1 %v5073_v62  ;;  %v5045_v7 = vsel %vm2059_vm3, %v4988_v63, %v4984_v22 }
 0x68d   : > { %v5061_v46 = vsel %vm2076_vm4, %v5045_v7, 0.0 }
 0x68e   : > { %v5050_v13 = vsel %vm2059_vm3, %v5028_v24, %v5024_v56 }
 0x68f   : > { %v4974_v42 = vpop.permute.xlu1 %4973  ;;  %v5076_v35 = vsel %vm2076_vm4, %v5050_v13, 0.0 }
 0x690   : > { %3304 = vadd.xlane.f32.xlu1 %v3303_v58  ;;  %5077 = vadd.xlane.f32.xlu0 %v5076_v35  ;;  %v5036_v32 = vrot.slane %v4974_v42, %v18877_v50 }
 0x692   : > { %v5051_v24 = vsel %vm2059_vm3, %v5036_v32, %v5032_v44 }
 0x693   : > { %v3165_v27 = vpop.permute.xlu1 %3164  ;;  %v5079_v61 = vsel %vm2076_vm4, %v5051_v24, 0.0 }
 0x694   : > { %4174 = vadd.xlane.f32.xlu1 %v4173_v14  ;;  %v3216_v2 = vrot.slane %v3165_v27, %v18877_v50 }
 0x695   : > { %v3201_v38 = vpop.permute.xlu0 %3200 }
 0x696   : > { %v3264_v27 = vrot.slane %v3201_v38, %v18877_v50 }
 0x697   : > { %v3168_v60 = vpop.permute.xlu1 %3167 }
 0x698   : > { %4192 = vadd.xlane.f32.xlu1 %v4191_v3  ;;  %v3220_v56 = vrot.slane %v3168_v60, %v18877_v50 }
 0x699   : > { %v4053_v62 = vpop.permute.xlu0 %4052 }
 0x69a   : > { %v3270_v58 = vsel %vm2059_vm3, %v3220_v56, %v3216_v2  ;;  %v4104_v3 = vrot.slane %v4053_v62, %v18877_v50 }
 0x69b   : > { %v3171_v16 = vpop.permute.xlu1 %3170  ;;  %v3288_v5 = vsel %vm2076_vm4, %v3270_v58, 0.0 }
 0x69c   : > { %5062 = vadd.xlane.f32.xlu1 %v5061_v46  ;;  %v3224_v13 = vrot.slane %v3171_v16, %v18877_v50 }
 0x69d   : > { %v4059_v35 = vpop.permute.xlu0 %4058 }
 0x69e   : > { %v4112_v16 = vrot.slane %v4059_v35, %v18877_v50 }
 0x69f   : > { %v3174_v54 = vpop.permute.xlu1 %3173 }
 0x6a0   : > { %v3228_v42 = vrot.slane %v3174_v54, %v18877_v50  ;;  %5080 = vadd.xlane.f32.xlu1 %v5079_v61 }
 0x6a1   : > { %v4089_v23 = vpop.permute.xlu0 %4088 }
 0x6a2   : > { %v3271_v49 = vsel %vm2059_vm3, %v3228_v42, %v3224_v13  ;;  %v4152_v62 = vrot.slane %v4089_v23, %v18877_v50 }
 0x6a3   : > { %v3204_v59 = vpop.permute.xlu1 %3203  ;;  %v3291_v43 = vsel %vm2076_vm4, %v3271_v49, 0.0 }
 0x6a4   : > { %v3268_v14 = vrot.slane %v3204_v59, %v18877_v50  ;;  %3292 = vadd.xlane.f32.xlu0 %v3291_v43  ;;  %3289 = vadd.xlane.f32.xlu1 %v3288_v5 }
 0x6a5   : > { %v4941_v56 = vpop.permute.xlu0 %4940 }
 0x6a6   : > { %v3276_v63 = vsel %vm2059_vm3, %v3268_v14, %v3264_v27  ;;  %v4992_v49 = vrot.slane %v4941_v56, %v18877_v50 }
 0x6a7   : > { %v4056_v22 = vpop.permute.xlu1 %4055  ;;  %v3306_v60 = vsel %vm2076_vm4, %v3276_v63, 0.0 }
 0x6a8   : > { %v4108_v32 = vrot.slane %v4056_v22, %v18877_v50  ;;  %3307 = vadd.xlane.f32.xlu0 %v3306_v60 }
 0x6a9   : > { %v4947_v42 = vpop.permute.xlu0 %4946 }
 0x6aa   : > { %v4158_v7 = vsel %vm2059_vm3, %v4108_v32, %v4104_v3  ;;  %v5000_v14 = vrot.slane %v4947_v42, %v18877_v50 }
 0x6ab   : > { %v4062_v44 = vpop.permute.xlu1 %4061  ;;  %v4176_v38 = vsel %vm2076_vm4, %v4158_v7, 0.0 }
 0x6ac   : > { %v4116_v46 = vrot.slane %v4062_v44, %v18877_v50  ;;  %4177 = vadd.xlane.f32.xlu0 %v4176_v38 }
 0x6ad   : > { %v4977_v23 = vpop.permute.xlu0 %4976 }
 0x6ae   : > { %v4159_v24 = vsel %vm2059_vm3, %v4116_v46, %v4112_v16  ;;  %v5040_v32 = vrot.slane %v4977_v23, %v18877_v50 }
 0x6af   : > { %v4092_v2 = vpop.permute.xlu1 %4091  ;;  %v4179_v54 = vsel %vm2076_vm4, %v4159_v24, 0.0 }
 0x6b0   : > { %v4156_v61 = vrot.slane %v4092_v2, %v18877_v50  ;;  %4180 = vadd.xlane.f32.xlu1 %v4179_v54 }
 0x6b2   : > { %v4164_v13 = vsel %vm2059_vm3, %v4156_v61, %v4152_v62 }
 0x6b3   : > { %v4944_v58 = vpop.permute.xlu1 %4943  ;;  %v4194_v35 = vsel %vm2076_vm4, %v4164_v13, 0.0 }
 0x6b4   : > { %v4996_v59 = vrot.slane %v4944_v58, %v18877_v50  ;;  %4195 = vadd.xlane.f32.xlu0 %v4194_v35 }
 0x6b5   : > { %v4065_v46 = vpop.permute.xlu0 %4064 }
 0x6b6   : > { %v5046_v43 = vsel %vm2059_vm3, %v4996_v59, %v4992_v49  ;;  %v4120_v13 = vrot.slane %v4065_v46, %v18877_v50 }
 0x6b7   : > { %v4950_v5 = vpop.permute.xlu1 %4949  ;;  %v5064_v27 = vsel %vm2076_vm4, %v5046_v43, 0.0 }
 0x6b8   : > { %v5004_v63 = vrot.slane %v4950_v5, %v18877_v50  ;;  %5065 = vadd.xlane.f32.xlu0 %v5064_v27 }
 0x6b9   : > { %v4953_v58 = vpop.permute.xlu0 %4952 }
 0x6ba   : > { %v5047_v22 = vsel %vm2059_vm3, %v5004_v63, %v5000_v14  ;;  %v5008_v43 = vrot.slane %v4953_v58, %v18877_v50 }
 0x6bb   : > { %v4980_v60 = vpop.permute.xlu1 %4979  ;;  %v5067_v3 = vsel %vm2076_vm4, %v5047_v22, 0.0 }
 0x6bc   : > { %v5044_v7 = vrot.slane %v4980_v60, %v18877_v50  ;;  %5068 = vadd.xlane.f32.xlu1 %v5067_v3 }
 0x6be   : > { %v5052_v44 = vsel %vm2059_vm3, %v5044_v7, %v5040_v32 }
 0x6bf   : > { %v3177_v38 = vpop.permute.xlu1 %3176  ;;  %v5082_v16 = vsel %vm2076_vm4, %v5052_v44, 0.0 }
 0x6c0   : > { %5083 = vadd.xlane.f32.xlu0 %v5082_v16  ;;  %v3232_v24 = vrot.slane %v3177_v38, %v18877_v50 }
 0x6c3   : > { %v3180_v56 = vpop.permute.xlu1 %3179 }
 0x6c4   : > { %v3236_v2 = vrot.slane %v3180_v56, %v18877_v50 }
 0x6c6   : > { %v3272_v54 = vsel %vm2059_vm3, %v3236_v2, %v3232_v24 }
 0x6c7   : > { %v4068_v62 = vpop.permute.xlu1 %4067  ;;  %v3294_v61 = vsel %vm2076_vm4, %v3272_v54, 0.0 }
 0x6c8   : > { %v4124_v42 = vrot.slane %v4068_v62, %v18877_v50  ;;  %3295 = vadd.xlane.f32.xlu0 %v3294_v61 }
 0x6ca   : > { %v4160_v35 = vsel %vm2059_vm3, %v4124_v42, %v4120_v13 }
 0x6cb   : > { %v4956_v49 = vpop.permute.xlu1 %4955  ;;  %v4182_v59 = vsel %vm2076_vm4, %v4160_v35, 0.0 }
 0x6cc   : > { %v5012_v5 = vrot.slane %v4956_v49, %v18877_v50  ;;  %4183 = vadd.xlane.f32.xlu0 %v4182_v59 }
 0x6ce   : > { %v5048_v27 = vsel %vm2059_vm3, %v5012_v5, %v5008_v43 }
 0x6cf   : > { %v5070_v14 = vsel %vm2076_vm4, %v5048_v27, 0.0 }
 0x6d0   : > { %5071 = vadd.xlane.f32.xlu0 %v5070_v14 }
 0x6e6   : > { %v15945_v63 = vpop.xlane.xlu0 %2397 }
 0x6ea   : > { %v2386_v23 = vpop.xlane.xlu0 %2385 }
 0x6eb   : > { %v2424_v32 = vrot.slane %v2386_v23, %v14729_v48  ;;  %v2428_v38 = vrot.slane %v2386_v23, %v15443_v18 }
 0x6ee   : > { %v15949_v60 = vpop.xlane.xlu0 %2403 }
 0x6f2   : > { %v2392_v46 = vpop.xlane.xlu0 %2391 }
 0x6f3   : > { %v2440_v24 = vrot.slane %v2392_v46, %v14729_v48  ;;  %v2444_v62 = vrot.slane %v2392_v46, %v15443_v18 }
 0x6fd   : > { %v15947_v22 = vpop.xlane.xlu1 %2394 }
 0x701   : > { %v2383_v3 = vpop.xlane.xlu1 %2382 }
 0x702   : > { %v2416_v7 = vrot.slane %v2383_v3, %v14729_v48  ;;  %v2420_v44 = vrot.slane %v2383_v3, %v15443_v18  ;;  %v3287_v3 = vpop.xlane.xlu0 %3286 }
 0x704   : > { %13215 = vrcp.f32 %v2416_v7 }
 0x705   : > { %13217 = vrcp.f32 %v2420_v44  ;;  %v15955_v16 = vpop.xlane.xlu1 %2400 }
 0x706   : > { %13219 = vrcp.f32 %v2424_v32 }
 0x707   : > { %13221 = vrcp.f32 %v2428_v38 }
 0x709   : > { %v2389_v56 = vpop.xlane.xlu1 %2388 }
 0x70a   : > { %v2432_v2 = vrot.slane %v2389_v56, %v14729_v48  ;;  %v2436_v54 = vrot.slane %v2389_v56, %v15443_v18 }
 0x70c   : > { %13223 = vrcp.f32 %v2432_v2  ;;  %v3324_v2 = vrot.slane %v3287_v3, %v15443_v18 }
 0x70d   : > { %13225 = vrcp.f32 %v2436_v54  ;;  %v3299_v61 = vpop.xlane.xlu1 %3298  ;;  %v3302_v54 = vpop.xlane.xlu0 %3301 }
 0x70e   : > { %13227 = vrcp.f32 %v2440_v24  ;;  %v3352_v13 = vrot.slane %v3299_v61, %v14729_v48  ;;  %v3356_v42 = vrot.slane %v3299_v61, %v15443_v18 }
 0x70f   : > { %13229 = vrcp.f32 %v2444_v62 }
 0x710   : > { %13231 = vrcp.f32 %v3352_v13 }
 0x711   : > { %v13216_v58 = vpop.eup %13215  ;;  %v4187_v35 = vpop.xlane.xlu1 %4186  ;;  %13233 = vrcp.f32 %v3356_v42 }
 0x712   : > { %v13218_v49 = vpop.eup %13217  ;;  %v4240_v59 = vrot.slane %v4187_v35, %v14729_v48  ;;  %v2494_v43 = vmul.f32 %v13216_v58, %v15501_v20  ;;  %v4244_v27 = vrot.slane %v4187_v35, %v15443_v18  ;;  %v3364_v58 = vrot.slane %v3302_v54, %v15443_v18 }
 0x713   : > { %v13220_v5 = vpop.eup %13219  ;;  %v2496_v14 = vmul.f32 %v13218_v49, %v15489_v1  ;;  %v3320_v1 = vrot.slane %v3287_v3, %v14729_v48  ;;  %v4190_v3 = vpop.xlane.xlu0 %4189 }
 0x714   : > { %v13222_v23 = vpop.eup %13221  ;;  %2527 = vperm.xlu0 %13084, %v2494_v43   ;;  %13235 = vrcp.f32 %v4240_v59  ;;  %v2498_v44 = vmul.f32 %v13220_v5, %v15519_v40 }
 0x715   : > { %2532 = vperm.xlu1 %13085, %v2496_v14   ;;  %v5075_v32 = vpop.xlane.xlu1 %5074  ;;  %13237 = vrcp.f32 %v4244_v27  ;;  %v2500_v20 = vmul.f32 %v13222_v23, %v15510_v6  ;;  %v3360_v6 = vrot.slane %v3302_v54, %v14729_v48 }
 0x716   : > { %v5128_v7 = vrot.slane %v5075_v32, %v14729_v48  ;;  %v5132_v38 = vrot.slane %v5075_v32, %v15443_v18 }
 0x718   : > { %2537 = vperm.xlu0 %13084, %v2498_v44   ;;  %13239 = vrcp.f32 %v5128_v7 }
 0x719   : > { %v13224_v46 = vpop.eup %13223  ;;  %2542 = vperm.xlu1 %13085, %v2500_v20   ;;  %13241 = vrcp.f32 %v5132_v38  ;;  %v3305_v13 = vpop.xlane.xlu1 %3304 }
 0x71a   : > { %v13226_v56 = vpop.eup %13225  ;;  %v2502_v40 = vmul.f32 %v13224_v46, %v15525_v37  ;;  %13243 = vrcp.f32 %v3320_v1  ;;  %v3372_v43 = vrot.slane %v3305_v13, %v15443_v18  ;;  %v4252_v46 = vrot.slane %v4190_v3, %v15443_v18 }
 0x71b   : > { %v13228_v24 = vpop.eup %13227  ;;  %v2504_v62 = vmul.f32 %v13226_v56, %v15516_v25  ;;  %13245 = vrcp.f32 %v3324_v2  ;;  %v3368_v25 = vrot.slane %v3305_v13, %v14729_v48  ;;  %v5078_v13 = vpop.xlane.xlu0 %5077 }
 0x71c   : > { %v13230_v61 = vpop.eup %13229  ;;  %2547 = vperm.xlu0 %13084, %v2502_v40   ;;  %v2506_v49 = vmul.f32 %v13228_v24, %v15550_v33  ;;  %13247 = vrcp.f32 %v3360_v6 }
 0x71d   : > { %2552 = vperm.xlu1 %13085, %v2504_v62   ;;  %v13232_v42 = vpop.eup %13231  ;;  %v2508_v35 = vmul.f32 %v13230_v61, %v15553_v34  ;;  %13249 = vrcp.f32 %v3364_v58  ;;  %v4175_v5 = vpop.xlane.xlu1 %4174 }
 0x71e   : > { %v13234_v59 = vpop.eup %13233  ;;  %v3414_v14 = vmul.f32 %v13232_v42, %v15560_v52  ;;  %13251 = vrcp.f32 %v3368_v25  ;;  %v4208_v33 = vrot.slane %v4175_v5, %v14729_v48  ;;  %v4212_v32 = vrot.slane %v4175_v5, %v15443_v18 }
 0x71f   : > { %v3416_v27 = vmul.f32 %v13234_v59, %v15570_v11  ;;  %13253 = vrcp.f32 %v3372_v43  ;;  %v4248_v52 = vrot.slane %v4190_v3, %v14729_v48  ;;  %v5140_v59 = vrot.slane %v5078_v13, %v15443_v18 }
 0x720   : > { %2557 = vperm.xlu0 %13084, %v2506_v49   ;;  %13255 = vrcp.f32 %v4208_v33 }
 0x721   : > { %2562 = vperm.xlu1 %13085, %v2508_v35   ;;  %v13236_v37 = vpop.eup %13235  ;;  %v4193_v20 = vpop.xlane.xlu1 %4192  ;;  %13257 = vrcp.f32 %v4212_v32 }
 0x722   : > { %v13238_v23 = vpop.eup %13237  ;;  %v4302_v44 = vmul.f32 %v13236_v37, %v15567_v21  ;;  %13259 = vrcp.f32 %v4248_v52  ;;  %v4256_v21 = vrot.slane %v4193_v20, %v14729_v48  ;;  %v4260_v2 = vrot.slane %v4193_v20, %v15443_v18 }
 0x723   : > { %v4304_v7 = vmul.f32 %v13238_v23, %v15580_v12  ;;  %13261 = vrcp.f32 %v4252_v46 }
 0x724   : > { %3471 = vperm.xlu0 %13084, %v3414_v14   ;;  %13263 = vrcp.f32 %v4256_v21 }
 0x725   : > { %3476 = vperm.xlu1 %13085, %v3416_v27   ;;  %v13240_v34 = vpop.eup %13239  ;;  %v5063_v54 = vpop.xlane.xlu1 %5062  ;;  %13265 = vrcp.f32 %v4260_v2 }
 0x726   : > { %v13242_v38 = vpop.eup %13241  ;;  %v5190_v1 = vmul.f32 %v13240_v34, %v15577_v36  ;;  %v5096_v36 = vrot.slane %v5063_v54, %v14729_v48  ;;  %v5100_v6 = vrot.slane %v5063_v54, %v15443_v18 }
 0x727   : > { %v13244_v11 = vpop.eup %13243  ;;  %v5192_v56 = vmul.f32 %v13242_v38, %v15587_v26 }
 0x728   : > { %4359 = vperm.xlu0 %13084, %v4302_v44   ;;  %v13246_v24 = vpop.eup %13245  ;;  %v3398_v40 = vmul.f32 %v13244_v11, %v15600_v45  ;;  %13267 = vrcp.f32 %v5096_v36 }
 0x729   : > { %4364 = vperm.xlu1 %13085, %v4304_v7   ;;  %v13248_v12 = vpop.eup %13247  ;;  %v3400_v62 = vmul.f32 %v13246_v24, %v15590_v15  ;;  %v5081_v49 = vpop.xlane.xlu1 %5080  ;;  %v5136_v15 = vrot.slane %v5078_v13, %v14729_v48  ;;  %13269 = vrcp.f32 %v5100_v6 }
 0x72a   : > { %v13250_v61 = vpop.eup %13249  ;;  %v3418_v58 = vmul.f32 %v13248_v12, %v15597_v17  ;;  %v5144_v17 = vrot.slane %v5081_v49, %v14729_v48  ;;  %v5148_v27 = vrot.slane %v5081_v49, %v15443_v18 }
 0x72b   : > { %v13252_v26 = vpop.eup %13251  ;;  %v3420_v42 = vmul.f32 %v13250_v61, %v15610_v30  ;;  %13271 = vrcp.f32 %v5136_v15 }
 0x72c   : > { %5247 = vperm.xlu0 %13084, %v5190_v1   ;;  %v13254_v35 = vpop.eup %13253  ;;  %v3422_v37 = vmul.f32 %v13252_v26, %v15607_v28  ;;  %13273 = vrcp.f32 %v5140_v59 }
 0x72d   : > { %5252 = vperm.xlu1 %13085, %v5192_v56   ;;  %v13256_v45 = vpop.eup %13255  ;;  %v3424_v25 = vmul.f32 %v13254_v35, %v15620_v0  ;;  %v3293_v5 = vpop.xlane.xlu0 %3292  ;;  %13275 = vrcp.f32 %v5144_v17  ;;  %v18879_v17 = vld [vmem:[#allocation113_spill] sm:$0xff] }
 0x72e   : > { %v13258_v43 = vpop.eup %13257  ;;  %v3290_v14 = vpop.xlane.xlu1 %3289  ;;  %v4286_v33 = vmul.f32 %v13256_v45, %v15617_v8  ;;  %13277 = vrcp.f32 %v5148_v27  ;;  %v3336_v32 = vrot.slane %v3293_v5, %v14729_v48 }
 0x72f   : > { %v13260_v30 = vpop.eup %13259  ;;  %v4288_v23 = vmul.f32 %v13258_v43, %v15631_v31  ;;  %v3328_v28 = vrot.slane %v3290_v14, %v14729_v48  ;;  %v3332_v8 = vrot.slane %v3290_v14, %v15443_v18  ;;  %v18878_v43 = vld [vmem:[#allocation111_spill] sm:$0xff] }
 0x730   : > { %3436 = vperm.xlu0 %13084, %v3400_v62   ;;  %v13262_v34 = vpop.eup %13261  ;;  %v4306_v44 = vmul.f32 %v13260_v30, %v15627_v53  ;;  %v3340_v53 = vrot.slane %v3293_v5, %v15443_v18 }
 0x731   : > { %3431 = vperm.xlu1 %13085, %v3398_v40   ;;  %v3308_v0 = vpop.xlane.xlu0 %3307  ;;  %v13264_v3 = vpop.eup %13263  ;;  %v4308_v7 = vmul.f32 %v13262_v34, %v15639_v19  ;;  %13279 = vrcp.f32 %v3328_v28  ;;  %v18881_v28 = vld [vmem:[#allocation115_spill] sm:$0xff] }
 0x732   : > { %v13266_v38 = vpop.eup %13265  ;;  %13281 = vrcp.f32 %v3336_v32  ;;  %v3376_v20 = vrot.slane %v3308_v0, %v14729_v48  ;;  %v4310_v11 = vmul.f32 %v13264_v3, %v15636_v39  ;;  %v3380_v39 = vrot.slane %v3308_v0, %v15443_v18 }
 0x733   : > { %v4312_v52 = vmul.f32 %v13266_v38, %v15648_v57  ;;  %13283 = vrcp.f32 %v3332_v8  ;;  %v18882_v8 = vld [vmem:[#allocation119_spill] sm:$0xff] }
 0x734   : > { %3481 = vperm.xlu0 %13084, %v3418_v58   ;;  %13285 = vrcp.f32 %v3376_v20  ;;  %v18883_v20 = vld [vmem:[#allocation112_spill] sm:$0xff] }
 0x735   : > { %3486 = vperm.xlu1 %13085, %v3420_v42   ;;  %v13268_v31 = vpop.eup %13267  ;;  %v4178_v56 = vpop.xlane.xlu0 %4177  ;;  %13287 = vrcp.f32 %v3340_v53 }
 0x736   : > { %v13270_v46 = vpop.eup %13269  ;;  %v4216_v1 = vrot.slane %v4178_v56, %v14729_v48  ;;  %v5174_v21 = vmul.f32 %v13268_v31, %v15644_v41  ;;  %v4220_v41 = vrot.slane %v4178_v56, %v15443_v18 }
 0x737   : > { %v5176_v24 = vmul.f32 %v13270_v46, %v15658_v4 }
 0x738   : > { %3491 = vperm.xlu0 %13084, %v3422_v37   ;;  %v13272_v19 = vpop.eup %13271  ;;  %13289 = vrcp.f32 %v4216_v1 }
 0x739   : > { %3496 = vperm.xlu1 %13085, %v3424_v25   ;;  %v13274_v12 = vpop.eup %13273  ;;  %v4181_v2 = vpop.xlane.xlu1 %4180  ;;  %v5194_v61 = vmul.f32 %v13272_v19, %v15654_v51  ;;  %13291 = vrcp.f32 %v3380_v39  ;;  %v18884_v19 = vld [vmem:[#allocation121_spill] sm:$0xff] }
 0x73a   : > { %v13276_v54 = vpop.eup %13275  ;;  %v4224_v62 = vrot.slane %v4181_v2, %v14729_v48  ;;  %v5196_v40 = vmul.f32 %v13274_v12, %v15668_v10  ;;  %v4228_v51 = vrot.slane %v4181_v2, %v15443_v18 }
 0x73b   : > { %v13278_v36 = vpop.eup %13277  ;;  %v5198_v6 = vmul.f32 %v13276_v54, %v15664_v55 }
 0x73c   : > { %4319 = vperm.xlu0 %13084, %v4286_v33   ;;  %13293 = vrcp.f32 %v4224_v62  ;;  %v5200_v13 = vmul.f32 %v13278_v36, %v15676_v47  ;;  %v18880_v33 = vld [vmem:[#allocation117_spill] sm:$0xff]  ;;  %v18886_v62 = vld [vmem:[#allocation123_spill] sm:$0xff] }
 0x73d   : > { %4324 = vperm.xlu1 %13085, %v4288_v23   ;;  %v4196_v57 = vpop.xlane.xlu0 %4195  ;;  %13295 = vrcp.f32 %v4220_v41 }
 0x73e   : > { %v13280_v4 = vpop.eup %13279  ;;  %v4264_v26 = vrot.slane %v4196_v57, %v14729_v48  ;;  %v4268_v55 = vrot.slane %v4196_v57, %v15443_v18 }
 0x73f   : > { %v13282_v42 = vpop.eup %13281  ;;  %v3402_v49 = vmul.f32 %v13280_v4, %v15683_v29  ;;  %v2448_v4 = vrot.slane %v15947_v22, %v14729_v48 }
 0x740   : > { %4369 = vperm.xlu0 %13084, %v4306_v44   ;;  %v13284_v10 = vpop.eup %13283  ;;  %13297 = vrcp.f32 %v4264_v26  ;;  %v3406_v15 = vmul.f32 %v13282_v42, %v15703_v9 }
 0x741   : > { %4374 = vperm.xlu1 %13085, %v4308_v7   ;;  %v5066_v58 = vpop.xlane.xlu0 %5065  ;;  %v13286_v45 = vpop.eup %13285  ;;  %13299 = vrcp.f32 %v4228_v51  ;;  %v3404_v5 = vmul.f32 %v13284_v10, %v18878_v43 }
 0x742   : > { %v5104_v35 = vrot.slane %v5066_v58, %v14729_v48  ;;  %v13288_v25 = vpop.eup %13287  ;;  %v3426_v30 = vmul.f32 %v13286_v45, %v18879_v17  ;;  %v5108_v9 = vrot.slane %v5066_v58, %v15443_v18  ;;  %v18889_v58 = vld [vmem:[#allocation118_spill] sm:$0xff]  ;;  %v18890_v45 = vld [vmem:[#allocation127_spill] sm:$0xff]  ;;  %v18892_v17 = vld [vmem:[#allocation129_spill] sm:$0xff] }
 0x743   : > { %v3408_v34 = vmul.f32 %v13288_v25, %v18880_v33  ;;  %v18894_v33 = vld [vmem:[#allocation126_spill] sm:$0xff] }
 0x744   : > { %4379 = vperm.xlu0 %13084, %v4310_v11   ;;  %13301 = vrcp.f32 %v5104_v35  ;;  %v2456_v35 = vrot.slane %v15945_v63, %v14729_v48 }
 0x745   : > { %4384 = vperm.xlu1 %13085, %v4312_v52   ;;  %v5069_v59 = vpop.xlane.xlu1 %5068  ;;  %v13290_v27 = vpop.eup %13289  ;;  %13303 = vrcp.f32 %v4268_v55 }
 0x746   : > { %v5112_v37 = vrot.slane %v5069_v59, %v14729_v48  ;;  %v13292_v14 = vpop.eup %13291  ;;  %v4290_v0 = vmul.f32 %v13290_v27, %v18881_v28  ;;  %v5116_v32 = vrot.slane %v5069_v59, %v15443_v18  ;;  %v18893_v27 = vld [vmem:[#allocation128_spill] sm:$0xff] }
 0x747   : > { %v3428_v31 = vmul.f32 %v13292_v14, %v18882_v8  ;;  %v2460_v14 = vrot.slane %v15945_v63, %v15443_v18  ;;  %v18895_v28 = vld [vmem:[#allocation124_spill] sm:$0xff]  ;;  %v18896_v63 = vld [vmem:[#allocation130_spill] sm:$0xff] }
 0x748   : > { %5207 = vperm.xlu0 %13084, %v5174_v21   ;;  %13305 = vrcp.f32 %v5112_v37  ;;  %v2452_v37 = vrot.slane %v15947_v22, %v15443_v18  ;;  %v2472_v22 = vrot.slane %v15949_v60, %v14729_v48 }
 0x749   : > { %5212 = vperm.xlu1 %13085, %v5176_v24   ;;  %v5084_v47 = vpop.xlane.xlu0 %5083  ;;  %v13294_v3 = vpop.eup %13293  ;;  %13307 = vrcp.f32 %v5108_v9  ;;  %v18885_v24 = vld [vmem:[#allocation114_spill] sm:$0xff] }
 0x74a   : > { %v5152_v23 = vrot.slane %v5084_v47, %v14729_v48  ;;  %v13296_v44 = vpop.eup %13295  ;;  %v4294_v52 = vmul.f32 %v13294_v3, %v18883_v20  ;;  %v5156_v46 = vrot.slane %v5084_v47, %v15443_v18  ;;  %v18891_v47 = vld [vmem:[#allocation120_spill] sm:$0xff] }
 0x74b   : > { %v4292_v1 = vmul.f32 %v13296_v44, %v18884_v19 }
 0x74c   : > { %5257 = vperm.xlu0 %13084, %v5194_v61   ;;  %13309 = vrcp.f32 %v5152_v23  ;;  %v18887_v61 = vld [vmem:[#allocation116_spill] sm:$0xff] }
 0x74d   : > { %5262 = vperm.xlu1 %13085, %v5196_v40   ;;  %v13298_v11 = vpop.eup %13297  ;;  %13311 = vrcp.f32 %v5116_v32 }
 0x74e   : > { %v13300_v56 = vpop.eup %13299  ;;  %v4314_v21 = vmul.f32 %v13298_v11, %v18885_v24  ;;  %v18898_v11 = vld [vmem:[#allocation139_spill] sm:$0xff] }
 0x74f   : > { %v4296_v40 = vmul.f32 %v13300_v56, %v18886_v62  ;;  %v18899_v56 = vld [vmem:[#allocation132_spill] sm:$0xff] }
 0x750   : > { %5267 = vperm.xlu0 %13084, %v5198_v6   ;;  %v18888_v6 = vld [vmem:[#allocation122_spill] sm:$0xff] }
 0x751   : > { %5272 = vperm.xlu1 %13085, %v5200_v13   ;;  %v3296_v29 = vpop.xlane.xlu0 %3295  ;;  %v13302_v12 = vpop.eup %13301 }
 0x752   : > { %v3344_v38 = vrot.slane %v3296_v29, %v14729_v48  ;;  %v3348_v39 = vrot.slane %v3296_v29, %v15443_v18  ;;  %v13304_v57 = vpop.eup %13303  ;;  %v5178_v36 = vmul.f32 %v13302_v12, %v18887_v61  ;;  %v18904_v61 = vld [vmem:[#allocation133_spill] sm:$0xff] }
 0x753   : > { %v4316_v42 = vmul.f32 %v13304_v57, %v18888_v6  ;;  %v18902_v57 = vld [vmem:[#allocation131_spill] sm:$0xff]  ;;  %v18906_v6 = vld [vmem:[#allocation134_spill] sm:$0xff] }
 0x754   : > { %3451 = vperm.xlu0 %13084, %v3406_v15   ;;  %13313 = vrcp.f32 %v3344_v38  ;;  %v18897_v38 = vld [vmem:[#allocation125_spill] sm:$0xff] }
 0x755   : > { %3441 = vperm.xlu1 %13085, %v3402_v49   ;;  %v4184_v7 = vpop.xlane.xlu0 %4183  ;;  %13315 = vrcp.f32 %v5156_v46  ;;  %v13306_v41 = vpop.eup %13305 }
 0x756   : > { %v4232_v53 = vrot.slane %v4184_v7, %v14729_v48  ;;  %v13308_v26 = vpop.eup %13307  ;;  %v4236_v13 = vrot.slane %v4184_v7, %v15443_v18  ;;  %v5182_v51 = vmul.f32 %v13306_v41, %v18889_v58  ;;  %v2468_v7 = vrot.slane %v15955_v16, %v15443_v18  ;;  %v18905_v41 = vld [vmem:[#allocation138_spill] sm:$0xff] }
 0x757   : > { %v5180_v59 = vmul.f32 %v13308_v26, %v18890_v45 }
 0x758   : > { %3501 = vperm.xlu0 %13084, %v3426_v30   ;;  %13317 = vrcp.f32 %v4232_v53 }
 0x759   : > { %3446 = vperm.xlu1 %13085, %v3404_v5   ;;  %v5072_v2 = vpop.xlane.xlu0 %5071  ;;  %13319 = vrcp.f32 %v3348_v39  ;;  %v13310_v10 = vpop.eup %13309  ;;  %v2464_v5 = vrot.slane %v15955_v16, %v14729_v48 }
 0x75a   : > { %v5120_v54 = vrot.slane %v5072_v2, %v14729_v48  ;;  %v13312_v49 = vpop.eup %13311  ;;  %v5124_v15 = vrot.slane %v5072_v2, %v15443_v18  ;;  %v5202_v55 = vmul.f32 %v13310_v10, %v18891_v47  ;;  %v18907_v10 = vld [vmem:[#allocation80_spill] sm:$0xff] }
 0x75b   : > { %v5184_v30 = vmul.f32 %v13312_v49, %v18892_v17  ;;  %v18908_v49 = vld [vmem:[#allocation137_spill] sm:$0xff] }
 0x75c   : > { %4329 = vperm.xlu0 %13084, %v4290_v0   ;;  %13321 = vrcp.f32 %v5120_v54  ;;  %v18903_v54 = vld [vmem:[#allocation136_spill] sm:$0xff]  ;;  %v18912_v17 = vld [vmem:[#allocation85_spill] sm:$0xff] }
 0x75d   : > { %3456 = vperm.xlu1 %13085, %v3408_v34   ;;  %13323 = vrcp.f32 %v2448_v4 }
 0x75e   : > { %13325 = vrcp.f32 %v4236_v13 }
 0x75f   : > { %13327 = vrcp.f32 %v2456_v35 }
 0x760   : > { %4339 = vperm.xlu0 %13084, %v4294_v52   ;;  %13329 = vrcp.f32 %v5124_v15  ;;  %v2476_v52 = vrot.slane %v15949_v60, %v15443_v18 }
 0x761   : > { %3506 = vperm.xlu1 %13085, %v3428_v31   ;;  %v13314_v25 = vpop.eup %13313  ;;  %13331 = vrcp.f32 %v2452_v37  ;;  %v18911_v37 = vld [vmem:[#allocation78_spill] sm:$0xff] }
 0x762   : > { %v13316_v43 = vpop.eup %13315  ;;  %v3410_v29 = vmul.f32 %v13314_v25, %v18893_v27  ;;  %13333 = vrcp.f32 %v2464_v5  ;;  %v18910_v25 = vld [vmem:[#allocation84_spill] sm:$0xff] }
 0x763   : > { %v5204_v34 = vmul.f32 %v13316_v43, %v18894_v33  ;;  %13335 = vrcp.f32 %v2460_v14 }
 0x764   : > { %4389 = vperm.xlu0 %13084, %v4314_v21   ;;  %13337 = vrcp.f32 %v2472_v22  ;;  %v18901_v21 = vld [vmem:[#allocation135_spill] sm:$0xff] }
 0x765   : > { %4334 = vperm.xlu1 %13085, %v4292_v1   ;;  %v13318_v9 = vpop.eup %13317  ;;  %13339 = vrcp.f32 %v2468_v7  ;;  %v18900_v1 = vld [vmem:[#allocation140_spill] sm:$0xff]  ;;  %v18915_v22 = vld [vmem:[#allocation79_spill] sm:$0xff] }
 0x766   : > { %v13320_v23 = vpop.eup %13319  ;;  %v4298_v0 = vmul.f32 %v13318_v9, %v18895_v28  ;;  %13341 = vrcp.f32 %v2476_v52  ;;  %v18914_v9 = vld [vmem:[#allocation86_spill] sm:$0xff]  ;;  %v18916_v7 = vld [vmem:[#allocation87_spill] sm:$0xff] }
 0x767   : > { %v3412_v44 = vmul.f32 %v13320_v23, %v18896_v63 }
 0x768   : > { %5217 = vperm.xlu0 %13084, %v5178_v36  }
 0x769   : > { %4344 = vperm.xlu1 %13085, %v4296_v40   ;;  %v13322_v3 = vpop.eup %13321 }
 0x76a   : > { %v13324_v32 = vpop.eup %13323  ;;  %v5186_v8 = vmul.f32 %v13322_v3, %v18897_v38  ;;  %v18917_v38 = vld [vmem:[#allocation83_spill] sm:$0xff] }
 0x76b   : > { %v13326_v31 = vpop.eup %13325  ;;  %v2510_v53 = vmul.f32 %v13324_v32, %v18899_v56 }
 0x76c   : > { %5227 = vperm.xlu0 %13084, %v5182_v51   ;;  %v13328_v20 = vpop.eup %13327  ;;  %v4300_v46 = vmul.f32 %v13326_v31, %v18898_v11 }
 0x76d   : > { %4394 = vperm.xlu1 %13085, %v4316_v42   ;;  %v13330_v19 = vpop.eup %13329  ;;  %v2514_v12 = vmul.f32 %v13328_v20, %v18901_v21 }
 0x76e   : > { %v13332_v16 = vpop.eup %13331  ;;  %v5188_v24 = vmul.f32 %v13330_v19, %v18900_v1  ;;  %v18918_v1 = vld [vmem:[#allocation88_spill] sm:$0xff] }
 0x76f   : > { %v13334_v2 = vpop.eup %13333  ;;  %v2512_v60 = vmul.f32 %v13332_v16, %v18902_v57 }
 0x770   : > { %5277 = vperm.xlu0 %13084, %v5202_v55   ;;  %v13336_v39 = vpop.eup %13335  ;;  %v2518_v62 = vmul.f32 %v13334_v2, %v18903_v54 }
 0x771   : > { %5222 = vperm.xlu1 %13085, %v5180_v59   ;;  %v13338_v40 = vpop.eup %13337  ;;  %v2516_v36 = vmul.f32 %v13336_v39, %v18904_v61  ;;  %v18909_v59 = vld [vmem:[#allocation81_spill] sm:$0xff] }
 0x772   : > { %v2522_v4 = vmul.f32 %v13338_v40, %v18905_v41  ;;  %v13340_v26 = vpop.eup %13339 }
 0x773   : > { %v2520_v42 = vmul.f32 %v13340_v26, %v18906_v6  ;;  %v13342_v58 = vpop.eup %13341 }
 0x774   : > { %3461 = vperm.xlu0 %13084, %v3410_v29   ;;  %v2524_v15 = vmul.f32 %v13342_v58, %v18908_v49 }
 0x775   : > { %5232 = vperm.xlu1 %13085, %v5184_v30   ;;  %v18913_v30 = vld [vmem:[#allocation82_spill] sm:$0xff] }
 0x778   : > { %4349 = vperm.xlu0 %13084, %v4298_v0  }
 0x779   : > { %5282 = vperm.xlu1 %13085, %v5204_v34  }
 0x77c   : > { %5237 = vperm.xlu0 %13084, %v5186_v8  }
 0x77d   : > { %3466 = vperm.xlu1 %13085, %v3412_v44  }
 0x780   : > { %2567 = vperm.xlu0 %13084, %v2510_v53  }
 0x781   : > { %4354 = vperm.xlu1 %13085, %v4300_v46  }
 0x784   : > { %2577 = vperm.xlu0 %13084, %v2514_v12  }
 0x785   : > { %5242 = vperm.xlu1 %13085, %v5188_v24  }
 0x788   : > { %2587 = vperm.xlu0 %13084, %v2518_v62  }
 0x789   : > { %2572 = vperm.xlu1 %13085, %v2512_v60  }
 0x78c   : > { %2597 = vperm.xlu0 %13084, %v2522_v4  }
 0x78d   : > { %2582 = vperm.xlu1 %13085, %v2516_v36  }
 0x78f   : > { %v16087_v13 = vpop.permute.xlu0 %2527 }
 0x790   : > { %v16090_v51 = vpop.permute.xlu1 %2532  ;;  %2605 = vrot.lane.b32.xlu0 %v18907_v10, %s18582_s9 }
 0x791   : > { %2592 = vperm.xlu1 %13085, %v2520_v42   ;;  %v18919_v42 = vld [vmem:[#allocation89_spill] sm:$0xff] }
 0x793   : > { %v16094_v35 = vpop.permute.xlu0 %2537 }
 0x794   : > { %v16097_v45 = vpop.permute.xlu1 %2542  ;;  %2609 = vrot.lane.b32.xlu0 %v18909_v59, %s18582_s9 }
 0x795   : > { %2602 = vperm.xlu1 %13085, %v2524_v15  }
 0x797   : > { %v16103_v55 = vpop.permute.xlu0 %2547 }
 0x798   : > { %v16101_v47 = vpop.permute.xlu1 %2552  ;;  %2613 = vrot.lane.b32.xlu0 %v18911_v37, %s18582_s9 }
 0x799   : > { %2607 = vrot.lane.b32.xlu1 %v18910_v25, %s18582_s9 }
 0x79b   : > { %v16111_v5 = vpop.permute.xlu0 %2557 }
 0x79c   : > { %v16109_v43 = vpop.permute.xlu1 %2562  ;;  %2617 = vrot.lane.b32.xlu0 %v18913_v30, %s18582_s9 }
 0x79d   : > { %2611 = vrot.lane.b32.xlu1 %v18912_v17, %s18582_s9 }
 0x79f   : > { %v3472_v29 = vpop.permute.xlu0 %3471 }
 0x7a0   : > { %v3477_v27 = vpop.permute.xlu1 %3476  ;;  %v3541_v23 = vmul.f32 %v18914_v9, %v3472_v29 }
 0x7a1   : > { %v3542_v14 = vmul.f32 %v18914_v9, %v3477_v27  ;;  %2615 = vrot.lane.b32.xlu1 %v18915_v22, %s18582_s9 }
 0x7a2   : > { %v3605_v34 = vsel %vm1912_vm2, %v3541_v23, 0.0 }
 0x7a3   : > { %v3612_v33 = vsel %vm1912_vm2, %v3542_v14, 0.0  ;;  %v3606_v0 = vrot.slane %v3605_v34, 4  ;;  %v4360_v32 = vpop.permute.xlu0 %4359 }
 0x7a4   : > { %v3613_v28 = vrot.slane %v3612_v33, 4  ;;  %v4365_v3 = vpop.permute.xlu1 %4364  ;;  %v4429_v44 = vmul.f32 %v18916_v7, %v4360_v32 }
 0x7a5   : > { %v4430_v63 = vmul.f32 %v18916_v7, %v4365_v3  ;;  %2619 = vrot.lane.b32.xlu1 %v18917_v38, %s18582_s9  ;;  %v3607_v31 = vadd.f32 %v3606_v0, %v3605_v34  ;;  %v18920_v0 = vld [vmem:[#allocation92_spill] sm:$0xff]  ;;  %s18586_s9 = smov 24  }
 0x7a6   : > { %v3614_v8 = vadd.f32 %v3613_v28, %v3612_v33  ;;  %v4493_v52 = vsel %vm1912_vm2, %v4429_v44, 0.0 }
 0x7a7   : > { %v4500_v20 = vsel %vm1912_vm2, %v4430_v63, 0.0  ;;  %v3608_v46 = vrot.slane %v3607_v31, 2  ;;  %v4494_v53 = vrot.slane %v4493_v52, 4  ;;  %v5248_v16 = vpop.permute.xlu0 %5247 }
 0x7a8   : > { %v3615_v11 = vrot.slane %v3614_v8, 2  ;;  %v4501_v56 = vrot.slane %v4500_v20, 4  ;;  %v5253_v19 = vpop.permute.xlu1 %5252  ;;  %v5317_v21 = vmul.f32 %v18918_v1, %v5248_v16 }
 0x7a9   : > { %v5318_v24 = vmul.f32 %v18918_v1, %v5253_v19  ;;  %v3609_v2 = vadd.f32 %v3608_v46, %v3607_v31  ;;  %v4495_v57 = vadd.f32 %v4494_v53, %v4493_v52 }
 0x7aa   : > { %v3616_v12 = vadd.f32 %v3615_v11, %v3614_v8  ;;  %v4502_v39 = vadd.f32 %v4501_v56, %v4500_v20  ;;  %v5381_v54 = vsel %vm1912_vm2, %v5317_v21, 0.0  ;;  %v18921_v21 = vld [vmem:[#allocation90_spill] sm:$0xff] }
 0x7ab   : > { %v5388_v60 = vsel %vm1912_vm2, %v5318_v24, 0.0  ;;  %v3610_v40 = vrot.slane %v3609_v2, 1  ;;  %v4496_v36 = vrot.slane %v4495_v57, 2  ;;  %v3437_v4 = vpop.permute.xlu0 %3436  ;;  %v5382_v6 = vrot.slane %v5381_v54, 4 }
 0x7ac   : > { %v3617_v62 = vrot.slane %v3616_v12, 1  ;;  %v4503_v61 = vrot.slane %v4502_v39, 2  ;;  %v3432_v41 = vpop.permute.xlu1 %3431  ;;  %v5389_v26 = vrot.slane %v5388_v60, 4  ;;  %v3534_v10 = vmul.f32 %v18919_v42, %v3437_v4 }
 0x7ad   : > { %v3533_v58 = vmul.f32 %v18919_v42, %v3432_v41  ;;  %v4497_v15 = vadd.f32 %v4496_v36, %v4495_v57  ;;  %v3611_v59 = vadd.f32 %v3610_v40, %v3609_v2  ;;  %v5383_v17 = vadd.f32 %v5382_v6, %v5381_v54 }
 0x7ae   : > { %v4504_v49 = vadd.f32 %v4503_v61, %v4502_v39  ;;  %v3618_v25 = vadd.f32 %v3617_v62, %v3616_v12  ;;  %v5390_v37 = vadd.f32 %v5389_v26, %v5388_v60  ;;  %v3556_v27 = vsel %vm1912_vm2, %v3534_v10, 0.0 }
 0x7af   : > { %v3549_v30 = vsel %vm1912_vm2, %v3533_v58, 0.0  ;;  %v4498_v9 = vrot.slane %v4497_v15, 1  ;;  %v3557_v23 = vrot.slane %v3556_v27, 4  ;;  %v3482_v33 = vpop.permute.xlu0 %3481  ;;  %v5384_v28 = vrot.slane %v5383_v17, 2 }
 0x7b0   : > { %v4505_v29 = vrot.slane %v4504_v49, 1  ;;  %v3550_v14 = vrot.slane %v3549_v30, 4  ;;  %v3487_v22 = vpop.permute.xlu1 %3486  ;;  %v5391_v34 = vrot.slane %v5390_v37, 2  ;;  %v3543_v32 = vmul.f32 %v18920_v0, %v3482_v33 }
 0x7b1   : > { %v3544_v3 = vmul.f32 %v18920_v0, %v3487_v22  ;;  %v3558_v63 = vadd.f32 %v3557_v23, %v3556_v27  ;;  %v5489_v44 = vsel %vm2059_vm3, %v3618_v25, %v3611_v59  ;;  %v4499_v38 = vadd.f32 %v4498_v9, %v4497_v15  ;;  %v18922_v59 = vld [vmem:[#allocation91_spill] sm:$0xff] }
 0x7b2   : > { %v3551_v7 = vadd.f32 %v3550_v14, %v3549_v30  ;;  %v5392_v8 = vadd.f32 %v5391_v34, %v5390_v37  ;;  %v5385_v31 = vadd.f32 %v5384_v28, %v5383_v17  ;;  %v3619_v52 = vsel %vm1912_vm2, %v3543_v32, 0.0  ;;  %5501 = vrot.lane.b32.xlu0 %v5489_v44, %s18590_s4 }
 0x7b3   : > { %v3626_v20 = vsel %vm1912_vm2, %v3544_v3, 0.0  ;;  %v3559_v46 = vrot.slane %v3558_v63, 2  ;;  %v3620_v53 = vrot.slane %v3619_v52, 4  ;;  %v3492_v16 = vpop.permute.xlu0 %3491  ;;  %v4506_v61 = vadd.f32 %v4505_v29, %v4504_v49 }
 0x7b4   : > { %v3552_v11 = vrot.slane %v3551_v7, 2  ;;  %v3627_v56 = vrot.slane %v3626_v20, 4  ;;  %v3497_v19 = vpop.permute.xlu1 %3496  ;;  %v5393_v1 = vrot.slane %v5392_v8, 1  ;;  %v5386_v24 = vrot.slane %v5385_v31, 1 }
 0x7b5   : > { %v3546_v12 = vmul.f32 %v18921_v21, %v3497_v19  ;;  %v3545_v2 = vmul.f32 %v18921_v21, %v3492_v16  ;;  %v3560_v57 = vadd.f32 %v3559_v46, %v3558_v63  ;;  %v3621_v54 = vadd.f32 %v3620_v53, %v3619_v52 }
 0x7b6   : > { %v3553_v39 = vadd.f32 %v3552_v11, %v3551_v7  ;;  %v3628_v60 = vadd.f32 %v3627_v56, %v3626_v20  ;;  %v5387_v42 = vadd.f32 %v5386_v24, %v5385_v31  ;;  %v5537_v15 = vsel %vm2059_vm3, %v4506_v61, %v4499_v38  ;;  %v18923_v38 = vld [vmem:[#allocation94_spill] sm:$0xff] }
 0x7b7   : > { %v3640_v62 = vsel %vm1912_vm2, %v3546_v12, 0.0  ;;  %v3633_v40 = vsel %vm1912_vm2, %v3545_v2, 0.0  ;;  %v3622_v4 = vrot.slane %v3621_v54, 2  ;;  %v4320_v6 = vpop.permute.xlu0 %4319  ;;  %v3561_v37 = vrot.slane %v3560_v57, 1  ;;  %5549 = vrot.lane.b32.xlu0 %v5537_v15, %s18588_s7 }
 0x7b8   : > { %v3554_v36 = vrot.slane %v3553_v39, 1  ;;  %v3629_v41 = vrot.slane %v3628_v60, 2  ;;  %v4325_v26 = vpop.permute.xlu1 %4324  ;;  %v3641_v58 = vrot.slane %v3640_v62, 4  ;;  %v3634_v10 = vrot.slane %v3633_v40, 4 }
 0x7b9   : > { %v4422_v25 = vmul.f32 %v18922_v59, %v4325_v26  ;;  %v3623_v17 = vadd.f32 %v3622_v4, %v3621_v54  ;;  %v4421_v30 = vmul.f32 %v18922_v59, %v4320_v6  ;;  %v5394_v49 = vadd.f32 %v5393_v1, %v5392_v8 }
 0x7ba   : > { %v3630_v27 = vadd.f32 %v3629_v41, %v3628_v60  ;;  %v3642_v29 = vadd.f32 %v3641_v58, %v3640_v62  ;;  %v3635_v9 = vadd.f32 %v3634_v10, %v3633_v40  ;;  %v3555_v0 = vadd.f32 %v3554_v36, %v3553_v39 }
 0x7bb   : > { %v4444_v14 = vsel %vm1912_vm2, %v4422_v25, 0.0  ;;  %v3624_v23 = vrot.slane %v3623_v17, 1  ;;  %v4437_v33 = vsel %vm1912_vm2, %v4421_v30, 0.0  ;;  %v4370_v28 = vpop.permute.xlu0 %4369  ;;  %v5585_v63 = vsel %vm2059_vm3, %v5394_v49, %v5387_v42 }
 0x7bc   : > { %v4445_v22 = vrot.slane %v4444_v14, 4  ;;  %v4375_v34 = vpop.permute.xlu1 %4374  ;;  %v3643_v3 = vrot.slane %v3642_v29, 2  ;;  %v3636_v32 = vrot.slane %v3635_v9, 2  ;;  %v4438_v7 = vrot.slane %v4437_v33, 4  ;;  %5597 = vrot.lane.b32.xlu0 %v5585_v63, %s18586_s9 }
 0x7bd   : > { %v4432_v8 = vmul.f32 %v18923_v38, %v4375_v34  ;;  %v4431_v31 = vmul.f32 %v18923_v38, %v4370_v28  ;;  %v3562_v20 = vadd.f32 %v3561_v37, %v3560_v57  ;;  %v3631_v52 = vrot.slane %v3630_v27, 1  ;;  %v18924_v57 = vld [vmem:[#allocation93_spill] sm:$0xff] }
 0x7be   : > { %v4446_v44 = vadd.f32 %v4445_v22, %v4444_v14  ;;  %v3644_v11 = vadd.f32 %v3643_v3, %v3642_v29  ;;  %v3637_v46 = vadd.f32 %v3636_v32, %v3635_v9  ;;  %v4439_v56 = vadd.f32 %v4438_v7, %v4437_v33  ;;  %v18925_v9 = vld [vmem:[#allocation95_spill] sm:$0xff] }
 0x7bf   : > { %v4514_v19 = vsel %vm1912_vm2, %v4432_v8, 0.0  ;;  %v4507_v16 = vsel %vm1912_vm2, %v4431_v31, 0.0  ;;  %v5485_v1 = vsel %vm2059_vm3, %v3562_v20, %v3555_v0  ;;  %v4380_v21 = vpop.permute.xlu0 %4379  ;;  %v3625_v60 = vadd.f32 %v3624_v23, %v3623_v17 }
 0x7c0   : > { %v4447_v53 = vrot.slane %v4446_v44, 2  ;;  %v4385_v24 = vpop.permute.xlu1 %4384  ;;  %v3638_v12 = vrot.slane %v3637_v46, 1  ;;  %v4440_v2 = vrot.slane %v4439_v56, 2  ;;  %v4515_v39 = vrot.slane %v4514_v19, 4  ;;  %5493 = vrot.lane.b32.xlu0 %v5485_v1, %s18590_s4 }
 0x7c1   : > { %v3645_v54 = vrot.slane %v3644_v11, 1  ;;  %v4508_v62 = vrot.slane %v4507_v16, 4  ;;  %v4434_v40 = vmul.f32 %v18924_v57, %v4385_v24  ;;  %v4433_v61 = vmul.f32 %v18924_v57, %v4380_v21 }
 0x7c2   : > { %v4448_v36 = vadd.f32 %v4447_v53, %v4446_v44  ;;  %v4441_v41 = vadd.f32 %v4440_v2, %v4439_v56  ;;  %v4516_v4 = vadd.f32 %v4515_v39, %v4514_v19  ;;  %v3632_v26 = vadd.f32 %v3631_v52, %v3630_v27  ;;  %v18926_v56 = vld [vmem:[#allocation96_spill] sm:$0xff] }
 0x7c3   : > { %v4509_v6 = vadd.f32 %v4508_v62, %v4507_v16  ;;  %v4528_v42 = vsel %vm1912_vm2, %v4434_v40, 0.0  ;;  %v4521_v58 = vsel %vm1912_vm2, %v4433_v61, 0.0  ;;  %v5208_v15 = vpop.permute.xlu0 %5207  ;;  %v3639_v59 = vadd.f32 %v3638_v12, %v3637_v46 }
 0x7c4   : > { %v5213_v10 = vpop.permute.xlu1 %5212  ;;  %v4442_v25 = vrot.slane %v4441_v41, 1  ;;  %v4517_v37 = vrot.slane %v4516_v4, 2  ;;  %v4529_v17 = vrot.slane %v4528_v42, 4  ;;  %v4522_v30 = vrot.slane %v4521_v58, 4 }
 0x7c5   : > { %v4510_v49 = vrot.slane %v4509_v6, 2  ;;  %v5490_v29 = vsel %vm2059_vm3, %v3632_v26, %v3625_v60  ;;  %v5310_v14 = vmul.f32 %v18925_v9, %v5213_v10  ;;  %v5309_v23 = vmul.f32 %v18925_v9, %v5208_v15  ;;  %v18927_v26 = vld [vmem:[#allocation97_spill] sm:$0xff] }
 0x7c6   : > { %v4449_v27 = vrot.slane %v4448_v36, 1  ;;  %v4530_v22 = vadd.f32 %v4529_v17, %v4528_v42  ;;  %v4523_v33 = vadd.f32 %v4522_v30, %v4521_v58  ;;  %5503 = vrot.lane.b32.xlu1 %v5490_v29, %s18590_s4  ;;  %v3646_v34 = vadd.f32 %v3645_v54, %v3644_v11 }
 0x7c7   : > { %v4518_v28 = vadd.f32 %v4517_v37, %v4516_v4  ;;  %v4511_v0 = vadd.f32 %v4510_v49, %v4509_v6  ;;  %v5332_v3 = vsel %vm1912_vm2, %v5310_v14, 0.0  ;;  %v5325_v32 = vsel %vm1912_vm2, %v5309_v23, 0.0  ;;  %v5258_v63 = vpop.permute.xlu0 %5257 }
 0x7c8   : > { %v5263_v7 = vpop.permute.xlu1 %5262  ;;  %v4531_v44 = vrot.slane %v4530_v22, 2  ;;  %v4524_v38 = vrot.slane %v4523_v33, 2  ;;  %v5333_v8 = vrot.slane %v5332_v3, 4  ;;  %v4443_v31 = vadd.f32 %v4442_v25, %v4441_v41 }
 0x7c9   : > { %v4512_v20 = vrot.slane %v4511_v0, 1  ;;  %v5326_v52 = vrot.slane %v5325_v32, 4  ;;  %v5491_v46 = vsel %vm2059_vm3, %v3646_v34, %v3639_v59  ;;  %v5320_v53 = vmul.f32 %v18926_v56, %v5263_v7  ;;  %v18929_v7 = vld [vmem:[#allocation104_spill] sm:$0xff] }
 0x7ca   : > { %v4532_v19 = vadd.f32 %v4531_v44, %v4530_v22  ;;  %v4525_v11 = vadd.f32 %v4524_v38, %v4523_v33  ;;  %v5334_v16 = vadd.f32 %v5333_v8, %v5332_v3  ;;  %5505 = vrot.lane.b32.xlu0 %v5491_v46, %s18590_s4  ;;  %v5319_v1 = vmul.f32 %v18926_v56, %v5258_v63 }
 0x7cb   : > { %v4519_v24 = vrot.slane %v4518_v28, 1  ;;  %v5327_v21 = vadd.f32 %v5326_v52, %v5325_v32  ;;  %v5402_v12 = vsel %vm1912_vm2, %v5320_v53, 0.0  ;;  %v4450_v2 = vadd.f32 %v4449_v27, %v4448_v36  ;;  %v5268_v60 = vpop.permute.xlu0 %5267  ;;  %v18928_v27 = vld [vmem:[#allocation98_spill] sm:$0xff] }
 0x7cc   : > { %v5273_v39 = vpop.permute.xlu1 %5272  ;;  %v4526_v54 = vrot.slane %v4525_v11, 1  ;;  %v5335_v62 = vrot.slane %v5334_v16, 2  ;;  %v5403_v57 = vrot.slane %v5402_v12, 4  ;;  %v4513_v40 = vadd.f32 %v4512_v20, %v4511_v0 }
 0x7cd   : > { %v5328_v61 = vrot.slane %v5327_v21, 2  ;;  %v5395_v41 = vsel %vm1912_vm2, %v5319_v1, 0.0  ;;  %v5533_v4 = vsel %vm2059_vm3, %v4450_v2, %v4443_v31  ;;  %v5322_v6 = vmul.f32 %v18927_v26, %v5273_v39 }
 0x7ce   : > { %v4533_v42 = vrot.slane %v4532_v19, 1  ;;  %v5336_v58 = vadd.f32 %v5335_v62, %v5334_v16  ;;  %v5404_v10 = vadd.f32 %v5403_v57, %v5402_v12  ;;  %v5396_v15 = vrot.slane %v5395_v41, 4  ;;  %5541 = vrot.lane.b32.xlu0 %v5533_v4, %s18588_s7  ;;  %v18930_v12 = vld [vmem:[#allocation99_spill] sm:$0xff] }
 0x7cf   : > { %v5329_v36 = vadd.f32 %v5328_v61, %v5327_v21  ;;  %v5416_v59 = vsel %vm1912_vm2, %v5322_v6, 0.0  ;;  %v5321_v25 = vmul.f32 %v18927_v26, %v5268_v60  ;;  %v4520_v37 = vadd.f32 %v4519_v24, %v4518_v28  ;;  %v3452_v30 = vpop.permute.xlu0 %3451 }
 0x7d0   : > { %v3442_v17 = vpop.permute.xlu1 %3441  ;;  %v5405_v49 = vrot.slane %v5404_v10, 2  ;;  %v5397_v29 = vadd.f32 %v5396_v15, %v5395_v41  ;;  %v5417_v9 = vrot.slane %v5416_v59, 4  ;;  %v4527_v33 = vadd.f32 %v4526_v54, %v4525_v11  ;;  %v18931_v15 = vld [vmem:[#allocation100_spill] sm:$0xff] }
 0x7d1   : > { %v5330_v14 = vrot.slane %v5329_v36, 1  ;;  %v5538_v23 = vsel %vm2059_vm3, %v4520_v37, %v4513_v40  ;;  %v3535_v22 = vmul.f32 %v18928_v27, %v3442_v17  ;;  %v5337_v34 = vrot.slane %v5336_v58, 1 }
 0x7d2   : > { %v5398_v0 = vrot.slane %v5397_v29, 2  ;;  %v5418_v3 = vadd.f32 %v5417_v9, %v5416_v59  ;;  %5551 = vrot.lane.b32.xlu1 %v5538_v23, %s18588_s7  ;;  %v5409_v32 = vsel %vm1912_vm2, %v5321_v25, 0.0  ;;  %v3537_v63 = vmul.f32 %v18929_v7, %v3452_v30 }
 0x7d3   : > { %v3563_v28 = vsel %vm1912_vm2, %v3535_v22, 0.0  ;;  %v4534_v44 = vadd.f32 %v4533_v42, %v4532_v19  ;;  %v3502_v8 = vpop.permute.xlu0 %3501  ;;  %v5406_v31 = vadd.f32 %v5405_v49, %v5404_v10  ;;  %v5331_v52 = vadd.f32 %v5330_v14, %v5329_v36 }
 0x7d4   : > { %v3447_v38 = vpop.permute.xlu1 %3446  ;;  %v5399_v20 = vadd.f32 %v5398_v0, %v5397_v29  ;;  %v3564_v46 = vrot.slane %v3563_v28, 4  ;;  %v3577_v56 = vsel %vm1912_vm2, %v3537_v63, 0.0  ;;  %v5419_v1 = vrot.slane %v5418_v3, 2 }
 0x7d5   : > { %v5539_v53 = vsel %vm2059_vm3, %v4534_v44, %v4527_v33  ;;  %v3536_v11 = vmul.f32 %v18928_v27, %v3447_v38  ;;  %v5410_v24 = vrot.slane %v5409_v32, 4  ;;  %v3547_v2 = vmul.f32 %v18930_v12, %v3502_v8 }
 0x7d6   : > { %v5400_v16 = vrot.slane %v5399_v20, 1  ;;  %5553 = vrot.lane.b32.xlu0 %v5539_v53, %s18588_s7  ;;  %v3565_v21 = vadd.f32 %v3564_v46, %v3563_v28  ;;  %v5338_v39 = vadd.f32 %v5337_v34, %v5336_v58  ;;  %v3578_v62 = vrot.slane %v3577_v56, 4  ;;  %v18932_v28 = vld [vmem:[#allocation106_spill] sm:$0xff]  ;;  %v18933_v53 = vld [vmem:[#allocation101_spill] sm:$0xff] }
 0x7d7   : > { %v3570_v19 = vsel %vm1912_vm2, %v3536_v11, 0.0  ;;  %v4330_v54 = vpop.permute.xlu0 %4329  ;;  %v5407_v40 = vrot.slane %v5406_v31, 1  ;;  %v3647_v61 = vsel %vm1912_vm2, %v3547_v2, 0.0  ;;  %v5411_v26 = vadd.f32 %v5410_v24, %v5409_v32 }
 0x7d8   : > { %v3457_v60 = vpop.permute.xlu1 %3456  ;;  %v3571_v57 = vrot.slane %v3570_v19, 4  ;;  %v5581_v41 = vsel %vm2059_vm3, %v5338_v39, %v5331_v52  ;;  %v3566_v6 = vrot.slane %v3565_v21, 2  ;;  %v16198_v10 = vadd.f32 %v5419_v1, %v5418_v3 }
 0x7d9   : > { %v3538_v4 = vmul.f32 %v18929_v7, %v3457_v60  ;;  %v4423_v36 = vmul.f32 %v18931_v15, %v4330_v54  ;;  %v5401_v59 = vadd.f32 %v5400_v16, %v5399_v20  ;;  %v3579_v17 = vadd.f32 %v3578_v62, %v3577_v56 }
 0x7da   : > { %v3572_v42 = vadd.f32 %v3571_v57, %v3570_v19  ;;  %5589 = vrot.lane.b32.xlu0 %v5581_v41, %s18586_s9  ;;  %v3648_v49 = vrot.slane %v3647_v61, 4  ;;  %v5408_v14 = vadd.f32 %v5407_v40, %v5406_v31  ;;  %v5412_v27 = vrot.slane %v5411_v26, 2 }
 0x7db   : > { %v3584_v58 = vsel %vm1912_vm2, %v3538_v4, 0.0  ;;  %v4340_v37 = vpop.permute.xlu0 %4339  ;;  %v4451_v9 = vsel %vm1912_vm2, %v4423_v36, 0.0  ;;  %v3567_v22 = vadd.f32 %v3566_v6, %v3565_v21  ;;  %v5421_v38 = vrot.slane %v16198_v10, 1 }
 0x7dc   : > { %v3507_v25 = vpop.permute.xlu1 %3506  ;;  %v3573_v30 = vrot.slane %v3572_v42, 2  ;;  %v3585_v29 = vrot.slane %v3584_v58, 4  ;;  %v4452_v0 = vrot.slane %v4451_v9, 4  ;;  %v5586_v3 = vsel %vm2059_vm3, %v5408_v14, %v5401_v59 }
 0x7dd   : > { %v3548_v23 = vmul.f32 %v18930_v12, %v3507_v25  ;;  %v4425_v7 = vmul.f32 %v18932_v28, %v4340_v37  ;;  %v3580_v8 = vrot.slane %v3579_v17, 2  ;;  %v3649_v20 = vadd.f32 %v3648_v49, %v3647_v61  ;;  %5599 = vrot.lane.b32.xlu1 %v5586_v3, %s18586_s9 }
 0x7de   : > { %v3574_v33 = vadd.f32 %v3573_v30, %v3572_v42  ;;  %v3586_v34 = vadd.f32 %v3585_v29, %v3584_v58  ;;  %v4453_v1 = vadd.f32 %v4452_v0, %v4451_v9  ;;  %v16212_v19 = vadd.f32 %v5412_v27, %v5411_v26  ;;  %v18934_v42 = vld [vmem:[#allocation102_spill] sm:$0xff] }
 0x7df   : > { %v3654_v32 = vsel %vm1912_vm2, %v3548_v23, 0.0  ;;  %v4390_v44 = vpop.permute.xlu0 %4389  ;;  %v4465_v46 = vsel %vm1912_vm2, %v4425_v7, 0.0  ;;  %v3568_v12 = vrot.slane %v3567_v22, 1  ;;  %v3581_v62 = vadd.f32 %v3580_v8, %v3579_v17 }
 0x7e0   : > { %v4335_v63 = vpop.permute.xlu1 %4334  ;;  %v3655_v31 = vrot.slane %v3654_v32, 4  ;;  %v3587_v52 = vrot.slane %v3586_v34, 2  ;;  %v4435_v11 = vmul.f32 %v18933_v53, %v4390_v44  ;;  %v3575_v16 = vrot.slane %v3574_v33, 1 }
 0x7e1   : > { %v4424_v56 = vmul.f32 %v18931_v15, %v4335_v63  ;;  %v4466_v21 = vrot.slane %v4465_v46, 4  ;;  %v3650_v57 = vrot.slane %v3649_v20, 2  ;;  %v4454_v15 = vrot.slane %v4453_v1, 2  ;;  %v18935_v63 = vld [vmem:[#allocation108_spill] sm:$0xff] }
 0x7e2   : > { %v3656_v24 = vadd.f32 %v3655_v31, %v3654_v32  ;;  %v4535_v39 = vsel %vm1912_vm2, %v4435_v11, 0.0  ;;  %v3588_v41 = vadd.f32 %v3587_v52, %v3586_v34  ;;  %v3576_v59 = vadd.f32 %v3575_v16, %v3574_v33 }
 0x7e3   : > { %v4458_v2 = vsel %vm1912_vm2, %v4424_v56, 0.0  ;;  %v5218_v54 = vpop.permute.xlu0 %5217  ;;  %v4467_v40 = vadd.f32 %v4466_v21, %v4465_v46  ;;  %v4536_v4 = vrot.slane %v4535_v39, 4  ;;  %v3569_v49 = vadd.f32 %v3568_v12, %v3567_v22 }
 0x7e4   : > { %v4345_v60 = vpop.permute.xlu1 %4344  ;;  %v4459_v61 = vrot.slane %v4458_v2, 4  ;;  %v5311_v58 = vmul.f32 %v18934_v42, %v5218_v54  ;;  %v3657_v26 = vrot.slane %v3656_v24, 2  ;;  %v3582_v9 = vrot.slane %v3581_v62, 1 }
 0x7e5   : > { %v4426_v6 = vmul.f32 %v18932_v28, %v4345_v60  ;;  %v4468_v25 = vrot.slane %v4467_v40, 2  ;;  %v4537_v37 = vadd.f32 %v4536_v4, %v4535_v39  ;;  %v3589_v34 = vrot.slane %v3588_v41, 1 }
 0x7e6   : > { %v4460_v36 = vadd.f32 %v4459_v61, %v4458_v2  ;;  %v5339_v27 = vsel %vm1912_vm2, %v5311_v58, 0.0  ;;  %v5486_v3 = vsel %vm2059_vm3, %v3576_v59, %v3569_v49  ;;  %v3651_v28 = vadd.f32 %v3650_v57, %v3649_v20 }
 0x7e7   : > { %v4472_v30 = vsel %vm1912_vm2, %v4426_v6, 0.0  ;;  %v5228_v17 = vpop.permute.xlu0 %5227  ;;  %v4538_v0 = vrot.slane %v4537_v37, 2  ;;  %v3658_v33 = vadd.f32 %v3657_v26, %v3656_v24  ;;  %5495 = vrot.lane.b32.xlu1 %v5486_v3, %s18590_s4  ;;  %v4455_v44 = vadd.f32 %v4454_v15, %v4453_v1 }
 0x7e8   : > { %v4395_v29 = vpop.permute.xlu1 %4394  ;;  %v4461_v14 = vrot.slane %v4460_v36, 2  ;;  %v4473_v23 = vrot.slane %v4472_v30, 4  ;;  %v5313_v22 = vmul.f32 %v18935_v63, %v5228_v17  ;;  %v16224_v8 = vadd.f32 %v4468_v25, %v4467_v40 }
 0x7e9   : > { %v4436_v32 = vmul.f32 %v18933_v53, %v4395_v29  ;;  %v5340_v31 = vrot.slane %v5339_v27, 4  ;;  %v16228_v20 = vadd.f32 %v4538_v0, %v4537_v37  ;;  %v3583_v12 = vadd.f32 %v3582_v9, %v3581_v62  ;;  %v18936_v29 = vld [vmem:[#allocation105_spill] sm:$0xff] }
 0x7ea   : > { %v4474_v7 = vadd.f32 %v4473_v23, %v4472_v30  ;;  %v4462_v11 = vadd.f32 %v4461_v14, %v4460_v36  ;;  %v5353_v53 = vsel %vm1912_vm2, %v5313_v22, 0.0  ;;  %v3590_v2 = vadd.f32 %v3589_v34, %v3588_v41 }
 0x7eb   : > { %v4542_v52 = vsel %vm1912_vm2, %v4436_v32, 0.0  ;;  %v5278_v56 = vpop.permute.xlu0 %5277  ;;  %v5354_v24 = vrot.slane %v5353_v53, 4  ;;  %v3652_v39 = vrot.slane %v3651_v28, 1  ;;  %v3659_v60 = vrot.slane %v3658_v33, 1 }
 0x7ec   : > { %v5223_v46 = vpop.permute.xlu1 %5222  ;;  %v4475_v16 = vrot.slane %v4474_v7, 2  ;;  %v4543_v21 = vrot.slane %v4542_v52, 4  ;;  %v5414_v57 = vrot.slane %v16212_v19, 1  ;;  %v5341_v40 = vadd.f32 %v5340_v31, %v5339_v27  ;;  %v18937_v27 = vld [vmem:[#allocation103_spill] sm:$0xff] }
 0x7ed   : > { %v5312_v54 = vmul.f32 %v18934_v42, %v5223_v46  ;;  %v5355_v61 = vadd.f32 %v5354_v24, %v5353_v53  ;;  %v5487_v4 = vsel %vm2059_vm3, %v3590_v2, %v3583_v12  ;;  %v4456_v15 = vrot.slane %v4455_v44, 1 }
 0x7ee   : > { %v4544_v1 = vadd.f32 %v4543_v21, %v4542_v52  ;;  %v4470_v26 = vrot.slane %v16224_v8, 1  ;;  %v4476_v36 = vadd.f32 %v4475_v16, %v4474_v7  ;;  %5497 = vrot.lane.b32.xlu0 %v5487_v4, %s18590_s4  ;;  %v4463_v41 = vrot.slane %v4462_v11, 1 }
 0x7ef   : > { %v3462_v58 = vpop.permute.xlu0 %3461  ;;  %v5346_v62 = vsel %vm1912_vm2, %v5312_v54, 0.0  ;;  %v4540_v59 = vrot.slane %v16228_v20, 1  ;;  %v3653_v37 = vadd.f32 %v3652_v39, %v3651_v28  ;;  %v3660_v30 = vadd.f32 %v3659_v60, %v3658_v33 }
 0x7f0   : > { %v5233_v6 = vpop.permute.xlu1 %5232  ;;  %v4545_v42 = vrot.slane %v4544_v1, 2  ;;  %v5347_v25 = vrot.slane %v5346_v62, 4  ;;  %v3539_v17 = vmul.f32 %v18936_v29, %v3462_v58  ;;  %v5342_v9 = vrot.slane %v5341_v40, 2 }
 0x7f1   : > { %v5314_v49 = vmul.f32 %v18935_v63, %v5233_v6  ;;  %v5356_v14 = vrot.slane %v5355_v61, 2  ;;  %v5323_v34 = vmul.f32 %v18937_v27, %v5278_v56  ;;  %v4477_v32 = vrot.slane %v4476_v36, 1  ;;  %v18938_v56 = vld [vmem:[#allocation107_spill] sm:$0xff] }
 0x7f2   : > { %v5348_v23 = vadd.f32 %v5347_v25, %v5346_v62  ;;  %v5492_v7 = vsel %vm2059_vm3, %v3660_v30, %v3653_v37  ;;  %v3591_v31 = vsel %vm1912_vm2, %v3539_v17, 0.0  ;;  %v4546_v28 = vadd.f32 %v4545_v42, %v4544_v1 }
 0x7f3   : > { %v4350_v3 = vpop.permute.xlu0 %4349  ;;  %v5360_v22 = vsel %vm1912_vm2, %v5314_v49, 0.0  ;;  %5507 = vrot.lane.b32.xlu1 %v5492_v7, %s18590_s4  ;;  %v4457_v52 = vadd.f32 %v4456_v15, %v4455_v44  ;;  %v3592_v46 = vrot.slane %v3591_v31, 4  ;;  %v4464_v16 = vadd.f32 %v4463_v41, %v4462_v11  ;;  %v18939_v49 = vld [vmem:[#allocation109_spill] sm:$0xff] }
 0x7f4   : > { %v5283_v0 = vpop.permute.xlu1 %5282  ;;  %v5349_v33 = vrot.slane %v5348_v23, 2  ;;  %v5361_v63 = vrot.slane %v5360_v22, 4  ;;  %v4427_v53 = vmul.f32 %v18938_v56, %v4350_v3  ;;  %v5343_v24 = vadd.f32 %v5342_v9, %v5341_v40 }
 0x7f5   : > { %v5324_v21 = vmul.f32 %v18937_v27, %v5283_v0  ;;  %v5357_v12 = vadd.f32 %v5356_v14, %v5355_v61  ;;  %v5423_v2 = vsel %vm1912_vm2, %v5323_v34, 0.0  ;;  %v3593_v4 = vadd.f32 %v3592_v46, %v3591_v31 }
 0x7f6   : > { %v5362_v39 = vadd.f32 %v5361_v63, %v5360_v22  ;;  %v5350_v54 = vadd.f32 %v5349_v33, %v5348_v23  ;;  %v5534_v1 = vsel %vm2059_vm3, %v4464_v16, %v4457_v52  ;;  %v4479_v6 = vsel %vm1912_vm2, %v4427_v53, 0.0 }
 0x7f7   : > { %v5238_v58 = vpop.permute.xlu0 %5237  ;;  %v4547_v44 = vrot.slane %v4546_v28, 1  ;;  %5543 = vrot.lane.b32.xlu1 %v5534_v1, %s18588_s7  ;;  %v5430_v11 = vsel %vm1912_vm2, %v5324_v21, 0.0  ;;  %v4471_v40 = vadd.f32 %v4470_v26, %v16224_v8  ;;  %v3594_v61 = vrot.slane %v3593_v4, 2 }
 0x7f8   : > { %v3467_v60 = vpop.permute.xlu1 %3466  ;;  %v5363_v15 = vrot.slane %v5362_v39, 2  ;;  %v4480_v62 = vrot.slane %v4479_v6, 4  ;;  %v4478_v41 = vadd.f32 %v4477_v32, %v4476_v36  ;;  %v5344_v25 = vrot.slane %v5343_v24, 1 }
 0x7f9   : > { %v3540_v42 = vmul.f32 %v18936_v29, %v3467_v60  ;;  %v5424_v37 = vrot.slane %v5423_v2, 4  ;;  %v5315_v17 = vmul.f32 %v18939_v49, %v5238_v58  ;;  %v5351_v14 = vrot.slane %v5350_v54, 1 }
 0x7fa   : > { %v5364_v30 = vadd.f32 %v5363_v15, %v5362_v39  ;;  %v4481_v23 = vadd.f32 %v4480_v62, %v4479_v6  ;;  %v5535_v27 = vsel %vm2059_vm3, %v4478_v41, %v4471_v40  ;;  %v5358_v0 = vrot.slane %v5357_v12, 1 }
 0x7fb   : > { %v3598_v34 = vsel %vm1912_vm2, %v3540_v42, 0.0  ;;  %v5431_v3 = vrot.slane %v5430_v11, 4  ;;  %5545 = vrot.lane.b32.xlu0 %v5535_v27, %s18588_s7  ;;  %v5367_v26 = vsel %vm1912_vm2, %v5315_v17, 0.0  ;;  %v3595_v36 = vadd.f32 %v3594_v61, %v3593_v4 }
 0x7fc   : > { %v4355_v9 = vpop.permute.xlu1 %4354  ;;  %v3599_v8 = vrot.slane %v3598_v34, 4  ;;  %v5368_v29 = vrot.slane %v5367_v26, 4  ;;  %v4541_v32 = vadd.f32 %v4540_v59, %v16228_v20  ;;  %v4548_v7 = vadd.f32 %v4547_v44, %v4546_v28 }
 0x7fd   : > { %v5365_v22 = vrot.slane %v5364_v30, 1  ;;  %v4482_v31 = vrot.slane %v4481_v23, 2  ;;  %v4428_v63 = vmul.f32 %v18938_v56, %v4355_v9  ;;  %v5345_v21 = vadd.f32 %v5344_v25, %v5343_v24 }
 0x7fe   : > { %v3600_v33 = vadd.f32 %v3599_v8, %v3598_v34  ;;  %v5369_v46 = vadd.f32 %v5368_v29, %v5367_v26  ;;  %v5540_v16 = vsel %vm2059_vm3, %v4548_v7, %v4541_v32  ;;  %v5352_v53 = vadd.f32 %v5351_v14, %v5350_v54 }
 0x7ff   : > { %v5432_v39 = vadd.f32 %v5431_v3, %v5430_v11  ;;  %5555 = vrot.lane.b32.xlu1 %v5540_v16, %s18588_s7  ;;  %v4486_v4 = vsel %vm1912_vm2, %v4428_v63, 0.0  ;;  %v3596_v59 = vrot.slane %v3595_v36, 1  ;;  %v5359_v44 = vadd.f32 %v5358_v0, %v5357_v12  ;;  %v5642_v0 = vld [vmem:[%s18940_s5 + $0x18] sm:$0xff] }
 0x800   : > { %v5243_v52 = vpop.permute.xlu1 %5242  ;;  %v3601_v60 = vrot.slane %v3600_v33, 2  ;;  %v5370_v28 = vrot.slane %v5369_v46, 2  ;;  %v4487_v1 = vrot.slane %v4486_v4, 4  ;;  %v5582_v6 = vsel %vm2059_vm3, %v5352_v53, %v5345_v21  ;;  %12702 = vmatprep.subr.mxu0 %v5642_v0 }
 0x801   : > { %v5316_v20 = vmul.f32 %v18939_v49, %v5243_v52  ;;  %v5366_v15 = vadd.f32 %v5365_v22, %v5364_v30  ;;  %v5425_v24 = vadd.f32 %v5424_v37, %v5423_v2  ;;  %v4483_v54 = vadd.f32 %v4482_v31, %v4481_v23  ;;  %12703 = vmatpush3.msra.mxu0 %v5642_v0  ;;  %v5641_v31 = vld [vmem:[%s18940_s5 + $0x10] sm:$0xff] }
 0x802   : > { %v3602_v56 = vadd.f32 %v3601_v60, %v3600_v33  ;;  %v4488_v11 = vadd.f32 %v4487_v1, %v4486_v4  ;;  %v5415_v41 = vadd.f32 %v5414_v57, %v16212_v19  ;;  %v5422_v42 = vadd.f32 %v5421_v38, %v16198_v10  ;;  %v5640_v33 = vld [vmem:[%s18940_s5 + $0x8] sm:$0xff]  ;;  %12704 = vmatprep.subr.mxu0 %v5641_v31 }
 0x803   : > { %v5374_v58 = vsel %vm1912_vm2, %v5316_v20, 0.0  ;;  %5591 = vrot.lane.b32.xlu1 %v5582_v6, %s18586_s9  ;;  %v5583_v62 = vsel %vm2059_vm3, %v5366_v15, %v5359_v44  ;;  %v5433_v25 = vrot.slane %v5432_v39, 2  ;;  %v5371_v12 = vadd.f32 %v5370_v28, %v5369_v46  ;;  %12705 = vmatpush3.msra.mxu0 %v5641_v31  ;;  %v5639_v46 = vld [vmem:[%s18940_s5] sm:$0xff]  ;;  %s14281_s5 = smov [#allocation32]  }
 0x804   : > { %v5375_v40 = vrot.slane %v5374_v58, 4  ;;  %v3603_v61 = vrot.slane %v3602_v56, 1  ;;  %v4489_v30 = vrot.slane %v4488_v11, 2  ;;  %5593 = vrot.lane.b32.xlu0 %v5583_v62, %s18586_s9  ;;  %v3597_v37 = vadd.f32 %v3596_v59, %v3595_v36  ;;  %12706 = vmatprep.subr.mxu0 %v5640_v33  ;;  %v2573_v4 = vpop.permute.xlu1 %2572 }
 0x805   : > { %v5426_v17 = vrot.slane %v5425_v24, 2  ;;  %v4484_v9 = vrot.slane %v4483_v54, 1  ;;  %v5587_v27 = vsel %vm2059_vm3, %v5422_v42, %v5415_v41  ;;  %v5434_v57 = vadd.f32 %v5433_v25, %v5432_v39  ;;  %12707 = vmatpush3.msra.mxu0 %v5640_v33  ;;  %v2568_v39 = vpop.permute.xlu0 %2567 }
 0x806   : > { %v5376_v2 = vadd.f32 %v5375_v40, %v5374_v58  ;;  %v3604_v49 = vadd.f32 %v3603_v61, %v3602_v56  ;;  %v4490_v14 = vadd.f32 %v4489_v30, %v4488_v11  ;;  %v5372_v34 = vrot.slane %v5371_v12, 1  ;;  %12708 = vmatprep.subr.mxu0 %v5639_v46 }
 0x807   : > { %v5427_v3 = vadd.f32 %v5426_v17, %v5425_v24  ;;  %v4485_v26 = vadd.f32 %v4484_v9, %v4483_v54  ;;  %v5435_v29 = vrot.slane %v5434_v57, 1  ;;  %12709 = vmatpush3.msra.mxu0 %v5639_v46 }
 0x808   : > { %v5377_v23 = vrot.slane %v5376_v2, 2  ;;  %v5488_v19 = vsel %vm2059_vm3, %v3604_v49, %v3597_v37  ;;  %v4491_v10 = vrot.slane %v4490_v14, 1  ;;  %5601 = vrot.lane.b32.xlu0 %v5587_v27, %s18586_s9  ;;  %v5373_v7 = vadd.f32 %v5372_v34, %v5371_v12  ;;  %v2583_v59 = vpop.permute.xlu1 %2582 }
 0x809   : > { %5499 = vrot.lane.b32.xlu1 %v5488_v19, %s18590_s4  ;;  %v5428_v63 = vrot.slane %v5427_v3, 1  ;;  %v5436_v16 = vadd.f32 %v5435_v29, %v5434_v57  ;;  %v2578_v60 = vpop.permute.xlu0 %2577  ;;  %s18957_s4 = sld [smem:[#allocation53_spill]] }
 0x80a   : > { %v5378_v38 = vadd.f32 %v5377_v23, %v5376_v2  ;;  %v4492_v36 = vadd.f32 %v4491_v10, %v4490_v14 }
 0x80b   : > { %v5429_v21 = vadd.f32 %v5428_v63, %v5427_v3 }
 0x80c   : > { %v5379_v8 = vrot.slane %v5378_v38, 1  ;;  %v5536_v32 = vsel %vm2059_vm3, %v4492_v36, %v4485_v26  ;;  %v2593_v1 = vpop.permute.xlu1 %2592 }
 0x80d   : > { %5547 = vrot.lane.b32.xlu1 %v5536_v32, %s18588_s7  ;;  %v5588_v53 = vsel %vm2059_vm3, %v5436_v16, %v5429_v21  ;;  %v2588_v20 = vpop.permute.xlu0 %2587  ;;  %s18956_s7 = sld [smem:[#allocation52_spill]] }
 0x80e   : > { %v5380_v22 = vadd.f32 %v5379_v8, %v5378_v38 }
 0x810   : > { %v5584_v52 = vsel %vm2059_vm3, %v5380_v22, %v5373_v7  ;;  %v2603_v56 = vpop.permute.xlu1 %2602 }
 0x811   : > { %5595 = vrot.lane.b32.xlu1 %v5584_v52, %s18586_s9  ;;  %v2598_v28 = vpop.permute.xlu0 %2597 }
 0x814   : > { %v2608_v44 = vpop.permute.xlu1 %2607 }
 0x815   : > { %5603 = vrot.lane.b32.xlu1 %v5588_v53, %s18586_s9  ;;  %v2606_v6 = vpop.permute.xlu0 %2605  ;;  %v2631_v49 = vmul.f32 %v2608_v44, %v16094_v35  ;;  %v2632_v17 = vmul.f32 %v2608_v44, %v16097_v45  ;;  %s18955_s9 = sld [smem:[#allocation51_spill]] }
 0x816   : > { %v2629_v2 = vmul.f32 %v2606_v6, %v16087_v13  ;;  %v2630_v37 = vmul.f32 %v2606_v6, %v16090_v51 }
 0x817   : > { %v2659_v35 = vsel %vm1912_vm2, %v2631_v49, 0.0  ;;  %v2666_v45 = vsel %vm1912_vm2, %v2632_v17, 0.0 }
 0x818   : > { %v2612_v24 = vpop.permute.xlu1 %2611  ;;  %v2645_v19 = vsel %vm1912_vm2, %v2629_v2, 0.0  ;;  %v2652_v57 = vsel %vm1912_vm2, %v2630_v37, 0.0  ;;  %v2660_v22 = vrot.slane %v2659_v35, 4  ;;  %v2667_v52 = vrot.slane %v2666_v45, 4 }
 0x819   : > { %v2610_v58 = vpop.permute.xlu0 %2609  ;;  %v2635_v3 = vmul.f32 %v2612_v24, %v16111_v5  ;;  %v2636_v8 = vmul.f32 %v2612_v24, %v16109_v43  ;;  %v2646_v26 = vrot.slane %v2645_v19, 4  ;;  %v2653_v36 = vrot.slane %v2652_v57, 4 }
 0x81a   : > { %v2633_v13 = vmul.f32 %v2610_v58, %v16103_v55  ;;  %v2634_v51 = vmul.f32 %v2610_v58, %v16101_v47 }
 0x81b   : > { %v2687_v21 = vsel %vm1912_vm2, %v2635_v3, 0.0  ;;  %v2694_v53 = vsel %vm1912_vm2, %v2636_v8, 0.0  ;;  %v2647_v2 = vadd.f32 %v2646_v26, %v2645_v19  ;;  %v2654_v37 = vadd.f32 %v2653_v36, %v2652_v57 }
 0x81c   : > { %v2616_v11 = vpop.permute.xlu1 %2615  ;;  %v2673_v47 = vsel %vm1912_vm2, %v2633_v13, 0.0  ;;  %v2680_v63 = vsel %vm1912_vm2, %v2634_v51, 0.0  ;;  %v2688_v44 = vrot.slane %v2687_v21, 4 }
 0x81d   : > { %v2614_v15 = vpop.permute.xlu0 %2613  ;;  %v2640_v34 = vmul.f32 %v2616_v11, %v2583_v59  ;;  %v2639_v10 = vmul.f32 %v2616_v11, %v2578_v60  ;;  %v2648_v19 = vrot.slane %v2647_v2, 2  ;;  %v2655_v57 = vrot.slane %v2654_v37, 2 }
 0x81e   : > { %v2637_v25 = vmul.f32 %v2614_v15, %v2568_v39  ;;  %v2638_v12 = vmul.f32 %v2614_v15, %v2573_v4  ;;  %v2674_v39 = vrot.slane %v2673_v47, 4  ;;  %v2695_v15 = vrot.slane %v2694_v53, 4 }
 0x81f   : > { %v2722_v31 = vsel %vm1912_vm2, %v2640_v34, 0.0  ;;  %v2715_v5 = vsel %vm1912_vm2, %v2639_v10, 0.0 }
 0x820   : > { %v2620_v61 = vpop.permute.xlu1 %2619  ;;  %v2701_v9 = vsel %vm1912_vm2, %v2637_v25, 0.0  ;;  %v2708_v14 = vsel %vm1912_vm2, %v2638_v12, 0.0  ;;  %v2716_v6 = vrot.slane %v2715_v5, 4  ;;  %v2696_v10 = vadd.f32 %v2695_v15, %v2694_v53 }
 0x821   : > { %v2618_v54 = vpop.permute.xlu0 %2617  ;;  %v2702_v38 = vrot.slane %v2701_v9, 4  ;;  %v2709_v0 = vrot.slane %v2708_v14, 4  ;;  %v2643_v33 = vmul.f32 %v2620_v61, %v2598_v28  ;;  %v2644_v43 = vmul.f32 %v2620_v61, %v2603_v56 }
 0x822   : > { %v2641_v29 = vmul.f32 %v2618_v54, %v2588_v20  ;;  %v2642_v32 = vmul.f32 %v2618_v54, %v2593_v1  ;;  %v2723_v20 = vrot.slane %v2722_v31, 4  ;;  %v2681_v28 = vrot.slane %v2680_v63, 4 }
 0x823   : > { %v2703_v46 = vadd.f32 %v2702_v38, %v2701_v9  ;;  %v2710_v16 = vadd.f32 %v2709_v0, %v2708_v14  ;;  %v2661_v1 = vadd.f32 %v2660_v22, %v2659_v35  ;;  %v2743_v58 = vsel %vm1912_vm2, %v2643_v33, 0.0 }
 0x824   : > { %v2729_v60 = vsel %vm1912_vm2, %v2641_v29, 0.0  ;;  %v2736_v4 = vsel %vm1912_vm2, %v2642_v32, 0.0  ;;  %v2668_v56 = vadd.f32 %v2667_v52, %v2666_v45  ;;  %v2750_v24 = vsel %vm1912_vm2, %v2644_v43, 0.0 }
 0x825   : > { %v16289_v40 = vpop.permute.xlu0 %5501  ;;  %v2704_v11 = vrot.slane %v2703_v46, 2  ;;  %v2711_v61 = vrot.slane %v2710_v16, 2  ;;  %v2730_v25 = vrot.slane %v2729_v60, 4  ;;  %v2737_v12 = vrot.slane %v2736_v4, 4 }
 0x826   : > { %v2724_v49 = vadd.f32 %v2723_v20, %v2722_v31  ;;  %v2744_v17 = vrot.slane %v2743_v58, 4  ;;  %v2675_v9 = vadd.f32 %v2674_v39, %v2673_v47  ;;  %v2662_v14 = vrot.slane %v2661_v1, 2 }
 0x827   : > { %v2717_v13 = vadd.f32 %v2716_v6, %v2715_v5  ;;  %v2751_v34 = vrot.slane %v2750_v24, 4  ;;  %v2682_v51 = vadd.f32 %v2681_v28, %v2680_v63  ;;  %v2669_v35 = vrot.slane %v2668_v56, 2 }
 0x828   : > { %v2689_v45 = vadd.f32 %v2688_v44, %v2687_v21  ;;  %v2705_v3 = vadd.f32 %v2704_v11, %v2703_v46  ;;  %v2712_v8 = vadd.f32 %v2711_v61, %v2710_v16  ;;  %v2731_v29 = vadd.f32 %v2730_v25, %v2729_v60 }
 0x829   : > { %v16291_v62 = vpop.permute.xlu0 %5549  ;;  %v2738_v32 = vadd.f32 %v2737_v12, %v2736_v4  ;;  %v2725_v26 = vrot.slane %v2724_v49, 2  ;;  %v2745_v36 = vadd.f32 %v2744_v17, %v2743_v58  ;;  %v2676_v47 = vrot.slane %v2675_v9, 2 }
 0x82a   : > { %v2663_v22 = vadd.f32 %v2662_v14, %v2661_v1  ;;  %v2718_v31 = vrot.slane %v2717_v13, 2  ;;  %v2752_v33 = vadd.f32 %v2751_v34, %v2750_v24  ;;  %v2683_v63 = vrot.slane %v2682_v51, 2 }
 0x82b   : > { %v2670_v52 = vadd.f32 %v2669_v35, %v2668_v56  ;;  %v2690_v5 = vrot.slane %v2689_v45, 2  ;;  %v2697_v43 = vrot.slane %v2696_v10, 2  ;;  %v2732_v53 = vrot.slane %v2731_v29, 2 }
 0x82c   : > { %v2739_v39 = vrot.slane %v2738_v32, 2  ;;  %v2706_v46 = vrot.slane %v2705_v3, 1  ;;  %v2713_v16 = vrot.slane %v2712_v8, 1  ;;  %v2649_v60 = vadd.f32 %v2648_v19, %v2647_v2 }
 0x82d   : > { %v2656_v4 = vadd.f32 %v2655_v57, %v2654_v37  ;;  %v2726_v20 = vadd.f32 %v2725_v26, %v2724_v49  ;;  %v2746_v28 = vrot.slane %v2745_v36, 2  ;;  %v2677_v58 = vadd.f32 %v2676_v47, %v2675_v9 }
 0x82e   : > { %v16295_v42 = vpop.permute.xlu0 %5597  ;;  %v2719_v1 = vadd.f32 %v2718_v31, %v2717_v13  ;;  %v2753_v44 = vrot.slane %v2752_v33, 2  ;;  %v2664_v15 = vrot.slane %v2663_v22, 1  ;;  %v2684_v24 = vadd.f32 %v2683_v63, %v2682_v51 }
 0x82f   : > { %v2691_v56 = vadd.f32 %v2690_v5, %v2689_v45  ;;  %v2698_v11 = vadd.f32 %v2697_v43, %v2696_v10  ;;  %v2671_v61 = vrot.slane %v2670_v52, 1  ;;  %v2733_v25 = vadd.f32 %v2732_v53, %v2731_v29 }
 0x830   : > { %v2740_v12 = vadd.f32 %v2739_v39, %v2738_v32  ;;  %v2707_v17 = vadd.f32 %v2706_v46, %v2705_v3  ;;  %v2714_v14 = vadd.f32 %v2713_v16, %v2712_v8  ;;  %v2747_v35 = vadd.f32 %v2746_v28, %v2745_v36 }
 0x831   : > { %v2650_v2 = vrot.slane %v2649_v60, 1  ;;  %v2657_v37 = vrot.slane %v2656_v4, 1  ;;  %v2727_v49 = vrot.slane %v2726_v20, 1  ;;  %v2754_v57 = vadd.f32 %v2753_v44, %v2752_v33 }
 0x832   : > { %v16305_v23 = vpop.permute.xlu0 %5493  ;;  %v2720_v26 = vrot.slane %v2719_v1, 1  ;;  %v2665_v9 = vadd.f32 %v2664_v15, %v2663_v22  ;;  %v2678_v13 = vrot.slane %v2677_v58, 1  ;;  %v2672_v47 = vadd.f32 %v2671_v61, %v2670_v52 }
 0x833   : > { %v2685_v31 = vrot.slane %v2684_v24, 1  ;;  %v2692_v51 = vrot.slane %v2691_v56, 1  ;;  %v2699_v45 = vrot.slane %v2698_v11, 1  ;;  %v5457_v10 = vsel %vm2059_vm3, %v2714_v14, %v2707_v17 }
 0x834   : > { %v2734_v29 = vrot.slane %v2733_v25, 1  ;;  %v2651_v3 = vadd.f32 %v2650_v2, %v2649_v60  ;;  %v2658_v8 = vadd.f32 %v2657_v37, %v2656_v4  ;;  %v2728_v63 = vadd.f32 %v2727_v49, %v2726_v20 }
 0x835   : > { %v2741_v36 = vrot.slane %v2740_v12, 1  ;;  %v2721_v43 = vadd.f32 %v2720_v26, %v2719_v1  ;;  %v2679_v53 = vadd.f32 %v2678_v13, %v2677_v58  ;;  %v2755_v39 = vrot.slane %v2754_v57, 1 }
 0x836   : > { %v2748_v33 = vrot.slane %v2747_v35, 1  ;;  %v5454_v22 = vsel %vm2059_vm3, %v2672_v47, %v2665_v9  ;;  %v2686_v46 = vadd.f32 %v2685_v31, %v2684_v24  ;;  %v2693_v52 = vadd.f32 %v2692_v51, %v2691_v56 }
 0x837   : > { %v2700_v16 = vadd.f32 %v2699_v45, %v2698_v11  ;;  %v5617_v28 = vsel %vm1280_vm0, %v5457_v10, %v16289_v40  ;;  %v5453_v4 = vsel %vm2059_vm3, %v2658_v8, %v2651_v3  ;;  %v2735_v20 = vadd.f32 %v2734_v29, %v2733_v25  ;;  %v18941_v45 = vld [vmem:[#allocation68_spill] sm:$0xff] }
 0x838   : > { %v16293_v41 = vpop.permute.xlu1 %5503  ;;  %v2742_v1 = vadd.f32 %v2741_v36, %v2740_v12  ;;  %v5613_v24 = vsel %vm1280_vm0, %v5453_v4, %v16305_v23  ;;  %v5458_v56 = vsel %vm2059_vm3, %v2728_v63, %v2721_v43  ;;  %v2756_v40 = vadd.f32 %v2755_v39, %v2754_v57 }
 0x839   : > { %v5455_v61 = vsel %vm2059_vm3, %v2686_v46, %v2679_v53  ;;  %v2749_v25 = vadd.f32 %v2748_v33, %v2747_v35  ;;  %v5456_v12 = vsel %vm2059_vm3, %v2700_v16, %v2693_v52  ;;  %v5626_v57 = vsel %vm5621_vm5, %v5617_v28, %v16291_v62 }
 0x83a   : > { %v5459_v49 = vsel %vm2059_vm3, %v2742_v1, %v2735_v20  ;;  %v5635_v47 = vsel %vm5630_vm6, %v5626_v57, %v16295_v42  ;;  %v18943_v20 = vld [vmem:[#allocation70_spill] sm:$0xff] }
 0x83b   : > { %v5460_v26 = vsel %vm2059_vm3, %v2756_v40, %v2749_v25 }
 0x83c   : > { %v16317_v7 = vpop.permute.xlu0 %5505 }
 0x840   : > { %v16333_v54 = vpop.permute.xlu0 %5541 }
 0x844   : > { %v16297_v30 = vpop.permute.xlu1 %5551 }
 0x848   : > { %v16335_v38 = vpop.permute.xlu0 %5553 }
 0x84c   : > { %v16341_v6 = vpop.permute.xlu0 %5589 }
 0x84f   : > { %v16307_v27 = vpop.permute.xlu1 %5599 }
 0x859   : > { %v16319_v55 = vpop.permute.xlu1 %5495 }
 0x85a   : > { %v5614_v60 = vsel %vm1280_vm0, %v5454_v22, %v16319_v55  ;;  %v5622_v55 = vsel %vm5621_vm5, %v5613_v24, %v16333_v54 }
 0x85b   : > { %v5631_v17 = vsel %vm5630_vm6, %v5622_v55, %v16341_v6 }
 0x860   : > { %v5498_v19 = vpop.permute.xlu0 %5497 }
 0x861   : > { %v5615_v23 = vsel %vm1280_vm0, %v5455_v61, %v5498_v19  ;;  %v18946_v61 = vld [vmem:[#allocation74_spill] sm:$0xff] }
 0x865   : > { %v16329_v59 = vpop.permute.xlu1 %5507 }
 0x866   : > { %v5620_v31 = vsel %vm1280_vm0, %v5460_v26, %v16329_v59 }
 0x869   : > { %v16337_v0 = vpop.permute.xlu1 %5543 }
 0x86a   : > { %v5623_v58 = vsel %vm5621_vm5, %v5614_v60, %v16337_v0  ;;  %v5618_v0 = vsel %vm1280_vm0, %v5458_v56, %v16293_v41  ;;  %v18942_v60 = vld [vmem:[#allocation73_spill] sm:$0xff]  ;;  %v18945_v56 = vld [vmem:[#allocation72_spill] sm:$0xff] }
 0x86d   : > { %v5546_v5 = vpop.permute.xlu0 %5545 }
 0x86e   : > { %v5624_v54 = vsel %vm5621_vm5, %v5615_v23, %v5546_v5 }
 0x871   : > { %v16339_v21 = vpop.permute.xlu1 %5555 }
 0x872   : > { %v5629_v62 = vsel %vm5621_vm5, %v5620_v31, %v16339_v21  ;;  %v12583_v21 = vld [vmem:[#allocation10] ss:$0 sm:$0xff]  ;;  %v14279_v31 = vmov 1414812756  }
 0x875   : > { %v5592_v34 = vpop.permute.xlu1 %5591 }
 0x876   : > { %v5594_v44 = vpop.permute.xlu0 %5593  ;;  %v5632_v11 = vsel %vm5630_vm6, %v5623_v58, %v5592_v34  ;;  %v5627_v34 = vsel %vm5621_vm5, %v5618_v0, %v16297_v30  ;;  %v5619_v30 = vsel %vm1280_vm0, %v5459_v49, %v16317_v7 }
 0x877   : > { %v5658_v2 = vcombine.low %v5631_v17, %v5632_v11  ;;  %v5636_v41 = vsel %vm5630_vm6, %v5627_v34, %v16307_v27  ;;  %v5633_v6 = vsel %vm5630_vm6, %v5624_v54, %v5594_v44  ;;  %v5628_v27 = vsel %vm5621_vm5, %v5619_v30, %v16335_v38  ;;  %v18948_v17 = vld [vmem:[#allocation76_spill] sm:$0xff] }
 0x878   : > { %v5675_v51 = vcombine.low %v5635_v47, %v5636_v41  ;;  %v14278_v47 = vmov 842150450  }
 0x879   : > { %v5666_v10 = vrot.slane %v5658_v2, %v18941_v45 }
 0x87a   : > { %v5602_v9 = vpop.permute.xlu0 %5601  ;;  %v5683_v38 = vrot.slane %v5675_v51, %v18941_v45  ;;  %v5893_v51 = vunpack.c.l.s4 %v14279_v31  ;;  %v6296_v31 = vld [vmem:[%s18956_s7 + $0x20] sm:$0xff] }
 0x87b   : > { %v5500_v32 = vpop.permute.xlu1 %5499 }
 0x87c   : > { %v5616_v14 = vsel %vm1280_vm0, %v5456_v12, %v5500_v32  ;;  %v5637_v32 = vsel %vm5630_vm6, %v5628_v27, %v5602_v9  ;;  %v18947_v12 = vld [vmem:[#allocation75_spill] sm:$0xff]  ;;  %v14277_v9 = vmov 269488144   ;;  %v5886_v27 = vunpack.c.l.s4 %v14278_v47  ;;  %v6298_v47 = vld [vmem:[%s18956_s7 + $0x30] sm:$0xff] }
 0x87f   : > { %v5548_v15 = vpop.permute.xlu1 %5547 }
 0x880   : > { %v5625_v35 = vsel %vm5621_vm5, %v5616_v14, %v5548_v15  ;;  %v18944_v15 = vld [vmem:[#allocation71_spill] sm:$0xff]  ;;  %v18949_v14 = vld [vmem:[#allocation77_spill] sm:$0xff] }
 0x883   : > { %v5596_v37 = vpop.permute.xlu1 %5595 }
 0x884   : > { %v5634_v19 = vsel %vm5630_vm6, %v5625_v35, %v5596_v37 }
 0x885   : > { %v5659_v13 = vcombine.low %v5633_v6, %v5634_v19 }
 0x887   : > { %v5673_v7 = vrot.slane %v5659_v13, %v18941_v45  ;;  %v5604_v29 = vpop.permute.xlu1 %5603  ;;  %v5879_v13 = vunpack.c.l.s4 %v14277_v9  ;;  %v6158_v9 = vld [vmem:[%s18955_s9] sm:$0xff] }
 0x888   : > { %v5638_v3 = vsel %vm5630_vm6, %v5629_v62, %v5604_v29  ;;  %v14280_v62 = vmov 1987475062   ;;  %v5887_v29 = vunpack.c.0.s8 %v5886_v27  ;;  %v6297_v27 = vld [vmem:[%s18956_s7 + $0x28] sm:$0xff] }
 0x889   : > { %v5674_v42 = vcombine.low %v5666_v10, %v5673_v7  ;;  %v5676_v8 = vcombine.low %v5637_v32, %v5638_v3  ;;  %v5900_v10 = vunpack.c.l.s4 %v14280_v62  ;;  %v5880_v7 = vunpack.c.0.s8 %v5879_v13  ;;  %v6299_v13 = vld [vmem:[%s18956_s7 + $0x38] sm:$0xff] }
 0x88a   : > { %v5894_v32 = vunpack.c.0.s8 %v5893_v51  ;;  %12724 = vmatprep.subr.mxu0 %v6299_v13 }
 0x88b   : > { %v5690_v63 = vrot.slane %v5676_v8, %v18941_v45  ;;  %12710 = vmatprep.mubr.msk.f32.mxu0 %vm1556_vm1, %v5674_v42  ;;  %v5901_v3 = vunpack.c.0.s8 %v5900_v10  ;;  %v18950_v42 = vld [vmem:[#allocation67_spill] sm:$0xff] }
 0x88c   : > { %v16415_v8 = vsub.s32 %v5880_v7, %v18950_v42 }
 0x88d   : > { %v5691_v59 = vcombine.low %v5683_v38, %v5690_v63  ;;  %v16418_v38 = vsub.s32 %v5887_v29, %v18950_v42  ;;  %v16421_v63 = vsub.s32 %v5894_v32, %v18950_v42 }
 0x88e   : > { %18951 = vst [vmem:[#allocation111_spill] sm:$0xff] %v16415_v8 }
 0x88f   : > { %12711 = vmatmul.mubr.msk.f32.vlgmr.msra.gmra.mxu0 %vm1556_vm1, %v5691_v59  ;;  %18952 = vst [vmem:[#allocation113_spill] sm:$0xff] %v16418_v38  ;;  %18953 = vst [vmem:[#allocation117_spill] sm:$0xff] %v16421_v63  ;;  %v16424_v59 = vsub.s32 %v5901_v3, %v18950_v42  ;;  %v12586_v3 = vld [vmem:[#allocation11] ss:$0 sm:$0xff]  ;;  %v12587_v42 = vld [vmem:[#allocation13] ss:$0 sm:$0xff] }
 0x890   : > { %12725 = vmatpush3.msra.mxu0 %v6299_v13 }
 0x891   : > { %18954 = vst [vmem:[#allocation115_spill] sm:$0xff] %v16424_v59  ;;  %12726 = vmatprep.subr.mxu0 %v6298_v47 }
 0x892   : > { %12727 = vmatpush3.msra.mxu0 %v6298_v47 }
 0x893   : > { %12728 = vmatprep.subr.mxu0 %v6297_v27 }
 0x894   : > { %12729 = vmatpush3.msra.mxu0 %v6297_v27 }
 0x895   : > { %12730 = vmatprep.subr.mxu0 %v6296_v31 }
 0x896   : > { %12731 = vmatpush3.msra.mxu0 %v6296_v31 }
 0x94f   : > { %v12712_v36 = vpop.f32.mrf.mxu0 }
 0x950   : > { %v5768_v5 = vadd.f32 %v12712_v36, %v12583_v21 }
 0x951   : > { %v5762_v43 = vpop.f32.mrf.mxu0 }
 0x952   : > { %v5790_v53 = vcombine.high %v5768_v5, %v5768_v5  ;;  %v5797_v39 = vrot.slane %v5768_v5, %v18941_v45  ;;  %v5763_v33 = vadd.f32 %v12583_v21, %v5762_v43 }
 0x954   : > { %v5804_v22 = vrot.slane %v5790_v53, %v18941_v45  ;;  %v5805_v46 = vcombine.high %v5797_v39, %v5797_v39  ;;  %v5773_v52 = vcombine.high %v5763_v33, %v5763_v33  ;;  %v5780_v16 = vrot.slane %v5763_v33, %v18941_v45 }
 0x955   : > { %v5819_v4 = vadd.f32 %v5797_v39, %v18942_v60 }
 0x956   : > { %v5806_v28 = vcombine.high %v5804_v22, %v5804_v22  ;;  %v5820_v1 = vadd.f32 %v5805_v46, %v18943_v20  ;;  %v5787_v58 = vrot.slane %v5773_v52, %v18941_v45  ;;  %v5788_v44 = vcombine.high %v5780_v16, %v5780_v16 }
 0x957   : > { %v5821_v24 = vadd.f32 %v5804_v22, %v18944_v15  ;;  %v5815_v25 = vadd.f32 %v5780_v16, %v18946_v61 }
 0x958   : > { %v5822_v40 = vadd.f32 %v5806_v28, %v18945_v56  ;;  %v5848_v11 = vcombine.low %v5819_v4, %v5820_v1  ;;  %v5789_v55 = vcombine.high %v5787_v58, %v5787_v58  ;;  %v5816_v0 = vadd.f32 %v5788_v44, %v18947_v12 }
 0x959   : > { %v5817_v23 = vadd.f32 %v5787_v58, %v18948_v17 }
 0x95a   : > { %v5818_v34 = vadd.f32 %v5789_v55, %v18949_v14  ;;  %v5849_v54 = vcombine.low %v5821_v24, %v5822_v40  ;;  %v5831_v2 = vcombine.low %v5815_v25, %v5816_v0  ;;  %v5856_v35 = vrot.slane %v5848_v11, %v18941_v45 }
 0x95c   : > { %v5863_v37 = vrot.slane %v5849_v54, %v18941_v45  ;;  %v5832_v49 = vcombine.low %v5817_v23, %v5818_v34  ;;  %v5839_v6 = vrot.slane %v5831_v2, %v18941_v45 }
 0x95e   : > { %v5864_v41 = vcombine.low %v5856_v35, %v5863_v37  ;;  %v5846_v19 = vrot.slane %v5832_v49, %v18941_v45 }
 0x960   : > { %v5870_v57 = vsel %vm1556_vm1, %v5864_v41, 0.0  ;;  %v5847_v30 = vcombine.low %v5839_v6, %v5846_v19 }
 0x961   : > { %5871 = vadd.xlane.f32.xlu1 %v5870_v57  ;;  %v6161_v57 = vld [vmem:[%s18955_s9 + $0x18] sm:$0xff] }
 0x962   : > { %v5867_v26 = vsel %vm1556_vm1, %v5847_v30, 0.0  ;;  %v6160_v30 = vld [vmem:[%s18955_s9 + $0x10] sm:$0xff]  ;;  %12713 = vmatprep.subr.mxu1 %v6161_v57 }
 0x963   : > { %5868 = vadd.xlane.f32.xlu0 %v5867_v26  ;;  %12714 = vmatpush3.msra.mxu1 %v6161_v57  ;;  %v6159_v26 = vld [vmem:[%s18955_s9 + $0x8] sm:$0xff] }
 0x964   : > { %12715 = vmatprep.subr.mxu1 %v6160_v30 }
 0x965   : > { %12716 = vmatpush3.msra.mxu1 %v6160_v30 }
 0x966   : > { %12717 = vmatprep.subr.mxu1 %v6159_v26 }
 0x967   : > { %12718 = vmatpush3.msra.mxu1 %v6159_v26 }
 0x968   : > { %12719 = vmatprep.subr.mxu1 %v6158_v9 }
 0x969   : > { %12720 = vmatpush3.msra.mxu1 %v6158_v9 }
 0x9ea   : > { %v5872_v21 = vpop.xlane.xlu1 %5871 }
 0x9eb   : > { %v5875_v36 = vmul.f32 0.03125, %v5872_v21  ;;  %v6094_v21 = vcombine.high %v12586_v3, %v12586_v3 }
 0x9ec   : > { %v5869_v5 = vpop.xlane.xlu0 %5868 }
 0x9ed   : > { %v5912_v43 = vrot.slane %v5875_v36, %v16415_v8  ;;  %v5919_v53 = vrot.slane %v5875_v36, %v16418_v38  ;;  %v5926_v39 = vrot.slane %v5875_v36, %v16421_v63  ;;  %v5933_v33 = vrot.slane %v5875_v36, %v16424_v59 }
 0x9ee   : > { %v5874_v22 = vmul.f32 0.03125, %v5869_v5  ;;  %v6101_v36 = vrot.slane %v12586_v3, %v18941_v45  ;;  %v6129_v5 = vcombine.high %v12587_v42, %v12587_v42  ;;  %v6295_v3 = vld [vmem:[%s18956_s7 + $0x18] sm:$0xff] }
 0x9ef   : > { %v16430_v46 = vsub.f32 %v5819_v4, %v5912_v43  ;;  %v16432_v52 = vsub.f32 %v5820_v1, %v5919_v53  ;;  %v16434_v16 = vsub.f32 %v5821_v24, %v5926_v39  ;;  %v16436_v28 = vsub.f32 %v5822_v40, %v5933_v33  ;;  %12732 = vmatprep.subr.mxu0 %v6295_v3 }
 0x9f0   : > { %v5884_v60 = vrot.slane %v5874_v22, %v16415_v8  ;;  %v5891_v20 = vrot.slane %v5874_v22, %v16418_v38  ;;  %v5898_v58 = vrot.slane %v5874_v22, %v16421_v63  ;;  %v5905_v44 = vrot.slane %v5874_v22, %v16424_v59  ;;  %12733 = vmatpush3.msra.mxu0 %v6295_v3 }
 0x9f1   : > { %v5954_v15 = vmul.f32 %v16430_v46, %v16430_v46  ;;  %v5955_v4 = vmul.f32 %v16432_v52, %v16432_v52  ;;  %v5956_v1 = vmul.f32 %v16434_v16, %v16434_v16  ;;  %v5957_v24 = vmul.f32 %v16436_v28, %v16436_v28 }
 0x9f2   : > { %v16450_v56 = vsub.f32 %v5815_v25, %v5884_v60  ;;  %v16452_v40 = vsub.f32 %v5816_v0, %v5891_v20  ;;  %v16454_v11 = vsub.f32 %v5817_v23, %v5898_v58  ;;  %v16456_v55 = vsub.f32 %v5818_v34, %v5905_v44 }
 0x9f3   : > { %v5983_v61 = vcombine.low %v5954_v15, %v5955_v4  ;;  %v5984_v12 = vcombine.low %v5956_v1, %v5957_v24  ;;  %v6108_v43 = vrot.slane %v6094_v21, %v18941_v45  ;;  %v6136_v53 = vrot.slane %v12587_v42, %v18941_v45  ;;  %v6294_v42 = vld [vmem:[%s18956_s7 + $0x10] sm:$0xff]  ;;  %v6293_v21 = vld [vmem:[%s18956_s7 + $0x8] sm:$0xff] }
 0x9f4   : > { %v5950_v17 = vmul.f32 %v16450_v56, %v16450_v56  ;;  %v5951_v14 = vmul.f32 %v16452_v40, %v16452_v40  ;;  %v5952_v25 = vmul.f32 %v16454_v11, %v16454_v11  ;;  %v5953_v0 = vmul.f32 %v16456_v55, %v16456_v55  ;;  %12734 = vmatprep.subr.mxu0 %v6294_v42 }
 0x9f5   : > { %v5991_v35 = vrot.slane %v5983_v61, %v18941_v45  ;;  %v5998_v37 = vrot.slane %v5984_v12, %v18941_v45  ;;  %v6109_v33 = vcombine.high %v6101_v36, %v6101_v36  ;;  %v6143_v22 = vrot.slane %v6129_v5, %v18941_v45  ;;  %12735 = vmatpush3.msra.mxu0 %v6294_v42  ;;  %v12588_v5 = vld [vmem:[#allocation14] ss:$0 sm:$0xff] }
 0x9f6   : > { %v5966_v23 = vcombine.low %v5950_v17, %v5951_v14  ;;  %v5967_v34 = vcombine.low %v5952_v25, %v5953_v0  ;;  %v6110_v15 = vcombine.high %v6108_v43, %v6108_v43  ;;  %v6144_v4 = vcombine.high %v6136_v53, %v6136_v53  ;;  %12736 = vmatprep.subr.mxu0 %v6293_v21 }
 0x9f7   : > { %v5999_v6 = vcombine.low %v5991_v35, %v5998_v37  ;;  %v6145_v14 = vcombine.high %v6143_v22, %v6143_v22  ;;  %12737 = vmatpush3.msra.mxu0 %v6293_v21 }
 0x9f8   : > { %v5974_v54 = vrot.slane %v5966_v23, %v18941_v45  ;;  %v5981_v2 = vrot.slane %v5967_v34, %v18941_v45 }
 0x9f9   : > { %v6005_v19 = vsel %vm1556_vm1, %v5999_v6, 0.0 }
 0x9fa   : > { %v5982_v49 = vcombine.low %v5974_v54, %v5981_v2 }
 0x9fc   : > { %v6002_v41 = vsel %vm1556_vm1, %v5982_v49, 0.0 }
 0x9fd   : > { %6003 = vadd.xlane.f32.xlu0 %v6002_v41 }
 0xa01   : > { %6006 = vadd.xlane.f32.xlu0 %v6005_v19 }
 0xa86   : > { %v6004_v51 = vpop.xlane.xlu0 %6003 }
 0xa87   : > { %v6008_v62 = vmul.f32 0.03125, %v6004_v51 }
 0xa89   : > { %v6010_v10 = vadd.f32 1e-05, %v6008_v62 }
 0xa8a   : > { %v6007_v7 = vpop.xlane.xlu0 %6006 }
 0xa8b   : > { %13343 = vrsqrt.f32 %v6010_v10  ;;  %v6009_v29 = vmul.f32 0.03125, %v6007_v7 }
 0xa8d   : > { %v6011_v32 = vadd.f32 1e-05, %v6009_v29 }
 0xa8f   : > { %13345 = vrsqrt.f32 %v6011_v32 }
 0xa98   : > { %v13344_v39 = vpop.eup %13343 }
 0xa99   : > { %v6022_v60 = vrot.slane %v13344_v39, %v16415_v8  ;;  %v6029_v20 = vrot.slane %v13344_v39, %v16418_v38  ;;  %v6036_v58 = vrot.slane %v13344_v39, %v16421_v63  ;;  %v6043_v44 = vrot.slane %v13344_v39, %v16424_v59 }
 0xa9b   : > { %v6080_v1 = vmul.f32 %v6022_v60, %v16450_v56  ;;  %v6081_v24 = vmul.f32 %v6029_v20, %v16452_v40  ;;  %v6082_v61 = vmul.f32 %v6036_v58, %v16454_v11  ;;  %v6083_v12 = vmul.f32 %v6043_v44, %v16456_v55  ;;  %v12591_v20 = vld [vmem:[%s18957_s4] ss:$0 sm:$0xff]  ;;  %s18958_s4 = sld [smem:[#allocation55_spill]] }
 0xa9c   : > { %v13346_v17 = vpop.eup %13345 }
 0xa9d   : > { %v6057_v25 = vrot.slane %v13346_v17, %v16418_v38  ;;  %v6071_v0 = vrot.slane %v13346_v17, %v16424_v59  ;;  %v6115_v23 = vmul.f32 %v6101_v36, %v6080_v1  ;;  %v6116_v34 = vmul.f32 %v6109_v33, %v6081_v24 }
 0xa9e   : > { %v6117_v54 = vmul.f32 %v6108_v43, %v6082_v61  ;;  %v6118_v2 = vmul.f32 %v6110_v15, %v6083_v12  ;;  %v6050_v35 = vrot.slane %v13346_v17, %v16415_v8  ;;  %v6064_v56 = vrot.slane %v13346_v17, %v16421_v63 }
 0xa9f   : > { %v6085_v40 = vmul.f32 %v6057_v25, %v16432_v52  ;;  %v6087_v11 = vmul.f32 %v6071_v0, %v16436_v28  ;;  %v16498_v37 = vadd.f32 %v6136_v53, %v6115_v23  ;;  %v16500_v55 = vadd.f32 %v6144_v4, %v6116_v34 }
 0xaa0   : > { %v16502_v49 = vadd.f32 %v6143_v22, %v6117_v54  ;;  %v16504_v41 = vadd.f32 %v6145_v14, %v6118_v2  ;;  %v6084_v6 = vmul.f32 %v6050_v35, %v16430_v46  ;;  %v6086_v19 = vmul.f32 %v6064_v56, %v16434_v16 }
 0xaa1   : > { %v6120_v57 = vmul.f32 %v6109_v33, %v6085_v40  ;;  %v6122_v30 = vmul.f32 %v6110_v15, %v6087_v11  ;;  %v6177_v26 = vcombine.low %v16498_v37, %v16500_v55 }
 0xaa2   : > { %v6178_v52 = vcombine.low %v16502_v49, %v16504_v41  ;;  %v6119_v28 = vmul.f32 %v6101_v36, %v6084_v6  ;;  %v6121_v9 = vmul.f32 %v6108_v43, %v6086_v19  ;;  %v6292_v36 = vld [vmem:[%s18956_s7] sm:$0xff] }
 0xaa3   : > { %v6155_v13 = vadd.f32 %v6144_v4, %v6120_v57  ;;  %v6157_v47 = vadd.f32 %v6145_v14, %v6122_v30  ;;  %v6185_v27 = vrot.slane %v6177_v26, %v18941_v45  ;;  %12738 = vmatprep.subr.mxu0 %v6292_v36 }
 0xaa4   : > { %v6192_v46 = vrot.slane %v6178_v52, %v18941_v45  ;;  %v6154_v16 = vadd.f32 %v6136_v53, %v6119_v28  ;;  %v6156_v31 = vadd.f32 %v6143_v22, %v6121_v9  ;;  %12739 = vmatpush3.msra.mxu0 %v6292_v36 }
 0xaa6   : > { %v6193_v51 = vcombine.low %v6185_v27, %v6192_v46  ;;  %v6194_v62 = vcombine.low %v6154_v16, %v6155_v13  ;;  %v6195_v10 = vcombine.low %v6156_v31, %v6157_v47 }
 0xaa8   : > { %12721 = vmatprep.mubr.msk.f32.mxu1 %vm1556_vm1, %v6193_v51  ;;  %v6202_v7 = vrot.slane %v6194_v62, %v18941_v45  ;;  %v6209_v29 = vrot.slane %v6195_v10, %v18941_v45 }
 0xaaa   : > { %v6210_v32 = vcombine.low %v6202_v7, %v6209_v29 }
 0xaac   : > { %12722 = vmatmul.mubr.msk.f32.vlgmr.msra.gmra.mxu1 %vm1556_vm1, %v6210_v32 }
 0xb6c   : > { %v12723_v43 = vpop.f32.mrf.mxu1 }
 0xb6d   : > { %v6287_v53 = vadd.f32 %v12723_v43, %v12588_v5 }
 0xb6e   : > { %v6281_v39 = vpop.f32.mrf.mxu1 }
 0xb6f   : > { %v6282_v33 = vadd.f32 %v12588_v5, %v6281_v39  ;;  %v6291_v60 = vmax.f32 %v6287_v53, 0.0 }
 0xb71   : > { %v6290_v22 = vmax.f32 %v6282_v33, 0.0 }
 0xb73   : > { %12740 = vmatprep.mubr.msk.f32.mxu0 %vm6307_vm7, %v6290_v22 }
 0xb74   : > { %12741 = vmatmul.mubr.msk.f32.vlgmr.msra.gmra.mxu0 %vm6307_vm7, %v6291_v60 }
 0xc34   : > { %v12742_v58 = vpop.f32.mrf.mxu0 }
 0xc35   : > { %v6386_v44 = vadd.f32 %v12742_v58, %v12591_v20 }
 0xc36   : > { %v6380_v15 = vpop.f32.mrf.mxu0 }
 0xc37   : > { %v6408_v4 = vcombine.high %v6386_v44, %v6386_v44  ;;  %v6415_v1 = vrot.slane %v6386_v44, %v18941_v45  ;;  %v6381_v24 = vadd.f32 %v12591_v20, %v6380_v15 }
 0xc39   : > { %v6422_v61 = vrot.slane %v6408_v4, %v18941_v45  ;;  %v6423_v12 = vcombine.high %v6415_v1, %v6415_v1  ;;  %v6391_v17 = vcombine.high %v6381_v24, %v6381_v24  ;;  %v6398_v14 = vrot.slane %v6381_v24, %v18941_v45 }
 0xc3a   : > { %v6437_v0 = vadd.f32 %v6415_v1, %v6154_v16 }
 0xc3b   : > { %v6424_v25 = vcombine.high %v6422_v61, %v6422_v61  ;;  %v6438_v23 = vadd.f32 %v6423_v12, %v6155_v13  ;;  %v6405_v34 = vrot.slane %v6391_v17, %v18941_v45  ;;  %v6406_v54 = vcombine.high %v6398_v14, %v6398_v14 }
 0xc3c   : > { %v6439_v2 = vadd.f32 %v6422_v61, %v6156_v31  ;;  %v6433_v11 = vadd.f32 %v6398_v14, %v16498_v37 }
 0xc3d   : > { %v6440_v35 = vadd.f32 %v6424_v25, %v6157_v47  ;;  %v6466_v56 = vcombine.low %v6437_v0, %v6438_v23  ;;  %v6407_v40 = vcombine.high %v6405_v34, %v6405_v34  ;;  %v6434_v6 = vadd.f32 %v6406_v54, %v16500_v55 }
 0xc3e   : > { %v6435_v19 = vadd.f32 %v6405_v34, %v16502_v49 }
 0xc3f   : > { %v6436_v57 = vadd.f32 %v6407_v40, %v16504_v41  ;;  %v6467_v30 = vcombine.low %v6439_v2, %v6440_v35  ;;  %v6449_v26 = vcombine.low %v6433_v11, %v6434_v6  ;;  %v6474_v52 = vrot.slane %v6466_v56, %v18941_v45  ;;  %v6778_v40 = vld [vmem:[%s18958_s4 + $0x18] sm:$0xff] }
 0xc40   : > { %12743 = vmatprep.subr.mxu1 %v6778_v40 }
 0xc41   : > { %v6481_v28 = vrot.slane %v6467_v30, %v18941_v45  ;;  %v6450_v9 = vcombine.low %v6435_v19, %v6436_v57  ;;  %v6457_v47 = vrot.slane %v6449_v26, %v18941_v45  ;;  %12744 = vmatpush3.msra.mxu1 %v6778_v40 }
 0xc43   : > { %v6482_v13 = vcombine.low %v6474_v52, %v6481_v28  ;;  %v6464_v27 = vrot.slane %v6450_v9, %v18941_v45 }
 0xc45   : > { %v6488_v37 = vsel %vm1556_vm1, %v6482_v13, 0.0  ;;  %v6465_v46 = vcombine.low %v6457_v47, %v6464_v27  ;;  %v12594_v13 = vld [vmem:[#allocation16] ss:$0 sm:$0xff]  ;;  %v12595_v47 = vld [vmem:[#allocation17] ss:$0 sm:$0xff] }
 0xc46   : > { %6489 = vadd.xlane.f32.xlu0 %v6488_v37  ;;  %v6711_v27 = vcombine.high %v12594_v13, %v12594_v13  ;;  %v6746_v37 = vcombine.high %v12595_v47, %v12595_v47 }
 0xc47   : > { %v6485_v55 = vsel %vm1556_vm1, %v6465_v46, 0.0  ;;  %v6718_v46 = vrot.slane %v12594_v13, %v18941_v45  ;;  %v12596_v13 = vld [vmem:[#allocation19] ss:$0 sm:$0xff] }
 0xc48   : > { %6486 = vadd.xlane.f32.xlu1 %v6485_v55  ;;  %v6725_v55 = vrot.slane %v6711_v27, %v18941_v45 }
 0xccf   : > { %v6490_v49 = vpop.xlane.xlu0 %6489 }
 0xcd0   : > { %v6492_v41 = vmul.f32 0.03125, %v6490_v49  ;;  %v6753_v49 = vrot.slane %v12595_v47, %v18941_v45 }
 0xcd1   : > { %v6487_v16 = vpop.xlane.xlu1 %6486 }
 0xcd2   : > { %v6529_v31 = vrot.slane %v6492_v41, %v16415_v8  ;;  %v6536_v51 = vrot.slane %v6492_v41, %v16418_v38  ;;  %v6543_v62 = vrot.slane %v6492_v41, %v16421_v63  ;;  %v6550_v10 = vrot.slane %v6492_v41, %v16424_v59 }
 0xcd3   : > { %v6491_v7 = vmul.f32 0.03125, %v6487_v16  ;;  %v6760_v41 = vrot.slane %v6746_v37, %v18941_v45 }
 0xcd4   : > { %v16543_v29 = vsub.f32 %v6437_v0, %v6529_v31  ;;  %v16545_v32 = vsub.f32 %v6438_v23, %v6536_v51  ;;  %v16547_v3 = vsub.f32 %v6439_v2, %v6543_v62  ;;  %v16549_v42 = vsub.f32 %v6440_v35, %v6550_v10 }
 0xcd5   : > { %v6501_v21 = vrot.slane %v6491_v7, %v16415_v8  ;;  %v6508_v36 = vrot.slane %v6491_v7, %v16418_v38  ;;  %v6515_v5 = vrot.slane %v6491_v7, %v16421_v63  ;;  %v6522_v43 = vrot.slane %v6491_v7, %v16424_v59 }
 0xcd6   : > { %v6571_v53 = vmul.f32 %v16543_v29, %v16543_v29  ;;  %v6572_v39 = vmul.f32 %v16545_v32, %v16545_v32  ;;  %v6573_v33 = vmul.f32 %v16547_v3, %v16547_v3  ;;  %v6574_v22 = vmul.f32 %v16549_v42, %v16549_v42 }
 0xcd7   : > { %v16563_v60 = vsub.f32 %v6433_v11, %v6501_v21  ;;  %v16565_v20 = vsub.f32 %v6434_v6, %v6508_v36  ;;  %v16567_v58 = vsub.f32 %v6435_v19, %v6515_v5  ;;  %v16569_v44 = vsub.f32 %v6436_v57, %v6522_v43  ;;  %v6777_v11 = vld [vmem:[%s18958_s4 + $0x10] sm:$0xff]  ;;  %v6776_v6 = vld [vmem:[%s18958_s4 + $0x8] sm:$0xff]  ;;  %v6775_v19 = vld [vmem:[%s18958_s4] sm:$0xff] }
 0xcd8   : > { %v6600_v15 = vcombine.low %v6571_v53, %v6572_v39  ;;  %v6601_v4 = vcombine.low %v6573_v33, %v6574_v22  ;;  %12745 = vmatprep.subr.mxu1 %v6777_v11  ;;  %v6726_v31 = vcombine.high %v6718_v46, %v6718_v46  ;;  %v6727_v51 = vcombine.high %v6725_v55, %v6725_v55 }
 0xcd9   : > { %v6567_v1 = vmul.f32 %v16563_v60, %v16563_v60  ;;  %v6568_v24 = vmul.f32 %v16565_v20, %v16565_v20  ;;  %v6569_v61 = vmul.f32 %v16567_v58, %v16567_v58  ;;  %v6570_v12 = vmul.f32 %v16569_v44, %v16569_v44  ;;  %12746 = vmatpush3.msra.mxu1 %v6777_v11 }
 0xcda   : > { %v6608_v17 = vrot.slane %v6600_v15, %v18941_v45  ;;  %v6615_v14 = vrot.slane %v6601_v4, %v18941_v45  ;;  %12747 = vmatprep.subr.mxu1 %v6776_v6  ;;  %v6761_v36 = vcombine.high %v6753_v49, %v6753_v49  ;;  %v6762_v5 = vcombine.high %v6760_v41, %v6760_v41 }
 0xcdb   : > { %v6583_v25 = vcombine.low %v6567_v1, %v6568_v24  ;;  %v6584_v0 = vcombine.low %v6569_v61, %v6570_v12  ;;  %12748 = vmatpush3.msra.mxu1 %v6776_v6 }
 0xcdc   : > { %v6616_v23 = vcombine.low %v6608_v17, %v6615_v14  ;;  %12749 = vmatprep.subr.mxu1 %v6775_v19 }
 0xcdd   : > { %v6591_v34 = vrot.slane %v6583_v25, %v18941_v45  ;;  %v6598_v54 = vrot.slane %v6584_v0, %v18941_v45  ;;  %12750 = vmatpush3.msra.mxu1 %v6775_v19 }
 0xcde   : > { %v6622_v2 = vsel %vm1556_vm1, %v6616_v23, 0.0 }
 0xcdf   : > { %6623 = vadd.xlane.f32.xlu0 %v6622_v2  ;;  %v6599_v35 = vcombine.low %v6591_v34, %v6598_v54 }
 0xce1   : > { %v6619_v56 = vsel %vm1556_vm1, %v6599_v35, 0.0 }
 0xce2   : > { %6620 = vadd.xlane.f32.xlu1 %v6619_v56 }
 0xd68   : > { %v6624_v57 = vpop.xlane.xlu0 %6623 }
 0xd69   : > { %v6626_v30 = vmul.f32 0.03125, %v6624_v57 }
 0xd6b   : > { %v6628_v26 = vadd.f32 1e-05, %v6626_v30  ;;  %v6621_v52 = vpop.xlane.xlu1 %6620 }
 0xd6c   : > { %v6625_v28 = vmul.f32 0.03125, %v6621_v52 }
 0xd6d   : > { %13347 = vrsqrt.f32 %v6628_v26 }
 0xd6e   : > { %v6627_v9 = vadd.f32 1e-05, %v6625_v28 }
 0xd70   : > { %13349 = vrsqrt.f32 %v6627_v9 }
 0xd7a   : > { %v13348_v16 = vpop.eup %13347 }
 0xd7b   : > { %v6674_v62 = vrot.slane %v13348_v16, %v16418_v38  ;;  %v6688_v10 = vrot.slane %v13348_v16, %v16424_v59  ;;  %v6667_v7 = vrot.slane %v13348_v16, %v16415_v8  ;;  %v6681_v21 = vrot.slane %v13348_v16, %v16421_v63 }
 0xd7d   : > { %v13350_v43 = vpop.eup %13349  ;;  %v6702_v53 = vmul.f32 %v6674_v62, %v16545_v32  ;;  %v6704_v39 = vmul.f32 %v6688_v10, %v16549_v42  ;;  %v6701_v33 = vmul.f32 %v6667_v7, %v16543_v29  ;;  %v6703_v22 = vmul.f32 %v6681_v21, %v16547_v3 }
 0xd7e   : > { %v6639_v15 = vrot.slane %v13350_v43, %v16415_v8  ;;  %v6646_v4 = vrot.slane %v13350_v43, %v16418_v38  ;;  %v6653_v1 = vrot.slane %v13350_v43, %v16421_v63  ;;  %v6660_v24 = vrot.slane %v13350_v43, %v16424_v59 }
 0xd7f   : > { %v6737_v61 = vmul.f32 %v6726_v31, %v6702_v53  ;;  %v6739_v12 = vmul.f32 %v6727_v51, %v6704_v39  ;;  %v6736_v17 = vmul.f32 %v6718_v46, %v6701_v33  ;;  %v6738_v14 = vmul.f32 %v6725_v55, %v6703_v22 }
 0xd80   : > { %v6697_v32 = vmul.f32 %v6639_v15, %v16563_v60  ;;  %v6698_v42 = vmul.f32 %v6646_v4, %v16565_v20  ;;  %v6699_v29 = vmul.f32 %v6653_v1, %v16567_v58  ;;  %v6700_v3 = vmul.f32 %v6660_v24, %v16569_v44  ;;  %v18975_v4 = vld [vmem:[#allocation69_spill] sm:$0xff] }
 0xd81   : > { %v16609_v25 = vadd.f32 %v6761_v36, %v6737_v61  ;;  %v16611_v0 = vadd.f32 %v6762_v5, %v6739_v12  ;;  %v16613_v23 = vadd.f32 %v6753_v49, %v6736_v17  ;;  %v16615_v34 = vadd.f32 %v6760_v41, %v6738_v14 }
 0xd82   : > { %v6732_v54 = vmul.f32 %v6718_v46, %v6697_v32  ;;  %v6733_v2 = vmul.f32 %v6726_v31, %v6698_v42  ;;  %v6734_v35 = vmul.f32 %v6725_v55, %v6699_v29  ;;  %v6735_v56 = vmul.f32 %v6727_v51, %v6700_v3 }
 0xd83   : > { %18959 = vst [vmem:[#allocation119_spill] sm:$0xff] %v16609_v25  ;;  %18960 = vst [vmem:[#allocation112_spill] sm:$0xff] %v16611_v0  ;;  %v6811_v60 = vcombine.low %v16613_v23, %v16609_v25  ;;  %v6812_v20 = vcombine.low %v16615_v34, %v16611_v0 }
 0xd84   : > { %18961 = vst [vmem:[#allocation121_spill] sm:$0xff] %v16613_v23  ;;  %18962 = vst [vmem:[#allocation114_spill] sm:$0xff] %v16615_v34  ;;  %v16621_v58 = vadd.f32 %v6753_v49, %v6732_v54  ;;  %v16623_v44 = vadd.f32 %v6761_v36, %v6733_v2  ;;  %v16625_v40 = vadd.f32 %v6760_v41, %v6734_v35 }
 0xd85   : > { %v16627_v11 = vadd.f32 %v6762_v5, %v6735_v56  ;;  %v6819_v57 = vrot.slane %v6811_v60, %v18941_v45  ;;  %v6826_v30 = vrot.slane %v6812_v20, %v18941_v45 }
 0xd86   : > { %18963 = vst [vmem:[#allocation123_spill] sm:$0xff] %v16621_v58  ;;  %18964 = vst [vmem:[#allocation116_spill] sm:$0xff] %v16623_v44  ;;  %v6794_v6 = vcombine.low %v16621_v58, %v16623_v44 }
 0xd87   : > { %18965 = vst [vmem:[#allocation122_spill] sm:$0xff] %v16625_v40  ;;  %18966 = vst [vmem:[#allocation118_spill] sm:$0xff] %v16627_v11  ;;  %v6795_v19 = vcombine.low %v16625_v40, %v16627_v11  ;;  %v6827_v9 = vcombine.low %v6819_v57, %v6826_v30 }
 0xd88   : > { %v6802_v26 = vrot.slane %v6794_v6, %v18941_v45 }
 0xd89   : > { %v6809_v52 = vrot.slane %v6795_v19, %v18941_v45 }
 0xd8b   : > { %v6810_v28 = vcombine.low %v6802_v26, %v6809_v52 }
 0xd8d   : > { %12751 = vmatprep.mubr.msk.f32.mxu1 %vm1556_vm1, %v6810_v28 }
 0xd8e   : > { %12752 = vmatmul.mubr.msk.f32.vlgmr.msra.gmra.mxu1 %vm1556_vm1, %v6827_v9 }
 0xe4e   : > { %v12753_v47 = vpop.f32.mrf.mxu1 }
 0xe4f   : > { %v6904_v27 = vadd.f32 %v12753_v47, %v12596_v13 }
 0xe50   : > { %v6898_v37 = vpop.f32.mrf.mxu1 }
 0xe51   : > { %v6933_v46 = vrot.slane %v6904_v27, %v18941_v45  ;;  %v6899_v55 = vadd.f32 %v12596_v13, %v6898_v37  ;;  %v6926_v62 = vcombine.high %v6904_v27, %v6904_v27 }
 0xe53   : > { %v16641_v49 = vrot.slane %v6933_v46, %v18941_v45  ;;  %v16644_v41 = vrot.slane %v6899_v55, %v18941_v45  ;;  %v16648_v16 = vcombine.high %v6933_v46, %v6933_v46  ;;  %v16667_v10 = vrot.slane %v6926_v62, %v18941_v45 }
 0xe54   : > { %v6909_v7 = vcombine.high %v6899_v55, %v6899_v55  ;;  %v6981_v1 = vrot.slane %v6933_v46, %v18975_v4 }
 0xe55   : > { %18967 = vst [vmem:[#allocation127_spill] sm:$0xff] %v16641_v49  ;;  %7151 = vrot.lane.b32.xlu0 %v16641_v49, %s14265_s28  ;;  %v16652_v31 = vrot.slane %v16644_v41, %v18941_v45  ;;  %v16660_v51 = vrot.slane %v16648_v16, %v18941_v45  ;;  %v16675_v21 = vrot.slane %v16667_v10, %v18941_v45 }
 0xe56   : > { %v16682_v36 = vrot.slane %v6909_v7, %v18941_v45  ;;  %v16690_v5 = vcombine.high %v16667_v10, %v16667_v10  ;;  %v16706_v39 = vcombine.high %v16644_v41, %v16644_v41  ;;  %v6982_v24 = vcombine.high %v6981_v1, %v6981_v1 }
 0xe57   : > { %18968 = vst [vmem:[#allocation120_spill] sm:$0xff] %v16652_v31  ;;  %7143 = vrot.lane.b32.xlu1 %v16652_v31, %s14265_s28  ;;  %18969 = vst [vmem:[#allocation129_spill] sm:$0xff] %v16660_v51  ;;  %v7042_v61 = vrot.slane %v6981_v1, %v14729_v48  ;;  %v6949_v54 = vrot.slane %v16644_v41, %v18975_v4  ;;  %v6989_v56 = vrot.slane %v16648_v16, %v18975_v4 }
 0xe58   : > { %18970 = vst [vmem:[#allocation128_spill] sm:$0xff] %v16675_v21  ;;  %v16694_v43 = vrot.slane %v16682_v36, %v18941_v45  ;;  %v16702_v53 = vrot.slane %v16690_v5, %v18941_v45  ;;  %v16714_v33 = vrot.slane %v16706_v39, %v18941_v45  ;;  %v16738_v22 = vcombine.high %v16682_v36, %v16682_v36 }
 0xe59   : > { %8783 = vrot.lane.b32.xlu0 %v16641_v49, %s14266_s15  ;;  %v7046_v12 = vrot.slane %v6982_v24, %v14729_v48  ;;  %v6950_v35 = vcombine.high %v6949_v54, %v6949_v54  ;;  %v7010_v20 = vrot.slane %v6949_v54, %v14729_v48  ;;  %v6990_v19 = vcombine.high %v6989_v56, %v6989_v56 }
 0xe5a   : > { %18971 = vst [vmem:[#allocation126_spill] sm:$0xff] %v16694_v43  ;;  %18972 = vst [vmem:[#allocation124_spill] sm:$0xff] %v16702_v53  ;;  %v16746_v15 = vrot.slane %v16738_v22, %v18941_v45  ;;  %v6997_v57 = vrot.slane %v16667_v10, %v18975_v4  ;;  %v7050_v9 = vrot.slane %v6989_v56, %v14729_v48 }
 0xe5b   : > { %7153 = vrot.lane.b32.xlu1 %v16660_v51, %s14265_s28  ;;  %18973 = vst [vmem:[#allocation130_spill] sm:$0xff] %v16714_v33  ;;  %v7014_v6 = vrot.slane %v6950_v35, %v14729_v48  ;;  %v7054_v13 = vrot.slane %v6990_v19, %v14729_v48  ;;  %v6965_v19 = vrot.slane %v16682_v36, %v18975_v4 }
 0xe5c   : > { %18974 = vst [vmem:[#allocation125_spill] sm:$0xff] %v16746_v15  ;;  %v6998_v47 = vcombine.high %v6997_v57, %v6997_v57  ;;  %v7058_v55 = vrot.slane %v6997_v57, %v14729_v48 }
 0xe5d   : > { %9671 = vrot.lane.b32.xlu0 %v16641_v49, %s14267_s10 }
 0xe5e   : > { %v7062_v41 = vrot.slane %v6998_v47, %v14729_v48 }
 0xe5f   : > { %8785 = vrot.lane.b32.xlu1 %v16660_v51, %s14266_s15 }
 0xe61   : > { %10559 = vrot.lane.b32.xlu0 %v16641_v49, %s14268_s18 }
 0xe63   : > { %9673 = vrot.lane.b32.xlu1 %v16660_v51, %s14267_s10 }
 0xe65   : > { %7155 = vrot.lane.b32.xlu0 %v16675_v21, %s14265_s28 }
 0xe67   : > { %10561 = vrot.lane.b32.xlu1 %v16660_v51, %s14268_s18 }
 0xe69   : > { %8775 = vrot.lane.b32.xlu0 %v16652_v31, %s14266_s15 }
 0xe6b   : > { %7147 = vrot.lane.b32.xlu1 %v16694_v43, %s14265_s28 }
 0xe6d   : > { %8787 = vrot.lane.b32.xlu0 %v16675_v21, %s14266_s15 }
 0xe6f   : > { %7157 = vrot.lane.b32.xlu1 %v16702_v53, %s14265_s28 }
 0xe71   : > { %9663 = vrot.lane.b32.xlu0 %v16652_v31, %s14267_s10 }
 0xe73   : > { %8777 = vrot.lane.b32.xlu1 %v16714_v33, %s14266_s15 }
 0xe75   : > { %9675 = vrot.lane.b32.xlu0 %v16675_v21, %s14267_s10 }
 0xe77   : > { %8789 = vrot.lane.b32.xlu1 %v16702_v53, %s14266_s15 }
 0xe79   : > { %10551 = vrot.lane.b32.xlu0 %v16652_v31, %s14268_s18 }
 0xe7b   : > { %9665 = vrot.lane.b32.xlu1 %v16714_v33, %s14267_s10 }
 0xe7d   : > { %10563 = vrot.lane.b32.xlu0 %v16675_v21, %s14268_s18 }
 0xe7f   : > { %9677 = vrot.lane.b32.xlu1 %v16702_v53, %s14267_s10 }
 0xe81   : > { %7145 = vrot.lane.b32.xlu0 %v16714_v33, %s14265_s28 }
 0xe83   : > { %10553 = vrot.lane.b32.xlu1 %v16714_v33, %s14268_s18 }
 0xe85   : > { %8779 = vrot.lane.b32.xlu0 %v16694_v43, %s14266_s15 }
 0xe87   : > { %10565 = vrot.lane.b32.xlu1 %v16702_v53, %s14268_s18 }
 0xe89   : > { %9667 = vrot.lane.b32.xlu0 %v16694_v43, %s14267_s10 }
 0xe8b   : > { %7149 = vrot.lane.b32.xlu1 %v16746_v15, %s14265_s28  ;;  %s18976_s28 = smov 104  }
 0xe8d   : > { %10555 = vrot.lane.b32.xlu0 %v16694_v43, %s14268_s18 }
 0xe8f   : > { %8781 = vrot.lane.b32.xlu1 %v16746_v15, %s14266_s15  ;;  %s19098_s15 = smov 64  }
 0xe93   : > { %9669 = vrot.lane.b32.xlu1 %v16746_v15, %s14267_s10  ;;  %s19114_s10 = smov 8  }
 0xe97   : > { %10557 = vrot.lane.b32.xlu1 %v16746_v15, %s14268_s18  ;;  %s19116_s18 = smov 16  }
 0xec7   : > { %v7152_v17 = vpop.permute.xlu0 %7151 }
 0xec8   : > { %v7175_v14 = vmul.f32 %v7152_v17, %v7042_v61  ;;  %v7176_v32 = vmul.f32 %v7152_v17, %v7046_v12 }
 0xec9   : > { %v7144_v60 = vpop.permute.xlu1 %7143 }
 0xeca   : > { %8055 = vrot.lane.b32.xlu0 %v7175_v14, %s14269_s13  ;;  %8057 = vrot.lane.b32.xlu1 %v7176_v32, %s14269_s13  ;;  %v7210_v42 = vsel %vm1912_vm2, %v7176_v32, 0.0  ;;  %v7207_v29 = vsel %vm1912_vm2, %v7175_v14, 0.0  ;;  %v7167_v26 = vmul.f32 %v7144_v60, %v7010_v20  ;;  %v7168_v52 = vmul.f32 %v7144_v60, %v7014_v6 }
 0xecb   : > { %v16769_v3 = vpop.permute.xlu0 %8783  ;;  %v6957_v60 = vrot.slane %v16706_v39, %v18975_v4  ;;  %v7026_v39 = vrot.slane %v6965_v19, %v14729_v48 }
 0xecc   : > { %18977 = vst [vmem:[#allocation139_spill] sm:$0xff] %v16769_v3  ;;  %v7186_v1 = vsel %vm1912_vm2, %v7168_v52, 0.0  ;;  %v7183_v17 = vsel %vm1912_vm2, %v7167_v26, 0.0 }
 0xecd   : > { %v7154_v28 = vpop.permute.xlu1 %7153  ;;  %v6958_v57 = vcombine.high %v6957_v60, %v6957_v60 }
 0xece   : > { %8943 = vrot.lane.b32.xlu0 %v7175_v14, %s14270_s6  ;;  %8945 = vrot.lane.b32.xlu1 %v7176_v32, %s14270_s6  ;;  %v7177_v27 = vmul.f32 %v7154_v28, %v7050_v9  ;;  %v7178_v37 = vmul.f32 %v7154_v28, %v7054_v13  ;;  %v7005_v28 = vrot.slane %v16690_v5, %v18975_v4 }
 0xecf   : > { %v16773_v2 = vpop.permute.xlu0 %9671  ;;  %v7018_v9 = vrot.slane %v6957_v60, %v14729_v48  ;;  %v7022_v13 = vrot.slane %v6958_v57, %v14729_v48 }
 0xed0   : > { %18978 = vst [vmem:[#allocation132_spill] sm:$0xff] %v16773_v2  ;;  %v7216_v12 = vsel %vm1912_vm2, %v7178_v37, 0.0  ;;  %v7066_v5 = vrot.slane %v7005_v28, %v14729_v48 }
 0xed1   : > { %v16812_v61 = vpop.permute.xlu1 %8785 }
 0xed2   : > { %9831 = vrot.lane.b32.xlu0 %v7175_v14, %s18976_s28  ;;  %9833 = vrot.lane.b32.xlu1 %v7176_v32, %s18976_s28  ;;  %18983 = vst [vmem:[#allocation133_spill] sm:$0xff] %v16812_v61 }
 0xed3   : > { %v16781_v30 = vpop.permute.xlu0 %10559 }
 0xed4   : > { %18979 = vst [vmem:[#allocation140_spill] sm:$0xff] %v16781_v30 }
 0xed7   : > { %v7156_v46 = vpop.permute.xlu0 %7155 }
 0xed8   : > { %v7179_v16 = vmul.f32 %v7156_v46, %v7058_v55  ;;  %v7180_v62 = vmul.f32 %v7156_v46, %v7062_v41  ;;  %v7006_v55 = vcombine.high %v7005_v28, %v7005_v28 }
 0xeda   : > { %v7222_v32 = vsel %vm1912_vm2, %v7180_v62, 0.0  ;;  %v7219_v54 = vsel %vm1912_vm2, %v7179_v16, 0.0 }
 0xedb   : > { %v16805_v10 = vpop.permute.xlu0 %8775 }
 0xedc   : > { %18980 = vst [vmem:[#allocation135_spill] sm:$0xff] %v16805_v10 }
 0xedf   : > { %v16807_v7 = vpop.permute.xlu0 %8787 }
 0xee0   : > { %18981 = vst [vmem:[#allocation131_spill] sm:$0xff] %v16807_v7 }
 0xee3   : > { %v16810_v24 = vpop.permute.xlu0 %9663 }
 0xee4   : > { %18982 = vst [vmem:[#allocation136_spill] sm:$0xff] %v16810_v24 }
 0xee7   : > { %v16816_v14 = vpop.permute.xlu0 %9675 }
 0xee8   : > { %18984 = vst [vmem:[#allocation138_spill] sm:$0xff] %v16816_v14 }
 0xeeb   : > { %v16823_v35 = vpop.permute.xlu0 %10551 }
 0xeec   : > { %18986 = vst [vmem:[#allocation80_spill] sm:$0xff] %v16823_v35 }
 0xeef   : > { %v16829_v20 = vpop.permute.xlu0 %10563 }
 0xef0   : > { %18988 = vst [vmem:[#allocation81_spill] sm:$0xff] %v16829_v20 }
 0xef1   : > { %7211 = vadd.xlane.f32.xlu0 %v7210_v42  ;;  %v7213_v42 = vsel %vm1912_vm2, %v7177_v27, 0.0 }
 0xef6   : > { %7208 = vadd.xlane.f32.xlu1 %v7207_v29  ;;  %v16820_v29 = vpop.permute.xlu1 %9673 }
 0xef7   : > { %18985 = vst [vmem:[#allocation134_spill] sm:$0xff] %v16820_v29 }
 0xefa   : > { %v16825_v56 = vpop.permute.xlu1 %10561 }
 0xefb   : > { %18987 = vst [vmem:[#allocation137_spill] sm:$0xff] %v16825_v56 }
 0xefe   : > { %v7148_v6 = vpop.permute.xlu1 %7147 }
 0xeff   : > { %v7171_v36 = vmul.f32 %v7148_v6, %v7026_v39 }
 0xf01   : > { %v7195_v38 = vsel %vm1912_vm2, %v7171_v36, 0.0 }
 0xf02   : > { %v7158_v47 = vpop.permute.xlu1 %7157 }
 0xf07   : > { %8039 = vrot.lane.b32.xlu0 %v7167_v26, %s14269_s13  ;;  %8041 = vrot.lane.b32.xlu1 %v7168_v52, %s14269_s13 }
 0xf0b   : > { %8059 = vrot.lane.b32.xlu0 %v7177_v27, %s14269_s13  ;;  %8061 = vrot.lane.b32.xlu1 %v7178_v37, %s14269_s13 }
 0xf0f   : > { %8063 = vrot.lane.b32.xlu0 %v7179_v16, %s14269_s13  ;;  %8065 = vrot.lane.b32.xlu1 %v7180_v62, %s14269_s13 }
 0xf13   : > { %8927 = vrot.lane.b32.xlu0 %v7167_v26, %s14270_s6  ;;  %8929 = vrot.lane.b32.xlu1 %v7168_v52, %s14270_s6 }
 0xf17   : > { %8947 = vrot.lane.b32.xlu0 %v7177_v27, %s14270_s6  ;;  %8949 = vrot.lane.b32.xlu1 %v7178_v37, %s14270_s6 }
 0xf1b   : > { %8951 = vrot.lane.b32.xlu0 %v7179_v16, %s14270_s6  ;;  %8953 = vrot.lane.b32.xlu1 %v7180_v62, %s14270_s6 }
 0xf1f   : > { %9815 = vrot.lane.b32.xlu0 %v7167_v26, %s18976_s28  ;;  %9817 = vrot.lane.b32.xlu1 %v7168_v52, %s18976_s28  ;;  %v7146_v26 = vpop.permute.xlu0 %7145  ;;  %v6966_v52 = vcombine.high %v6965_v19, %v6965_v19 }
 0xf21   : > { %v7030_v46 = vrot.slane %v6966_v52, %v14729_v48 }
 0xf23   : > { %9835 = vrot.lane.b32.xlu0 %v7177_v27, %s18976_s28  ;;  %9837 = vrot.lane.b32.xlu1 %v7178_v37, %s18976_s28  ;;  %v7169_v27 = vmul.f32 %v7146_v26, %v7018_v9  ;;  %v7170_v37 = vmul.f32 %v7146_v26, %v7022_v13  ;;  %v7172_v41 = vmul.f32 %v7148_v6, %v7030_v46  ;;  %v16871_v19 = vpop.permute.xlu0 %8779 }
 0xf24   : > { %18995 = vst [vmem:[#allocation87_spill] sm:$0xff] %v16871_v19 }
 0xf25   : > { %v7192_v46 = vsel %vm1912_vm2, %v7170_v37, 0.0 }
 0xf27   : > { %9839 = vrot.lane.b32.xlu0 %v7179_v16, %s18976_s28  ;;  %9841 = vrot.lane.b32.xlu1 %v7180_v62, %s18976_s28  ;;  %v16841_v16 = vpop.permute.xlu1 %8777  ;;  %v7070_v62 = vrot.slane %v7006_v55, %v14729_v48  ;;  %v16875_v26 = vpop.permute.xlu0 %9667  ;;  %v7198_v55 = vsel %vm1912_vm2, %v7172_v41, 0.0 }
 0xf28   : > { %18989 = vst [vmem:[#allocation84_spill] sm:$0xff] %v16841_v16  ;;  %18997 = vst [vmem:[#allocation88_spill] sm:$0xff] %v16875_v26 }
 0xf2b   : > { %v16879_v28 = vpop.permute.xlu0 %10555 }
 0xf2c   : > { %18999 = vst [vmem:[#allocation92_spill] sm:$0xff] %v16879_v28 }
 0xf3c   : > { %v8056_v9 = vpop.permute.xlu0 %8055 }
 0xf40   : > { %v16883_v39 = vpop.permute.xlu0 %8943 }
 0xf44   : > { %v16888_v59 = vpop.permute.xlu0 %9831 }
 0xf46   : > { %7187 = vadd.xlane.f32.xlu0 %v7186_v1  ;;  %v7181_v1 = vmul.f32 %v7158_v47, %v7066_v5 }
 0xf4a   : > { %7217 = vadd.xlane.f32.xlu0 %v7216_v12  ;;  %v7182_v12 = vmul.f32 %v7158_v47, %v7070_v62  ;;  %v7189_v62 = vsel %vm1912_vm2, %v7169_v27, 0.0 }
 0xf4b   : > { %7184 = vadd.xlane.f32.xlu1 %v7183_v17  ;;  %v16849_v17 = vpop.permute.xlu1 %8789 }
 0xf4c   : > { %18990 = vst [vmem:[#allocation78_spill] sm:$0xff] %v16849_v17  ;;  %v7228_v63 = vsel %vm1912_vm2, %v7182_v12, 0.0 }
 0xf4e   : > { %7223 = vadd.xlane.f32.xlu0 %v7222_v32 }
 0xf4f   : > { %7214 = vadd.xlane.f32.xlu1 %v7213_v42  ;;  %v16853_v32 = vpop.permute.xlu1 %9665 }
 0xf50   : > { %18991 = vst [vmem:[#allocation85_spill] sm:$0xff] %v16853_v32 }
 0xf53   : > { %7220 = vadd.xlane.f32.xlu1 %v7219_v54  ;;  %v16859_v42 = vpop.permute.xlu1 %9677 }
 0xf54   : > { %18992 = vst [vmem:[#allocation82_spill] sm:$0xff] %v16859_v42  ;;  %v8111_v42 = vsel %vm1912_vm2, %v8056_v9, 0.0 }
 0xf57   : > { %v16863_v54 = vpop.permute.xlu1 %10553 }
 0xf58   : > { %18993 = vst [vmem:[#allocation86_spill] sm:$0xff] %v16863_v54 }
 0xf5b   : > { %v16869_v60 = vpop.permute.xlu1 %10565 }
 0xf5c   : > { %18994 = vst [vmem:[#allocation79_spill] sm:$0xff] %v16869_v60 }
 0xf5f   : > { %v7150_v6 = vpop.permute.xlu1 %7149 }
 0xf63   : > { %v16873_v57 = vpop.permute.xlu1 %8781 }
 0xf64   : > { %8043 = vrot.lane.b32.xlu0 %v7169_v27, %s14269_s13  ;;  %8045 = vrot.lane.b32.xlu1 %v7170_v37, %s14269_s13  ;;  %18996 = vst [vmem:[#allocation83_spill] sm:$0xff] %v16873_v57 }
 0xf67   : > { %v16877_v52 = vpop.permute.xlu1 %9669 }
 0xf68   : > { %8047 = vrot.lane.b32.xlu0 %v7171_v36, %s14269_s13  ;;  %8049 = vrot.lane.b32.xlu1 %v7172_v41, %s14269_s13  ;;  %18998 = vst [vmem:[#allocation89_spill] sm:$0xff] %v16877_v52 }
 0xf6b   : > { %v16881_v13 = vpop.permute.xlu1 %10557 }
 0xf6c   : > { %8067 = vrot.lane.b32.xlu0 %v7181_v1, %s14269_s13  ;;  %8069 = vrot.lane.b32.xlu1 %v7182_v12, %s14269_s13  ;;  %19000 = vst [vmem:[#allocation90_spill] sm:$0xff] %v16881_v13 }
 0xf6f   : > { %v8058_v47 = vpop.permute.xlu1 %8057 }
 0xf70   : > { %8931 = vrot.lane.b32.xlu0 %v7169_v27, %s14270_s6  ;;  %8933 = vrot.lane.b32.xlu1 %v7170_v37, %s14270_s6  ;;  %v8114_v60 = vsel %vm1912_vm2, %v8058_v47, 0.0  ;;  %v8999_v47 = vsel %vm1912_vm2, %v16883_v39, 0.0 }
 0xf73   : > { %v8946_v5 = vpop.permute.xlu1 %8945 }
 0xf74   : > { %8935 = vrot.lane.b32.xlu0 %v7171_v36, %s14270_s6  ;;  %8937 = vrot.lane.b32.xlu1 %v7172_v41, %s14270_s6  ;;  %v9002_v54 = vsel %vm1912_vm2, %v8946_v5, 0.0 }
 0xf77   : > { %v9834_v11 = vpop.permute.xlu1 %9833 }
 0xf78   : > { %8955 = vrot.lane.b32.xlu0 %v7181_v1, %s14270_s6  ;;  %8957 = vrot.lane.b32.xlu1 %v7182_v12, %s14270_s6 }
 0xf7a   : > { %v16892_v8 = vpop.xlane.xlu0 %7211 }
 0xf7c   : > { %9819 = vrot.lane.b32.xlu0 %v7169_v27, %s18976_s28  ;;  %9821 = vrot.lane.b32.xlu1 %v7170_v37, %s18976_s28  ;;  %v7225_v37 = vsel %vm1912_vm2, %v7181_v1, 0.0  ;;  %v6973_v27 = vrot.slane %v16738_v22, %v18975_v4 }
 0xf7e   : > { %v6974_v40 = vcombine.high %v6973_v27, %v6973_v27 }
 0xf80   : > { %9823 = vrot.lane.b32.xlu0 %v7171_v36, %s18976_s28  ;;  %9825 = vrot.lane.b32.xlu1 %v7172_v41, %s18976_s28  ;;  %v16895_v41 = vpop.xlane.xlu1 %7208  ;;  %v7038_v36 = vrot.slane %v6974_v40, %v14729_v48 }
 0xf82   : > { %v7174_v58 = vmul.f32 %v7150_v6, %v7038_v36 }
 0xf84   : > { %9843 = vrot.lane.b32.xlu0 %v7181_v1, %s18976_s28  ;;  %9845 = vrot.lane.b32.xlu1 %v7182_v12, %s18976_s28  ;;  %v7204_v13 = vsel %vm1912_vm2, %v7174_v58, 0.0 }
 0xfa3   : > { %7193 = vadd.xlane.f32.xlu0 %v7192_v46  ;;  %v8040_v46 = vpop.permute.xlu0 %8039 }
 0xfa7   : > { %7199 = vadd.xlane.f32.xlu0 %v7198_v55  ;;  %v8042_v55 = vpop.permute.xlu1 %8041 }
 0xfa8   : > { %7190 = vadd.xlane.f32.xlu1 %v7189_v62  ;;  %v8060_v62 = vpop.permute.xlu0 %8059 }
 0xfab   : > { %7229 = vadd.xlane.f32.xlu0 %v7228_v63  ;;  %v7034_v63 = vrot.slane %v6973_v27, %v14729_v48  ;;  %v8062_v12 = vpop.permute.xlu1 %8061 }
 0xfac   : > { %7196 = vadd.xlane.f32.xlu1 %v7195_v38  ;;  %v8064_v44 = vpop.permute.xlu0 %8063 }
 0xfad   : > { %v7173_v38 = vmul.f32 %v7150_v6, %v7034_v63 }
 0xfaf   : > { %v8066_v1 = vpop.permute.xlu1 %8065  ;;  %v7201_v28 = vsel %vm1912_vm2, %v7173_v38, 0.0 }
 0xfb0   : > { %7226 = vadd.xlane.f32.xlu1 %v7225_v37  ;;  %v8928_v37 = vpop.permute.xlu0 %8927  ;;  %v8126_v39 = vsel %vm1912_vm2, %v8066_v1, 0.0 }
 0xfb3   : > { %v8930_v22 = vpop.permute.xlu1 %8929 }
 0xfb4   : > { %v8948_v40 = vpop.permute.xlu0 %8947 }
 0xfb7   : > { %v8950_v4 = vpop.permute.xlu1 %8949 }
 0xfb8   : > { %v16907_v27 = vpop.permute.xlu0 %8951 }
 0xfbb   : > { %v8954_v6 = vpop.permute.xlu1 %8953 }
 0xfbc   : > { %v16909_v63 = vpop.permute.xlu0 %9815 }
 0xfbf   : > { %v9818_v36 = vpop.permute.xlu1 %9817 }
 0xfc0   : > { %v16911_v0 = vpop.permute.xlu0 %9835 }
 0xfc1   : > { %8051 = vrot.lane.b32.xlu0 %v7173_v38, %s14269_s13  ;;  %8053 = vrot.lane.b32.xlu1 %v7174_v58, %s14269_s13  ;;  %s19118_s13 = smov 24  }
 0xfc3   : > { %v9838_v34 = vpop.permute.xlu1 %9837 }
 0xfc4   : > { %v16913_v25 = vpop.permute.xlu0 %9839 }
 0xfc5   : > { %8939 = vrot.lane.b32.xlu0 %v7173_v38, %s14270_s6  ;;  %8941 = vrot.lane.b32.xlu1 %v7174_v58, %s14270_s6  ;;  %s19136_s6 = sld [smem:[#allocation57_spill]] }
 0xfc7   : > { %v16917_v45 = vpop.permute.xlu1 %9841 }
 0xfc9   : > { %9827 = vrot.lane.b32.xlu0 %v7173_v38, %s18976_s28  ;;  %9829 = vrot.lane.b32.xlu1 %v7174_v58, %s18976_s28  ;;  %s19150_s28 = sld [smem:[#allocation59_spill]] }
 0xfcf   : > { %v16915_v23 = vpop.xlane.xlu0 %7187 }
 0xfd3   : > { %v16923_v57 = vpop.xlane.xlu0 %7217 }
 0xfd4   : > { %v16920_v52 = vpop.xlane.xlu1 %7184 }
 0xfd7   : > { %v16930_v58 = vpop.xlane.xlu0 %7223 }
 0xfd8   : > { %v16928_v26 = vpop.xlane.xlu1 %7214 }
 0xfdb   : > { %v8044_v5 = vpop.permute.xlu0 %8043 }
 0xfdf   : > { %v8048_v38 = vpop.permute.xlu0 %8047 }
 0xfe8   : > { %7205 = vadd.xlane.f32.xlu0 %v7204_v13  ;;  %v9890_v13 = vsel %vm1912_vm2, %v9834_v11, 0.0  ;;  %v8090_v11 = vsel %vm1912_vm2, %v8042_v55, 0.0  ;;  %v8975_v55 = vsel %vm1912_vm2, %v8928_v37, 0.0  ;;  %v9896_v37 = vsel %vm1912_vm2, %v9838_v34, 0.0 }
 0xfe9   : > { %v9899_v34 = vsel %vm1912_vm2, %v16913_v25, 0.0 }
 0xfec   : > { %8115 = vadd.xlane.f32.xlu0 %v8114_v60  ;;  %v16935_v60 = vpop.xlane.xlu1 %7220 }
 0xfed   : > { %7202 = vadd.xlane.f32.xlu1 %v7201_v28  ;;  %v8087_v28 = vsel %vm1912_vm2, %v8040_v46, 0.0 }
 0xff0   : > { %9003 = vadd.xlane.f32.xlu0 %v9002_v54  ;;  %v9887_v54 = vsel %vm1912_vm2, %v16888_v59, 0.0  ;;  %v8046_v9 = vpop.permute.xlu1 %8045  ;;  %v8123_v59 = vsel %vm1912_vm2, %v8064_v44, 0.0  ;;  %v9011_v44 = vsel %vm1912_vm2, %v16907_v27, 0.0  ;;  %v8093_v27 = vsel %vm1912_vm2, %v8044_v5, 0.0 }
 0xff1   : > { %8112 = vadd.xlane.f32.xlu1 %v8111_v42  ;;  %v8120_v42 = vsel %vm1912_vm2, %v8062_v12, 0.0  ;;  %v9008_v12 = vsel %vm1912_vm2, %v8950_v4, 0.0  ;;  %v9863_v4 = vsel %vm1912_vm2, %v16909_v63, 0.0  ;;  %v8096_v63 = vsel %vm1912_vm2, %v8046_v9, 0.0 }
 0xff4   : > { %9891 = vadd.xlane.f32.xlu0 %v9890_v13  ;;  %v8117_v13 = vsel %vm1912_vm2, %v8060_v62, 0.0  ;;  %v8050_v46 = vpop.permute.xlu1 %8049  ;;  %v9005_v62 = vsel %vm1912_vm2, %v8948_v40, 0.0  ;;  %v9902_v40 = vsel %vm1912_vm2, %v16917_v45, 0.0 }
 0xff5   : > { %9000 = vadd.xlane.f32.xlu1 %v8999_v47  ;;  %v8978_v47 = vsel %vm1912_vm2, %v8930_v22, 0.0 }
 0xff8   : > { %8088 = vadd.xlane.f32.xlu0 %v8087_v28  ;;  %v8068_v28 = vpop.permute.xlu0 %8067 }
 0xff9   : > { %9888 = vadd.xlane.f32.xlu1 %v9887_v54  ;;  %v8070_v54 = vpop.permute.xlu1 %8069 }
 0xffc   : > { %8121 = vadd.xlane.f32.xlu0 %v8120_v42  ;;  %v8932_v1 = vpop.permute.xlu0 %8931  ;;  %v9014_v42 = vsel %vm1912_vm2, %v8954_v6, 0.0 }
 0xffd   : > { %8091 = vadd.xlane.f32.xlu1 %v8090_v11  ;;  %v8934_v22 = vpop.permute.xlu1 %8933  ;;  %v9866_v11 = vsel %vm1912_vm2, %v9818_v36, 0.0  ;;  %v9893_v36 = vsel %vm1912_vm2, %v16911_v0, 0.0  ;;  %v8102_v0 = vsel %vm1912_vm2, %v8050_v46, 0.0  ;;  %v8981_v25 = vsel %vm1912_vm2, %v8932_v1, 0.0 }
 0xffe   : > { %v8984_v9 = vsel %vm1912_vm2, %v8934_v22, 0.0 }
0x1000   : > { %8127 = vadd.xlane.f32.xlu0 %v8126_v39  ;;  %v8936_v39 = vpop.permute.xlu0 %8935 }
0x1001   : > { %8118 = vadd.xlane.f32.xlu1 %v8117_v13  ;;  %v8938_v6 = vpop.permute.xlu1 %8937 }
0x1002   : > { %v8990_v46 = vsel %vm1912_vm2, %v8938_v6, 0.0 }
0x1004   : > { %8979 = vadd.xlane.f32.xlu0 %v8978_v47  ;;  %v8956_v13 = vpop.permute.xlu0 %8955 }
0x1005   : > { %8124 = vadd.xlane.f32.xlu1 %v8123_v59  ;;  %v8958_v47 = vpop.permute.xlu1 %8957 }
0x1006   : > { %v9020_v1 = vsel %vm1912_vm2, %v8958_v47, 0.0 }
0x1008   : > { %9009 = vadd.xlane.f32.xlu0 %v9008_v12  ;;  %v9820_v59 = vpop.permute.xlu0 %9819  ;;  %v8099_v12 = vsel %vm1912_vm2, %v8048_v38, 0.0 }
0x1009   : > { %8976 = vadd.xlane.f32.xlu1 %v8975_v55  ;;  %v9822_v45 = vpop.permute.xlu1 %9821  ;;  %v9869_v22 = vsel %vm1912_vm2, %v9820_v59, 0.0 }
0x100c   : > { %9015 = vadd.xlane.f32.xlu0 %v9014_v42  ;;  %v9824_v55 = vpop.permute.xlu0 %9823  ;;  %v8129_v42 = vsel %vm1912_vm2, %v8068_v28, 0.0 }
0x100d   : > { %9006 = vadd.xlane.f32.xlu1 %v9005_v62  ;;  %v9826_v5 = vpop.permute.xlu1 %9825  ;;  %v8132_v62 = vsel %vm1912_vm2, %v8070_v54, 0.0  ;;  %v9017_v54 = vsel %vm1912_vm2, %v8956_v13, 0.0  ;;  %v9875_v6 = vsel %vm1912_vm2, %v9824_v55, 0.0 }
0x100e   : > { %v9878_v13 = vsel %vm1912_vm2, %v9826_v5, 0.0 }
0x1010   : > { %9867 = vadd.xlane.f32.xlu0 %v9866_v11  ;;  %v9844_v11 = vpop.permute.xlu0 %9843 }
0x1011   : > { %9012 = vadd.xlane.f32.xlu1 %v9011_v44  ;;  %v8987_v44 = vsel %vm1912_vm2, %v8936_v39, 0.0  ;;  %v9872_v39 = vsel %vm1912_vm2, %v9822_v45, 0.0  ;;  %v16984_v45 = vmul.f32 0.35355338, %v16895_v41 }
0x1014   : > { %9897 = vadd.xlane.f32.xlu0 %v9896_v37  ;;  %v9846_v37 = vpop.permute.xlu1 %9845 }
0x1015   : > { %9864 = vadd.xlane.f32.xlu1 %v9863_v4  ;;  %v9908_v59 = vsel %vm1912_vm2, %v9846_v37, 0.0 }
0x1018   : > { %9903 = vadd.xlane.f32.xlu0 %v9902_v40 }
0x1019   : > { %9894 = vadd.xlane.f32.xlu1 %v9893_v36 }
0x101c   : > { %8094 = vadd.xlane.f32.xlu0 %v8093_v27 }
0x101d   : > { %9900 = vadd.xlane.f32.xlu1 %v9899_v34 }
0x1020   : > { %8097 = vadd.xlane.f32.xlu0 %v8096_v63  ;;  %v9905_v63 = vsel %vm1912_vm2, %v9844_v11, 0.0 }
0x1021   : > { %8100 = vadd.xlane.f32.xlu1 %v8099_v12 }
0x1024   : > { %8103 = vadd.xlane.f32.xlu0 %v8102_v0 }
0x1025   : > { %8130 = vadd.xlane.f32.xlu1 %v8129_v42  ;;  %v16987_v42 = vmul.f32 0.35355338, %v16892_v8 }
0x1027   : > { %v7302_v8 = vrot.slane %v16987_v42, %v18877_v50 }
0x1028   : > { %8133 = vadd.xlane.f32.xlu0 %v8132_v62  ;;  %v16991_v62 = vmul.f32 0.35355338, %v16928_v26  ;;  %v17005_v26 = vmul.f32 0.35355338, %v16915_v23 }
0x1029   : > { %8982 = vadd.xlane.f32.xlu1 %v8981_v25  ;;  %v7298_v25 = vrot.slane %v16984_v45, %v18877_v50 }
0x102b   : > { %v7331_v23 = vsel %vm2059_vm3, %v7302_v8, %v7298_v25 }
0x102c   : > { %v7194_v38 = vpop.xlane.xlu0 %7193  ;;  %8985 = vadd.xlane.f32.xlu0 %v8984_v9  ;;  %v16997_v9 = vmul.f32 0.35355338, %v16920_v52 }
0x102d   : > { %8988 = vadd.xlane.f32.xlu1 %v8987_v44  ;;  %v17000_v44 = vmul.f32 0.35355338, %v16923_v57 }
0x102e   : > { %v7266_v57 = vrot.slane %v16997_v9, %v18877_v50 }
0x1030   : > { %v16972_v28 = vpop.xlane.xlu0 %7199  ;;  %8991 = vadd.xlane.f32.xlu0 %v8990_v46  ;;  %v7306_v46 = vrot.slane %v16991_v62, %v18877_v50 }
0x1031   : > { %v7191_v4 = vpop.xlane.xlu1 %7190  ;;  %9018 = vadd.xlane.f32.xlu1 %v9017_v54 }
0x1032   : > { %v17010_v54 = vmul.f32 0.35355338, %v7191_v4  ;;  %v7270_v4 = vrot.slane %v17005_v26, %v18877_v50 }
0x1034   : > { %v7230_v40 = vpop.xlane.xlu0 %7229  ;;  %9021 = vadd.xlane.f32.xlu0 %v9020_v1 }
0x1035   : > { %v7197_v36 = vpop.xlane.xlu1 %7196  ;;  %9870 = vadd.xlane.f32.xlu1 %v9869_v22  ;;  %v17016_v22 = vmul.f32 0.35355338, %v16935_v60  ;;  %v7274_v60 = vrot.slane %v17010_v54, %v18877_v50 }
0x1038   : > { %9873 = vadd.xlane.f32.xlu0 %v9872_v39  ;;  %v8052_v27 = vpop.permute.xlu0 %8051  ;;  %v7310_v39 = vrot.slane %v17000_v44, %v18877_v50 }
0x1039   : > { %v7227_v34 = vpop.xlane.xlu1 %7226  ;;  %9876 = vadd.xlane.f32.xlu1 %v9875_v6  ;;  %v8105_v0 = vsel %vm1912_vm2, %v8052_v27, 0.0  ;;  %v17021_v6 = vmul.f32 0.35355338, %v7194_v38  ;;  %v17026_v27 = vmul.f32 0.35355338, %v16930_v58  ;;  %v7314_v38 = vrot.slane %v17016_v22, %v18877_v50 }
0x103a   : > { %v7327_v58 = vsel %vm2059_vm3, %v7270_v4, %v7266_v57 }
0x103b   : > { %v7343_v25 = vsel %vm2076_vm4, %v7327_v58, -inf }
0x103c   : > { %9879 = vadd.xlane.f32.xlu0 %v9878_v13  ;;  %v8940_v12 = vpop.permute.xlu0 %8939 }
0x103d   : > { %9906 = vadd.xlane.f32.xlu1 %v9905_v63  ;;  %v8054_v47 = vpop.permute.xlu1 %8053  ;;  %v8993_v11 = vsel %vm1912_vm2, %v8940_v12, 0.0  ;;  %v17031_v63 = vmul.f32 0.35355338, %v7227_v34  ;;  %v7332_v12 = vsel %vm2059_vm3, %v7310_v39, %v7306_v46  ;;  %v7318_v34 = vrot.slane %v17026_v27, %v18877_v50 }
0x103e   : > { %v8108_v5 = vsel %vm1912_vm2, %v8054_v47, 0.0  ;;  %v7355_v47 = vsel %vm2076_vm4, %v7331_v23, -inf }
0x103f   : > { %v7333_v8 = vsel %vm2059_vm3, %v7318_v34, %v7314_v38 }
0x1040   : > { %9909 = vadd.xlane.f32.xlu0 %v9908_v59  ;;  %v9828_v41 = vpop.permute.xlu0 %9827  ;;  %v17037_v59 = vmul.f32 0.35355338, %v7197_v36  ;;  %v7322_v36 = vrot.slane %v17031_v63, %v18877_v50 }
0x1041   : > { %8106 = vadd.xlane.f32.xlu1 %v8105_v0  ;;  %v8942_v55 = vpop.permute.xlu1 %8941  ;;  %v9881_v1 = vsel %vm1912_vm2, %v9828_v41, 0.0  ;;  %v7278_v0 = vrot.slane %v17021_v6, %v18877_v50 }
0x1042   : > { %v8996_v37 = vsel %vm1912_vm2, %v8942_v55, 0.0  ;;  %v17042_v55 = vmul.f32 0.35355338, %v7230_v40  ;;  %v7282_v40 = vrot.slane %v17037_v59, %v18877_v50 }
0x1043   : > { %v7328_v41 = vsel %vm2059_vm3, %v7278_v0, %v7274_v60 }
0x1044   : > { %8109 = vadd.xlane.f32.xlu0 %v8108_v5  ;;  %v17047_v5 = vmul.f32 0.35355338, %v16972_v28  ;;  %v7326_v28 = vrot.slane %v17042_v55, %v18877_v50  ;;  %v7346_v46 = vsel %vm2076_vm4, %v7328_v41, -inf }
0x1045   : > { %8994 = vadd.xlane.f32.xlu1 %v8993_v11  ;;  %v9830_v52 = vpop.permute.xlu1 %9829  ;;  %v7358_v11 = vsel %vm2076_vm4, %v7332_v12, -inf }
0x1046   : > { %v9884_v13 = vsel %vm1912_vm2, %v9830_v52, 0.0  ;;  %v7361_v52 = vsel %vm2076_vm4, %v7333_v8, -inf }
0x1048   : > { %8997 = vadd.xlane.f32.xlu0 %v8996_v37  ;;  %v7286_v37 = vrot.slane %v17047_v5, %v18877_v50 }
0x1049   : > { %9882 = vadd.xlane.f32.xlu1 %v9881_v1  ;;  %v7334_v1 = vsel %vm2059_vm3, %v7326_v28, %v7322_v36 }
0x104a   : > { %v7329_v57 = vsel %vm2059_vm3, %v7286_v37, %v7282_v40  ;;  %v7364_v23 = vsel %vm2076_vm4, %v7334_v1, -inf }
0x104b   : > { %v7349_v39 = vsel %vm2076_vm4, %v7329_v57, -inf }
0x104c   : > { %9885 = vadd.xlane.f32.xlu0 %v9884_v13 }
0x104d   : > { %7356 = vmax.xlane.f32.xlu1 %v7355_v47 }
0x1050   : > { %7359 = vmax.xlane.f32.xlu0 %v7358_v11 }
0x1051   : > { %7344 = vmax.xlane.f32.xlu1 %v7343_v25 }
0x1054   : > { %7347 = vmax.xlane.f32.xlu0 %v7346_v46 }
0x1055   : > { %7362 = vmax.xlane.f32.xlu1 %v7361_v52 }
0x1058   : > { %7365 = vmax.xlane.f32.xlu0 %v7364_v23 }
0x1059   : > { %7350 = vmax.xlane.f32.xlu1 %v7349_v39 }
0x1071   : > { %v7206_v4 = vpop.xlane.xlu0 %7205 }
0x1072   : > { %v17067_v13 = vmul.f32 0.35355338, %v7206_v4 }
0x1074   : > { %v7294_v38 = vrot.slane %v17067_v13, %v18877_v50 }
0x1075   : > { %v8116_v60 = vpop.xlane.xlu0 %8115 }
0x1076   : > { %v7203_v47 = vpop.xlane.xlu1 %7202  ;;  %v17073_v58 = vmul.f32 0.35355338, %v8116_v60 }
0x1077   : > { %v17069_v12 = vmul.f32 0.35355338, %v7203_v47 }
0x1078   : > { %v8206_v40 = vrot.slane %v17073_v58, %v18877_v50 }
0x1079   : > { %v7290_v0 = vrot.slane %v17069_v12, %v18877_v50  ;;  %v9004_v34 = vpop.xlane.xlu0 %9003 }
0x107a   : > { %v8113_v11 = vpop.xlane.xlu1 %8112  ;;  %v17083_v8 = vmul.f32 0.35355338, %v9004_v34 }
0x107b   : > { %v17077_v36 = vmul.f32 0.35355338, %v8113_v11  ;;  %v7330_v25 = vsel %vm2059_vm3, %v7294_v38, %v7290_v0 }
0x107c   : > { %v7352_v41 = vsel %vm2076_vm4, %v7330_v25, -inf  ;;  %v9094_v23 = vrot.slane %v17083_v8, %v18877_v50 }
0x107d   : > { %v8202_v28 = vrot.slane %v17077_v36, %v18877_v50  ;;  %7353 = vmax.xlane.f32.xlu0 %v7352_v41  ;;  %v9892_v37 = vpop.xlane.xlu0 %9891 }
0x107e   : > { %v9001_v46 = vpop.xlane.xlu1 %9000  ;;  %v17093_v39 = vmul.f32 0.35355338, %v9892_v37 }
0x107f   : > { %v17087_v52 = vmul.f32 0.35355338, %v9001_v46  ;;  %v8235_v1 = vsel %vm2059_vm3, %v8206_v40, %v8202_v28 }
0x1080   : > { %v8259_v57 = vsel %vm2076_vm4, %v8235_v1, -inf  ;;  %v9982_v11 = vrot.slane %v17093_v39, %v18877_v50 }
0x1081   : > { %v9090_v4 = vrot.slane %v17087_v52, %v18877_v50  ;;  %8260 = vmax.xlane.f32.xlu1 %v8259_v57  ;;  %v8089_v60 = vpop.xlane.xlu0 %8088 }
0x1082   : > { %v9889_v47 = vpop.xlane.xlu1 %9888  ;;  %v17103_v25 = vmul.f32 0.35355338, %v8089_v60 }
0x1083   : > { %v17097_v38 = vmul.f32 0.35355338, %v9889_v47  ;;  %v9123_v0 = vsel %vm2059_vm3, %v9094_v23, %v9090_v4 }
0x1084   : > { %v9147_v34 = vsel %vm2076_vm4, %v9123_v0, -inf  ;;  %v8170_v57 = vrot.slane %v17103_v25, %v18877_v50 }
0x1085   : > { %v9978_v41 = vrot.slane %v17097_v38, %v18877_v50  ;;  %9148 = vmax.xlane.f32.xlu1 %v9147_v34  ;;  %v8122_v40 = vpop.xlane.xlu0 %8121 }
0x1086   : > { %v8092_v28 = vpop.xlane.xlu1 %8091  ;;  %v17113_v23 = vmul.f32 0.35355338, %v8122_v40 }
0x1087   : > { %v17107_v37 = vmul.f32 0.35355338, %v8092_v28  ;;  %v10011_v46 = vsel %vm2059_vm3, %v9982_v11, %v9978_v41 }
0x1088   : > { %v10035_v1 = vsel %vm2076_vm4, %v10011_v46, -inf  ;;  %v8214_v11 = vrot.slane %v17113_v23, %v18877_v50 }
0x1089   : > { %v8174_v4 = vrot.slane %v17107_v37, %v18877_v50  ;;  %10036 = vmax.xlane.f32.xlu1 %v10035_v1  ;;  %v8128_v60 = vpop.xlane.xlu0 %8127 }
0x108a   : > { %v8119_v47 = vpop.xlane.xlu1 %8118  ;;  %v17123_v41 = vmul.f32 0.35355338, %v8128_v60 }
0x108b   : > { %v17117_v0 = vmul.f32 0.35355338, %v8119_v47  ;;  %v8231_v34 = vsel %vm2059_vm3, %v8174_v4, %v8170_v57 }
0x108c   : > { %v8247_v28 = vsel %vm2076_vm4, %v8231_v34, -inf  ;;  %v8222_v57 = vrot.slane %v17123_v41, %v18877_v50 }
0x108d   : > { %v8210_v40 = vrot.slane %v17117_v0, %v18877_v50  ;;  %8248 = vmax.xlane.f32.xlu1 %v8247_v28  ;;  %v8980_v46 = vpop.xlane.xlu0 %8979 }
0x108e   : > { %v8125_v32 = vpop.xlane.xlu1 %8124  ;;  %v17133_v4 = vmul.f32 0.35355338, %v8980_v46 }
0x108f   : > { %v17127_v1 = vmul.f32 0.35355338, %v8125_v32  ;;  %v8236_v47 = vsel %vm2059_vm3, %v8214_v11, %v8210_v40 }
0x1090   : > { %v8262_v17 = vsel %vm2076_vm4, %v8236_v47, -inf  ;;  %v9062_v11 = vrot.slane %v17133_v4, %v18877_v50 }
0x1091   : > { %v8218_v60 = vrot.slane %v17127_v1, %v18877_v50  ;;  %8263 = vmax.xlane.f32.xlu0 %v8262_v17  ;;  %v9010_v34 = vpop.xlane.xlu0 %9009 }
0x1092   : > { %v8977_v19 = vpop.xlane.xlu1 %8976  ;;  %v17143_v40 = vmul.f32 0.35355338, %v9010_v34 }
0x1093   : > { %v17137_v28 = vmul.f32 0.35355338, %v8977_v19  ;;  %v8237_v32 = vsel %vm2059_vm3, %v8222_v57, %v8218_v60 }
0x1094   : > { %v8265_v16 = vsel %vm2076_vm4, %v8237_v32, -inf  ;;  %v9102_v57 = vrot.slane %v17143_v40, %v18877_v50 }
0x1095   : > { %v9058_v46 = vrot.slane %v17137_v28, %v18877_v50  ;;  %8266 = vmax.xlane.f32.xlu1 %v8265_v16  ;;  %v9016_v47 = vpop.xlane.xlu0 %9015 }
0x1096   : > { %v9007_v20 = vpop.xlane.xlu1 %9006  ;;  %v17153_v60 = vmul.f32 0.35355338, %v9016_v47 }
0x1097   : > { %v17147_v17 = vmul.f32 0.35355338, %v9007_v20  ;;  %v9119_v19 = vsel %vm2059_vm3, %v9062_v11, %v9058_v46 }
0x1098   : > { %v9135_v56 = vsel %vm2076_vm4, %v9119_v19, -inf  ;;  %v9110_v11 = vrot.slane %v17153_v60, %v18877_v50 }
0x1099   : > { %v9098_v34 = vrot.slane %v17147_v17, %v18877_v50  ;;  %9136 = vmax.xlane.f32.xlu1 %v9135_v56  ;;  %v9868_v32 = vpop.xlane.xlu0 %9867 }
0x109a   : > { %v9013_v35 = vpop.xlane.xlu1 %9012  ;;  %v17163_v46 = vmul.f32 0.35355338, %v9868_v32 }
0x109b   : > { %v17157_v16 = vmul.f32 0.35355338, %v9013_v35  ;;  %v9124_v20 = vsel %vm2059_vm3, %v9102_v57, %v9098_v34 }
0x109c   : > { %v9150_v14 = vsel %vm2076_vm4, %v9124_v20, -inf  ;;  %v9950_v57 = vrot.slane %v17163_v46, %v18877_v50 }
0x109d   : > { %v9106_v47 = vrot.slane %v17157_v16, %v18877_v50  ;;  %9151 = vmax.xlane.f32.xlu0 %v9150_v14  ;;  %v9898_v19 = vpop.xlane.xlu0 %9897 }
0x109e   : > { %v9865_v29 = vpop.xlane.xlu1 %9864  ;;  %v17173_v34 = vmul.f32 0.35355338, %v9898_v19 }
0x109f   : > { %v17167_v56 = vmul.f32 0.35355338, %v9865_v29  ;;  %v9125_v35 = vsel %vm2059_vm3, %v9110_v11, %v9106_v47 }
0x10a0   : > { %v9153_v24 = vsel %vm2076_vm4, %v9125_v35, -inf  ;;  %v9990_v11 = vrot.slane %v17173_v34, %v18877_v50 }
0x10a1   : > { %v9946_v32 = vrot.slane %v17167_v56, %v18877_v50  ;;  %9154 = vmax.xlane.f32.xlu1 %v9153_v24  ;;  %v9904_v20 = vpop.xlane.xlu0 %9903 }
0x10a2   : > { %v9895_v7 = vpop.xlane.xlu1 %9894  ;;  %v17183_v47 = vmul.f32 0.35355338, %v9904_v20 }
0x10a3   : > { %v17177_v14 = vmul.f32 0.35355338, %v9895_v7  ;;  %v10007_v29 = vsel %vm2059_vm3, %v9950_v57, %v9946_v32 }
0x10a4   : > { %v10023_v61 = vsel %vm2076_vm4, %v10007_v29, -inf  ;;  %v9998_v32 = vrot.slane %v17183_v47, %v18877_v50 }
0x10a5   : > { %v9986_v19 = vrot.slane %v17177_v14, %v18877_v50  ;;  %10024 = vmax.xlane.f32.xlu1 %v10023_v61  ;;  %v8095_v35 = vpop.xlane.xlu0 %8094 }
0x10a6   : > { %v9901_v10 = vpop.xlane.xlu1 %9900  ;;  %v17190_v30 = vmul.f32 0.35355338, %v8095_v35 }
0x10a7   : > { %v17187_v24 = vmul.f32 0.35355338, %v9901_v10  ;;  %v10012_v7 = vsel %vm2059_vm3, %v9990_v11, %v9986_v19 }
0x10a8   : > { %v10038_v57 = vsel %vm2076_vm4, %v10012_v7, -inf  ;;  %v8178_v11 = vrot.slane %v17190_v30, %v18877_v50 }
0x10a9   : > { %v9994_v20 = vrot.slane %v17187_v24, %v18877_v50  ;;  %10039 = vmax.xlane.f32.xlu0 %v10038_v57  ;;  %v8098_v29 = vpop.xlane.xlu0 %8097 }
0x10aa   : > { %v17197_v53 = vmul.f32 0.35355338, %v8098_v29  ;;  %v8101_v61 = vpop.xlane.xlu1 %8100 }
0x10ab   : > { %v10013_v10 = vsel %vm2059_vm3, %v9998_v32, %v9994_v20  ;;  %v17204_v35 = vmul.f32 0.35355338, %v8101_v61 }
0x10ac   : > { %v8182_v19 = vrot.slane %v17197_v53, %v18877_v50  ;;  %v10041_v7 = vsel %vm2076_vm4, %v10013_v10, -inf }
0x10ad   : > { %10042 = vmax.xlane.f32.xlu1 %v10041_v7  ;;  %v8104_v2 = vpop.xlane.xlu0 %8103  ;;  %v8186_v32 = vrot.slane %v17204_v35, %v18877_v50 }
0x10ae   : > { %v17207_v51 = vmul.f32 0.35355338, %v8104_v2  ;;  %v8131_v57 = vpop.xlane.xlu1 %8130  ;;  %v8232_v29 = vsel %vm2059_vm3, %v8182_v19, %v8178_v11 }
0x10af   : > { %v8250_v3 = vsel %vm2076_vm4, %v8232_v29, -inf  ;;  %v17215_v15 = vmul.f32 0.35355338, %v8131_v57 }
0x10b0   : > { %v8190_v20 = vrot.slane %v17207_v51, %v18877_v50  ;;  %8251 = vmax.xlane.f32.xlu0 %v8250_v3 }
0x10b1   : > { %19001 = vst [vmem:[#allocation91_spill] sm:$0xff] %v17215_v15  ;;  %v8134_v61 = vpop.xlane.xlu0 %8133  ;;  %v8226_v11 = vrot.slane %v17215_v15, %v18877_v50 }
0x10b2   : > { %v17217_v10 = vmul.f32 0.35355338, %v8134_v61  ;;  %v8983_v7 = vpop.xlane.xlu1 %8982  ;;  %v8233_v2 = vsel %vm2059_vm3, %v8190_v20, %v8186_v32 }
0x10b3   : > { %v8253_v33 = vsel %vm2076_vm4, %v8233_v2, -inf  ;;  %v17225_v29 = vmul.f32 0.35355338, %v8983_v7 }
0x10b4   : > { %19002 = vst [vmem:[#allocation94_spill] sm:$0xff] %v17217_v10  ;;  %v8230_v19 = vrot.slane %v17217_v10, %v18877_v50  ;;  %8254 = vmax.xlane.f32.xlu1 %v8253_v33 }
0x10b5   : > { %19003 = vst [vmem:[#allocation93_spill] sm:$0xff] %v17225_v29  ;;  %v8986_v57 = vpop.xlane.xlu0 %8985  ;;  %v9066_v32 = vrot.slane %v17225_v29, %v18877_v50 }
0x10b6   : > { %v17227_v21 = vmul.f32 0.35355338, %v8986_v57  ;;  %v8989_v3 = vpop.xlane.xlu1 %8988  ;;  %v8238_v61 = vsel %vm2059_vm3, %v8230_v19, %v8226_v11 }
0x10b7   : > { %v8268_v49 = vsel %vm2076_vm4, %v8238_v61, -inf  ;;  %v17235_v2 = vmul.f32 0.35355338, %v8989_v3 }
0x10b8   : > { %19004 = vst [vmem:[#allocation95_spill] sm:$0xff] %v17227_v21  ;;  %v9070_v20 = vrot.slane %v17227_v21, %v18877_v50  ;;  %8269 = vmax.xlane.f32.xlu0 %v8268_v49 }
0x10b9   : > { %19005 = vst [vmem:[#allocation96_spill] sm:$0xff] %v17235_v2  ;;  %v8992_v7 = vpop.xlane.xlu0 %8991  ;;  %v9074_v11 = vrot.slane %v17235_v2, %v18877_v50 }
0x10ba   : > { %v17237_v43 = vmul.f32 0.35355338, %v8992_v7  ;;  %v9019_v33 = vpop.xlane.xlu1 %9018  ;;  %v9120_v57 = vsel %vm2059_vm3, %v9070_v20, %v9066_v32 }
0x10bb   : > { %v9138_v31 = vsel %vm2076_vm4, %v9120_v57, -inf  ;;  %v17245_v61 = vmul.f32 0.35355338, %v9019_v33 }
0x10bc   : > { %19006 = vst [vmem:[#allocation97_spill] sm:$0xff] %v17237_v43  ;;  %v9078_v19 = vrot.slane %v17237_v43, %v18877_v50  ;;  %9139 = vmax.xlane.f32.xlu0 %v9138_v31 }
0x10bd   : > { %19007 = vst [vmem:[#allocation98_spill] sm:$0xff] %v17245_v61  ;;  %v9022_v3 = vpop.xlane.xlu0 %9021  ;;  %v9114_v32 = vrot.slane %v17245_v61, %v18877_v50 }
0x10be   : > { %v17247_v21 = vmul.f32 0.35355338, %v9022_v3  ;;  %v9871_v49 = vpop.xlane.xlu1 %9870  ;;  %v9121_v7 = vsel %vm2059_vm3, %v9078_v19, %v9074_v11 }
0x10bf   : > { %v9141_v29 = vsel %vm2076_vm4, %v9121_v7, -inf  ;;  %v17255_v57 = vmul.f32 0.35355338, %v9871_v49 }
0x10c0   : > { %19008 = vst [vmem:[#allocation104_spill] sm:$0xff] %v17247_v21  ;;  %v9118_v20 = vrot.slane %v17247_v21, %v18877_v50  ;;  %9142 = vmax.xlane.f32.xlu1 %v9141_v29 }
0x10c1   : > { %19009 = vst [vmem:[#allocation99_spill] sm:$0xff] %v17255_v57  ;;  %v9874_v33 = vpop.xlane.xlu0 %9873  ;;  %v9954_v11 = vrot.slane %v17255_v57, %v18877_v50 }
0x10c2   : > { %v17257_v43 = vmul.f32 0.35355338, %v9874_v33  ;;  %v9877_v31 = vpop.xlane.xlu1 %9876  ;;  %v9126_v3 = vsel %vm2059_vm3, %v9118_v20, %v9114_v32 }
0x10c3   : > { %v9156_v2 = vsel %vm2076_vm4, %v9126_v3, -inf  ;;  %v17265_v7 = vmul.f32 0.35355338, %v9877_v31 }
0x10c4   : > { %19010 = vst [vmem:[#allocation100_spill] sm:$0xff] %v17257_v43  ;;  %v9958_v19 = vrot.slane %v17257_v43, %v18877_v50  ;;  %9157 = vmax.xlane.f32.xlu0 %v9156_v2 }
0x10c5   : > { %19011 = vst [vmem:[#allocation106_spill] sm:$0xff] %v17265_v7  ;;  %v9880_v49 = vpop.xlane.xlu0 %9879  ;;  %v9962_v32 = vrot.slane %v17265_v7, %v18877_v50 }
0x10c6   : > { %v17267_v21 = vmul.f32 0.35355338, %v9880_v49  ;;  %v9907_v29 = vpop.xlane.xlu1 %9906  ;;  %v10008_v33 = vsel %vm2059_vm3, %v9958_v19, %v9954_v11 }
0x10c7   : > { %v10026_v61 = vsel %vm2076_vm4, %v10008_v33, -inf  ;;  %v17275_v3 = vmul.f32 0.35355338, %v9907_v29 }
0x10c8   : > { %19012 = vst [vmem:[#allocation101_spill] sm:$0xff] %v17267_v21  ;;  %v9966_v20 = vrot.slane %v17267_v21, %v18877_v50  ;;  %10027 = vmax.xlane.f32.xlu0 %v10026_v61 }
0x10c9   : > { %19013 = vst [vmem:[#allocation102_spill] sm:$0xff] %v17275_v3  ;;  %v9910_v31 = vpop.xlane.xlu0 %9909  ;;  %v10002_v11 = vrot.slane %v17275_v3, %v18877_v50 }
0x10ca   : > { %v17277_v43 = vmul.f32 0.35355338, %v9910_v31  ;;  %v8107_v2 = vpop.xlane.xlu1 %8106  ;;  %v10009_v49 = vsel %vm2059_vm3, %v9966_v20, %v9962_v32 }
0x10cb   : > { %v10029_v57 = vsel %vm2076_vm4, %v10009_v49, -inf  ;;  %v17285_v33 = vmul.f32 0.35355338, %v8107_v2 }
0x10cc   : > { %19014 = vst [vmem:[#allocation108_spill] sm:$0xff] %v17277_v43  ;;  %v10006_v19 = vrot.slane %v17277_v43, %v18877_v50  ;;  %10030 = vmax.xlane.f32.xlu1 %v10029_v57 }
0x10cd   : > { %19015 = vst [vmem:[#allocation105_spill] sm:$0xff] %v17285_v33  ;;  %v8110_v29 = vpop.xlane.xlu0 %8109  ;;  %v8194_v32 = vrot.slane %v17285_v33, %v18877_v50 }
0x10ce   : > { %v17287_v21 = vmul.f32 0.35355338, %v8110_v29  ;;  %v8995_v61 = vpop.xlane.xlu1 %8994  ;;  %v10014_v31 = vsel %vm2059_vm3, %v10006_v19, %v10002_v11 }
0x10cf   : > { %v10044_v7 = vsel %vm2076_vm4, %v10014_v31, -inf  ;;  %v17295_v49 = vmul.f32 0.35355338, %v8995_v61 }
0x10d0   : > { %19016 = vst [vmem:[#allocation103_spill] sm:$0xff] %v17287_v21  ;;  %v8198_v20 = vrot.slane %v17287_v21, %v18877_v50  ;;  %10045 = vmax.xlane.f32.xlu0 %v10044_v7 }
0x10d1   : > { %19017 = vst [vmem:[#allocation107_spill] sm:$0xff] %v17295_v49  ;;  %v8998_v2 = vpop.xlane.xlu0 %8997  ;;  %v9082_v11 = vrot.slane %v17295_v49, %v18877_v50 }
0x10d2   : > { %v17297_v43 = vmul.f32 0.35355338, %v8998_v2  ;;  %v9883_v57 = vpop.xlane.xlu1 %9882  ;;  %v8234_v29 = vsel %vm2059_vm3, %v8198_v20, %v8194_v32 }
0x10d3   : > { %v8256_v3 = vsel %vm2076_vm4, %v8234_v29, -inf  ;;  %v17305_v31 = vmul.f32 0.35355338, %v9883_v57 }
0x10d4   : > { %19018 = vst [vmem:[#allocation109_spill] sm:$0xff] %v17297_v43  ;;  %v9086_v19 = vrot.slane %v17297_v43, %v18877_v50  ;;  %8257 = vmax.xlane.f32.xlu0 %v8256_v3 }
0x10d5   : > { %19019 = vst [vmem:[#allocation73_spill] sm:$0xff] %v17305_v31  ;;  %v9886_v61 = vpop.xlane.xlu0 %9885  ;;  %v9970_v20 = vrot.slane %v17305_v31, %v18877_v50 }
0x10d6   : > { %v17307_v21 = vmul.f32 0.35355338, %v9886_v61  ;;  %v7357_v7 = vpop.xlane.xlu1 %7356  ;;  %v9122_v2 = vsel %vm2059_vm3, %v9086_v19, %v9082_v11 }
0x10d7   : > { %v7414_v33 = vrot.slane %v7357_v7, %v15443_v18  ;;  %v9144_v32 = vsel %vm2076_vm4, %v9122_v2, -inf  ;;  %v7410_v57 = vrot.slane %v7357_v7, %v14729_v48 }
0x10d8   : > { %19020 = vst [vmem:[#allocation70_spill] sm:$0xff] %v17307_v21  ;;  %v9974_v29 = vrot.slane %v17307_v21, %v18877_v50  ;;  %9145 = vmax.xlane.f32.xlu0 %v9144_v32 }
0x10d9   : > { %v7464_v3 = vsub.f32 %v16987_v42, %v7414_v33  ;;  %v7360_v61 = vpop.xlane.xlu0 %7359  ;;  %v7463_v31 = vsub.f32 %v16984_v45, %v7410_v57 }
0x10da   : > { %v7345_v43 = vpop.xlane.xlu1 %7344  ;;  %v10010_v49 = vsel %vm2059_vm3, %v9974_v29, %v9970_v20  ;;  %v7422_v19 = vrot.slane %v7360_v61, %v15443_v18  ;;  %v7418_v21 = vrot.slane %v7360_v61, %v14729_v48 }
0x10db   : > { %v7489_v11 = vmul.f32 1.442695, %v7464_v3  ;;  %v7382_v2 = vrot.slane %v7345_v43, %v15443_v18  ;;  %v10032_v10 = vsel %vm2076_vm4, %v10010_v49, -inf  ;;  %v7378_v50 = vrot.slane %v7345_v43, %v14729_v48 }
0x10dc   : > { %10033 = vmax.xlane.f32.xlu0 %v10032_v10  ;;  %v7466_v33 = vsub.f32 %v17000_v44, %v7422_v19  ;;  %v7487_v3 = vmul.f32 1.442695, %v7463_v31  ;;  %v7465_v10 = vsub.f32 %v16991_v62, %v7418_v21 }
0x10dd   : > { %v7456_v32 = vsub.f32 %v17005_v26, %v7382_v2  ;;  %13351 = vpow2.f32 %v7489_v11  ;;  %v7348_v20 = vpop.xlane.xlu0 %7347  ;;  %v7455_v49 = vsub.f32 %v16997_v9, %v7378_v50 }
0x10de   : > { %v7363_v42 = vpop.xlane.xlu1 %7362  ;;  %v7493_v15 = vmul.f32 1.442695, %v7466_v33  ;;  %v7390_v43 = vrot.slane %v7348_v20, %v15443_v18  ;;  %v7491_v9 = vmul.f32 1.442695, %v7465_v10  ;;  %v7386_v19 = vrot.slane %v7348_v20, %v14729_v48 }
0x10df   : > { %v7473_v7 = vmul.f32 1.442695, %v7456_v32  ;;  %v7430_v29 = vrot.slane %v7363_v42, %v15443_v18  ;;  %v7471_v44 = vmul.f32 1.442695, %v7455_v49  ;;  %v7426_v57 = vrot.slane %v7363_v42, %v14729_v48 }
0x10e0   : > { %v7458_v31 = vsub.f32 %v17021_v6, %v7390_v43  ;;  %v7457_v62 = vsub.f32 %v17010_v54, %v7386_v19 }
0x10e1   : > { %13353 = vpow2.f32 %v7473_v7  ;;  %v7468_v45 = vsub.f32 %v17026_v27, %v7430_v29  ;;  %v7366_v50 = vpop.xlane.xlu0 %7365  ;;  %v7467_v27 = vsub.f32 %v17016_v22, %v7426_v57 }
0x10e2   : > { %v7351_v26 = vpop.xlane.xlu1 %7350  ;;  %13355 = vpow2.f32 %v7487_v3  ;;  %v7477_v32 = vmul.f32 1.442695, %v7458_v31  ;;  %v7438_v21 = vrot.slane %v7366_v50, %v15443_v18  ;;  %v7475_v20 = vmul.f32 1.442695, %v7457_v62 }
0x10e3   : > { %13357 = vpow2.f32 %v7493_v15  ;;  %v7497_v11 = vmul.f32 1.442695, %v7468_v45  ;;  %v7398_v61 = vrot.slane %v7351_v26, %v15443_v18  ;;  %v7495_v6 = vmul.f32 1.442695, %v7467_v27 }
0x10e4   : > { %13359 = vpow2.f32 %v7471_v44  ;;  %v7394_v42 = vrot.slane %v7351_v26, %v14729_v48  ;;  %v7470_v33 = vsub.f32 %v17042_v55, %v7438_v21  ;;  %v7434_v29 = vrot.slane %v7366_v50, %v14729_v48 }
0x10e5   : > { %13361 = vpow2.f32 %v7497_v11  ;;  %v7460_v15 = vsub.f32 %v17047_v5, %v7398_v61 }
0x10e6   : > { %13363 = vpow2.f32 %v7491_v9  ;;  %v7459_v5 = vsub.f32 %v17037_v59, %v7394_v42  ;;  %v7501_v54 = vmul.f32 1.442695, %v7470_v33  ;;  %v7469_v55 = vsub.f32 %v17031_v63, %v7434_v29 }
0x10e7   : > { %13365 = vpow2.f32 %v7477_v32  ;;  %v7481_v22 = vmul.f32 1.442695, %v7460_v15 }
0x10e8   : > { %13367 = vpow2.f32 %v7495_v6  ;;  %v7479_v43 = vmul.f32 1.442695, %v7459_v5  ;;  %v7499_v26 = vmul.f32 1.442695, %v7469_v55 }
0x10e9   : > { %13369 = vpow2.f32 %v7481_v22 }
0x10ea   : > { %v17337_v2 = vpop.eup %13351  ;;  %13371 = vpow2.f32 %v7475_v20 }
0x10eb   : > { %19021 = vst [vmem:[#allocation71_spill] sm:$0xff] %v17337_v2  ;;  %7547 = vperm.xlu1 %13085, %v17337_v2   ;;  %13373 = vpow2.f32 %v7501_v54  ;;  %v19056_v2 = vld [vmem:[#allocation109_spill] sm:$0xff] }
0x10ec   : > { %13375 = vpow2.f32 %v7479_v43 }
0x10ed   : > { %13377 = vpow2.f32 %v7499_v26 }
0x10ee   : > { %v17345_v7 = vpop.eup %13353 }
0x10ef   : > { %7523 = vperm.xlu1 %13085, %v17345_v7   ;;  %v17350_v3 = vpop.eup %13355 }
0x10f0   : > { %v17353_v49 = vpop.eup %13357 }
0x10f1   : > { %19022 = vst [vmem:[#allocation72_spill] sm:$0xff] %v17353_v49  ;;  %v17357_v45 = vpop.eup %13359 }
0x10f2   : > { %7544 = vperm.xlu0 %13084, %v17350_v3   ;;  %v17360_v59 = vpop.eup %13361 }
0x10f3   : > { %7553 = vperm.xlu1 %13085, %v17353_v49   ;;  %19023 = vst [vmem:[#allocation74_spill] sm:$0xff] %v17360_v59  ;;  %v17363_v10 = vpop.eup %13363 }
0x10f4   : > { %19024 = vst [vmem:[#allocation75_spill] sm:$0xff] %v17363_v10  ;;  %v17366_v44 = vpop.eup %13365 }
0x10f5   : > { %v17369_v63 = vpop.eup %13367 }
0x10f6   : > { %7520 = vperm.xlu0 %13084, %v17357_v45   ;;  %19025 = vst [vmem:[#allocation76_spill] sm:$0xff] %v17369_v63  ;;  %v17372_v57 = vpop.eup %13369 }
0x10f7   : > { %7559 = vperm.xlu1 %13085, %v17360_v59   ;;  %v17375_v31 = vpop.eup %13371 }
0x10f8   : > { %v17378_v11 = vpop.eup %13373 }
0x10f9   : > { %19026 = vst [vmem:[#allocation77_spill] sm:$0xff] %v17378_v11  ;;  %v17381_v61 = vpop.eup %13375 }
0x10fa   : > { %7550 = vperm.xlu0 %13084, %v17363_v10   ;;  %v17388_v21 = vpop.eup %13377 }
0x10fb   : > { %7529 = vperm.xlu1 %13085, %v17366_v44   ;;  %19027 = vst [vmem:[#allocation67_spill] sm:$0xff] %v17388_v21 }
0x10fe   : > { %7556 = vperm.xlu0 %13084, %v17369_v63  }
0x10ff   : > { %7535 = vperm.xlu1 %13085, %v17372_v57  }
0x1102   : > { %7526 = vperm.xlu0 %13084, %v17375_v31  }
0x1103   : > { %7565 = vperm.xlu1 %13085, %v17378_v11  }
0x1106   : > { %v7354_v50 = vpop.xlane.xlu0 %7353  ;;  %7532 = vperm.xlu0 %13084, %v17381_v61  }
0x1107   : > { %v7402_v9 = vrot.slane %v7354_v50, %v14729_v48  ;;  %v7406_v19 = vrot.slane %v7354_v50, %v15443_v18 }
0x1109   : > { %v7461_v27 = vsub.f32 %v17069_v12, %v7402_v9  ;;  %v7462_v32 = vsub.f32 %v17067_v13, %v7406_v19 }
0x110a   : > { %v8261_v15 = vpop.xlane.xlu1 %8260  ;;  %7562 = vperm.xlu0 %13084, %v17388_v21  }
0x110b   : > { %v7483_v62 = vmul.f32 1.442695, %v7461_v27  ;;  %v7485_v6 = vmul.f32 1.442695, %v7462_v32  ;;  %v8314_v42 = vrot.slane %v8261_v15, %v14729_v48  ;;  %v8318_v33 = vrot.slane %v8261_v15, %v15443_v18 }
0x110d   : > { %13379 = vpow2.f32 %v7483_v62  ;;  %v8367_v22 = vsub.f32 %v17077_v36, %v8314_v42  ;;  %v8368_v20 = vsub.f32 %v17073_v58, %v8318_v33 }
0x110e   : > { %13381 = vpow2.f32 %v7485_v6  ;;  %v9149_v12 = vpop.xlane.xlu1 %9148 }
0x110f   : > { %v8391_v29 = vmul.f32 1.442695, %v8367_v22  ;;  %v8393_v13 = vmul.f32 1.442695, %v8368_v20  ;;  %v9202_v5 = vrot.slane %v9149_v12, %v14729_v48  ;;  %v9206_v54 = vrot.slane %v9149_v12, %v15443_v18 }
0x1111   : > { %13383 = vpow2.f32 %v8391_v29  ;;  %v9255_v55 = vsub.f32 %v17087_v52, %v9202_v5  ;;  %v9256_v43 = vsub.f32 %v17083_v8, %v9206_v54 }
0x1112   : > { %13385 = vpow2.f32 %v8393_v13  ;;  %v10037_v26 = vpop.xlane.xlu1 %10036 }
0x1113   : > { %v9279_v50 = vmul.f32 1.442695, %v9255_v55  ;;  %v9281_v9 = vmul.f32 1.442695, %v9256_v43  ;;  %v10090_v36 = vrot.slane %v10037_v26, %v14729_v48  ;;  %v10094_v58 = vrot.slane %v10037_v26, %v15443_v18 }
0x1115   : > { %13387 = vpow2.f32 %v9279_v50  ;;  %v10143_v19 = vsub.f32 %v17097_v38, %v10090_v36  ;;  %v10144_v27 = vsub.f32 %v17093_v39, %v10094_v58 }
0x1116   : > { %13389 = vpow2.f32 %v9281_v9  ;;  %v8249_v32 = vpop.xlane.xlu1 %8248 }
0x1117   : > { %v10167_v15 = vmul.f32 1.442695, %v10143_v19  ;;  %v10169_v62 = vmul.f32 1.442695, %v10144_v27  ;;  %v8282_v52 = vrot.slane %v8249_v32, %v14729_v48  ;;  %v8286_v8 = vrot.slane %v8249_v32, %v15443_v18 }
0x1119   : > { %13391 = vpow2.f32 %v10167_v15  ;;  %v8359_v6 = vsub.f32 %v17103_v25, %v8282_v52  ;;  %v8360_v42 = vsub.f32 %v17107_v37, %v8286_v8 }
0x111a   : > { %v17407_v33 = vpop.eup %13379  ;;  %13393 = vpow2.f32 %v10169_v62  ;;  %v8264_v22 = vpop.xlane.xlu0 %8263 }
0x111b   : > { %v17409_v38 = vpop.eup %13381  ;;  %v8375_v39 = vmul.f32 1.442695, %v8359_v6  ;;  %v8377_v20 = vmul.f32 1.442695, %v8360_v42  ;;  %v8322_v12 = vrot.slane %v8264_v22, %v14729_v48  ;;  %v8326_v29 = vrot.slane %v8264_v22, %v15443_v18  ;;  %7538 = vperm.xlu0 %13084, %v17407_v33  }
0x111c   : > { %7541 = vperm.xlu1 %13085, %v17409_v38  }
0x111d   : > { %13395 = vpow2.f32 %v8375_v39  ;;  %v8369_v25 = vsub.f32 %v17117_v0, %v8322_v12  ;;  %v8370_v37 = vsub.f32 %v17113_v23, %v8326_v29 }
0x111e   : > { %v17417_v13 = vpop.eup %13383  ;;  %13397 = vpow2.f32 %v8377_v20  ;;  %v8267_v5 = vpop.xlane.xlu1 %8266 }
0x111f   : > { %v17419_v54 = vpop.eup %13385  ;;  %v8395_v55 = vmul.f32 1.442695, %v8369_v25  ;;  %v8397_v43 = vmul.f32 1.442695, %v8370_v37  ;;  %v8330_v26 = vrot.slane %v8267_v5, %v14729_v48  ;;  %v8334_v50 = vrot.slane %v8267_v5, %v15443_v18  ;;  %8448 = vperm.xlu0 %13084, %v17417_v13  }
0x1120   : > { %8451 = vperm.xlu1 %13085, %v17419_v54  }
0x1121   : > { %13399 = vpow2.f32 %v8395_v55  ;;  %v8371_v0 = vsub.f32 %v17127_v1, %v8330_v26  ;;  %v8372_v23 = vsub.f32 %v17123_v41, %v8334_v50 }
0x1122   : > { %v17427_v9 = vpop.eup %13387  ;;  %13401 = vpow2.f32 %v8397_v43  ;;  %v9137_v36 = vpop.xlane.xlu1 %9136 }
0x1123   : > { %v17429_v58 = vpop.eup %13389  ;;  %v8399_v19 = vmul.f32 1.442695, %v8371_v0  ;;  %v8401_v27 = vmul.f32 1.442695, %v8372_v23  ;;  %v9170_v32 = vrot.slane %v9137_v36, %v14729_v48  ;;  %v9174_v15 = vrot.slane %v9137_v36, %v15443_v18  ;;  %9336 = vperm.xlu0 %13084, %v17427_v9  }
0x1124   : > { %9339 = vperm.xlu1 %13085, %v17429_v58  }
0x1125   : > { %13403 = vpow2.f32 %v8399_v19  ;;  %v9247_v1 = vsub.f32 %v17137_v28, %v9170_v32  ;;  %v9248_v41 = vsub.f32 %v17133_v4, %v9174_v15 }
0x1126   : > { %v17437_v62 = vpop.eup %13391  ;;  %13405 = vpow2.f32 %v8401_v27  ;;  %v9152_v52 = vpop.xlane.xlu0 %9151 }
0x1127   : > { %v17439_v8 = vpop.eup %13393  ;;  %v9263_v6 = vmul.f32 1.442695, %v9247_v1  ;;  %v9265_v42 = vmul.f32 1.442695, %v9248_v41  ;;  %v9210_v22 = vrot.slane %v9152_v52, %v14729_v48  ;;  %v9214_v39 = vrot.slane %v9152_v52, %v15443_v18  ;;  %10224 = vperm.xlu0 %13084, %v17437_v62  }
0x1128   : > { %10227 = vperm.xlu1 %13085, %v17439_v8  }
0x1129   : > { %13407 = vpow2.f32 %v9263_v6  ;;  %v9257_v28 = vsub.f32 %v17147_v17, %v9210_v22  ;;  %v9258_v4 = vsub.f32 %v17143_v40, %v9214_v39 }
0x112a   : > { %v17447_v20 = vpop.eup %13395  ;;  %13409 = vpow2.f32 %v9265_v42  ;;  %v9155_v12 = vpop.xlane.xlu1 %9154 }
0x112b   : > { %v17449_v29 = vpop.eup %13397  ;;  %v9283_v25 = vmul.f32 1.442695, %v9257_v28  ;;  %v9285_v37 = vmul.f32 1.442695, %v9258_v4  ;;  %v9218_v5 = vrot.slane %v9155_v12, %v14729_v48  ;;  %v9222_v55 = vrot.slane %v9155_v12, %v15443_v18 }
0x112c   : > { %8424 = vperm.xlu1 %13085, %v17447_v20   ;;  %8427 = vperm.xlu0 %13084, %v17449_v29  }
0x112d   : > { %13411 = vpow2.f32 %v9283_v25  ;;  %v9259_v17 = vsub.f32 %v17157_v16, %v9218_v5  ;;  %v9260_v40 = vsub.f32 %v17153_v60, %v9222_v55 }
0x112e   : > { %v17457_v43 = vpop.eup %13399  ;;  %13413 = vpow2.f32 %v9285_v37  ;;  %v10025_v26 = vpop.xlane.xlu1 %10024 }
0x112f   : > { %v17459_v50 = vpop.eup %13401  ;;  %v9287_v0 = vmul.f32 1.442695, %v9259_v17  ;;  %v9289_v23 = vmul.f32 1.442695, %v9260_v40  ;;  %v10058_v36 = vrot.slane %v10025_v26, %v14729_v48  ;;  %v10062_v19 = vrot.slane %v10025_v26, %v15443_v18 }
0x1130   : > { %8457 = vperm.xlu1 %13085, %v17459_v50   ;;  %8454 = vperm.xlu0 %13084, %v17457_v43  }
0x1131   : > { %13415 = vpow2.f32 %v9287_v0  ;;  %v10135_v16 = vsub.f32 %v17167_v56, %v10058_v36  ;;  %v10136_v60 = vsub.f32 %v17163_v46, %v10062_v19 }
0x1132   : > { %v17467_v27 = vpop.eup %13403  ;;  %13417 = vpow2.f32 %v9289_v23  ;;  %v10040_v32 = vpop.xlane.xlu0 %10039 }
0x1133   : > { %v17469_v15 = vpop.eup %13405  ;;  %v10151_v1 = vmul.f32 1.442695, %v10135_v16  ;;  %v10153_v41 = vmul.f32 1.442695, %v10136_v60  ;;  %v10098_v52 = vrot.slane %v10040_v32, %v14729_v48  ;;  %v10102_v6 = vrot.slane %v10040_v32, %v15443_v18 }
0x1134   : > { %8463 = vperm.xlu1 %13085, %v17469_v15   ;;  %8460 = vperm.xlu0 %13084, %v17467_v27  }
0x1135   : > { %13419 = vpow2.f32 %v10151_v1  ;;  %v10145_v56 = vsub.f32 %v17177_v14, %v10098_v52  ;;  %v10146_v46 = vsub.f32 %v17173_v34, %v10102_v6 }
0x1136   : > { %v17477_v42 = vpop.eup %13407  ;;  %13421 = vpow2.f32 %v10153_v41  ;;  %v10043_v22 = vpop.xlane.xlu1 %10042 }
0x1137   : > { %v17479_v39 = vpop.eup %13409  ;;  %v10171_v28 = vmul.f32 1.442695, %v10145_v56  ;;  %v10173_v4 = vmul.f32 1.442695, %v10146_v46  ;;  %v10106_v12 = vrot.slane %v10043_v22, %v14729_v48  ;;  %v10110_v25 = vrot.slane %v10043_v22, %v15443_v18 }
0x1138   : > { %9315 = vperm.xlu1 %13085, %v17479_v39   ;;  %9312 = vperm.xlu0 %13084, %v17477_v42  }
0x1139   : > { %13423 = vpow2.f32 %v10171_v28  ;;  %v10147_v14 = vsub.f32 %v17187_v24, %v10106_v12  ;;  %v10148_v34 = vsub.f32 %v17183_v47, %v10110_v25  ;;  %v8252_v37 = vpop.xlane.xlu0 %8251  ;;  %v19028_v28 = vld [vmem:[#allocation91_spill] sm:$0xff] }
0x113a   : > { %v17487_v5 = vpop.eup %13411  ;;  %13425 = vpow2.f32 %v10173_v4  ;;  %v8290_v55 = vrot.slane %v8252_v37, %v14729_v48  ;;  %v8294_v17 = vrot.slane %v8252_v37, %v15443_v18 }
0x113b   : > { %v17491_v40 = vpop.eup %13413  ;;  %v10175_v26 = vmul.f32 1.442695, %v10147_v14  ;;  %v10177_v0 = vmul.f32 1.442695, %v10148_v34 }
0x113c   : > { %v8361_v23 = vsub.f32 %v17190_v30, %v8290_v55  ;;  %9345 = vperm.xlu1 %13085, %v17491_v40   ;;  %9342 = vperm.xlu0 %13084, %v17487_v5   ;;  %v8362_v36 = vsub.f32 %v17197_v53, %v8294_v17 }
0x113d   : > { %13427 = vpow2.f32 %v10175_v26  ;;  %v8255_v47 = vpop.xlane.xlu1 %8254  ;;  %v19030_v26 = vld [vmem:[#allocation93_spill] sm:$0xff] }
0x113e   : > { %v17496_v24 = vpop.eup %13415  ;;  %13429 = vpow2.f32 %v10177_v0  ;;  %v8379_v19 = vmul.f32 1.442695, %v8361_v23  ;;  %v8298_v16 = vrot.slane %v8255_v47, %v14729_v48  ;;  %v8302_v32 = vrot.slane %v8255_v47, %v15443_v18 }
0x113f   : > { %v17500_v60 = vpop.eup %13417  ;;  %v8381_v53 = vmul.f32 1.442695, %v8362_v36 }
0x1140   : > { %13431 = vpow2.f32 %v8379_v19  ;;  %v8363_v30 = vsub.f32 %v17204_v35, %v8298_v16  ;;  %9351 = vperm.xlu1 %13085, %v17500_v60   ;;  %9348 = vperm.xlu0 %13084, %v17496_v24   ;;  %v8364_v1 = vsub.f32 %v17207_v51, %v8302_v32  ;;  %v19029_v51 = vld [vmem:[#allocation94_spill] sm:$0xff]  ;;  %v19031_v19 = vld [vmem:[#allocation95_spill] sm:$0xff] }
0x1141   : > { %v8270_v41 = vpop.xlane.xlu0 %8269 }
0x1142   : > { %v17507_v52 = vpop.eup %13419  ;;  %v8383_v6 = vmul.f32 1.442695, %v8363_v30  ;;  %v8338_v56 = vrot.slane %v8270_v41, %v14729_v48  ;;  %v8342_v46 = vrot.slane %v8270_v41, %v15443_v18  ;;  %v8385_v4 = vmul.f32 1.442695, %v8364_v1 }
0x1143   : > { %v17511_v22 = vpop.eup %13421 }
0x1144   : > { %13433 = vpow2.f32 %v8383_v6  ;;  %v8373_v35 = vsub.f32 %v19028_v28, %v8338_v56  ;;  %10203 = vperm.xlu1 %13085, %v17511_v22   ;;  %10200 = vperm.xlu0 %13084, %v17507_v52   ;;  %v8374_v12 = vsub.f32 %v19029_v51, %v8342_v46  ;;  %v19033_v46 = vld [vmem:[#allocation97_spill] sm:$0xff] }
0x1145   : > { %v9140_v25 = vpop.xlane.xlu0 %9139  ;;  %13435 = vpow2.f32 %v8381_v53  ;;  %v19032_v53 = vld [vmem:[#allocation96_spill] sm:$0xff] }
0x1146   : > { %v17517_v14 = vpop.eup %13423  ;;  %v8403_v34 = vmul.f32 1.442695, %v8373_v35  ;;  %v9178_v37 = vrot.slane %v9140_v25, %v14729_v48  ;;  %v9182_v55 = vrot.slane %v9140_v25, %v15443_v18  ;;  %v8405_v23 = vmul.f32 1.442695, %v8374_v12 }
0x1147   : > { %v17521_v17 = vpop.eup %13425 }
0x1148   : > { %13437 = vpow2.f32 %v8403_v34  ;;  %v9249_v0 = vsub.f32 %v19030_v26, %v9178_v37  ;;  %10233 = vperm.xlu1 %13085, %v17521_v17   ;;  %10230 = vperm.xlu0 %13084, %v17517_v14   ;;  %v9250_v16 = vsub.f32 %v19031_v19, %v9182_v55  ;;  %v19034_v34 = vld [vmem:[#allocation98_spill] sm:$0xff] }
0x1149   : > { %13439 = vpow2.f32 %v8385_v4  ;;  %v9143_v47 = vpop.xlane.xlu1 %9142 }
0x114a   : > { %v17526_v36 = vpop.eup %13427  ;;  %v9267_v32 = vmul.f32 1.442695, %v9249_v0  ;;  %v9186_v30 = vrot.slane %v9143_v47, %v14729_v48  ;;  %v9190_v1 = vrot.slane %v9143_v47, %v15443_v18  ;;  %v9269_v4 = vmul.f32 1.442695, %v9250_v16  ;;  %v19035_v0 = vld [vmem:[#allocation104_spill] sm:$0xff] }
0x114b   : > { %v17531_v41 = vpop.eup %13429 }
0x114c   : > { %13441 = vpow2.f32 %v9267_v32  ;;  %v9251_v6 = vsub.f32 %v19032_v53, %v9186_v30  ;;  %10239 = vperm.xlu1 %13085, %v17531_v41   ;;  %10236 = vperm.xlu0 %13084, %v17526_v36   ;;  %v9252_v28 = vsub.f32 %v19033_v46, %v9190_v1  ;;  %v19037_v1 = vld [vmem:[#allocation99_spill] sm:$0xff] }
0x114d   : > { %v17536_v56 = vpop.eup %13431  ;;  %13443 = vpow2.f32 %v8405_v23  ;;  %v9158_v35 = vpop.xlane.xlu0 %9157 }
0x114e   : > { %v9271_v51 = vmul.f32 1.442695, %v9251_v6  ;;  %v9226_v12 = vrot.slane %v9158_v35, %v14729_v48  ;;  %v9230_v25 = vrot.slane %v9158_v35, %v15443_v18  ;;  %v9273_v26 = vmul.f32 1.442695, %v9252_v28 }
0x1150   : > { %13445 = vpow2.f32 %v9271_v51  ;;  %v9261_v37 = vsub.f32 %v19034_v34, %v9226_v12  ;;  %8430 = vperm.xlu1 %13085, %v17536_v56   ;;  %v9262_v47 = vsub.f32 %v19035_v0, %v9230_v25 }
0x1151   : > { %v17543_v55 = vpop.eup %13433  ;;  %v10028_v23 = vpop.xlane.xlu0 %10027  ;;  %13447 = vpow2.f32 %v9269_v4  ;;  %v19040_v4 = vld [vmem:[#allocation100_spill] sm:$0xff] }
0x1152   : > { %v9291_v19 = vmul.f32 1.442695, %v9261_v37  ;;  %v10066_v16 = vrot.slane %v10028_v23, %v14729_v48  ;;  %v10070_v32 = vrot.slane %v10028_v23, %v15443_v18  ;;  %8436 = vperm.xlu0 %13084, %v17543_v55   ;;  %v17549_v30 = vpop.eup %13435  ;;  %v9293_v46 = vmul.f32 1.442695, %v9262_v47  ;;  %v19041_v37 = vld [vmem:[#allocation106_spill] sm:$0xff] }
0x1153   : > { %19036 = vst [vmem:[#allocation69_spill] sm:$0xff] %v17549_v30 }
0x1154   : > { %13449 = vpow2.f32 %v9291_v19  ;;  %v10137_v53 = vsub.f32 %v19037_v1, %v10066_v16  ;;  %8433 = vperm.xlu1 %13085, %v17549_v30   ;;  %v10138_v51 = vsub.f32 %v19040_v4, %v10070_v32  ;;  %v19045_v4 = vld [vmem:[#allocation102_spill] sm:$0xff] }
0x1155   : > { %v17553_v6 = vpop.eup %13437  ;;  %13451 = vpow2.f32 %v9273_v26  ;;  %v10031_v28 = vpop.xlane.xlu1 %10030  ;;  %v19043_v26 = vld [vmem:[#allocation101_spill] sm:$0xff] }
0x1156   : > { %19038 = vst [vmem:[#allocation91_spill] sm:$0xff] %v17553_v6  ;;  %v17555_v35 = vpop.eup %13439  ;;  %v10155_v12 = vmul.f32 1.442695, %v10137_v53  ;;  %v10074_v25 = vrot.slane %v10031_v28, %v14729_v48  ;;  %v10078_v34 = vrot.slane %v10031_v28, %v15443_v18  ;;  %8466 = vperm.xlu0 %13084, %v17553_v6   ;;  %v10157_v32 = vmul.f32 1.442695, %v10138_v51 }
0x1157   : > { %19039 = vst [vmem:[#allocation94_spill] sm:$0xff] %v17555_v35 }
0x1158   : > { %13453 = vpow2.f32 %v10155_v12  ;;  %v10139_v0 = vsub.f32 %v19041_v37, %v10074_v25  ;;  %8439 = vperm.xlu1 %13085, %v17555_v35   ;;  %v10140_v47 = vsub.f32 %v19043_v26, %v10078_v34  ;;  %v19047_v34 = vld [vmem:[#allocation108_spill] sm:$0xff] }
0x1159   : > { %v17563_v23 = vpop.eup %13441  ;;  %13455 = vpow2.f32 %v9293_v46  ;;  %v10046_v19 = vpop.xlane.xlu0 %10045 }
0x115a   : > { %19042 = vst [vmem:[#allocation93_spill] sm:$0xff] %v17563_v23  ;;  %v17566_v16 = vpop.eup %13443  ;;  %v10159_v1 = vmul.f32 1.442695, %v10139_v0  ;;  %v10114_v53 = vrot.slane %v10046_v19, %v14729_v48  ;;  %v10118_v28 = vrot.slane %v10046_v19, %v15443_v18  ;;  %9318 = vperm.xlu0 %13084, %v17563_v23   ;;  %v10161_v46 = vmul.f32 1.442695, %v10140_v47 }
0x115b   : > { %19044 = vst [vmem:[#allocation95_spill] sm:$0xff] %v17566_v16 }
0x115c   : > { %13457 = vpow2.f32 %v10159_v1  ;;  %v10149_v12 = vsub.f32 %v19045_v4, %v10114_v53  ;;  %8469 = vperm.xlu1 %13085, %v17566_v16   ;;  %v10150_v37 = vsub.f32 %v19047_v34, %v10118_v28  ;;  %v19049_v1 = vld [vmem:[#allocation105_spill] sm:$0xff] }
0x115d   : > { %v17573_v25 = vpop.eup %13445  ;;  %v8258_v26 = vpop.xlane.xlu0 %8257  ;;  %13459 = vpow2.f32 %v10157_v32 }
0x115e   : > { %19046 = vst [vmem:[#allocation96_spill] sm:$0xff] %v17573_v25  ;;  %v10179_v51 = vmul.f32 1.442695, %v10149_v12  ;;  %v8306_v0 = vrot.slane %v8258_v26, %v14729_v48  ;;  %v8310_v11 = vrot.slane %v8258_v26, %v15443_v18  ;;  %9324 = vperm.xlu0 %13084, %v17573_v25   ;;  %v17579_v19 = vpop.eup %13447  ;;  %v10181_v47 = vmul.f32 1.442695, %v10150_v37  ;;  %v19052_v12 = vld [vmem:[#allocation103_spill] sm:$0xff] }
0x115f   : > { %19048 = vst [vmem:[#allocation97_spill] sm:$0xff] %v17579_v19 }
0x1160   : > { %13461 = vpow2.f32 %v10179_v51  ;;  %v8365_v53 = vsub.f32 %v19049_v1, %v8306_v0  ;;  %9321 = vperm.xlu1 %13085, %v17579_v19   ;;  %v8366_v34 = vsub.f32 %v19052_v12, %v8310_v11  ;;  %v19053_v51 = vld [vmem:[#allocation107_spill] sm:$0xff] }
0x1161   : > { %v17583_v4 = vpop.eup %13449  ;;  %13463 = vpow2.f32 %v10161_v46  ;;  %v9146_v28 = vpop.xlane.xlu0 %9145 }
0x1162   : > { %19050 = vst [vmem:[#allocation98_spill] sm:$0xff] %v17583_v4  ;;  %v17585_v32 = vpop.eup %13451  ;;  %v8387_v59 = vmul.f32 1.442695, %v8365_v53  ;;  %v9194_v26 = vrot.slane %v9146_v28, %v14729_v48  ;;  %v9198_v49 = vrot.slane %v9146_v28, %v15443_v18  ;;  %9354 = vperm.xlu0 %13084, %v17583_v4   ;;  %v8389_v37 = vmul.f32 1.442695, %v8366_v34  ;;  %v19059_v34 = vld [vmem:[#allocation70_spill] sm:$0xff] }
0x1163   : > { %19051 = vst [vmem:[#allocation104_spill] sm:$0xff] %v17585_v32 }
0x1164   : > { %13465 = vpow2.f32 %v8387_v59  ;;  %v9253_v0 = vsub.f32 %v19053_v51, %v9194_v26  ;;  %9327 = vperm.xlu1 %13085, %v17585_v32   ;;  %v9254_v11 = vsub.f32 %v19056_v2, %v9198_v49  ;;  %v19058_v51 = vld [vmem:[#allocation73_spill] sm:$0xff] }
0x1165   : > { %v17593_v1 = vpop.eup %13453  ;;  %13467 = vpow2.f32 %v10181_v47  ;;  %v10034_v12 = vpop.xlane.xlu0 %10033 }
0x1166   : > { %19054 = vst [vmem:[#allocation99_spill] sm:$0xff] %v17593_v1  ;;  %v17595_v46 = vpop.eup %13455  ;;  %v9275_v53 = vmul.f32 1.442695, %v9253_v0  ;;  %10206 = vperm.xlu0 %13084, %v17593_v1   ;;  %v10082_v28 = vrot.slane %v10034_v12, %v14729_v48  ;;  %v10086_v59 = vrot.slane %v10034_v12, %v15443_v18  ;;  %v9277_v47 = vmul.f32 1.442695, %v9254_v11 }
0x1167   : > { %19055 = vst [vmem:[#allocation100_spill] sm:$0xff] %v17595_v46 }
0x1168   : > { %13469 = vpow2.f32 %v9275_v53  ;;  %9357 = vperm.xlu1 %13085, %v17595_v46   ;;  %v10141_v21 = vsub.f32 %v19058_v51, %v10082_v28  ;;  %v10142_v63 = vsub.f32 %v19059_v34, %v10086_v59  ;;  %v19070_v46 = vld [vmem:[#allocation110_spill] sm:$0xff] }
0x1169   : > { %v17602_v26 = vpop.eup %13457  ;;  %13471 = vpow2.f32 %v8389_v37  ;;  %v7548_v37 = vpop.permute.xlu1 %7547 }
0x116a   : > { %19057 = vst [vmem:[#allocation106_spill] sm:$0xff] %v17602_v26  ;;  %10212 = vperm.xlu0 %13084, %v17602_v26   ;;  %v17607_v2 = vpop.eup %13459  ;;  %v10163_v49 = vmul.f32 1.442695, %v10141_v21  ;;  %v10165_v12 = vmul.f32 1.442695, %v10142_v63 }
0x116b   : > { %19060 = vst [vmem:[#allocation101_spill] sm:$0xff] %v17607_v2 }
0x116c   : > { %10209 = vperm.xlu1 %13085, %v17607_v2   ;;  %13473 = vpow2.f32 %v10163_v49 }
0x116d   : > { %v17610_v0 = vpop.eup %13461  ;;  %13475 = vpow2.f32 %v9277_v47  ;;  %v7545_v10 = vpop.permute.xlu0 %7544 }
0x116e   : > { %19061 = vst [vmem:[#allocation102_spill] sm:$0xff] %v17610_v0  ;;  %v17612_v53 = vpop.eup %13463  ;;  %10242 = vperm.xlu0 %13084, %v17610_v0   ;;  %13477 = vpow2.f32 %v10165_v12  ;;  %v7524_v51 = vpop.permute.xlu1 %7523  ;;  %v7602_v6 = vrot.slane %v7545_v10, %v19070_v46 }
0x116f   : > { %19062 = vst [vmem:[#allocation108_spill] sm:$0xff] %v17612_v53 }
0x1170   : > { %10215 = vperm.xlu1 %13085, %v17612_v53  }
0x1171   : > { %v17616_v11 = vpop.eup %13465  ;;  %v7521_v28 = vpop.permute.xlu0 %7520 }
0x1172   : > { %19063 = vst [vmem:[#allocation105_spill] sm:$0xff] %v17616_v11  ;;  %8442 = vperm.xlu0 %13084, %v17616_v11   ;;  %v17619_v21 = vpop.eup %13467  ;;  %v7554_v12 = vpop.permute.xlu1 %7553 }
0x1173   : > { %19064 = vst [vmem:[#allocation103_spill] sm:$0xff] %v17619_v21  ;;  %v7614_v19 = vrot.slane %v7554_v12, %v19070_v46 }
0x1174   : > { %10245 = vperm.xlu1 %13085, %v17619_v21  }
0x1175   : > { %v17622_v59 = vpop.eup %13469  ;;  %v7551_v34 = vpop.permute.xlu0 %7550 }
0x1176   : > { %19065 = vst [vmem:[#allocation107_spill] sm:$0xff] %v17622_v59  ;;  %9330 = vperm.xlu0 %13084, %v17622_v59   ;;  %v17625_v63 = vpop.eup %13471  ;;  %v7560_v59 = vpop.permute.xlu1 %7559  ;;  %v7610_v26 = vrot.slane %v7551_v34, %v19070_v46 }
0x1177   : > { %19066 = vst [vmem:[#allocation109_spill] sm:$0xff] %v17625_v63 }
0x1178   : > { %8445 = vperm.xlu1 %13085, %v17625_v63  }
0x1179   : > { %v17628_v47 = vpop.eup %13473  ;;  %v7557_v53 = vpop.permute.xlu0 %7556 }
0x117a   : > { %19067 = vst [vmem:[#allocation73_spill] sm:$0xff] %v17628_v47  ;;  %v17630_v49 = vpop.eup %13475  ;;  %10218 = vperm.xlu0 %13084, %v17628_v47   ;;  %v7530_v2 = vpop.permute.xlu1 %7529 }
0x117b   : > { %19068 = vst [vmem:[#allocation70_spill] sm:$0xff] %v17630_v49  ;;  %v17634_v21 = vpop.eup %13477  ;;  %v7582_v25 = vrot.slane %v7530_v2, %v19070_v46 }
0x117c   : > { %9333 = vperm.xlu1 %13085, %v17630_v49   ;;  %19069 = vst [vmem:[#allocation141_spill] sm:$0xff] %v17634_v21  ;;  %v7636_v49 = vsel %vm2059_vm3, %v7614_v19, %v7610_v26  ;;  %v7606_v19 = vrot.slane %v7548_v37, %v19070_v46 }
0x117d   : > { %v7527_v11 = vpop.permute.xlu0 %7526 }
0x117e   : > { %v7536_v63 = vpop.permute.xlu1 %7535  ;;  %v7578_v47 = vrot.slane %v7527_v11, %v19070_v46 }
0x1180   : > { %10221 = vperm.xlu1 %13085, %v17634_v21   ;;  %v7662_v21 = vsel %vm2076_vm4, %v7636_v49, 0.0  ;;  %v7632_v34 = vsel %vm2059_vm3, %v7582_v25, %v7578_v47  ;;  %v7570_v25 = vrot.slane %v7521_v28, %v19070_v46  ;;  %v7635_v47 = vsel %vm2059_vm3, %v7606_v19, %v7602_v6 }
0x1181   : > { %v7533_v0 = vpop.permute.xlu0 %7532  ;;  %v7650_v11 = vsel %vm2076_vm4, %v7632_v34, 0.0  ;;  %v7622_v6 = vrot.slane %v7560_v59, %v19070_v46 }
0x1182   : > { %v7566_v1 = vpop.permute.xlu1 %7565 }
0x1183   : > { %v7630_v12 = vrot.slane %v7566_v1, %v19070_v46  ;;  %v7574_v1 = vrot.slane %v7524_v51, %v19070_v46 }
0x1185   : > { %v7563_v32 = vpop.permute.xlu0 %7562 }
0x1186   : > { %v7626_v35 = vrot.slane %v7563_v32, %v19070_v46 }
0x1188   : > { %v7638_v32 = vsel %vm2059_vm3, %v7630_v12, %v7626_v35  ;;  %v7631_v35 = vsel %vm2059_vm3, %v7574_v1, %v7570_v25  ;;  %v7586_v12 = vrot.slane %v7533_v0, %v19070_v46  ;;  %v7590_v25 = vrot.slane %v7536_v63, %v19070_v46 }
0x1189   : > { %v7668_v10 = vsel %vm2076_vm4, %v7638_v32, 0.0  ;;  %v7647_v32 = vsel %vm2076_vm4, %v7631_v35, 0.0 }
0x1196   : > { %v7539_v4 = vpop.permute.xlu0 %7538 }
0x1197   : > { %v7542_v16 = vpop.permute.xlu1 %7541  ;;  %v7594_v2 = vrot.slane %v7539_v4, %v19070_v46  ;;  %v7659_v4 = vsel %vm2076_vm4, %v7635_v47, 0.0 }
0x1198   : > { %v7598_v26 = vrot.slane %v7542_v16, %v19070_v46 }
0x1199   : > { %7663 = vadd.xlane.f32.xlu0 %v7662_v21 }
0x119a   : > { %v8449_v23 = vpop.permute.xlu0 %8448  ;;  %v7634_v37 = vsel %vm2059_vm3, %v7598_v26, %v7594_v2 }
0x119b   : > { %v8452_v30 = vpop.permute.xlu1 %8451  ;;  %v7656_v28 = vsel %vm2076_vm4, %v7634_v37, 0.0  ;;  %v8506_v59 = vrot.slane %v8449_v23, %v19070_v46 }
0x119c   : > { %v8510_v35 = vrot.slane %v8452_v30, %v19070_v46 }
0x119d   : > { %7651 = vadd.xlane.f32.xlu0 %v7650_v11  ;;  %v7618_v11 = vrot.slane %v7557_v53, %v19070_v46 }
0x119e   : > { %v9337_v49 = vpop.permute.xlu0 %9336  ;;  %v8539_v30 = vsel %vm2059_vm3, %v8510_v35, %v8506_v59 }
0x119f   : > { %v9340_v21 = vpop.permute.xlu1 %9339  ;;  %v7637_v53 = vsel %vm2059_vm3, %v7622_v6, %v7618_v11 }
0x11a0   : > { %v7665_v0 = vsel %vm2076_vm4, %v7637_v53, 0.0 }
0x11a1   : > { %7669 = vadd.xlane.f32.xlu0 %v7668_v10 }
0x11a2   : > { %v10225_v34 = vpop.permute.xlu0 %10224 }
0x11a3   : > { %v10228_v16 = vpop.permute.xlu1 %10227 }
0x11a4   : > { %7660 = vadd.xlane.f32.xlu1 %v7659_v4  ;;  %v7633_v4 = vsel %vm2059_vm3, %v7590_v25, %v7586_v12  ;;  %v9394_v12 = vrot.slane %v9337_v49, %v19070_v46 }
0x11a5   : > { %7657 = vadd.xlane.f32.xlu0 %v7656_v28 }
0x11a7   : > { %v8425_v51 = vpop.permute.xlu1 %8424  ;;  %v8428_v19 = vpop.permute.xlu0 %8427 }
0x11a8   : > { %v8474_v26 = vrot.slane %v8425_v51, %v19070_v46  ;;  %v8478_v2 = vrot.slane %v8428_v19, %v19070_v46  ;;  %7648 = vadd.xlane.f32.xlu1 %v7647_v32  ;;  %v7653_v51 = vsel %vm2076_vm4, %v7633_v4, 0.0  ;;  %v9398_v32 = vrot.slane %v9340_v21, %v19070_v46 }
0x11aa   : > { %v8535_v47 = vsel %vm2059_vm3, %v8478_v2, %v8474_v26  ;;  %v10286_v26 = vrot.slane %v10228_v16, %v19070_v46  ;;  %v10282_v2 = vrot.slane %v10225_v34, %v19070_v46 }
0x11ab   : > { %v8458_v10 = vpop.permute.xlu1 %8457  ;;  %v8455_v1 = vpop.permute.xlu0 %8454  ;;  %v8551_v37 = vsel %vm2076_vm4, %v8535_v47, 0.0  ;;  %v8563_v47 = vsel %vm2076_vm4, %v8539_v30, 0.0 }
0x11ac   : > { %v8518_v28 = vrot.slane %v8458_v10, %v19070_v46  ;;  %v8514_v11 = vrot.slane %v8455_v1, %v19070_v46  ;;  %7666 = vadd.xlane.f32.xlu1 %v7665_v0  ;;  %8552 = vadd.xlane.f32.xlu0 %v8551_v37  ;;  %v9427_v10 = vsel %vm2059_vm3, %v9398_v32, %v9394_v12 }
0x11ad   : > { %v9451_v21 = vsel %vm2076_vm4, %v9427_v10, 0.0  ;;  %v10315_v49 = vsel %vm2059_vm3, %v10286_v26, %v10282_v2 }
0x11ae   : > { %v8540_v63 = vsel %vm2059_vm3, %v8518_v28, %v8514_v11  ;;  %v10339_v11 = vsel %vm2076_vm4, %v10315_v49, 0.0 }
0x11af   : > { %v8464_v6 = vpop.permute.xlu1 %8463  ;;  %v8461_v23 = vpop.permute.xlu0 %8460  ;;  %v8566_v19 = vsel %vm2076_vm4, %v8540_v63, 0.0 }
0x11b0   : > { %7654 = vadd.xlane.f32.xlu1 %v7653_v51  ;;  %8567 = vadd.xlane.f32.xlu0 %v8566_v19  ;;  %v8526_v37 = vrot.slane %v8464_v6, %v19070_v46  ;;  %v8522_v59 = vrot.slane %v8461_v23, %v19070_v46 }
0x11b2   : > { %v8541_v6 = vsel %vm2059_vm3, %v8526_v37, %v8522_v59 }
0x11b3   : > { %v9316_v53 = vpop.permute.xlu1 %9315  ;;  %v9313_v25 = vpop.permute.xlu0 %9312  ;;  %v8569_v26 = vsel %vm2076_vm4, %v8541_v6, 0.0 }
0x11b4   : > { %8564 = vadd.xlane.f32.xlu1 %v8563_v47  ;;  %v9366_v51 = vrot.slane %v9316_v53, %v19070_v46  ;;  %v9362_v19 = vrot.slane %v9313_v25, %v19070_v46 }
0x11b6   : > { %v9423_v2 = vsel %vm2059_vm3, %v9366_v51, %v9362_v19 }
0x11b7   : > { %v9346_v1 = vpop.permute.xlu1 %9345  ;;  %v9343_v0 = vpop.permute.xlu0 %9342  ;;  %v9439_v53 = vsel %vm2076_vm4, %v9423_v2, 0.0 }
0x11b8   : > { %v9406_v16 = vrot.slane %v9346_v1, %v19070_v46  ;;  %v9402_v34 = vrot.slane %v9343_v0, %v19070_v46  ;;  %9452 = vadd.xlane.f32.xlu1 %v9451_v21 }
0x11ba   : > { %v9428_v4 = vsel %vm2059_vm3, %v9406_v16, %v9402_v34 }
0x11bb   : > { %v9352_v35 = vpop.permute.xlu1 %9351  ;;  %v9349_v28 = vpop.permute.xlu0 %9348  ;;  %v9454_v63 = vsel %vm2076_vm4, %v9428_v4, 0.0 }
0x11bc   : > { %10340 = vadd.xlane.f32.xlu1 %v10339_v11  ;;  %9455 = vadd.xlane.f32.xlu0 %v9454_v63  ;;  %v9414_v23 = vrot.slane %v9352_v35, %v19070_v46  ;;  %v9410_v32 = vrot.slane %v9349_v28, %v19070_v46 }
0x11be   : > { %v9429_v25 = vsel %vm2059_vm3, %v9414_v23, %v9410_v32 }
0x11bf   : > { %v10204_v12 = vpop.permute.xlu1 %10203  ;;  %v10201_v30 = vpop.permute.xlu0 %10200  ;;  %v9457_v34 = vsel %vm2076_vm4, %v9429_v25, 0.0 }
0x11c0   : > { %8570 = vadd.xlane.f32.xlu1 %v8569_v26  ;;  %v10254_v1 = vrot.slane %v10204_v12, %v19070_v46  ;;  %v10250_v0 = vrot.slane %v10201_v30, %v19070_v46 }
0x11c2   : > { %v10311_v11 = vsel %vm2059_vm3, %v10254_v1, %v10250_v0 }
0x11c3   : > { %v10234_v47 = vpop.permute.xlu1 %10233  ;;  %v10231_v10 = vpop.permute.xlu0 %10230  ;;  %v10327_v51 = vsel %vm2076_vm4, %v10311_v11, 0.0 }
0x11c4   : > { %v10294_v21 = vrot.slane %v10234_v47, %v19070_v46  ;;  %v10290_v49 = vrot.slane %v10231_v10, %v19070_v46  ;;  %9440 = vadd.xlane.f32.xlu1 %v9439_v53 }
0x11c6   : > { %v10316_v37 = vsel %vm2059_vm3, %v10294_v21, %v10290_v49 }
0x11c7   : > { %v10240_v59 = vpop.permute.xlu1 %10239  ;;  %v10237_v16 = vpop.permute.xlu0 %10236  ;;  %v10342_v4 = vsel %vm2076_vm4, %v10316_v37, 0.0 }
0x11c8   : > { %v10302_v35 = vrot.slane %v10240_v59, %v19070_v46  ;;  %v10298_v28 = vrot.slane %v10237_v16, %v19070_v46  ;;  %9458 = vadd.xlane.f32.xlu1 %v9457_v34  ;;  %10343 = vadd.xlane.f32.xlu0 %v10342_v4 }
0x11ca   : > { %v10317_v19 = vsel %vm2059_vm3, %v10302_v35, %v10298_v28 }
0x11cb   : > { %v8431_v63 = vpop.permute.xlu1 %8430  ;;  %v10345_v32 = vsel %vm2076_vm4, %v10317_v19, 0.0 }
0x11cc   : > { %10328 = vadd.xlane.f32.xlu1 %v10327_v51  ;;  %v8482_v12 = vrot.slane %v8431_v63, %v19070_v46 }
0x11cd   : > { %v8437_v6 = vpop.permute.xlu0 %8436 }
0x11ce   : > { %v8490_v53 = vrot.slane %v8437_v6, %v19070_v46 }
0x11cf   : > { %v8434_v23 = vpop.permute.xlu1 %8433 }
0x11d0   : > { %v8486_v30 = vrot.slane %v8434_v23, %v19070_v46  ;;  %10346 = vadd.xlane.f32.xlu1 %v10345_v32 }
0x11d1   : > { %v8467_v26 = vpop.permute.xlu0 %8466 }
0x11d2   : > { %v8536_v2 = vsel %vm2059_vm3, %v8486_v30, %v8482_v12  ;;  %v8530_v37 = vrot.slane %v8467_v26, %v19070_v46 }
0x11d3   : > { %v8440_v47 = vpop.permute.xlu1 %8439  ;;  %v8554_v10 = vsel %vm2076_vm4, %v8536_v2, 0.0 }
0x11d4   : > { %v8494_v25 = vrot.slane %v8440_v47, %v19070_v46  ;;  %8555 = vadd.xlane.f32.xlu1 %v8554_v10 }
0x11d5   : > { %v9319_v1 = vpop.permute.xlu0 %9318 }
0x11d6   : > { %v8537_v0 = vsel %vm2059_vm3, %v8494_v25, %v8490_v53  ;;  %v9370_v28 = vrot.slane %v9319_v1, %v19070_v46 }
0x11d7   : > { %v8470_v21 = vpop.permute.xlu1 %8469  ;;  %v8557_v49 = vsel %vm2076_vm4, %v8537_v0, 0.0 }
0x11d8   : > { %v8534_v59 = vrot.slane %v8470_v21, %v19070_v46  ;;  %8558 = vadd.xlane.f32.xlu0 %v8557_v49 }
0x11d9   : > { %v9325_v16 = vpop.permute.xlu0 %9324 }
0x11da   : > { %v8542_v34 = vsel %vm2059_vm3, %v8534_v59, %v8530_v37  ;;  %v9378_v23 = vrot.slane %v9325_v16, %v19070_v46 }
0x11db   : > { %v9322_v4 = vpop.permute.xlu1 %9321  ;;  %v8572_v35 = vsel %vm2076_vm4, %v8542_v34, 0.0 }
0x11dc   : > { %v9374_v11 = vrot.slane %v9322_v4, %v19070_v46  ;;  %8573 = vadd.xlane.f32.xlu0 %v8572_v35 }
0x11dd   : > { %v9355_v63 = vpop.permute.xlu0 %9354 }
0x11de   : > { %v9424_v51 = vsel %vm2059_vm3, %v9374_v11, %v9370_v28  ;;  %v9418_v47 = vrot.slane %v9355_v63, %v19070_v46 }
0x11df   : > { %v9328_v19 = vpop.permute.xlu1 %9327  ;;  %v9442_v6 = vsel %vm2076_vm4, %v9424_v51, 0.0 }
0x11e0   : > { %v9382_v32 = vrot.slane %v9328_v19, %v19070_v46  ;;  %9443 = vadd.xlane.f32.xlu0 %v9442_v6 }
0x11e1   : > { %v10207_v12 = vpop.permute.xlu0 %10206 }
0x11e2   : > { %v9425_v30 = vsel %vm2059_vm3, %v9382_v32, %v9378_v23  ;;  %v10258_v21 = vrot.slane %v10207_v12, %v19070_v46 }
0x11e3   : > { %v9358_v26 = vpop.permute.xlu1 %9357  ;;  %v9445_v2 = vsel %vm2076_vm4, %v9425_v30, 0.0 }
0x11e4   : > { %v9422_v10 = vrot.slane %v9358_v26, %v19070_v46  ;;  %9446 = vadd.xlane.f32.xlu1 %v9445_v2 }
0x11e5   : > { %v10213_v53 = vpop.permute.xlu0 %10212 }
0x11e6   : > { %v9430_v25 = vsel %vm2059_vm3, %v9422_v10, %v9418_v47  ;;  %v10266_v4 = vrot.slane %v10213_v53, %v19070_v46 }
0x11e7   : > { %v10210_v1 = vpop.permute.xlu1 %10209  ;;  %v9460_v0 = vsel %vm2076_vm4, %v9430_v25, 0.0 }
0x11e8   : > { %v10262_v49 = vrot.slane %v10210_v1, %v19070_v46  ;;  %9461 = vadd.xlane.f32.xlu0 %v9460_v0 }
0x11e9   : > { %v10243_v37 = vpop.permute.xlu0 %10242 }
0x11ea   : > { %v10312_v59 = vsel %vm2059_vm3, %v10262_v49, %v10258_v21  ;;  %v10306_v19 = vrot.slane %v10243_v37, %v19070_v46 }
0x11eb   : > { %v10216_v16 = vpop.permute.xlu1 %10215  ;;  %v10330_v34 = vsel %vm2076_vm4, %v10312_v59, 0.0 }
0x11ec   : > { %v10270_v35 = vrot.slane %v10216_v16, %v19070_v46  ;;  %10331 = vadd.xlane.f32.xlu0 %v10330_v34 }
0x11ed   : > { %v8443_v28 = vpop.permute.xlu0 %8442 }
0x11ee   : > { %v10313_v11 = vsel %vm2059_vm3, %v10270_v35, %v10266_v4  ;;  %v8498_v26 = vrot.slane %v8443_v28, %v19070_v46 }
0x11ef   : > { %v10246_v63 = vpop.permute.xlu1 %10245  ;;  %v10333_v51 = vsel %vm2076_vm4, %v10313_v11, 0.0 }
0x11f0   : > { %v10310_v6 = vrot.slane %v10246_v63, %v19070_v46  ;;  %10334 = vadd.xlane.f32.xlu1 %v10333_v51 }
0x11f1   : > { %v9331_v32 = vpop.permute.xlu0 %9330 }
0x11f2   : > { %v10318_v23 = vsel %vm2059_vm3, %v10310_v6, %v10306_v19  ;;  %v9386_v25 = vrot.slane %v9331_v32, %v19070_v46 }
0x11f3   : > { %v8446_v12 = vpop.permute.xlu1 %8445  ;;  %v10348_v30 = vsel %vm2076_vm4, %v10318_v23, 0.0 }
0x11f4   : > { %v8502_v2 = vrot.slane %v8446_v12, %v19070_v46  ;;  %10349 = vadd.xlane.f32.xlu0 %v10348_v30 }
0x11f5   : > { %v10219_v0 = vpop.permute.xlu0 %10218 }
0x11f6   : > { %v8538_v47 = vsel %vm2059_vm3, %v8502_v2, %v8498_v26  ;;  %v10274_v59 = vrot.slane %v10219_v0, %v19070_v46 }
0x11f7   : > { %v9334_v10 = vpop.permute.xlu1 %9333  ;;  %v8560_v53 = vsel %vm2076_vm4, %v8538_v47, 0.0 }
0x11f8   : > { %v9390_v1 = vrot.slane %v9334_v10, %v19070_v46  ;;  %8561 = vadd.xlane.f32.xlu0 %v8560_v53 }
0x11fa   : > { %v9426_v21 = vsel %vm2059_vm3, %v9390_v1, %v9386_v25 }
0x11fb   : > { %v10222_v49 = vpop.permute.xlu1 %10221  ;;  %v9448_v37 = vsel %vm2076_vm4, %v9426_v21, 0.0 }
0x11fc   : > { %v10278_v16 = vrot.slane %v10222_v49, %v19070_v46  ;;  %9449 = vadd.xlane.f32.xlu0 %v9448_v37 }
0x11fe   : > { %v10314_v34 = vsel %vm2059_vm3, %v10278_v16, %v10274_v59 }
0x11ff   : > { %v10336_v4 = vsel %vm2076_vm4, %v10314_v34, 0.0 }
0x1200   : > { %10337 = vadd.xlane.f32.xlu0 %v10336_v4 }
0x1222   : > { %v17765_v35 = vpop.xlane.xlu0 %7663 }
0x1226   : > { %v7652_v28 = vpop.xlane.xlu0 %7651 }
0x1227   : > { %v7690_v46 = vrot.slane %v7652_v28, %v14729_v48  ;;  %v7694_v32 = vrot.slane %v7652_v28, %v15443_v18 }
0x122a   : > { %v17771_v51 = vpop.xlane.xlu0 %7669 }
0x122d   : > { %v17767_v11 = vpop.xlane.xlu1 %7660 }
0x122e   : > { %v7714_v63 = vrot.slane %v17767_v11, %v14729_v48  ;;  %v7658_v30 = vpop.xlane.xlu0 %7657 }
0x122f   : > { %v7706_v2 = vrot.slane %v7658_v30, %v14729_v48  ;;  %v7710_v53 = vrot.slane %v7658_v30, %v15443_v18 }
0x1230   : > { %13479 = vrcp.f32 %v7714_v63 }
0x1231   : > { %v7649_v19 = vpop.xlane.xlu1 %7648 }
0x1232   : > { %v7682_v6 = vrot.slane %v7649_v19, %v14729_v48  ;;  %v7686_v23 = vrot.slane %v7649_v19, %v15443_v18 }
0x1234   : > { %13481 = vrcp.f32 %v7682_v6 }
0x1235   : > { %13483 = vrcp.f32 %v7686_v23  ;;  %v17777_v12 = vpop.xlane.xlu1 %7666 }
0x1236   : > { %13485 = vrcp.f32 %v7690_v46 }
0x1237   : > { %13487 = vrcp.f32 %v7694_v32 }
0x1239   : > { %v7655_v26 = vpop.xlane.xlu1 %7654 }
0x123a   : > { %v7698_v47 = vrot.slane %v7655_v26, %v14729_v48  ;;  %v7702_v10 = vrot.slane %v7655_v26, %v15443_v18 }
0x123c   : > { %13489 = vrcp.f32 %v7698_v47 }
0x123d   : > { %v13480_v25 = vpop.eup %13479  ;;  %13491 = vrcp.f32 %v7702_v10  ;;  %v8565_v1 = vpop.xlane.xlu1 %8564 }
0x123e   : > { %13493 = vrcp.f32 %v7706_v2  ;;  %v8618_v0 = vrot.slane %v8565_v1, %v14729_v48  ;;  %v7776_v21 = vmul.f32 %v13480_v25, %v17350_v3  ;;  %v8622_v49 = vrot.slane %v8565_v1, %v15443_v18  ;;  %v8553_v3 = vpop.xlane.xlu0 %8552 }
0x123f   : > { %13495 = vrcp.f32 %v7710_v53  ;;  %v8586_v53 = vrot.slane %v8553_v3, %v14729_v48 }
0x1240   : > { %7833 = vperm.xlu0 %13084, %v7776_v21   ;;  %13497 = vrcp.f32 %v8618_v0 }
0x1241   : > { %v13482_v37 = vpop.eup %13481  ;;  %v9453_v59 = vpop.xlane.xlu1 %9452  ;;  %13499 = vrcp.f32 %v8622_v49 }
0x1242   : > { %v13484_v16 = vpop.eup %13483  ;;  %v9506_v34 = vrot.slane %v9453_v59, %v14729_v48  ;;  %v7760_v4 = vmul.f32 %v13482_v37, %v17357_v45  ;;  %v9510_v63 = vrot.slane %v9453_v59, %v15443_v18  ;;  %v8568_v25 = vpop.xlane.xlu0 %8567 }
0x1243   : > { %v13486_v28 = vpop.eup %13485  ;;  %v7762_v19 = vmul.f32 %v13484_v16, %v17345_v7  ;;  %v8590_v7 = vrot.slane %v8553_v3, %v15443_v18 }
0x1244   : > { %v13488_v46 = vpop.eup %13487  ;;  %7793 = vperm.xlu0 %13084, %v7760_v4   ;;  %13501 = vrcp.f32 %v9506_v34  ;;  %v7764_v32 = vmul.f32 %v13486_v28, %v17375_v31 }
0x1245   : > { %7798 = vperm.xlu1 %13085, %v7762_v19   ;;  %v10341_v6 = vpop.xlane.xlu1 %10340  ;;  %13503 = vrcp.f32 %v9510_v63  ;;  %v7766_v45 = vmul.f32 %v13488_v46, %v17366_v44  ;;  %v8626_v44 = vrot.slane %v8568_v25, %v14729_v48 }
0x1246   : > { %v10394_v23 = vrot.slane %v10341_v6, %v14729_v48  ;;  %v10398_v30 = vrot.slane %v10341_v6, %v15443_v18  ;;  %v9456_v3 = vpop.xlane.xlu0 %9455 }
0x1248   : > { %7803 = vperm.xlu0 %13084, %v7764_v32   ;;  %13505 = vrcp.f32 %v10394_v23 }
0x1249   : > { %v13490_v26 = vpop.eup %13489  ;;  %7808 = vperm.xlu1 %13085, %v7766_v45   ;;  %13507 = vrcp.f32 %v10398_v30  ;;  %v8571_v0 = vpop.xlane.xlu1 %8570 }
0x124a   : > { %v13492_v2 = vpop.eup %13491  ;;  %v7768_v47 = vmul.f32 %v13490_v26, %v17381_v61  ;;  %13509 = vrcp.f32 %v8590_v7  ;;  %v8630_v61 = vrot.slane %v8568_v25, %v15443_v18  ;;  %v8638_v4 = vrot.slane %v8571_v0, %v15443_v18 }
0x124b   : > { %v13494_v10 = vpop.eup %13493  ;;  %v7770_v31 = vmul.f32 %v13492_v2, %v17372_v57  ;;  %13511 = vrcp.f32 %v8586_v53  ;;  %v8634_v57 = vrot.slane %v8571_v0, %v14729_v48  ;;  %v9518_v26 = vrot.slane %v9456_v3, %v15443_v18 }
0x124c   : > { %v13496_v1 = vpop.eup %13495  ;;  %7813 = vperm.xlu0 %13084, %v7768_v47   ;;  %v7772_v21 = vmul.f32 %v13494_v10, %v17407_v33  ;;  %13513 = vrcp.f32 %v8626_v44 }
0x124d   : > { %7818 = vperm.xlu1 %13085, %v7770_v31   ;;  %v13498_v49 = vpop.eup %13497  ;;  %v7774_v37 = vmul.f32 %v13496_v1, %v17409_v38  ;;  %13515 = vrcp.f32 %v8630_v61  ;;  %v9441_v28 = vpop.xlane.xlu1 %9440 }
0x124e   : > { %v13500_v59 = vpop.eup %13499  ;;  %v8680_v16 = vmul.f32 %v13498_v49, %v17417_v13  ;;  %13517 = vrcp.f32 %v8634_v57  ;;  %v9474_v38 = vrot.slane %v9441_v28, %v14729_v48  ;;  %v9478_v13 = vrot.slane %v9441_v28, %v15443_v18 }
0x124f   : > { %v8682_v33 = vmul.f32 %v13500_v59, %v17419_v54  ;;  %13519 = vrcp.f32 %v8638_v4  ;;  %v9514_v54 = vrot.slane %v9456_v3, %v14729_v48 }
0x1250   : > { %7823 = vperm.xlu0 %13084, %v7772_v21   ;;  %13521 = vrcp.f32 %v9474_v38 }
0x1251   : > { %7828 = vperm.xlu1 %13085, %v7774_v37   ;;  %v13502_v34 = vpop.eup %13501  ;;  %v9459_v32 = vpop.xlane.xlu1 %9458  ;;  %13523 = vrcp.f32 %v9478_v13 }
0x1252   : > { %v13504_v63 = vpop.eup %13503  ;;  %v9568_v19 = vmul.f32 %v13502_v34, %v17427_v9  ;;  %13525 = vrcp.f32 %v9514_v54  ;;  %v9526_v10 = vrot.slane %v9459_v32, %v15443_v18  ;;  %v10344_v0 = vpop.xlane.xlu0 %10343 }
0x1253   : > { %v9570_v6 = vmul.f32 %v13504_v63, %v17429_v58  ;;  %v9522_v58 = vrot.slane %v9459_v32, %v14729_v48  ;;  %13527 = vrcp.f32 %v9518_v26  ;;  %v10406_v59 = vrot.slane %v10344_v0, %v15443_v18 }
0x1254   : > { %8737 = vperm.xlu0 %13084, %v8680_v16  }
0x1255   : > { %8742 = vperm.xlu1 %13085, %v8682_v33   ;;  %v13506_v46 = vpop.eup %13505  ;;  %v10329_v53 = vpop.xlane.xlu1 %10328  ;;  %13529 = vrcp.f32 %v9522_v58 }
0x1256   : > { %v13508_v23 = vpop.eup %13507  ;;  %v10456_v30 = vmul.f32 %v13506_v46, %v17437_v62  ;;  %13531 = vrcp.f32 %v9526_v10 }
0x1257   : > { %v13510_v45 = vpop.eup %13509  ;;  %v10458_v9 = vmul.f32 %v13508_v23, %v17439_v8  ;;  %v10362_v8 = vrot.slane %v10329_v53, %v14729_v48 }
0x1258   : > { %9625 = vperm.xlu0 %13084, %v9568_v19   ;;  %v13512_v2 = vpop.eup %13511  ;;  %v8666_v7 = vmul.f32 %v13510_v45, %v17449_v29  ;;  %v10366_v29 = vrot.slane %v10329_v53, %v15443_v18 }
0x1259   : > { %9630 = vperm.xlu1 %13085, %v9570_v6   ;;  %v13514_v47 = vpop.eup %13513  ;;  %v8664_v62 = vmul.f32 %v13512_v2, %v17447_v20  ;;  %v10402_v20 = vrot.slane %v10344_v0, %v14729_v48  ;;  %13533 = vrcp.f32 %v10362_v8  ;;  %v10347_v49 = vpop.xlane.xlu1 %10346 }
0x125a   : > { %v13516_v25 = vpop.eup %13515  ;;  %v8684_v31 = vmul.f32 %v13514_v47, %v17457_v43  ;;  %13535 = vrcp.f32 %v10366_v29  ;;  %v10414_v28 = vrot.slane %v10347_v49, %v15443_v18 }
0x125b   : > { %v13518_v1 = vpop.eup %13517  ;;  %v8686_v44 = vmul.f32 %v13516_v25, %v17459_v50  ;;  %13537 = vrcp.f32 %v10402_v20  ;;  %v10410_v50 = vrot.slane %v10347_v49, %v14729_v48 }
0x125c   : > { %10513 = vperm.xlu0 %13084, %v10456_v30   ;;  %v13520_v21 = vpop.eup %13519  ;;  %v8688_v61 = vmul.f32 %v13518_v1, %v17467_v27  ;;  %13539 = vrcp.f32 %v10406_v59 }
0x125d   : > { %10518 = vperm.xlu1 %13085, %v10458_v9   ;;  %v13522_v37 = vpop.eup %13521  ;;  %v8690_v57 = vmul.f32 %v13520_v21, %v17469_v15  ;;  %v8556_v63 = vpop.xlane.xlu1 %8555  ;;  %13541 = vrcp.f32 %v10410_v50 }
0x125e   : > { %v13524_v16 = vpop.eup %13523  ;;  %v9552_v34 = vmul.f32 %v13522_v37, %v17477_v42  ;;  %13543 = vrcp.f32 %v10414_v28  ;;  %v8594_v42 = vrot.slane %v8556_v63, %v14729_v48  ;;  %v8598_v32 = vrot.slane %v8556_v63, %v15443_v18  ;;  %v19071_v37 = vld [vmem:[#allocation91_spill] sm:$0xff]  ;;  %v19074_v63 = vld [vmem:[#allocation94_spill] sm:$0xff] }
0x125f   : > { %v13526_v4 = vpop.eup %13525  ;;  %v9554_v27 = vmul.f32 %v13524_v16, %v17479_v39  ;;  %v19072_v16 = vld [vmem:[#allocation69_spill] sm:$0xff] }
0x1260   : > { %8702 = vperm.xlu0 %13084, %v8666_v7   ;;  %v13528_v33 = vpop.eup %13527  ;;  %v9572_v19 = vmul.f32 %v13526_v4, %v17487_v5  ;;  %v19073_v4 = vld [vmem:[#allocation93_spill] sm:$0xff] }
0x1261   : > { %8697 = vperm.xlu1 %13085, %v8664_v62   ;;  %v8559_v43 = vpop.xlane.xlu0 %8558  ;;  %v9574_v3 = vmul.f32 %v13528_v33, %v17491_v40 }
0x1262   : > { %v8602_v15 = vrot.slane %v8559_v43, %v14729_v48  ;;  %v13530_v46 = vpop.eup %13529  ;;  %v8606_v9 = vrot.slane %v8559_v43, %v15443_v18 }
0x1263   : > { %v13532_v13 = vpop.eup %13531  ;;  %v9576_v6 = vmul.f32 %v13530_v46, %v17496_v24 }
0x1264   : > { %8747 = vperm.xlu0 %13084, %v8684_v31   ;;  %13545 = vrcp.f32 %v8602_v15  ;;  %v9578_v5 = vmul.f32 %v13532_v13, %v17500_v60 }
0x1265   : > { %8752 = vperm.xlu1 %13085, %v8686_v44   ;;  %v8574_v38 = vpop.xlane.xlu0 %8573  ;;  %13547 = vrcp.f32 %v8594_v42  ;;  %v19075_v42 = vld [vmem:[#allocation96_spill] sm:$0xff] }
0x1266   : > { %v8642_v39 = vrot.slane %v8574_v38, %v14729_v48  ;;  %v13534_v23 = vpop.eup %13533 }
0x1267   : > { %v13536_v30 = vpop.eup %13535  ;;  %v10440_v45 = vmul.f32 %v13534_v23, %v17507_v52  ;;  %v8646_v52 = vrot.slane %v8574_v38, %v15443_v18 }
0x1268   : > { %8757 = vperm.xlu0 %13084, %v8688_v61   ;;  %13549 = vrcp.f32 %v8642_v39  ;;  %v13538_v26 = vpop.eup %13537  ;;  %v10442_v58 = vmul.f32 %v13536_v30, %v17511_v22 }
0x1269   : > { %8762 = vperm.xlu1 %13085, %v8690_v57   ;;  %v9444_v54 = vpop.xlane.xlu0 %9443  ;;  %13551 = vrcp.f32 %v8598_v32  ;;  %v13540_v7 = vpop.eup %13539  ;;  %v10460_v47 = vmul.f32 %v13538_v26, %v17517_v14 }
0x126a   : > { %v9482_v40 = vrot.slane %v9444_v54, %v14729_v48  ;;  %v13542_v10 = vpop.eup %13541  ;;  %v10462_v53 = vmul.f32 %v13540_v7, %v17521_v17  ;;  %v9486_v1 = vrot.slane %v9444_v54, %v15443_v18  ;;  %v19079_v7 = vld [vmem:[#allocation99_spill] sm:$0xff] }
0x126b   : > { %v13544_v62 = vpop.eup %13543  ;;  %v10464_v8 = vmul.f32 %v13542_v10, %v17526_v36 }
0x126c   : > { %9585 = vperm.xlu0 %13084, %v9552_v34   ;;  %13553 = vrcp.f32 %v9482_v40  ;;  %v10466_v14 = vmul.f32 %v13544_v62, %v17531_v41 }
0x126d   : > { %9590 = vperm.xlu1 %13085, %v9554_v27   ;;  %v9447_v24 = vpop.xlane.xlu1 %9446  ;;  %13555 = vrcp.f32 %v8606_v9  ;;  %v19078_v9 = vld [vmem:[#allocation97_spill] sm:$0xff] }
0x126e   : > { %v9490_v60 = vrot.slane %v9447_v24, %v14729_v48  ;;  %v9494_v20 = vrot.slane %v9447_v24, %v15443_v18 }
0x1270   : > { %9635 = vperm.xlu0 %13084, %v9572_v19   ;;  %13557 = vrcp.f32 %v9490_v60 }
0x1271   : > { %9640 = vperm.xlu1 %13085, %v9574_v3   ;;  %v9462_v2 = vpop.xlane.xlu0 %9461  ;;  %v13546_v31 = vpop.eup %13545  ;;  %13559 = vrcp.f32 %v8646_v52  ;;  %v19080_v52 = vld [vmem:[#allocation104_spill] sm:$0xff] }
0x1272   : > { %v9530_v22 = vrot.slane %v9462_v2, %v14729_v48  ;;  %v13548_v0 = vpop.eup %13547  ;;  %v8672_v44 = vmul.f32 %v13546_v31, %v17543_v55  ;;  %v9534_v57 = vrot.slane %v9462_v2, %v15443_v18 }
0x1273   : > { %v8668_v49 = vmul.f32 %v13548_v0, %v17536_v56 }
0x1274   : > { %9645 = vperm.xlu0 %13084, %v9576_v6   ;;  %13561 = vrcp.f32 %v9530_v22  ;;  %v19076_v6 = vld [vmem:[#allocation95_spill] sm:$0xff]  ;;  %v19081_v22 = vld [vmem:[#allocation106_spill] sm:$0xff] }
0x1275   : > { %9650 = vperm.xlu1 %13085, %v9578_v5   ;;  %v10332_v25 = vpop.xlane.xlu0 %10331  ;;  %v13550_v21 = vpop.eup %13549  ;;  %13563 = vrcp.f32 %v9486_v1  ;;  %v19077_v5 = vld [vmem:[#allocation98_spill] sm:$0xff] }
0x1276   : > { %v10370_v17 = vrot.slane %v10332_v25, %v14729_v48  ;;  %v13552_v61 = vpop.eup %13551  ;;  %v8692_v59 = vmul.f32 %v13550_v21, %v19071_v37  ;;  %v10374_v33 = vrot.slane %v10332_v25, %v15443_v18  ;;  %v7722_v25 = vrot.slane %v17765_v35, %v14729_v48 }
0x1277   : > { %v8670_v50 = vmul.f32 %v13552_v61, %v19072_v16  ;;  %v7738_v37 = vrot.slane %v17771_v51, %v14729_v48  ;;  %v19086_v16 = vld [vmem:[#allocation108_spill] sm:$0xff] }
0x1278   : > { %10473 = vperm.xlu0 %13084, %v10440_v45   ;;  %13565 = vrcp.f32 %v10370_v17  ;;  %v7730_v17 = vrot.slane %v17777_v12, %v14729_v48 }
0x1279   : > { %10478 = vperm.xlu1 %13085, %v10442_v58   ;;  %v10335_v36 = vpop.xlane.xlu1 %10334  ;;  %v13554_v43 = vpop.eup %13553  ;;  %13567 = vrcp.f32 %v9494_v20 }
0x127a   : > { %v10378_v41 = vrot.slane %v10335_v36, %v14729_v48  ;;  %v13556_v34 = vpop.eup %13555  ;;  %v9556_v28 = vmul.f32 %v13554_v43, %v19073_v4  ;;  %v10382_v39 = vrot.slane %v10335_v36, %v15443_v18 }
0x127b   : > { %v8674_v38 = vmul.f32 %v13556_v34, %v19074_v63 }
0x127c   : > { %10523 = vperm.xlu0 %13084, %v10460_v47   ;;  %13569 = vrcp.f32 %v10378_v41 }
0x127d   : > { %10528 = vperm.xlu1 %13085, %v10462_v53   ;;  %v10350_v29 = vpop.xlane.xlu0 %10349  ;;  %v13558_v27 = vpop.eup %13557  ;;  %13571 = vrcp.f32 %v9534_v57 }
0x127e   : > { %v10418_v56 = vrot.slane %v10350_v29, %v14729_v48  ;;  %v13560_v15 = vpop.eup %13559  ;;  %v9560_v3 = vmul.f32 %v13558_v27, %v19075_v42  ;;  %v10422_v45 = vrot.slane %v10350_v29, %v15443_v18  ;;  %v19088_v27 = vld [vmem:[#allocation103_spill] sm:$0xff] }
0x127f   : > { %v8694_v23 = vmul.f32 %v13560_v15, %v19076_v6  ;;  %v7742_v6 = vrot.slane %v17771_v51, %v15443_v18 }
0x1280   : > { %10533 = vperm.xlu0 %13084, %v10464_v8   ;;  %13573 = vrcp.f32 %v10418_v56  ;;  %v19087_v56 = vld [vmem:[#allocation107_spill] sm:$0xff] }
0x1281   : > { %10538 = vperm.xlu1 %13085, %v10466_v14   ;;  %v8562_v55 = vpop.xlane.xlu0 %8561  ;;  %v13562_v13 = vpop.eup %13561  ;;  %13575 = vrcp.f32 %v10374_v33  ;;  %v19082_v14 = vld [vmem:[#allocation100_spill] sm:$0xff] }
0x1282   : > { %v8610_v46 = vrot.slane %v8562_v55, %v14729_v48  ;;  %v13564_v32 = vpop.eup %13563  ;;  %v9580_v30 = vmul.f32 %v13562_v13, %v19077_v5  ;;  %v8614_v10 = vrot.slane %v8562_v55, %v15443_v18  ;;  %v7718_v55 = vrot.slane %v17767_v11, %v15443_v18  ;;  %v19089_v11 = vld [vmem:[#allocation73_spill] sm:$0xff]  ;;  %v19091_v13 = vld [vmem:[#allocation75_spill] sm:$0xff]  ;;  %v19093_v5 = vld [vmem:[#allocation76_spill] sm:$0xff] }
0x1283   : > { %v9558_v24 = vmul.f32 %v13564_v32, %v19078_v9  ;;  %v19095_v9 = vld [vmem:[#allocation67_spill] sm:$0xff] }
0x1284   : > { %8717 = vperm.xlu0 %13084, %v8672_v44   ;;  %13577 = vrcp.f32 %v8610_v46  ;;  %v19083_v44 = vld [vmem:[#allocation102_spill] sm:$0xff]  ;;  %v19090_v46 = vld [vmem:[#allocation109_spill] sm:$0xff] }
0x1285   : > { %8707 = vperm.xlu1 %13085, %v8668_v49   ;;  %v9450_v19 = vpop.xlane.xlu0 %9449  ;;  %v13566_v40 = vpop.eup %13565  ;;  %13579 = vrcp.f32 %v10382_v39  ;;  %v19084_v49 = vld [vmem:[#allocation101_spill] sm:$0xff] }
0x1286   : > { %v9498_v54 = vrot.slane %v9450_v19, %v14729_v48  ;;  %v13568_v2 = vpop.eup %13567  ;;  %v10444_v60 = vmul.f32 %v13566_v40, %v19079_v7  ;;  %v9502_v1 = vrot.slane %v9450_v19, %v15443_v18  ;;  %v7734_v19 = vrot.slane %v17777_v12, %v15443_v18  ;;  %v19094_v40 = vld [vmem:[#allocation141_spill] sm:$0xff]  ;;  %v19097_v7 = vld [vmem:[#allocation72_spill] sm:$0xff] }
0x1287   : > { %v9562_v53 = vmul.f32 %v13568_v2, %v19080_v52  ;;  %v19096_v2 = vld [vmem:[#allocation71_spill] sm:$0xff] }
0x1288   : > { %8767 = vperm.xlu0 %13084, %v8692_v59   ;;  %13581 = vrcp.f32 %v9498_v54  ;;  %v19085_v59 = vld [vmem:[#allocation105_spill] sm:$0xff] }
0x1289   : > { %8712 = vperm.xlu1 %13085, %v8670_v50   ;;  %v10338_v26 = vpop.xlane.xlu0 %10337  ;;  %v13570_v47 = vpop.eup %13569  ;;  %13583 = vrcp.f32 %v10422_v45 }
0x128a   : > { %v10386_v58 = vrot.slane %v10338_v26, %v14729_v48  ;;  %v13572_v62 = vpop.eup %13571  ;;  %v10448_v8 = vmul.f32 %v13570_v47, %v19081_v22  ;;  %v10390_v36 = vrot.slane %v10338_v26, %v15443_v18  ;;  %v7726_v48 = vrot.slane %v17765_v35, %v15443_v18 }
0x128b   : > { %v9582_v0 = vmul.f32 %v13572_v62, %v19082_v14 }
0x128c   : > { %9595 = vperm.xlu0 %13084, %v9556_v28   ;;  %13585 = vrcp.f32 %v10386_v58 }
0x128d   : > { %8722 = vperm.xlu1 %13085, %v8674_v38   ;;  %v13574_v31 = vpop.eup %13573  ;;  %13587 = vrcp.f32 %v8614_v10  ;;  %v19099_v10 = vld [vmem:[#allocation120_spill] sm:$0xff] }
0x128e   : > { %v13576_v29 = vpop.eup %13575  ;;  %13589 = vrcp.f32 %v7722_v25  ;;  %v10468_v21 = vmul.f32 %v13574_v31, %v19083_v44 }
0x128f   : > { %13591 = vrcp.f32 %v9502_v1  ;;  %v10446_v61 = vmul.f32 %v13576_v29, %v19084_v49  ;;  %v19102_v1 = vld [vmem:[#allocation77_spill] sm:$0xff]  ;;  %v19103_v29 = vld [vmem:[#allocation127_spill] sm:$0xff] }
0x1290   : > { %9605 = vperm.xlu0 %13084, %v9560_v3   ;;  %13593 = vrcp.f32 %v7730_v17 }
0x1291   : > { %8772 = vperm.xlu1 %13085, %v8694_v23   ;;  %v13578_v20 = vpop.eup %13577  ;;  %13595 = vrcp.f32 %v10390_v36  ;;  %v19092_v23 = vld [vmem:[#allocation70_spill] sm:$0xff] }
0x1292   : > { %v13580_v41 = vpop.eup %13579  ;;  %v8676_v43 = vmul.f32 %v13578_v20, %v19085_v59  ;;  %13597 = vrcp.f32 %v7738_v37  ;;  %v19105_v20 = vld [vmem:[#allocation130_spill] sm:$0xff]  ;;  %v19107_v59 = vld [vmem:[#allocation139_spill] sm:$0xff] }
0x1293   : > { %v10450_v50 = vmul.f32 %v13580_v41, %v19086_v16  ;;  %13599 = vrcp.f32 %v7718_v55  ;;  %v19108_v55 = vld [vmem:[#allocation129_spill] sm:$0xff] }
0x1294   : > { %9655 = vperm.xlu0 %13084, %v9580_v30   ;;  %13601 = vrcp.f32 %v7726_v48  ;;  %v19109_v48 = vld [vmem:[#allocation132_spill] sm:$0xff] }
0x1295   : > { %9600 = vperm.xlu1 %13085, %v9558_v24   ;;  %v13582_v57 = vpop.eup %13581  ;;  %13603 = vrcp.f32 %v7734_v19 }
0x1296   : > { %v13584_v34 = vpop.eup %13583  ;;  %v9564_v4 = vmul.f32 %v13582_v57, %v19087_v56  ;;  %13605 = vrcp.f32 %v7742_v6  ;;  %v19111_v6 = vld [vmem:[#allocation140_spill] sm:$0xff] }
0x1297   : > { %v10470_v33 = vmul.f32 %v13584_v34, %v19088_v27 }
0x1298   : > { %10483 = vperm.xlu0 %13084, %v10444_v60  }
0x1299   : > { %9610 = vperm.xlu1 %13085, %v9562_v53   ;;  %v13586_v28 = vpop.eup %13585  ;;  %v19100_v53 = vld [vmem:[#allocation74_spill] sm:$0xff] }
0x129a   : > { %v13588_v63 = vpop.eup %13587  ;;  %v10452_v38 = vmul.f32 %v13586_v28, %v19089_v11  ;;  %v19110_v11 = vld [vmem:[#allocation124_spill] sm:$0xff] }
0x129b   : > { %v13590_v15 = vpop.eup %13589  ;;  %v8678_v42 = vmul.f32 %v13588_v63, %v19090_v46 }
0x129c   : > { %10493 = vperm.xlu0 %13084, %v10448_v8   ;;  %v13592_v3 = vpop.eup %13591  ;;  %v7780_v35 = vmul.f32 %v13590_v15, %v19091_v13  ;;  %v19101_v8 = vld [vmem:[#allocation126_spill] sm:$0xff] }
0x129d   : > { %9660 = vperm.xlu1 %13085, %v9582_v0   ;;  %v13594_v39 = vpop.eup %13593  ;;  %v9566_v32 = vmul.f32 %v13592_v3, %v19092_v23 }
0x129e   : > { %v13596_v54 = vpop.eup %13595  ;;  %v7784_v30 = vmul.f32 %v13594_v39, %v19093_v5 }
0x129f   : > { %v13598_v12 = vpop.eup %13597  ;;  %v10454_v45 = vmul.f32 %v13596_v54, %v19094_v40 }
0x12a0   : > { %10543 = vperm.xlu0 %13084, %v10468_v21   ;;  %v13600_v26 = vpop.eup %13599  ;;  %v7788_v24 = vmul.f32 %v13598_v12, %v19095_v9  ;;  %v19104_v21 = vld [vmem:[#allocation128_spill] sm:$0xff] }
0x12a1   : > { %10488 = vperm.xlu1 %13085, %v10446_v61   ;;  %v7778_v58 = vmul.f32 %v13600_v26, %v19096_v2  ;;  %v13602_v18 = vpop.eup %13601  ;;  %v19106_v61 = vld [vmem:[#allocation125_spill] sm:$0xff] }
0x12a2   : > { %v7782_v60 = vmul.f32 %v13602_v18, %v19097_v7  ;;  %v13604_v47 = vpop.eup %13603 }
0x12a3   : > { %v7786_v62 = vmul.f32 %v13604_v47, %v19100_v53  ;;  %v13606_v25 = vpop.eup %13605  ;;  %v19112_v47 = vld [vmem:[#allocation135_spill] sm:$0xff] }
0x12a4   : > { %8727 = vperm.xlu0 %13084, %v8676_v43   ;;  %v7790_v14 = vmul.f32 %v13606_v25, %v19102_v1 }
0x12a5   : > { %10498 = vperm.xlu1 %13085, %v10450_v50  }
0x12a8   : > { %9615 = vperm.xlu0 %13084, %v9564_v4  }
0x12a9   : > { %10548 = vperm.xlu1 %13085, %v10470_v33  }
0x12ac   : > { %10503 = vperm.xlu0 %13084, %v10452_v38  }
0x12ad   : > { %8732 = vperm.xlu1 %13085, %v8678_v42  }
0x12b0   : > { %7843 = vperm.xlu0 %13084, %v7780_v35  }
0x12b1   : > { %9620 = vperm.xlu1 %13085, %v9566_v32  }
0x12b4   : > { %7853 = vperm.xlu0 %13084, %v7784_v30  }
0x12b5   : > { %10508 = vperm.xlu1 %13085, %v10454_v45  }
0x12b8   : > { %7863 = vperm.xlu0 %13084, %v7788_v24  }
0x12b9   : > { %7838 = vperm.xlu1 %13085, %v7778_v58  }
0x12bb   : > { %v17906_v51 = vpop.permute.xlu0 %7833 }
0x12bc   : > { %7871 = vrot.lane.b32.xlu0 %v19099_v10, %s19098_s15 }
0x12bd   : > { %7848 = vperm.xlu1 %13085, %v7782_v60  }
0x12bf   : > { %v17911_v52 = vpop.permute.xlu0 %7793 }
0x12c0   : > { %v17914_v22 = vpop.permute.xlu1 %7798  ;;  %7875 = vrot.lane.b32.xlu0 %v19101_v8, %s19098_s15 }
0x12c1   : > { %7858 = vperm.xlu1 %13085, %v7786_v62  }
0x12c3   : > { %v17918_v31 = vpop.permute.xlu0 %7803 }
0x12c4   : > { %v17921_v0 = vpop.permute.xlu1 %7808  ;;  %7879 = vrot.lane.b32.xlu0 %v19103_v29, %s19098_s15 }
0x12c5   : > { %7868 = vperm.xlu1 %13085, %v7790_v14  }
0x12c7   : > { %v17925_v17 = vpop.permute.xlu0 %7813 }
0x12c8   : > { %v17927_v44 = vpop.permute.xlu1 %7818  ;;  %7883 = vrot.lane.b32.xlu0 %v19104_v21, %s19098_s15 }
0x12c9   : > { %7873 = vrot.lane.b32.xlu1 %v19105_v20, %s19098_s15 }
0x12cb   : > { %v17933_v36 = vpop.permute.xlu0 %7823 }
0x12cc   : > { %v17935_v49 = vpop.permute.xlu1 %7828 }
0x12cd   : > { %7877 = vrot.lane.b32.xlu1 %v19106_v61, %s19098_s15 }
0x12cf   : > { %v8738_v41 = vpop.permute.xlu0 %8737 }
0x12d0   : > { %v8743_v37 = vpop.permute.xlu1 %8742  ;;  %v8807_v43 = vmul.f32 %v19107_v59, %v8738_v41 }
0x12d1   : > { %v8808_v57 = vmul.f32 %v19107_v59, %v8743_v37  ;;  %7881 = vrot.lane.b32.xlu1 %v19108_v55, %s19098_s15 }
0x12d2   : > { %v8871_v16 = vsel %vm1912_vm2, %v8807_v43, 0.0 }
0x12d3   : > { %v8878_v50 = vsel %vm1912_vm2, %v8808_v57, 0.0  ;;  %v8872_v34 = vrot.slane %v8871_v16, 4  ;;  %v9626_v56 = vpop.permute.xlu0 %9625 }
0x12d4   : > { %v8879_v4 = vrot.slane %v8878_v50, 4  ;;  %v9631_v28 = vpop.permute.xlu1 %9630  ;;  %v9695_v27 = vmul.f32 %v19109_v48, %v9626_v56 }
0x12d5   : > { %v8873_v33 = vadd.f32 %v8872_v34, %v8871_v16  ;;  %v9696_v63 = vmul.f32 %v19109_v48, %v9631_v28  ;;  %7885 = vrot.lane.b32.xlu1 %v19110_v11, %s19098_s15  ;;  %s19151_s15 = sld [smem:[#allocation61_spill]] }
0x12d6   : > { %v8880_v38 = vadd.f32 %v8879_v4, %v8878_v50  ;;  %v9759_v15 = vsel %vm1912_vm2, %v9695_v27, 0.0  ;;  %v19113_v50 = vld [vmem:[#allocation133_spill] sm:$0xff] }
0x12d7   : > { %v8874_v19 = vrot.slane %v8873_v33, 2  ;;  %v9766_v46 = vsel %vm1912_vm2, %v9696_v63, 0.0  ;;  %v9760_v42 = vrot.slane %v9759_v15, 4  ;;  %v10514_v3 = vpop.permute.xlu0 %10513 }
0x12d8   : > { %v8881_v13 = vrot.slane %v8880_v38, 2  ;;  %v9767_v35 = vrot.slane %v9766_v46, 4  ;;  %v10519_v39 = vpop.permute.xlu1 %10518  ;;  %v10583_v23 = vmul.f32 %v19111_v6, %v10514_v3 }
0x12d9   : > { %v8875_v32 = vadd.f32 %v8874_v19, %v8873_v33  ;;  %v9761_v54 = vadd.f32 %v9760_v42, %v9759_v15  ;;  %v10584_v5 = vmul.f32 %v19111_v6, %v10519_v39 }
0x12da   : > { %v8882_v30 = vadd.f32 %v8881_v13, %v8880_v38  ;;  %v9768_v12 = vadd.f32 %v9767_v35, %v9766_v46  ;;  %v10647_v40 = vsel %vm1912_vm2, %v10583_v23, 0.0 }
0x12db   : > { %v8876_v45 = vrot.slane %v8875_v32, 1  ;;  %v9762_v26 = vrot.slane %v9761_v54, 2  ;;  %v10654_v9 = vsel %vm1912_vm2, %v10584_v5, 0.0  ;;  %v10648_v24 = vrot.slane %v10647_v40, 4  ;;  %v8703_v2 = vpop.permute.xlu0 %8702  ;;  %v19115_v5 = vld [vmem:[#allocation131_spill] sm:$0xff] }
0x12dc   : > { %v8883_v58 = vrot.slane %v8882_v30, 1  ;;  %v9769_v18 = vrot.slane %v9768_v12, 2  ;;  %v10655_v7 = vrot.slane %v10654_v9, 4  ;;  %v8698_v60 = vpop.permute.xlu1 %8697  ;;  %v8800_v10 = vmul.f32 %v19112_v47, %v8703_v2 }
0x12dd   : > { %v8877_v53 = vadd.f32 %v8876_v45, %v8875_v32  ;;  %v9763_v62 = vadd.f32 %v9762_v26, %v9761_v54  ;;  %v10649_v25 = vadd.f32 %v10648_v24, %v10647_v40  ;;  %v8799_v8 = vmul.f32 %v19112_v47, %v8698_v60 }
0x12de   : > { %v8884_v1 = vadd.f32 %v8883_v58, %v8882_v30  ;;  %v9770_v14 = vadd.f32 %v9769_v18, %v9768_v12  ;;  %v10656_v29 = vadd.f32 %v10655_v7, %v10654_v9  ;;  %v8822_v21 = vsel %vm1912_vm2, %v8800_v10, 0.0 }
0x12df   : > { %v9764_v20 = vrot.slane %v9763_v62, 1  ;;  %v10650_v61 = vrot.slane %v10649_v25, 2  ;;  %v8815_v41 = vsel %vm1912_vm2, %v8799_v8, 0.0  ;;  %v8823_v37 = vrot.slane %v8822_v21, 4  ;;  %v8748_v59 = vpop.permute.xlu0 %8747 }
0x12e0   : > { %v9771_v43 = vrot.slane %v9770_v14, 1  ;;  %v10657_v57 = vrot.slane %v10656_v29, 2  ;;  %v8816_v55 = vrot.slane %v8815_v41, 4  ;;  %v8753_v16 = vpop.permute.xlu1 %8752  ;;  %v8809_v34 = vmul.f32 %v19113_v50, %v8748_v59 }
0x12e1   : > { %v9765_v56 = vadd.f32 %v9764_v20, %v9763_v62  ;;  %v10651_v4 = vadd.f32 %v10650_v61, %v10649_v25  ;;  %v8824_v28 = vadd.f32 %v8823_v37, %v8822_v21  ;;  %v8810_v48 = vmul.f32 %v19113_v50, %v8753_v16 }
0x12e2   : > { %v9772_v27 = vadd.f32 %v9771_v43, %v9770_v14  ;;  %v10658_v33 = vadd.f32 %v10657_v57, %v10656_v29  ;;  %v8817_v63 = vadd.f32 %v8816_v55, %v8815_v41  ;;  %v8885_v11 = vsel %vm1912_vm2, %v8809_v34, 0.0 }
0x12e3   : > { %v10652_v38 = vrot.slane %v10651_v4, 1  ;;  %v8825_v15 = vrot.slane %v8824_v28, 2  ;;  %v8892_v19 = vsel %vm1912_vm2, %v8810_v48, 0.0  ;;  %v8886_v46 = vrot.slane %v8885_v11, 4  ;;  %v8758_v42 = vpop.permute.xlu0 %8757 }
0x12e4   : > { %v10659_v3 = vrot.slane %v10658_v33, 1  ;;  %v8818_v13 = vrot.slane %v8817_v63, 2  ;;  %v8893_v35 = vrot.slane %v8892_v19, 4  ;;  %v10755_v39 = vsel %vm2059_vm3, %v8884_v1, %v8877_v53  ;;  %v8763_v6 = vpop.permute.xlu1 %8762  ;;  %v19117_v1 = vld [vmem:[#allocation136_spill] sm:$0xff] }
0x12e5   : > { %v10653_v23 = vadd.f32 %v10652_v38, %v10651_v4  ;;  %v8826_v32 = vadd.f32 %v8825_v15, %v8824_v28  ;;  %v8887_v54 = vadd.f32 %v8886_v46, %v8885_v11  ;;  %10767 = vrot.lane.b32.xlu0 %v10755_v39, %s19114_s10  ;;  %v8812_v30 = vmul.f32 %v19115_v5, %v8763_v6 }
0x12e6   : > { %v10660_v12 = vadd.f32 %v10659_v3, %v10658_v33  ;;  %v8819_v40 = vadd.f32 %v8818_v13, %v8817_v63  ;;  %v8894_v45 = vadd.f32 %v8893_v35, %v8892_v19  ;;  %v8811_v26 = vmul.f32 %v19115_v5, %v8758_v42 }
0x12e7   : > { %v8827_v9 = vrot.slane %v8826_v32, 1  ;;  %v8888_v24 = vrot.slane %v8887_v54, 2  ;;  %v8906_v2 = vsel %vm1912_vm2, %v8812_v30, 0.0  ;;  %v10803_v58 = vsel %vm2059_vm3, %v9772_v27, %v9765_v56  ;;  %v9586_v18 = vpop.permute.xlu0 %9585  ;;  %v19119_v27 = vld [vmem:[#allocation134_spill] sm:$0xff] }
0x12e8   : > { %v8820_v7 = vrot.slane %v8819_v40, 1  ;;  %v8895_v60 = vrot.slane %v8894_v45, 2  ;;  %v8907_v47 = vrot.slane %v8906_v2, 4  ;;  %v8899_v10 = vsel %vm1912_vm2, %v8811_v26, 0.0  ;;  %v9591_v53 = vpop.permute.xlu1 %9590 }
0x12e9   : > { %v8828_v62 = vadd.f32 %v8827_v9, %v8826_v32  ;;  %v8889_v25 = vadd.f32 %v8888_v24, %v8887_v54  ;;  %v8900_v8 = vrot.slane %v8899_v10, 4  ;;  %10815 = vrot.lane.b32.xlu0 %v10803_v58, %s19116_s18  ;;  %v9688_v14 = vmul.f32 %v19117_v1, %v9591_v53 }
0x12ea   : > { %v8821_v29 = vadd.f32 %v8820_v7, %v8819_v40  ;;  %v8896_v21 = vadd.f32 %v8895_v60, %v8894_v45  ;;  %v8908_v20 = vadd.f32 %v8907_v47, %v8906_v2  ;;  %v9687_v61 = vmul.f32 %v19117_v1, %v9586_v18 }
0x12eb   : > { %v8890_v41 = vrot.slane %v8889_v25, 1  ;;  %v8901_v37 = vadd.f32 %v8900_v8, %v8899_v10  ;;  %v9710_v59 = vsel %vm1912_vm2, %v9688_v14, 0.0  ;;  %v10851_v43 = vsel %vm2059_vm3, %v10660_v12, %v10653_v23  ;;  %v9636_v57 = vpop.permute.xlu0 %9635  ;;  %v19120_v12 = vld [vmem:[#allocation138_spill] sm:$0xff] }
0x12ec   : > { %v8897_v55 = vrot.slane %v8896_v21, 1  ;;  %v8909_v16 = vrot.slane %v8908_v20, 2  ;;  %v9711_v50 = vrot.slane %v9710_v59, 4  ;;  %v9703_v34 = vsel %vm1912_vm2, %v9687_v61, 0.0  ;;  %v9641_v56 = vpop.permute.xlu1 %9640 }
0x12ed   : > { %v8891_v4 = vadd.f32 %v8890_v41, %v8889_v25  ;;  %v8902_v28 = vrot.slane %v8901_v37, 2  ;;  %v9704_v48 = vrot.slane %v9703_v34, 4  ;;  %10863 = vrot.lane.b32.xlu0 %v10851_v43, %s19118_s13  ;;  %v9698_v33 = vmul.f32 %v19119_v27, %v9641_v56  ;;  %v19121_v41 = vld [vmem:[#allocation80_spill] sm:$0xff] }
0x12ee   : > { %v8898_v63 = vadd.f32 %v8897_v55, %v8896_v21  ;;  %v8910_v11 = vadd.f32 %v8909_v16, %v8908_v20  ;;  %v9712_v38 = vadd.f32 %v9711_v50, %v9710_v59  ;;  %v9697_v15 = vmul.f32 %v19119_v27, %v9636_v57 }
0x12ef   : > { %v8903_v19 = vadd.f32 %v8902_v28, %v8901_v37  ;;  %v9705_v46 = vadd.f32 %v9704_v48, %v9703_v34  ;;  %v9780_v42 = vsel %vm1912_vm2, %v9698_v33, 0.0  ;;  %v10751_v3 = vsel %vm2059_vm3, %v8828_v62, %v8821_v29  ;;  %v9646_v13 = vpop.permute.xlu0 %9645 }
0x12f0   : > { %v8911_v35 = vrot.slane %v8910_v11, 1  ;;  %v9713_v39 = vrot.slane %v9712_v38, 2  ;;  %v9781_v6 = vrot.slane %v9780_v42, 4  ;;  %v9773_v23 = vsel %vm1912_vm2, %v9697_v15, 0.0  ;;  %v9651_v32 = vpop.permute.xlu1 %9650  ;;  %v19122_v15 = vld [vmem:[#allocation137_spill] sm:$0xff] }
0x12f1   : > { %v8904_v54 = vrot.slane %v8903_v19, 1  ;;  %v9706_v5 = vrot.slane %v9705_v46, 2  ;;  %v9774_v30 = vrot.slane %v9773_v23, 4  ;;  %10759 = vrot.lane.b32.xlu0 %v10751_v3, %s19114_s10  ;;  %v9700_v40 = vmul.f32 %v19120_v12, %v9651_v32 }
0x12f2   : > { %v8912_v45 = vadd.f32 %v8911_v35, %v8910_v11  ;;  %v9714_v26 = vadd.f32 %v9713_v39, %v9712_v38  ;;  %v9782_v9 = vadd.f32 %v9781_v6, %v9780_v42  ;;  %v9699_v24 = vmul.f32 %v19120_v12, %v9646_v13 }
0x12f3   : > { %v8905_v2 = vadd.f32 %v8904_v54, %v8903_v19  ;;  %v9707_v58 = vadd.f32 %v9706_v5, %v9705_v46  ;;  %v9775_v18 = vadd.f32 %v9774_v30, %v9773_v23  ;;  %v9794_v7 = vsel %vm1912_vm2, %v9700_v40, 0.0  ;;  %v10474_v60 = vpop.permute.xlu0 %10473 }
0x12f4   : > { %v9715_v47 = vrot.slane %v9714_v26, 1  ;;  %v9783_v10 = vrot.slane %v9782_v9, 2  ;;  %v9795_v53 = vrot.slane %v9794_v7, 4  ;;  %v9787_v62 = vsel %vm1912_vm2, %v9699_v24, 0.0  ;;  %v10479_v25 = vpop.permute.xlu1 %10478  ;;  %v19123_v24 = vld [vmem:[#allocation81_spill] sm:$0xff] }
0x12f5   : > { %v9708_v8 = vrot.slane %v9707_v58, 1  ;;  %v9776_v1 = vrot.slane %v9775_v18, 2  ;;  %v9788_v14 = vrot.slane %v9787_v62, 4  ;;  %v10756_v29 = vsel %vm2059_vm3, %v8898_v63, %v8891_v4 }
0x12f6   : > { %v9716_v21 = vadd.f32 %v9715_v47, %v9714_v26  ;;  %v9784_v20 = vadd.f32 %v9783_v10, %v9782_v9  ;;  %v9796_v61 = vadd.f32 %v9795_v53, %v9794_v7  ;;  %10769 = vrot.lane.b32.xlu1 %v10756_v29, %s19114_s10  ;;  %v10576_v37 = vmul.f32 %v19121_v41, %v10479_v25 }
0x12f7   : > { %v9709_v59 = vadd.f32 %v9708_v8, %v9707_v58  ;;  %v9777_v43 = vadd.f32 %v9776_v1, %v9775_v18  ;;  %v9789_v57 = vadd.f32 %v9788_v14, %v9787_v62  ;;  %v10575_v55 = vmul.f32 %v19121_v41, %v10474_v60  ;;  %v10524_v16 = vpop.permute.xlu0 %10523 }
0x12f8   : > { %v9785_v50 = vrot.slane %v9784_v20, 1  ;;  %v9797_v34 = vrot.slane %v9796_v61, 2  ;;  %v10598_v56 = vsel %vm1912_vm2, %v10576_v37, 0.0  ;;  %v10757_v28 = vsel %vm2059_vm3, %v8912_v45, %v8905_v2  ;;  %v10529_v4 = vpop.permute.xlu1 %10528 }
0x12f9   : > { %v9778_v48 = vrot.slane %v9777_v43, 1  ;;  %v9790_v27 = vrot.slane %v9789_v57, 2  ;;  %v10599_v33 = vrot.slane %v10598_v56, 4  ;;  %v10591_v63 = vsel %vm1912_vm2, %v10575_v55, 0.0  ;;  %10771 = vrot.lane.b32.xlu0 %v10757_v28, %s19114_s10 }
0x12fa   : > { %v9798_v11 = vadd.f32 %v9797_v34, %v9796_v61  ;;  %v10592_v38 = vrot.slane %v10591_v63, 4  ;;  %v10586_v19 = vmul.f32 %v19122_v15, %v10529_v4  ;;  %v9786_v46 = vadd.f32 %v9785_v50, %v9784_v20  ;;  %v19124_v61 = vld [vmem:[#allocation84_spill] sm:$0xff] }
0x12fb   : > { %v9791_v42 = vadd.f32 %v9790_v27, %v9789_v57  ;;  %v10600_v3 = vadd.f32 %v10599_v33, %v10598_v56  ;;  %v10585_v13 = vmul.f32 %v19122_v15, %v10524_v16  ;;  %v10534_v35 = vpop.permute.xlu0 %10533  ;;  %v9779_v39 = vadd.f32 %v9778_v48, %v9777_v43  ;;  %v19125_v57 = vld [vmem:[#allocation87_spill] sm:$0xff] }
0x12fc   : > { %v10593_v6 = vadd.f32 %v10592_v38, %v10591_v63  ;;  %v10668_v23 = vsel %vm1912_vm2, %v10586_v19, 0.0  ;;  %v10799_v32 = vsel %vm2059_vm3, %v9716_v21, %v9709_v59  ;;  %v10539_v54 = vpop.permute.xlu1 %10538  ;;  %v9799_v5 = vrot.slane %v9798_v11, 1 }
0x12fd   : > { %v10601_v30 = vrot.slane %v10600_v3, 2  ;;  %v10669_v12 = vrot.slane %v10668_v23, 4  ;;  %v10661_v40 = vsel %vm1912_vm2, %v10585_v13, 0.0  ;;  %10807 = vrot.lane.b32.xlu0 %v10799_v32, %s19116_s18  ;;  %v9792_v45 = vrot.slane %v9791_v42, 1  ;;  %v19126_v13 = vld [vmem:[#allocation78_spill] sm:$0xff] }
0x12fe   : > { %v10594_v26 = vrot.slane %v10593_v6, 2  ;;  %v10662_v9 = vrot.slane %v10661_v40, 4  ;;  %v10588_v2 = vmul.f32 %v19123_v24, %v10539_v54  ;;  %v10587_v7 = vmul.f32 %v19123_v24, %v10534_v35 }
0x12ff   : > { %v10602_v58 = vadd.f32 %v10601_v30, %v10600_v3  ;;  %v10670_v18 = vadd.f32 %v10669_v12, %v10668_v23  ;;  %v8718_v60 = vpop.permute.xlu0 %8717  ;;  %v10804_v62 = vsel %vm2059_vm3, %v9786_v46, %v9779_v39  ;;  %v9800_v8 = vadd.f32 %v9799_v5, %v9798_v11 }
0x1300   : > { %v10595_v47 = vadd.f32 %v10594_v26, %v10593_v6  ;;  %v10663_v10 = vadd.f32 %v10662_v9, %v10661_v40  ;;  %v10682_v53 = vsel %vm1912_vm2, %v10588_v2, 0.0  ;;  %v8708_v25 = vpop.permute.xlu1 %8707  ;;  %10817 = vrot.lane.b32.xlu1 %v10804_v62, %s19116_s18  ;;  %v9793_v29 = vadd.f32 %v9792_v45, %v9791_v42 }
0x1301   : > { %v10603_v1 = vrot.slane %v10602_v58, 1  ;;  %v10671_v14 = vrot.slane %v10670_v18, 2  ;;  %v8801_v41 = vmul.f32 %v19124_v61, %v8708_v25  ;;  %v10683_v59 = vrot.slane %v10682_v53, 4 }
0x1302   : > { %v10596_v21 = vrot.slane %v10595_v47, 1  ;;  %v10664_v20 = vrot.slane %v10663_v10, 2  ;;  %v10675_v43 = vsel %vm1912_vm2, %v10587_v7, 0.0  ;;  %v8803_v55 = vmul.f32 %v19125_v57, %v8718_v60 }
0x1303   : > { %v10672_v37 = vadd.f32 %v10671_v14, %v10670_v18  ;;  %v8768_v16 = vpop.permute.xlu0 %8767  ;;  %v10604_v50 = vadd.f32 %v10603_v1, %v10602_v58  ;;  %v8829_v56 = vsel %vm1912_vm2, %v8801_v41, 0.0  ;;  %v10676_v11 = vrot.slane %v10675_v43, 4  ;;  %v19127_v58 = vld [vmem:[#allocation85_spill] sm:$0xff] }
0x1304   : > { %v10665_v34 = vadd.f32 %v10664_v20, %v10663_v10  ;;  %v8713_v28 = vpop.permute.xlu1 %8712  ;;  %v10597_v4 = vadd.f32 %v10596_v21, %v10595_v47  ;;  %v8830_v27 = vrot.slane %v8829_v56, 4  ;;  %v8843_v33 = vsel %vm1912_vm2, %v8803_v55, 0.0 }
0x1305   : > { %v10673_v48 = vrot.slane %v10672_v37, 1  ;;  %v10805_v38 = vsel %vm2059_vm3, %v9800_v8, %v9793_v29  ;;  %v10684_v15 = vadd.f32 %v10683_v59, %v10682_v53  ;;  %v8844_v19 = vrot.slane %v8843_v33, 4  ;;  %v19128_v59 = vld [vmem:[#allocation88_spill] sm:$0xff] }
0x1306   : > { %v10666_v63 = vrot.slane %v10665_v34, 1  ;;  %10819 = vrot.lane.b32.xlu0 %v10805_v38, %s19116_s18  ;;  %v8802_v46 = vmul.f32 %v19124_v61, %v8713_v28  ;;  %v8813_v35 = vmul.f32 %v19126_v13, %v8768_v16  ;;  %v8831_v23 = vadd.f32 %v8830_v27, %v8829_v56 }
0x1307   : > { %v9596_v42 = vpop.permute.xlu0 %9595  ;;  %v10674_v3 = vadd.f32 %v10673_v48, %v10672_v37  ;;  %v10847_v54 = vsel %vm2059_vm3, %v10604_v50, %v10597_v4  ;;  %v10677_v5 = vadd.f32 %v10676_v11, %v10675_v43  ;;  %v10685_v40 = vrot.slane %v10684_v15, 2 }
0x1308   : > { %v8723_v39 = vpop.permute.xlu1 %8722  ;;  %v10667_v6 = vadd.f32 %v10666_v63, %v10665_v34  ;;  %v8836_v32 = vsel %vm1912_vm2, %v8802_v46, 0.0  ;;  %v8913_v12 = vsel %vm1912_vm2, %v8813_v35, 0.0  ;;  %v8845_v45 = vadd.f32 %v8844_v19, %v8843_v33 }
0x1309   : > { %v8837_v30 = vrot.slane %v8836_v32, 4  ;;  %v8914_v26 = vrot.slane %v8913_v12, 4  ;;  %v8804_v9 = vmul.f32 %v19125_v57, %v8723_v39  ;;  %v9689_v18 = vmul.f32 %v19127_v58, %v9596_v42 }
0x130a   : > { %10855 = vrot.lane.b32.xlu0 %v10847_v54, %s19118_s13  ;;  %v8832_v60 = vrot.slane %v8831_v23, 2  ;;  %v10852_v53 = vsel %vm2059_vm3, %v10674_v3, %v10667_v6  ;;  %v10678_v62 = vrot.slane %v10677_v5, 2  ;;  %v18025_v14 = vadd.f32 %v10685_v40, %v10684_v15  ;;  %v19129_v6 = vld [vmem:[#allocation82_spill] sm:$0xff] }
0x130b   : > { %v9606_v24 = vpop.permute.xlu0 %9605  ;;  %v8838_v2 = vadd.f32 %v8837_v30, %v8836_v32  ;;  %v8915_v47 = vadd.f32 %v8914_v26, %v8913_v12  ;;  %v8850_v10 = vsel %vm1912_vm2, %v8804_v9, 0.0  ;;  %v9717_v1 = vsel %vm1912_vm2, %v9689_v18, 0.0  ;;  %10865 = vrot.lane.b32.xlu1 %v10852_v53, %s19118_s13  ;;  %v19130_v26 = vld [vmem:[#allocation86_spill] sm:$0xff] }
0x130c   : > { %v8773_v7 = vpop.permute.xlu1 %8772  ;;  %v8851_v8 = vrot.slane %v8850_v10, 4  ;;  %v8846_v29 = vrot.slane %v8845_v45, 2  ;;  %v9691_v43 = vmul.f32 %v19128_v59, %v9606_v24  ;;  %v8833_v55 = vadd.f32 %v8832_v60, %v8831_v23 }
0x130d   : > { %v8839_v25 = vrot.slane %v8838_v2, 2  ;;  %v8814_v21 = vmul.f32 %v19126_v13, %v8773_v7  ;;  %v8916_v41 = vrot.slane %v8915_v47, 2  ;;  %v9718_v16 = vrot.slane %v9717_v1, 4 }
0x130e   : > { %v8852_v37 = vadd.f32 %v8851_v8, %v8850_v10  ;;  %v18031_v56 = vadd.f32 %v10678_v62, %v10677_v5  ;;  %v9731_v48 = vsel %vm1912_vm2, %v9691_v43, 0.0  ;;  %v8847_v27 = vadd.f32 %v8846_v29, %v8845_v45 }
0x130f   : > { %v9656_v20 = vpop.permute.xlu0 %9655  ;;  %v8840_v61 = vadd.f32 %v8839_v25, %v8838_v2  ;;  %v8920_v50 = vsel %vm1912_vm2, %v8814_v21, 0.0  ;;  %v9732_v63 = vrot.slane %v9731_v48, 4  ;;  %v8917_v15 = vadd.f32 %v8916_v41, %v8915_v47 }
0x1310   : > { %v9601_v57 = vpop.permute.xlu1 %9600  ;;  %v8853_v28 = vrot.slane %v8852_v37, 2  ;;  %v8921_v4 = vrot.slane %v8920_v50, 4  ;;  %v8834_v13 = vrot.slane %v8833_v55, 1  ;;  %v9719_v35 = vadd.f32 %v9718_v16, %v9717_v1 }
0x1311   : > { %v9690_v34 = vmul.f32 %v19127_v58, %v9601_v57  ;;  %v8841_v33 = vrot.slane %v8840_v61, 1  ;;  %v9733_v39 = vadd.f32 %v9732_v63, %v9731_v48  ;;  %v9701_v23 = vmul.f32 %v19129_v6, %v9656_v20 }
0x1312   : > { %v8854_v19 = vadd.f32 %v8853_v28, %v8852_v37  ;;  %v8922_v46 = vadd.f32 %v8921_v4, %v8920_v50  ;;  %v8848_v12 = vrot.slane %v8847_v27, 1  ;;  %v8918_v2 = vrot.slane %v8917_v15, 1  ;;  %v19131_v4 = vld [vmem:[#allocation92_spill] sm:$0xff] }
0x1313   : > { %v9724_v11 = vsel %vm1912_vm2, %v9690_v34, 0.0  ;;  %v10484_v38 = vpop.permute.xlu0 %10483  ;;  %v8842_v40 = vadd.f32 %v8841_v33, %v8840_v61  ;;  %v9801_v45 = vsel %vm1912_vm2, %v9701_v23, 0.0  ;;  %v8835_v47 = vadd.f32 %v8834_v13, %v8833_v55 }
0x1314   : > { %v9725_v42 = vrot.slane %v9724_v11, 4  ;;  %v9611_v3 = vpop.permute.xlu1 %9610  ;;  %v8855_v32 = vrot.slane %v8854_v19, 1  ;;  %v8923_v54 = vrot.slane %v8922_v46, 2  ;;  %v10577_v9 = vmul.f32 %v19130_v26, %v10484_v38 }
0x1315   : > { %v9692_v30 = vmul.f32 %v19128_v59, %v9611_v3  ;;  %v9802_v7 = vrot.slane %v9801_v45, 4  ;;  %v9720_v10 = vrot.slane %v9719_v35, 2  ;;  %v9734_v1 = vrot.slane %v9733_v39, 2 }
0x1316   : > { %v9726_v5 = vadd.f32 %v9725_v42, %v9724_v11  ;;  %v8924_v58 = vadd.f32 %v8923_v54, %v8922_v46  ;;  %v10605_v62 = vsel %vm1912_vm2, %v10577_v9, 0.0  ;;  %v8856_v25 = vadd.f32 %v8855_v32, %v8854_v19 }
0x1317   : > { %v10494_v24 = vpop.permute.xlu0 %10493  ;;  %v9738_v53 = vsel %vm1912_vm2, %v9692_v30, 0.0  ;;  %v10606_v20 = vrot.slane %v10605_v62, 4  ;;  %v10752_v61 = vsel %vm2059_vm3, %v8842_v40, %v8835_v47  ;;  %v8849_v59 = vadd.f32 %v8848_v12, %v8847_v27 }
0x1318   : > { %v9727_v18 = vrot.slane %v9726_v5, 2  ;;  %v9661_v60 = vpop.permute.xlu1 %9660  ;;  %v8925_v8 = vrot.slane %v8924_v58, 1  ;;  %v9739_v29 = vrot.slane %v9738_v53, 4  ;;  %v8919_v43 = vadd.f32 %v8918_v2, %v8917_v15  ;;  %10761 = vrot.lane.b32.xlu1 %v10752_v61, %s19114_s10 }
0x1319   : > { %v9702_v41 = vmul.f32 %v19129_v6, %v9661_v60  ;;  %v9803_v57 = vadd.f32 %v9802_v7, %v9801_v45  ;;  %v9721_v50 = vadd.f32 %v9720_v10, %v9719_v35  ;;  %v10579_v48 = vmul.f32 %v19131_v4, %v10494_v24 }
0x131a   : > { %v9728_v21 = vadd.f32 %v9727_v18, %v9726_v5  ;;  %v9740_v55 = vadd.f32 %v9739_v29, %v9738_v53  ;;  %v8926_v34 = vadd.f32 %v8925_v8, %v8924_v58  ;;  %v9735_v33 = vadd.f32 %v9734_v1, %v9733_v39  ;;  %v19132_v8 = vld [vmem:[#allocation83_spill] sm:$0xff] }
0x131b   : > { %v18043_v37 = vpop.permute.xlu0 %10543  ;;  %v9808_v28 = vsel %vm1912_vm2, %v9702_v41, 0.0  ;;  %v10607_v11 = vadd.f32 %v10606_v20, %v10605_v62  ;;  %v10619_v46 = vsel %vm1912_vm2, %v10579_v48, 0.0  ;;  %v10753_v27 = vsel %vm2059_vm3, %v8856_v25, %v8849_v59 }
0x131c   : > { %v10489_v16 = vpop.permute.xlu1 %10488  ;;  %v9741_v63 = vrot.slane %v9740_v55, 2  ;;  %v9809_v38 = vrot.slane %v9808_v28, 4  ;;  %v9729_v19 = vrot.slane %v9728_v21, 1  ;;  %v9804_v3 = vrot.slane %v9803_v57, 2  ;;  %10763 = vrot.lane.b32.xlu0 %v10753_v27, %s19114_s10 }
0x131d   : > { %v10578_v15 = vmul.f32 %v19130_v26, %v10489_v16  ;;  %v10620_v6 = vrot.slane %v10619_v46, 4  ;;  %v10687_v39 = vrot.slane %v18025_v14, 1  ;;  %v9722_v32 = vrot.slane %v9721_v50, 1 }
0x131e   : > { %v9742_v13 = vadd.f32 %v9741_v63, %v9740_v55  ;;  %v9810_v35 = vadd.f32 %v9809_v38, %v9808_v28  ;;  %v10758_v5 = vsel %vm2059_vm3, %v8926_v34, %v8919_v43  ;;  %v10680_v30 = vrot.slane %v18031_v56, 1 }
0x131f   : > { %v8728_v42 = vpop.permute.xlu0 %8727  ;;  %v10612_v54 = vsel %vm1912_vm2, %v10578_v15, 0.0  ;;  %v10608_v12 = vrot.slane %v10607_v11, 2  ;;  %v10621_v45 = vadd.f32 %v10620_v6, %v10619_v46  ;;  %10773 = vrot.lane.b32.xlu1 %v10758_v5, %s19114_s10  ;;  %v9730_v26 = vadd.f32 %v9729_v19, %v9728_v21 }
0x1320   : > { %v10499_v23 = vpop.permute.xlu1 %10498  ;;  %v9811_v40 = vrot.slane %v9810_v35, 2  ;;  %v9743_v9 = vrot.slane %v9742_v13, 1  ;;  %v10613_v24 = vrot.slane %v10612_v54, 4  ;;  %v9736_v58 = vrot.slane %v9735_v33, 1 }
0x1321   : > { %v10580_v2 = vmul.f32 %v19131_v4, %v10499_v23  ;;  %v9805_v18 = vadd.f32 %v9804_v3, %v9803_v57  ;;  %v10622_v60 = vrot.slane %v10621_v45, 2  ;;  %v9723_v53 = vadd.f32 %v9722_v32, %v9721_v50 }
0x1322   : > { %v9812_v7 = vadd.f32 %v9811_v40, %v9810_v35  ;;  %v10614_v62 = vadd.f32 %v10613_v24, %v10612_v54  ;;  %v8805_v1 = vmul.f32 %v19132_v8, %v8728_v42  ;;  %v18061_v29 = vadd.f32 %v10687_v39, %v18025_v14  ;;  %v19133_v14 = vld [vmem:[#allocation79_spill] sm:$0xff]  ;;  %v19135_v40 = vld [vmem:[#allocation90_spill] sm:$0xff] }
0x1323   : > { %v9616_v10 = vpop.permute.xlu0 %9615  ;;  %v10626_v25 = vsel %vm1912_vm2, %v10580_v2, 0.0  ;;  %v10609_v21 = vadd.f32 %v10608_v12, %v10607_v11  ;;  %v9744_v41 = vadd.f32 %v9743_v9, %v9742_v13  ;;  %v10800_v57 = vsel %vm2059_vm3, %v9730_v26, %v9723_v53  ;;  %v19134_v11 = vld [vmem:[#allocation89_spill] sm:$0xff] }
0x1324   : > { %v10549_v47 = vpop.permute.xlu1 %10548  ;;  %v9813_v20 = vrot.slane %v9812_v7, 1  ;;  %v10627_v61 = vrot.slane %v10626_v25, 4  ;;  %v10615_v59 = vrot.slane %v10614_v62, 2  ;;  %v8857_v43 = vsel %vm1912_vm2, %v8805_v1, 0.0  ;;  %10809 = vrot.lane.b32.xlu1 %v10800_v57, %s19116_s18 }
0x1325   : > { %v9737_v55 = vadd.f32 %v9736_v58, %v9735_v33  ;;  %v9806_v16 = vrot.slane %v9805_v18, 1  ;;  %v10623_v50 = vadd.f32 %v10622_v60, %v10621_v45  ;;  %v10589_v48 = vmul.f32 %v19133_v14, %v18043_v37 }
0x1326   : > { %v10628_v34 = vadd.f32 %v10627_v61, %v10626_v25  ;;  %v10616_v4 = vadd.f32 %v10615_v59, %v10614_v62  ;;  %v8858_v63 = vrot.slane %v8857_v43, 4  ;;  %v9693_v38 = vmul.f32 %v19134_v11, %v9616_v10 }
0x1327   : > { %v10610_v19 = vrot.slane %v10609_v21, 1  ;;  %v9814_v46 = vadd.f32 %v9813_v20, %v9812_v7  ;;  %v10590_v15 = vmul.f32 %v19133_v14, %v10549_v47  ;;  %v10504_v42 = vpop.permute.xlu0 %10503  ;;  %v10801_v35 = vsel %vm2059_vm3, %v9744_v41, %v9737_v55 }
0x1328   : > { %v8733_v28 = vpop.permute.xlu1 %8732  ;;  %v10629_v27 = vrot.slane %v10628_v34, 2  ;;  %v10617_v33 = vrot.slane %v10616_v4, 1  ;;  %v8859_v3 = vadd.f32 %v8858_v63, %v8857_v43  ;;  %v9745_v13 = vsel %vm1912_vm2, %v9693_v38, 0.0  ;;  %10811 = vrot.lane.b32.xlu0 %v10801_v35, %s19116_s18 }
0x1329   : > { %v9807_v6 = vadd.f32 %v9806_v16, %v9805_v18  ;;  %v10624_v23 = vrot.slane %v10623_v50, 1  ;;  %v9746_v32 = vrot.slane %v9745_v13, 4  ;;  %v10689_v5 = vsel %vm1912_vm2, %v10589_v48, 0.0 }
0x132a   : > { %v10630_v39 = vadd.f32 %v10629_v27, %v10628_v34  ;;  %v10618_v54 = vadd.f32 %v10617_v33, %v10616_v4  ;;  %v8806_v12 = vmul.f32 %v19132_v8, %v8733_v28  ;;  %v10581_v45 = vmul.f32 %v19135_v40, %v10504_v42 }
0x132b   : > { %v10611_v26 = vadd.f32 %v10610_v19, %v10609_v21  ;;  %v8860_v24 = vrot.slane %v8859_v3, 2  ;;  %v10696_v2 = vsel %vm1912_vm2, %v10590_v15, 0.0  ;;  %v9747_v58 = vadd.f32 %v9746_v32, %v9745_v13 }
0x132c   : > { %v9621_v37 = vpop.permute.xlu1 %9620  ;;  %v10631_v9 = vrot.slane %v10630_v39, 1  ;;  %v8864_v18 = vsel %vm1912_vm2, %v8806_v12, 0.0  ;;  %v10633_v7 = vsel %vm1912_vm2, %v10581_v45, 0.0  ;;  %v10806_v60 = vsel %vm2059_vm3, %v9814_v46, %v9807_v6 }
0x132d   : > { %v10681_v47 = vadd.f32 %v10680_v30, %v18031_v56  ;;  %v10625_v10 = vadd.f32 %v10624_v23, %v10623_v50  ;;  %v8865_v62 = vrot.slane %v8864_v18, 4  ;;  %10821 = vrot.lane.b32.xlu1 %v10806_v60, %s19116_s18  ;;  %v10697_v8 = vrot.slane %v10696_v2, 4  ;;  %v10905_v60 = vld [vmem:[%s19136_s6 + $0x10] sm:$0xff] }
0x132e   : > { %v10632_v53 = vadd.f32 %v10631_v9, %v10630_v39  ;;  %v10634_v1 = vrot.slane %v10633_v7, 4  ;;  %v9694_v21 = vmul.f32 %v19134_v11, %v9621_v37  ;;  %v10848_v20 = vsel %vm2059_vm3, %v10618_v54, %v10611_v26  ;;  %v10906_v26 = vld [vmem:[%s19136_s6 + $0x18] sm:$0xff] }
0x132f   : > { %v10690_v61 = vrot.slane %v10689_v5, 4  ;;  %v8861_v41 = vadd.f32 %v8860_v24, %v8859_v3  ;;  %v8866_v59 = vadd.f32 %v8865_v62, %v8864_v18  ;;  %v9748_v57 = vrot.slane %v9747_v58, 2  ;;  %12754 = vmatprep.subr.mxu1 %v10906_v26 }
0x1330   : > { %v10509_v25 = vpop.permute.xlu1 %10508  ;;  %v10635_v55 = vadd.f32 %v10634_v1, %v10633_v7  ;;  %v9752_v56 = vsel %vm1912_vm2, %v9694_v21, 0.0  ;;  %v10849_v30 = vsel %vm2059_vm3, %v10632_v53, %v10625_v10  ;;  %v10698_v34 = vadd.f32 %v10697_v8, %v10696_v2  ;;  %12755 = vmatpush3.msra.mxu1 %v10906_v26  ;;  %v7844_v21 = vpop.permute.xlu0 %7843 }
0x1331   : > { %v10582_v43 = vmul.f32 %v19135_v40, %v10509_v25  ;;  %v8867_v16 = vrot.slane %v8866_v59, 2  ;;  %v9753_v50 = vrot.slane %v9752_v56, 4  ;;  %10857 = vrot.lane.b32.xlu1 %v10848_v20, %s19118_s13  ;;  %10859 = vrot.lane.b32.xlu0 %v10849_v30, %s19118_s13  ;;  %v8862_v14 = vrot.slane %v8861_v41, 1  ;;  %v10903_v25 = vld [vmem:[%s19136_s6] sm:$0xff] }
0x1332   : > { %v10636_v28 = vrot.slane %v10635_v55, 2  ;;  %v10691_v38 = vadd.f32 %v10690_v61, %v10689_v5  ;;  %v9749_v19 = vadd.f32 %v9748_v57, %v9747_v58  ;;  %v10853_v46 = vsel %vm2059_vm3, %v18061_v29, %v10681_v47  ;;  %v10904_v47 = vld [vmem:[%s19136_s6 + $0x8] sm:$0xff]  ;;  %12756 = vmatprep.subr.mxu1 %v10905_v60  ;;  %s14115_s6 = sshll.u32 %s14281_s5, 4  ;;  %s14116_s6 = int_to_ptr.vmem [resolvable:$false] %s14115_s6 }
0x1333   : > { %v10640_v4 = vsel %vm1912_vm2, %v10582_v43, 0.0  ;;  %v8868_v48 = vadd.f32 %v8867_v16, %v8866_v59  ;;  %v9754_v63 = vadd.f32 %v9753_v50, %v9752_v56  ;;  %v10699_v33 = vrot.slane %v10698_v34, 2  ;;  %12757 = vmatpush3.msra.mxu1 %v10905_v60 }
0x1334   : > { %v10641_v11 = vrot.slane %v10640_v4, 4  ;;  %v10637_v3 = vadd.f32 %v10636_v28, %v10635_v55  ;;  %v8863_v13 = vadd.f32 %v8862_v14, %v8861_v41  ;;  %v10692_v39 = vrot.slane %v10691_v38, 2  ;;  %12758 = vmatprep.subr.mxu1 %v10904_v47  ;;  %v7839_v20 = vpop.permute.xlu1 %7838  ;;  %v7854_v61 = vpop.permute.xlu0 %7853 }
0x1335   : > { %v8869_v27 = vrot.slane %v8868_v48, 1  ;;  %v9755_v15 = vrot.slane %v9754_v63, 2  ;;  %10867 = vrot.lane.b32.xlu0 %v10853_v46, %s19118_s13  ;;  %v9750_v32 = vrot.slane %v9749_v19, 1  ;;  %v10700_v29 = vadd.f32 %v10699_v33, %v10698_v34  ;;  %12759 = vmatpush3.msra.mxu1 %v10904_v47 }
0x1336   : > { %v10642_v42 = vadd.f32 %v10641_v11, %v10640_v4  ;;  %v10638_v12 = vrot.slane %v10637_v3, 1  ;;  %v10693_v9 = vadd.f32 %v10692_v39, %v10691_v38  ;;  %12760 = vmatprep.subr.mxu1 %v10903_v25 }
0x1337   : > { %v8870_v35 = vadd.f32 %v8869_v27, %v8868_v48  ;;  %v9756_v6 = vadd.f32 %v9755_v15, %v9754_v63  ;;  %v9751_v24 = vadd.f32 %v9750_v32, %v9749_v19  ;;  %v10701_v58 = vrot.slane %v10700_v29, 1  ;;  %12761 = vmatpush3.msra.mxu1 %v10903_v25 }
0x1338   : > { %v10643_v23 = vrot.slane %v10642_v42, 2  ;;  %v10639_v18 = vadd.f32 %v10638_v12, %v10637_v3  ;;  %v10694_v10 = vrot.slane %v10693_v9, 1  ;;  %v7849_v41 = vpop.permute.xlu1 %7848  ;;  %v7864_v59 = vpop.permute.xlu0 %7863 }
0x1339   : > { %v9757_v37 = vrot.slane %v9756_v6, 1  ;;  %v10754_v5 = vsel %vm2059_vm3, %v8870_v35, %v8863_v13  ;;  %v10702_v62 = vadd.f32 %v10701_v58, %v10700_v29 }
0x133a   : > { %v10644_v54 = vadd.f32 %v10643_v23, %v10642_v42  ;;  %10765 = vrot.lane.b32.xlu1 %v10754_v5, %s19114_s10  ;;  %v10695_v8 = vadd.f32 %v10694_v10, %v10693_v9  ;;  %s19152_s10 = sld [smem:[#allocation65_spill]] }
0x133b   : > { %v9758_v40 = vadd.f32 %v9757_v37, %v9756_v6 }
0x133c   : > { %v10645_v45 = vrot.slane %v10644_v54, 1  ;;  %v10854_v1 = vsel %vm2059_vm3, %v10702_v62, %v10695_v8  ;;  %v7859_v43 = vpop.permute.xlu1 %7858  ;;  %v7872_v57 = vpop.permute.xlu0 %7871 }
0x133d   : > { %v10802_v7 = vsel %vm2059_vm3, %v9758_v40, %v9751_v24  ;;  %v7895_v46 = vmul.f32 %v7872_v57, %v17911_v52  ;;  %v7896_v27 = vmul.f32 %v7872_v57, %v17914_v22 }
0x133e   : > { %v10646_v2 = vadd.f32 %v10645_v45, %v10644_v54  ;;  %10813 = vrot.lane.b32.xlu1 %v10802_v7, %s19116_s18  ;;  %s12574_s18 = sshll.u32 %s14654_s12, 4 }
0x133f   : > { %v7911_v6 = vsel %vm1912_vm2, %v7895_v46, 0.0  ;;  %v7918_v23 = vsel %vm1912_vm2, %v7896_v27, 0.0  ;;  %s1214_s1 = scalar_lea.vmem [#allocation32], %s12574_s18 }
0x1340   : > { %v10850_v53 = vsel %vm2059_vm3, %v10646_v2, %v10639_v18  ;;  %v7869_v55 = vpop.permute.xlu1 %7868  ;;  %v7876_v56 = vpop.permute.xlu0 %7875  ;;  %v7912_v12 = vrot.slane %v7911_v6, 4  ;;  %v7919_v9 = vrot.slane %v7918_v23, 4  ;;  %s12244_s3 = sshll.u32 %s1214_s1, 4  ;;  %s18428_s3 = int_to_ptr.vmem [resolvable:$true] %s12244_s3 }
0x1341   : > { %v7899_v3 = vmul.f32 %v7876_v56, %v17925_v17  ;;  %v7900_v52 = vmul.f32 %v7876_v56, %v17927_v44  ;;  %s14111_s18 = scalar_lea.vmem %s18428_s3, 256  ;;  %p14118_p9 = scmp.lt.s32.totalorder %s18428_s3, %s14116_s6 }
0x1342   : > { %10861 = vrot.lane.b32.xlu1 %v10850_v53, %s19118_s13  ;;  %v7913_v57 = vadd.f32 %v7912_v12, %v7911_v6  ;;  %v7920_v56 = vadd.f32 %v7919_v9, %v7918_v23  ;;  %p14112_p2 = scmp.ne.s32.totalorder %s18428_s3, %s14111_s18 }
0x1343   : > { %v7939_v37 = vsel %vm1912_vm2, %v7899_v3, 0.0  ;;  %v7946_v7 = vsel %vm1912_vm2, %v7900_v52, 0.0 }
0x1344   : > { %v7874_v30 = vpop.permute.xlu1 %7873  ;;  %v7880_v16 = vpop.permute.xlu0 %7879  ;;  %v7940_v18 = vrot.slane %v7939_v37, 4  ;;  %p14113_p8 = pnand %p14112_p2, %p19154_p5 }
0x1345   : > { %v7903_v38 = vmul.f32 %v7880_v16, %v17906_v51  ;;  %v7904_v15 = vmul.f32 %v7880_v16, %v7839_v20  ;;  %v7897_v42 = vmul.f32 %v7874_v30, %v17918_v31  ;;  %v7898_v33 = vmul.f32 %v7874_v30, %v17921_v0 }
0x1346   : > { %10869 = vrot.lane.b32.xlu1 %v10854_v1, %s19118_s13  ;;  %v7947_v20 = vrot.slane %v7946_v7, 4  ;;  %s19153_s13 = sld [smem:[#allocation66_spill]]  ;;  %p14114_p0 = pneg %p14113_p8 }
0x1347   : > { %v7967_v13 = vsel %vm1912_vm2, %v7903_v38, 0.0  ;;  %v7974_v22 = vsel %vm1912_vm2, %v7904_v15, 0.0  ;;  %v7925_v0 = vsel %vm1912_vm2, %v7897_v42, 0.0  ;;  %v7932_v17 = vsel %vm1912_vm2, %v7898_v33, 0.0 }
0x1348   : > { %v7878_v50 = vpop.permute.xlu1 %7877  ;;  %v7884_v34 = vpop.permute.xlu0 %7883  ;;  %v7968_v31 = vrot.slane %v7967_v13, 4  ;;  %v7975_v40 = vrot.slane %v7974_v22, 4  ;;  %v7926_v24 = vrot.slane %v7925_v0, 4  ;;  %v7933_v2 = vrot.slane %v7932_v17, 4 }
0x1349   : > { %v7901_v54 = vmul.f32 %v7878_v50, %v17933_v36  ;;  %v7902_v5 = vmul.f32 %v7878_v50, %v17935_v49  ;;  %v7907_v44 = vmul.f32 %v7884_v34, %v7854_v61  ;;  %v7908_v45 = vmul.f32 %v7884_v34, %v7859_v43 }
0x134a   : > { %v7969_v60 = vadd.f32 %v7968_v31, %v7967_v13  ;;  %v7976_v25 = vadd.f32 %v7975_v40, %v7974_v22  ;;  %v7927_v61 = vadd.f32 %v7926_v24, %v7925_v0  ;;  %v7948_v15 = vadd.f32 %v7947_v20, %v7946_v7 }
0x134b   : > { %v7953_v49 = vsel %vm1912_vm2, %v7901_v54, 0.0  ;;  %v7960_v47 = vsel %vm1912_vm2, %v7902_v5, 0.0  ;;  %v7995_v8 = vsel %vm1912_vm2, %v7907_v44, 0.0  ;;  %v8002_v1 = vsel %vm1912_vm2, %v7908_v45, 0.0 }
0x134c   : > { %v7882_v28 = vpop.permute.xlu1 %7881  ;;  %v7954_v30 = vrot.slane %v7953_v49, 4  ;;  %v7961_v16 = vrot.slane %v7960_v47, 4  ;;  %v7970_v38 = vrot.slane %v7969_v60, 2  ;;  %v7977_v46 = vrot.slane %v7976_v25, 2 }
0x134d   : > { %v7905_v39 = vmul.f32 %v7882_v28, %v7844_v21  ;;  %v7906_v32 = vmul.f32 %v7882_v28, %v7849_v41  ;;  %v7934_v41 = vadd.f32 %v7933_v2, %v7932_v17  ;;  %v7928_v42 = vrot.slane %v7927_v61, 2 }
0x134e   : > { %v7955_v6 = vadd.f32 %v7954_v30, %v7953_v49  ;;  %v7962_v23 = vadd.f32 %v7961_v16, %v7960_v47  ;;  %v7914_v31 = vrot.slane %v7913_v57, 2  ;;  %v7921_v0 = vrot.slane %v7920_v56, 2 }
0x134f   : > { %v7981_v58 = vsel %vm1912_vm2, %v7905_v39, 0.0  ;;  %v7988_v36 = vsel %vm1912_vm2, %v7906_v32, 0.0  ;;  %v7935_v33 = vrot.slane %v7934_v41, 2  ;;  %v7971_v54 = vadd.f32 %v7970_v38, %v7969_v60 }
0x1350   : > { %v7886_v14 = vpop.permute.xlu1 %7885  ;;  %v7982_v21 = vrot.slane %v7981_v58, 4  ;;  %v7989_v43 = vrot.slane %v7988_v36, 4  ;;  %v7978_v5 = vadd.f32 %v7977_v46, %v7976_v25  ;;  %v7949_v40 = vrot.slane %v7948_v15, 2 }
0x1351   : > { %v7909_v10 = vmul.f32 %v7886_v14, %v7864_v59  ;;  %v7910_v53 = vmul.f32 %v7886_v14, %v7869_v55  ;;  %v7996_v59 = vrot.slane %v7995_v8, 4  ;;  %v8003_v55 = vrot.slane %v8002_v1, 4 }
0x1352   : > { %v7941_v14 = vadd.f32 %v7940_v18, %v7939_v37  ;;  %v7983_v27 = vadd.f32 %v7982_v21, %v7981_v58  ;;  %v7990_v3 = vadd.f32 %v7989_v43, %v7988_v36  ;;  %v7929_v44 = vadd.f32 %v7928_v42, %v7927_v61 }
0x1353   : > { %v8009_v34 = vsel %vm1912_vm2, %v7909_v10, 0.0  ;;  %v8016_v28 = vsel %vm1912_vm2, %v7910_v53, 0.0  ;;  %v7997_v17 = vadd.f32 %v7996_v59, %v7995_v8  ;;  %v8004_v32 = vadd.f32 %v8003_v55, %v8002_v1 }
0x1354   : > { %v8010_v52 = vrot.slane %v8009_v34, 4  ;;  %v8017_v22 = vrot.slane %v8016_v28, 4  ;;  %v7942_v37 = vrot.slane %v7941_v14, 2  ;;  %v7984_v12 = vrot.slane %v7983_v27, 2 }
0x1355   : > { %v7936_v45 = vadd.f32 %v7935_v33, %v7934_v41  ;;  %v7991_v9 = vrot.slane %v7990_v3, 2  ;;  %v7956_v2 = vrot.slane %v7955_v6, 2  ;;  %v7963_v58 = vrot.slane %v7962_v23, 2 }
0x1356   : > { %v8011_v18 = vadd.f32 %v8010_v52, %v8009_v34  ;;  %v8018_v7 = vadd.f32 %v8017_v22, %v8016_v28  ;;  %v7915_v36 = vadd.f32 %v7914_v31, %v7913_v57  ;;  %v7922_v49 = vadd.f32 %v7921_v0, %v7920_v56 }
0x1357   : > { %v18107_v4 = vpop.permute.xlu0 %10767  ;;  %v7998_v47 = vrot.slane %v7997_v17, 2  ;;  %v8005_v10 = vrot.slane %v8004_v32, 2  ;;  %v7943_v53 = vadd.f32 %v7942_v37, %v7941_v14  ;;  %v7972_v8 = vrot.slane %v7971_v54, 1 }
0x1358   : > { %v7979_v1 = vrot.slane %v7978_v5, 1  ;;  %v7985_v60 = vadd.f32 %v7984_v12, %v7983_v27  ;;  %v7950_v21 = vadd.f32 %v7949_v40, %v7948_v15  ;;  %v7930_v20 = vrot.slane %v7929_v44, 1 }
0x1359   : > { %v7937_v61 = vrot.slane %v7936_v45, 1  ;;  %v7992_v41 = vadd.f32 %v7991_v9, %v7990_v3  ;;  %v7957_v43 = vadd.f32 %v7956_v2, %v7955_v6  ;;  %v7964_v30 = vadd.f32 %v7963_v58, %v7962_v23 }
0x135a   : > { %v8012_v16 = vrot.slane %v8011_v18, 2  ;;  %v8019_v59 = vrot.slane %v8018_v7, 2  ;;  %v7916_v55 = vrot.slane %v7915_v36, 1  ;;  %v7923_v34 = vrot.slane %v7922_v49, 1 }
0x135b   : > { %v18109_v48 = vpop.permute.xlu0 %10815  ;;  %v7999_v28 = vadd.f32 %v7998_v47, %v7997_v17  ;;  %v8006_v57 = vadd.f32 %v8005_v10, %v8004_v32  ;;  %v7944_v38 = vrot.slane %v7943_v53, 1  ;;  %v7986_v46 = vrot.slane %v7985_v60, 1 }
0x135c   : > { %v7973_v14 = vadd.f32 %v7972_v8, %v7971_v54  ;;  %v7980_v42 = vadd.f32 %v7979_v1, %v7978_v5  ;;  %v7951_v27 = vrot.slane %v7950_v21, 1  ;;  %v7993_v52 = vrot.slane %v7992_v41, 1 }
0x135d   : > { %v7931_v15 = vadd.f32 %v7930_v20, %v7929_v44  ;;  %v7938_v22 = vadd.f32 %v7937_v61, %v7936_v45  ;;  %v7958_v31 = vrot.slane %v7957_v43, 1  ;;  %v7965_v3 = vrot.slane %v7964_v30, 1 }
0x135e   : > { %v8013_v6 = vadd.f32 %v8012_v16, %v8011_v18  ;;  %v8020_v23 = vadd.f32 %v8019_v59, %v8018_v7  ;;  %v8000_v0 = vrot.slane %v7999_v28, 1  ;;  %v8007_v37 = vrot.slane %v8006_v57, 1 }
0x135f   : > { %v18113_v11 = vpop.permute.xlu0 %10863  ;;  %v10723_v17 = vsel %vm2059_vm3, %v7980_v42, %v7973_v14  ;;  %v7917_v32 = vadd.f32 %v7916_v55, %v7915_v36  ;;  %v7924_v40 = vadd.f32 %v7923_v34, %v7922_v49  ;;  %v7987_v9 = vadd.f32 %v7986_v46, %v7985_v60 }
0x1360   : > { %v7994_v54 = vadd.f32 %v7993_v52, %v7992_v41  ;;  %v10720_v5 = vsel %vm2059_vm3, %v7938_v22, %v7931_v15  ;;  %v7945_v58 = vadd.f32 %v7944_v38, %v7943_v53  ;;  %v7952_v47 = vadd.f32 %v7951_v27, %v7950_v21 }
0x1361   : > { %v8014_v44 = vrot.slane %v8013_v6, 1  ;;  %v8021_v45 = vrot.slane %v8020_v23, 1  ;;  %v7959_v10 = vadd.f32 %v7958_v31, %v7957_v43  ;;  %v7966_v8 = vadd.f32 %v7965_v3, %v7964_v30  ;;  %v19137_v31 = vld [vmem:[#allocation68_spill] sm:$0xff] }
0x1362   : > { %v10883_v18 = vsel %vm1280_vm0, %v10723_v17, %v18107_v4  ;;  %v10719_v36 = vsel %vm2059_vm3, %v7924_v40, %v7917_v32  ;;  %v8001_v49 = vadd.f32 %v8000_v0, %v7999_v28  ;;  %v8008_v1 = vadd.f32 %v8007_v37, %v8006_v57 }
0x1363   : > { %v18127_v51 = vpop.permute.xlu0 %10759  ;;  %v10724_v61 = vsel %vm2059_vm3, %v7994_v54, %v7987_v9  ;;  %v10721_v41 = vsel %vm2059_vm3, %v7952_v47, %v7945_v58  ;;  %v8022_v43 = vadd.f32 %v8021_v45, %v8020_v23  ;;  %v8015_v30 = vadd.f32 %v8014_v44, %v8013_v6 }
0x1364   : > { %v10879_v21 = vsel %vm1280_vm0, %v10719_v36, %v18127_v51  ;;  %v10722_v16 = vsel %vm2059_vm3, %v7966_v8, %v7959_v10  ;;  %v10725_v38 = vsel %vm2059_vm3, %v8008_v1, %v8001_v49  ;;  %v10891_v14 = vsel %vm5621_vm5, %v10883_v18, %v18109_v48  ;;  %v19138_v10 = vld [vmem:[#allocation121_spill] sm:$0xff]  ;;  %v19139_v18 = vld [vmem:[#allocation119_spill] sm:$0xff]  ;;  %v19140_v1 = vld [vmem:[#allocation114_spill] sm:$0xff] }
0x1365   : > { %v10726_v42 = vsel %vm2059_vm3, %v8022_v43, %v8015_v30  ;;  %v10899_v52 = vsel %vm5630_vm6, %v10891_v14, %v18113_v11  ;;  %v19144_v30 = vld [vmem:[#allocation122_spill] sm:$0xff] }
0x1368   : > { %v18111_v63 = vpop.permute.xlu1 %10769 }
0x136b   : > { %v18139_v26 = vpop.permute.xlu0 %10771 }
0x136f   : > { %v18150_v50 = vpop.permute.xlu0 %10807 }
0x1372   : > { %v18116_v19 = vpop.permute.xlu1 %10817 }
0x1378   : > { %v18156_v39 = vpop.permute.xlu0 %10819 }
0x137c   : > { %v10856_v25 = vpop.permute.xlu0 %10855 }
0x137d   : > { %v18124_v35 = vpop.permute.xlu1 %10865 }
0x138a   : > { %v18137_v29 = vpop.permute.xlu1 %10761 }
0x138b   : > { %v10880_v7 = vsel %vm1280_vm0, %v10720_v5, %v18137_v29  ;;  %v10887_v29 = vsel %vm5621_vm5, %v10879_v21, %v18150_v50 }
0x138c   : > { %v10895_v59 = vsel %vm5630_vm6, %v10887_v29, %v10856_v25  ;;  %v19143_v29 = vld [vmem:[#allocation116_spill] sm:$0xff] }
0x138e   : > { %v10764_v33 = vpop.permute.xlu0 %10763 }
0x138f   : > { %v10881_v51 = vsel %vm1280_vm0, %v10721_v41, %v10764_v33  ;;  %v19142_v41 = vld [vmem:[#allocation123_spill] sm:$0xff] }
0x1391   : > { %v18146_v62 = vpop.permute.xlu1 %10773 }
0x1392   : > { %v10886_v15 = vsel %vm1280_vm0, %v10726_v42, %v18146_v62 }
0x1396   : > { %v18154_v13 = vpop.permute.xlu1 %10809 }
0x1397   : > { %v10888_v60 = vsel %vm5621_vm5, %v10880_v7, %v18154_v13  ;;  %v10884_v13 = vsel %vm1280_vm0, %v10724_v61, %v18111_v63 }
0x1398   : > { %v10892_v34 = vsel %vm5621_vm5, %v10884_v13, %v18116_v19  ;;  %v10885_v19 = vsel %vm1280_vm0, %v10725_v38, %v18139_v26  ;;  %v19145_v13 = vld [vmem:[#allocation118_spill] sm:$0xff] }
0x1399   : > { %v10900_v63 = vsel %vm5630_vm6, %v10892_v34, %v18124_v35  ;;  %v10893_v35 = vsel %vm5621_vm5, %v10885_v19, %v18156_v39 }
0x139a   : > { %v10812_v2 = vpop.permute.xlu0 %10811  ;;  %v10939_v22 = vcombine.low %v10899_v52, %v10900_v63  ;;  %v19147_v52 = vld [vmem:[#allocation113_spill] sm:$0xff] }
0x139b   : > { %v10889_v28 = vsel %vm5621_vm5, %v10881_v51, %v10812_v2 }
0x139c   : > { %v10947_v39 = vrot.slane %v10939_v22, %v19137_v31 }
0x139f   : > { %v18158_v24 = vpop.permute.xlu1 %10821 }
0x13a0   : > { %v10894_v48 = vsel %vm5621_vm5, %v10886_v15, %v18158_v24  ;;  %v12599_v24 = vld [vmem:[#allocation20] ss:$0 sm:$0xff] }
0x13a1   : > { %v19148_v15 = vld [vmem:[#allocation117_spill] sm:$0xff] }
0x13a3   : > { %v10858_v56 = vpop.permute.xlu1 %10857  ;;  %v10860_v20 = vpop.permute.xlu0 %10859 }
0x13a4   : > { %v10896_v4 = vsel %vm5630_vm6, %v10888_v60, %v10858_v56  ;;  %v10897_v25 = vsel %vm5630_vm6, %v10889_v28, %v10860_v20  ;;  %v19141_v20 = vld [vmem:[#allocation112_spill] sm:$0xff] }
0x13a5   : > { %v10922_v57 = vcombine.low %v10895_v59, %v10896_v4 }
0x13a7   : > { %v10868_v33 = vpop.permute.xlu0 %10867  ;;  %v10930_v3 = vrot.slane %v10922_v57, %v19137_v31 }
0x13a8   : > { %v10901_v23 = vsel %vm5630_vm6, %v10893_v35, %v10868_v33  ;;  %v19146_v33 = vld [vmem:[#allocation111_spill] sm:$0xff] }
0x13ac   : > { %v10766_v12 = vpop.permute.xlu1 %10765 }
0x13ad   : > { %v10882_v55 = vsel %vm1280_vm0, %v10722_v16, %v10766_v12 }
0x13b0   : > { %v10814_v53 = vpop.permute.xlu1 %10813 }
0x13b1   : > { %v10890_v50 = vsel %vm5621_vm5, %v10882_v55, %v10814_v53 }
0x13b4   : > { %v10862_v56 = vpop.permute.xlu1 %10861 }
0x13b5   : > { %v10898_v46 = vsel %vm5630_vm6, %v10890_v50, %v10862_v56 }
0x13b6   : > { %v10923_v27 = vcombine.low %v10897_v25, %v10898_v46 }
0x13b8   : > { %v10937_v26 = vrot.slane %v10923_v27, %v19137_v31  ;;  %v10870_v6 = vpop.permute.xlu1 %10869 }
0x13b9   : > { %v10902_v0 = vsel %vm5630_vm6, %v10894_v48, %v10870_v6  ;;  %v19149_v48 = vld [vmem:[#allocation115_spill] sm:$0xff] }
0x13ba   : > { %v10938_v11 = vcombine.low %v10930_v3, %v10937_v26  ;;  %v10940_v37 = vcombine.low %v10901_v23, %v10902_v0 }
0x13bc   : > { %v10954_v12 = vrot.slane %v10940_v37, %v19137_v31  ;;  %12762 = vmatprep.mubr.msk.f32.mxu1 %vm1556_vm1, %v10938_v11 }
0x13be   : > { %v10955_v62 = vcombine.low %v10947_v39, %v10954_v12 }
0x13c0   : > { %12763 = vmatmul.mubr.msk.f32.vlgmr.msra.gmra.mxu1 %vm1556_vm1, %v10955_v62 }
0x1480   : > { %v12764_v17 = vpop.f32.mrf.mxu1 }
0x1481   : > { %v11032_v32 = vadd.f32 %v12764_v17, %v12599_v24 }
0x1482   : > { %v11026_v40 = vpop.f32.mrf.mxu1 }
0x1483   : > { %v11054_v9 = vcombine.high %v11032_v32, %v11032_v32  ;;  %v11061_v2 = vrot.slane %v11032_v32, %v19137_v31  ;;  %v11027_v54 = vadd.f32 %v12599_v24, %v11026_v40 }
0x1485   : > { %v11068_v5 = vrot.slane %v11054_v9, %v19137_v31  ;;  %v11069_v58 = vcombine.high %v11061_v2, %v11061_v2  ;;  %v11037_v47 = vcombine.high %v11027_v54, %v11027_v54  ;;  %v11044_v44 = vrot.slane %v11027_v54, %v19137_v31 }
0x1486   : > { %v11083_v8 = vadd.f32 %v11061_v2, %v19138_v10 }
0x1487   : > { %v11070_v45 = vcombine.high %v11068_v5, %v11068_v5  ;;  %v11084_v7 = vadd.f32 %v11069_v58, %v19139_v18  ;;  %v11051_v36 = vrot.slane %v11037_v47, %v19137_v31  ;;  %v11052_v49 = vcombine.high %v11044_v44, %v11044_v44 }
0x1488   : > { %v11085_v60 = vadd.f32 %v11068_v5, %v19140_v1  ;;  %v11079_v4 = vadd.f32 %v11044_v44, %v19142_v41  ;;  %v11424_v41 = vld [vmem:[%s19150_s28 + $0x18] sm:$0xff] }
0x1489   : > { %v11086_v53 = vadd.f32 %v11070_v45, %v19141_v20  ;;  %v11112_v21 = vcombine.low %v11083_v8, %v11084_v7  ;;  %v11053_v61 = vcombine.high %v11051_v36, %v11051_v36  ;;  %v11080_v43 = vadd.f32 %v11052_v49, %v19143_v29  ;;  %12765 = vmatprep.subr.mxu0 %v11424_v41  ;;  %v11422_v29 = vld [vmem:[%s19150_s28 + $0x8] sm:$0xff] }
0x148a   : > { %v11081_v16 = vadd.f32 %v11051_v36, %v19144_v30  ;;  %12766 = vmatpush3.msra.mxu0 %v11424_v41  ;;  %v11562_v30 = vld [vmem:[%s19151_s15 + $0x38] sm:$0xff] }
0x148b   : > { %v11082_v59 = vadd.f32 %v11053_v61, %v19145_v13  ;;  %v11113_v51 = vcombine.low %v11085_v60, %v11086_v53  ;;  %v11095_v55 = vcombine.low %v11079_v4, %v11080_v43  ;;  %v11120_v34 = vrot.slane %v11112_v21, %v19137_v31  ;;  %12776 = vmatprep.subr.mxu1 %v11562_v30  ;;  %v11560_v13 = vld [vmem:[%s19151_s15 + $0x28] sm:$0xff] }
0x148c   : > { %12777 = vmatpush3.msra.mxu1 %v11562_v30 }
0x148d   : > { %v11127_v28 = vrot.slane %v11113_v51, %v19137_v31  ;;  %v11096_v57 = vcombine.low %v11081_v16, %v11082_v59  ;;  %v11103_v56 = vrot.slane %v11095_v55, %v19137_v31 }
0x148f   : > { %v11128_v50 = vcombine.low %v11120_v34, %v11127_v28  ;;  %v11110_v38 = vrot.slane %v11096_v57, %v19137_v31 }
0x1491   : > { %v11134_v63 = vsel %vm1556_vm1, %v11128_v50, 0.0  ;;  %v11111_v25 = vcombine.low %v11103_v56, %v11110_v38  ;;  %v12602_v56 = vld [vmem:[#allocation22] ss:$0 sm:$0xff]  ;;  %v12603_v38 = vld [vmem:[#allocation23] ss:$0 sm:$0xff] }
0x1492   : > { %11135 = vadd.xlane.f32.xlu1 %v11134_v63  ;;  %v11357_v63 = vcombine.high %v12602_v56, %v12602_v56 }
0x1493   : > { %v11131_v46 = vsel %vm1556_vm1, %v11111_v25, 0.0  ;;  %v11364_v25 = vrot.slane %v12602_v56, %v19137_v31  ;;  %v11555_v56 = vld [vmem:[%s19151_s15] sm:$0xff] }
0x1494   : > { %11132 = vadd.xlane.f32.xlu0 %v11131_v46  ;;  %v11392_v46 = vcombine.high %v12603_v38, %v12603_v38 }
0x151b   : > { %v11136_v14 = vpop.xlane.xlu1 %11135 }
0x151c   : > { %v11138_v19 = vmul.f32 0.03125, %v11136_v14  ;;  %v11371_v14 = vrot.slane %v11357_v63, %v19137_v31 }
0x151d   : > { %v11133_v42 = vpop.xlane.xlu0 %11132 }
0x151e   : > { %v11175_v27 = vrot.slane %v11138_v19, %v19146_v33  ;;  %v11182_v35 = vrot.slane %v11138_v19, %v19147_v52  ;;  %v11189_v22 = vrot.slane %v11138_v19, %v19148_v15  ;;  %v11196_v3 = vrot.slane %v11138_v19, %v19149_v48 }
0x151f   : > { %v11137_v26 = vmul.f32 0.03125, %v11133_v42  ;;  %v11399_v19 = vrot.slane %v12603_v38, %v19137_v31  ;;  %v12604_v38 = vld [vmem:[#allocation25] ss:$0 sm:$0xff] }
0x1520   : > { %v18234_v6 = vsub.f32 %v11083_v8, %v11175_v27  ;;  %v18236_v23 = vsub.f32 %v11084_v7, %v11182_v35  ;;  %v18238_v0 = vsub.f32 %v11085_v60, %v11189_v22  ;;  %v18240_v11 = vsub.f32 %v11086_v53, %v11196_v3 }
0x1521   : > { %v11147_v37 = vrot.slane %v11137_v26, %v19146_v33  ;;  %v11154_v39 = vrot.slane %v11137_v26, %v19147_v52  ;;  %v11161_v12 = vrot.slane %v11137_v26, %v19148_v15  ;;  %v11168_v62 = vrot.slane %v11137_v26, %v19149_v48 }
0x1522   : > { %v11217_v24 = vmul.f32 %v18234_v6, %v18234_v6  ;;  %v11218_v17 = vmul.f32 %v18236_v23, %v18236_v23  ;;  %v11219_v32 = vmul.f32 %v18238_v0, %v18238_v0  ;;  %v11220_v40 = vmul.f32 %v18240_v11, %v18240_v11 }
0x1523   : > { %v18254_v9 = vsub.f32 %v11079_v4, %v11147_v37  ;;  %v18256_v2 = vsub.f32 %v11080_v43, %v11154_v39  ;;  %v18258_v54 = vsub.f32 %v11081_v16, %v11161_v12  ;;  %v18260_v5 = vsub.f32 %v11082_v59, %v11168_v62  ;;  %v11423_v4 = vld [vmem:[%s19150_s28 + $0x10] sm:$0xff]  ;;  %v11421_v43 = vld [vmem:[%s19150_s28] sm:$0xff] }
0x1524   : > { %v11246_v58 = vcombine.low %v11217_v24, %v11218_v17  ;;  %v11247_v47 = vcombine.low %v11219_v32, %v11220_v40  ;;  %12767 = vmatprep.subr.mxu0 %v11423_v4  ;;  %v11561_v16 = vld [vmem:[%s19151_s15 + $0x30] sm:$0xff]  ;;  %v11559_v59 = vld [vmem:[%s19151_s15 + $0x20] sm:$0xff]  ;;  %v11372_v27 = vcombine.high %v11364_v25, %v11364_v25  ;;  %v11406_v35 = vrot.slane %v11392_v46, %v19137_v31 }
0x1525   : > { %v11213_v44 = vmul.f32 %v18254_v9, %v18254_v9  ;;  %v11214_v45 = vmul.f32 %v18256_v2, %v18256_v2  ;;  %v11215_v10 = vmul.f32 %v18258_v54, %v18258_v54  ;;  %v11216_v8 = vmul.f32 %v18260_v5, %v18260_v5  ;;  %12768 = vmatpush3.msra.mxu0 %v11423_v4 }
0x1526   : > { %v11254_v1 = vrot.slane %v11246_v58, %v19137_v31  ;;  %v11261_v60 = vrot.slane %v11247_v47, %v19137_v31  ;;  %12769 = vmatprep.subr.mxu0 %v11422_v29  ;;  %12778 = vmatprep.subr.mxu1 %v11561_v16  ;;  %v11373_v39 = vcombine.high %v11371_v14, %v11371_v14 }
0x1527   : > { %v11229_v18 = vcombine.low %v11213_v44, %v11214_v45  ;;  %v11230_v7 = vcombine.low %v11215_v10, %v11216_v8  ;;  %12770 = vmatpush3.msra.mxu0 %v11422_v29  ;;  %12779 = vmatpush3.msra.mxu1 %v11561_v16  ;;  %v11407_v12 = vcombine.high %v11399_v19, %v11399_v19 }
0x1528   : > { %v11262_v21 = vcombine.low %v11254_v1, %v11261_v60  ;;  %12771 = vmatprep.subr.mxu0 %v11421_v43  ;;  %12780 = vmatprep.subr.mxu1 %v11560_v13  ;;  %v11408_v58 = vcombine.high %v11406_v35, %v11406_v35 }
0x1529   : > { %v11237_v36 = vrot.slane %v11229_v18, %v19137_v31  ;;  %v11244_v49 = vrot.slane %v11230_v7, %v19137_v31  ;;  %12772 = vmatpush3.msra.mxu0 %v11421_v43  ;;  %12781 = vmatpush3.msra.mxu1 %v11560_v13 }
0x152a   : > { %v11268_v61 = vsel %vm1556_vm1, %v11262_v21, 0.0  ;;  %12782 = vmatprep.subr.mxu1 %v11559_v59 }
0x152b   : > { %v11245_v20 = vcombine.low %v11237_v36, %v11244_v49  ;;  %12783 = vmatpush3.msra.mxu1 %v11559_v59 }
0x152d   : > { %v11265_v53 = vsel %vm1556_vm1, %v11245_v20, 0.0 }
0x152e   : > { %11266 = vadd.xlane.f32.xlu0 %v11265_v53 }
0x1532   : > { %11269 = vadd.xlane.f32.xlu0 %v11268_v61 }
0x15b7   : > { %v11267_v51 = vpop.xlane.xlu0 %11266 }
0x15b8   : > { %v11271_v55 = vmul.f32 0.03125, %v11267_v51 }
0x15ba   : > { %v11273_v34 = vadd.f32 1e-05, %v11271_v55 }
0x15bb   : > { %v11270_v28 = vpop.xlane.xlu0 %11269 }
0x15bc   : > { %13607 = vrsqrt.f32 %v11273_v34  ;;  %v11272_v57 = vmul.f32 0.03125, %v11270_v28  ;;  %v11558_v28 = vld [vmem:[%s19151_s15 + $0x18] sm:$0xff] }
0x15bd   : > { %12784 = vmatprep.subr.mxu1 %v11558_v28 }
0x15be   : > { %v11274_v50 = vadd.f32 1e-05, %v11272_v57  ;;  %12785 = vmatpush3.msra.mxu1 %v11558_v28  ;;  %v11557_v57 = vld [vmem:[%s19151_s15 + $0x10] sm:$0xff] }
0x15bf   : > { %12786 = vmatprep.subr.mxu1 %v11557_v57 }
0x15c0   : > { %13609 = vrsqrt.f32 %v11274_v50  ;;  %v11556_v50 = vld [vmem:[%s19151_s15 + $0x8] sm:$0xff]  ;;  %12787 = vmatpush3.msra.mxu1 %v11557_v57 }
0x15c1   : > { %12788 = vmatprep.subr.mxu1 %v11556_v50 }
0x15c2   : > { %12789 = vmatpush3.msra.mxu1 %v11556_v50 }
0x15c3   : > { %12790 = vmatprep.subr.mxu1 %v11555_v56 }
0x15c4   : > { %12791 = vmatpush3.msra.mxu1 %v11555_v56 }
0x15c9   : > { %v13608_v42 = vpop.eup %13607 }
0x15ca   : > { %v11285_v22 = vrot.slane %v13608_v42, %v19146_v33  ;;  %v11292_v3 = vrot.slane %v13608_v42, %v19147_v52  ;;  %v11299_v26 = vrot.slane %v13608_v42, %v19148_v15  ;;  %v11306_v37 = vrot.slane %v13608_v42, %v19149_v48 }
0x15cc   : > { %v11343_v62 = vmul.f32 %v11285_v22, %v18254_v9  ;;  %v11344_v24 = vmul.f32 %v11292_v3, %v18256_v2  ;;  %v11345_v17 = vmul.f32 %v11299_v26, %v18258_v54  ;;  %v11346_v32 = vmul.f32 %v11306_v37, %v18260_v5 }
0x15cd   : > { %v13610_v40 = vpop.eup %13609 }
0x15ce   : > { %v11320_v47 = vrot.slane %v13610_v40, %v19147_v52  ;;  %v11334_v44 = vrot.slane %v13610_v40, %v19149_v48  ;;  %v11378_v45 = vmul.f32 %v11364_v25, %v11343_v62  ;;  %v11379_v10 = vmul.f32 %v11372_v27, %v11344_v24 }
0x15cf   : > { %v11380_v8 = vmul.f32 %v11371_v14, %v11345_v17  ;;  %v11381_v18 = vmul.f32 %v11373_v39, %v11346_v32  ;;  %v11313_v7 = vrot.slane %v13610_v40, %v19146_v33  ;;  %v11327_v9 = vrot.slane %v13610_v40, %v19148_v15 }
0x15d0   : > { %v11348_v2 = vmul.f32 %v11320_v47, %v18236_v23  ;;  %v11350_v54 = vmul.f32 %v11334_v44, %v18240_v11  ;;  %v18302_v36 = vadd.f32 %v11399_v19, %v11378_v45  ;;  %v18304_v5 = vadd.f32 %v11407_v12, %v11379_v10 }
0x15d1   : > { %v18306_v49 = vadd.f32 %v11406_v35, %v11380_v8  ;;  %v18308_v1 = vadd.f32 %v11408_v58, %v11381_v18  ;;  %v11347_v60 = vmul.f32 %v11313_v7, %v18234_v6  ;;  %v11349_v20 = vmul.f32 %v11327_v9, %v18238_v0 }
0x15d2   : > { %v11383_v53 = vmul.f32 %v11372_v27, %v11348_v2  ;;  %v11385_v21 = vmul.f32 %v11373_v39, %v11350_v54  ;;  %v11440_v61 = vcombine.low %v18302_v36, %v18304_v5  ;;  %v12607_v27 = vld [vmem:[#allocation26] ss:$0 sm:$0xff] }
0x15d3   : > { %v11441_v23 = vcombine.low %v18306_v49, %v18308_v1  ;;  %v11382_v11 = vmul.f32 %v11364_v25, %v11347_v60  ;;  %v11384_v41 = vmul.f32 %v11371_v14, %v11349_v20 }
0x15d4   : > { %v11418_v4 = vadd.f32 %v11407_v12, %v11383_v53  ;;  %v11420_v29 = vadd.f32 %v11408_v58, %v11385_v21  ;;  %v11448_v43 = vrot.slane %v11440_v61, %v19137_v31 }
0x15d5   : > { %v11455_v6 = vrot.slane %v11441_v23, %v19137_v31  ;;  %v11417_v0 = vadd.f32 %v11399_v19, %v11382_v11  ;;  %v11419_v30 = vadd.f32 %v11406_v35, %v11384_v41 }
0x15d7   : > { %v11456_v16 = vcombine.low %v11448_v43, %v11455_v6  ;;  %v11457_v13 = vcombine.low %v11417_v0, %v11418_v4  ;;  %v11458_v59 = vcombine.low %v11419_v30, %v11420_v29 }
0x15d9   : > { %12773 = vmatprep.mubr.msk.f32.mxu0 %vm1556_vm1, %v11456_v16  ;;  %v11465_v51 = vrot.slane %v11457_v13, %v19137_v31  ;;  %v11472_v55 = vrot.slane %v11458_v59, %v19137_v31 }
0x15db   : > { %v11473_v34 = vcombine.low %v11465_v51, %v11472_v55 }
0x15dd   : > { %12774 = vmatmul.mubr.msk.f32.vlgmr.msra.gmra.mxu0 %vm1556_vm1, %v11473_v34 }
0x169d   : > { %v12775_v63 = vpop.f32.mrf.mxu0 }
0x169e   : > { %v11550_v25 = vadd.f32 %v12775_v63, %v12604_v38 }
0x169f   : > { %v11544_v46 = vpop.f32.mrf.mxu0 }
0x16a0   : > { %v11545_v14 = vadd.f32 %v12604_v38, %v11544_v46  ;;  %v11554_v42 = vmax.f32 %v11550_v25, 0.0 }
0x16a2   : > { %v11553_v19 = vmax.f32 %v11545_v14, 0.0 }
0x16a4   : > { %12792 = vmatprep.mubr.msk.f32.mxu1 %vm6307_vm7, %v11553_v19 }
0x16a5   : > { %12793 = vmatmul.mubr.msk.f32.vlgmr.msra.gmra.mxu1 %vm6307_vm7, %v11554_v42 }
0x1765   : > { %v12794_v35 = vpop.f32.mrf.mxu1 }
0x1766   : > { %v11648_v22 = vadd.f32 %v12794_v35, %v12607_v27 }
0x1767   : > { %v11642_v3 = vpop.f32.mrf.mxu1 }
0x1768   : > { %v11670_v26 = vcombine.high %v11648_v22, %v11648_v22  ;;  %v11677_v37 = vrot.slane %v11648_v22, %v19137_v31  ;;  %v11643_v39 = vadd.f32 %v12607_v27, %v11642_v3 }
0x176a   : > { %v11684_v12 = vrot.slane %v11670_v26, %v19137_v31  ;;  %v11685_v62 = vcombine.high %v11677_v37, %v11677_v37  ;;  %v11653_v24 = vcombine.high %v11643_v39, %v11643_v39  ;;  %v11660_v17 = vrot.slane %v11643_v39, %v19137_v31 }
0x176b   : > { %v11699_v40 = vadd.f32 %v11677_v37, %v11417_v0 }
0x176c   : > { %v11686_v32 = vcombine.high %v11684_v12, %v11684_v12  ;;  %v11700_v58 = vadd.f32 %v11685_v62, %v11418_v4  ;;  %v11667_v47 = vrot.slane %v11653_v24, %v19137_v31  ;;  %v11668_v44 = vcombine.high %v11660_v17, %v11660_v17 }
0x176d   : > { %v11701_v45 = vadd.f32 %v11684_v12, %v11419_v30  ;;  %v11695_v7 = vadd.f32 %v11660_v17, %v18302_v36 }
0x176e   : > { %v11702_v10 = vadd.f32 %v11686_v32, %v11420_v29  ;;  %v11728_v8 = vcombine.low %v11699_v40, %v11700_v58  ;;  %v11669_v18 = vcombine.high %v11667_v47, %v11667_v47  ;;  %v11696_v9 = vadd.f32 %v11668_v44, %v18304_v5 }
0x176f   : > { %v11697_v2 = vadd.f32 %v11667_v47, %v18306_v49 }
0x1770   : > { %v11698_v54 = vadd.f32 %v11669_v18, %v18308_v1  ;;  %v11729_v60 = vcombine.low %v11701_v45, %v11702_v10  ;;  %v11711_v20 = vcombine.low %v11695_v7, %v11696_v9  ;;  %v11736_v53 = vrot.slane %v11728_v8, %v19137_v31  ;;  %v12038_v8 = vld [vmem:[%s14432_s21 + $0x8] sm:$0xff]  ;;  %v12037_v18 = vld [vmem:[%s14432_s21] sm:$0xff] }
0x1772   : > { %v11743_v21 = vrot.slane %v11729_v60, %v19137_v31  ;;  %v11712_v61 = vcombine.low %v11697_v2, %v11698_v54  ;;  %v11719_v11 = vrot.slane %v11711_v20, %v19137_v31 }
0x1774   : > { %v11744_v23 = vcombine.low %v11736_v53, %v11743_v21  ;;  %v11726_v41 = vrot.slane %v11712_v61, %v19137_v31  ;;  %v12610_v53 = vld [vmem:[#allocation28] ss:$0 sm:$0xff]  ;;  %v12611_v21 = vld [vmem:[#allocation29] ss:$0 sm:$0xff] }
0x1775   : > { %v11973_v61 = vcombine.high %v12610_v53, %v12610_v53 }
0x1776   : > { %v11750_v36 = vsel %vm1556_vm1, %v11744_v23, 0.0  ;;  %v11727_v4 = vcombine.low %v11719_v11, %v11726_v41  ;;  %v12008_v23 = vcombine.high %v12611_v21, %v12611_v21  ;;  %v11980_v11 = vrot.slane %v12610_v53, %v19137_v31 }
0x1777   : > { %11751 = vadd.xlane.f32.xlu0 %v11750_v36  ;;  %v11987_v41 = vrot.slane %v11973_v61, %v19137_v31  ;;  %v12015_v36 = vrot.slane %v12611_v21, %v19137_v31 }
0x1778   : > { %v11747_v5 = vsel %vm1556_vm1, %v11727_v4, 0.0  ;;  %v12022_v4 = vrot.slane %v12008_v23, %v19137_v31 }
0x1779   : > { %11748 = vadd.xlane.f32.xlu1 %v11747_v5 }
0x1800   : > { %v11752_v49 = vpop.xlane.xlu0 %11751 }
0x1801   : > { %v11754_v1 = vmul.f32 0.03125, %v11752_v49  ;;  %v11988_v49 = vcombine.high %v11980_v11, %v11980_v11 }
0x1802   : > { %v11749_v29 = vpop.xlane.xlu1 %11748 }
0x1803   : > { %v11791_v43 = vrot.slane %v11754_v1, %v19146_v33  ;;  %v11798_v6 = vrot.slane %v11754_v1, %v19147_v52  ;;  %v11805_v0 = vrot.slane %v11754_v1, %v19148_v15  ;;  %v11812_v30 = vrot.slane %v11754_v1, %v19149_v48 }
0x1804   : > { %v11753_v16 = vmul.f32 0.03125, %v11749_v29  ;;  %v11989_v1 = vcombine.high %v11987_v41, %v11987_v41 }
0x1805   : > { %v18346_v13 = vsub.f32 %v11699_v40, %v11791_v43  ;;  %v18348_v59 = vsub.f32 %v11700_v58, %v11798_v6  ;;  %v18350_v51 = vsub.f32 %v11701_v45, %v11805_v0  ;;  %v18352_v55 = vsub.f32 %v11702_v10, %v11812_v30  ;;  %v12040_v45 = vld [vmem:[%s14432_s21 + $0x18] sm:$0xff]  ;;  %v12039_v10 = vld [vmem:[%s14432_s21 + $0x10] sm:$0xff] }
0x1806   : > { %v11763_v34 = vrot.slane %v11753_v16, %v19146_v33  ;;  %v11770_v28 = vrot.slane %v11753_v16, %v19147_v52  ;;  %v11777_v57 = vrot.slane %v11753_v16, %v19148_v15  ;;  %v11784_v50 = vrot.slane %v11753_v16, %v19149_v48  ;;  %12795 = vmatprep.subr.mxu0 %v12040_v45 }
0x1807   : > { %v11833_v56 = vmul.f32 %v18346_v13, %v18346_v13  ;;  %v11834_v38 = vmul.f32 %v18348_v59, %v18348_v59  ;;  %v11835_v63 = vmul.f32 %v18350_v51, %v18350_v51  ;;  %v11836_v25 = vmul.f32 %v18352_v55, %v18352_v55  ;;  %12796 = vmatpush3.msra.mxu0 %v12040_v45 }
0x1808   : > { %v18366_v46 = vsub.f32 %v11695_v7, %v11763_v34  ;;  %v18368_v14 = vsub.f32 %v11696_v9, %v11770_v28  ;;  %v18370_v19 = vsub.f32 %v11697_v2, %v11777_v57  ;;  %v18372_v42 = vsub.f32 %v11698_v54, %v11784_v50  ;;  %12797 = vmatprep.subr.mxu0 %v12039_v10 }
0x1809   : > { %v11862_v27 = vcombine.low %v11833_v56, %v11834_v38  ;;  %v11863_v35 = vcombine.low %v11835_v63, %v11836_v25  ;;  %12798 = vmatpush3.msra.mxu0 %v12039_v10  ;;  %v12023_v30 = vcombine.high %v12015_v36, %v12015_v36  ;;  %v12024_v16 = vcombine.high %v12022_v4, %v12022_v4 }
0x180a   : > { %v11829_v22 = vmul.f32 %v18366_v46, %v18366_v46  ;;  %v11830_v3 = vmul.f32 %v18368_v14, %v18368_v14  ;;  %v11831_v26 = vmul.f32 %v18370_v19, %v18370_v19  ;;  %v11832_v37 = vmul.f32 %v18372_v42, %v18372_v42  ;;  %12799 = vmatprep.subr.mxu0 %v12038_v8 }
0x180b   : > { %v11870_v39 = vrot.slane %v11862_v27, %v19137_v31  ;;  %v11877_v12 = vrot.slane %v11863_v35, %v19137_v31  ;;  %12800 = vmatpush3.msra.mxu0 %v12038_v8 }
0x180c   : > { %v11845_v62 = vcombine.low %v11829_v22, %v11830_v3  ;;  %v11846_v24 = vcombine.low %v11831_v26, %v11832_v37  ;;  %12801 = vmatprep.subr.mxu0 %v12037_v18 }
0x180d   : > { %v11878_v17 = vcombine.low %v11870_v39, %v11877_v12  ;;  %12802 = vmatpush3.msra.mxu0 %v12037_v18  ;;  %v12612_v18 = vld [vmem:[#allocation31] ss:$0 sm:$0xff] }
0x180e   : > { %v11853_v32 = vrot.slane %v11845_v62, %v19137_v31  ;;  %v11860_v40 = vrot.slane %v11846_v24, %v19137_v31 }
0x180f   : > { %v11884_v58 = vsel %vm1556_vm1, %v11878_v17, 0.0 }
0x1810   : > { %11885 = vadd.xlane.f32.xlu0 %v11884_v58  ;;  %v11861_v47 = vcombine.low %v11853_v32, %v11860_v40 }
0x1812   : > { %v11881_v44 = vsel %vm1556_vm1, %v11861_v47, 0.0 }
0x1813   : > { %11882 = vadd.xlane.f32.xlu1 %v11881_v44 }
0x1899   : > { %v11886_v7 = vpop.xlane.xlu0 %11885 }
0x189a   : > { %v11888_v9 = vmul.f32 0.03125, %v11886_v7 }
0x189c   : > { %v11890_v2 = vadd.f32 1e-05, %v11888_v9  ;;  %v11883_v54 = vpop.xlane.xlu1 %11882 }
0x189d   : > { %v11887_v60 = vmul.f32 0.03125, %v11883_v54 }
0x189e   : > { %13611 = vrsqrt.f32 %v11890_v2  ;;  %v12213_v2 = vld [vmem:[%s19152_s10] sm:$0x3]  ;;  %s12620_s10 = sshll.u32 %s14470_s2, 8 }
0x189f   : > { %v11889_v20 = vadd.f32 1e-05, %v11887_v60  ;;  %s18426_s4 = scalar_lea.hbm %s19153_s13, %s12620_s10  ;;  %s14117_s10 = scalar_lea.vmem %s14116_s6, 512 }
0x18a0   : > { %p14119_p13 = scmp.lt.s32.totalorder %s14117_s10, %s14111_s18 }
0x18a1   : > { %13613 = vrsqrt.f32 %v11889_v20 }
0x18a2   : > { %p14120_p1 = por %p14119_p13, %p14118_p9 }
0x18a4   : > { %p14121_p3 = pnand %p14120_p1, %p14114_p0 }
0x18ab   : > { %v13612_v5 = vpop.eup %13611 }
0x18ac   : > { %v11936_v29 = vrot.slane %v13612_v5, %v19147_v52  ;;  %v11950_v43 = vrot.slane %v13612_v5, %v19149_v48  ;;  %v11929_v6 = vrot.slane %v13612_v5, %v19146_v33  ;;  %v11943_v0 = vrot.slane %v13612_v5, %v19148_v15 }
0x18ae   : > { %v13614_v34 = vpop.eup %13613  ;;  %v11964_v28 = vmul.f32 %v11936_v29, %v18348_v59  ;;  %v11966_v57 = vmul.f32 %v11950_v43, %v18352_v55  ;;  %v11963_v50 = vmul.f32 %v11929_v6, %v18346_v13  ;;  %v11965_v56 = vmul.f32 %v11943_v0, %v18350_v51 }
0x18af   : > { %v11901_v38 = vrot.slane %v13614_v34, %v19146_v33  ;;  %v11908_v63 = vrot.slane %v13614_v34, %v19147_v52  ;;  %v11915_v25 = vrot.slane %v13614_v34, %v19148_v15  ;;  %v11922_v27 = vrot.slane %v13614_v34, %v19149_v48 }
0x18b0   : > { %v11999_v35 = vmul.f32 %v11988_v49, %v11964_v28  ;;  %v12001_v22 = vmul.f32 %v11989_v1, %v11966_v57  ;;  %v11998_v3 = vmul.f32 %v11980_v11, %v11963_v50  ;;  %v12000_v26 = vmul.f32 %v11987_v41, %v11965_v56 }
0x18b1   : > { %v11959_v59 = vmul.f32 %v11901_v38, %v18366_v46  ;;  %v11960_v55 = vmul.f32 %v11908_v63, %v18368_v14  ;;  %v11961_v13 = vmul.f32 %v11915_v25, %v18370_v19  ;;  %v11962_v51 = vmul.f32 %v11922_v27, %v18372_v42 }
0x18b2   : > { %v12034_v37 = vadd.f32 %v12023_v30, %v11999_v35  ;;  %v12036_v33 = vadd.f32 %v12024_v16, %v12001_v22  ;;  %v12033_v39 = vadd.f32 %v12015_v36, %v11998_v3  ;;  %v12035_v52 = vadd.f32 %v12022_v4, %v12000_v26 }
0x18b3   : > { %v11994_v12 = vmul.f32 %v11980_v11, %v11959_v59  ;;  %v11995_v15 = vmul.f32 %v11988_v49, %v11960_v55  ;;  %v11996_v62 = vmul.f32 %v11987_v41, %v11961_v13  ;;  %v11997_v48 = vmul.f32 %v11989_v1, %v11962_v51 }
0x18b4   : > { %v12073_v24 = vcombine.low %v12033_v39, %v12034_v37  ;;  %v12074_v17 = vcombine.low %v12035_v52, %v12036_v33 }
0x18b5   : > { %v12029_v32 = vadd.f32 %v12015_v36, %v11994_v12  ;;  %v12030_v40 = vadd.f32 %v12023_v30, %v11995_v15  ;;  %v12031_v46 = vadd.f32 %v12022_v4, %v11996_v62  ;;  %v12032_v14 = vadd.f32 %v12024_v16, %v11997_v48 }
0x18b6   : > { %v12081_v42 = vrot.slane %v12073_v24, %v19137_v31  ;;  %v12088_v47 = vrot.slane %v12074_v17, %v19137_v31 }
0x18b7   : > { %v12056_v58 = vcombine.low %v12029_v32, %v12030_v40  ;;  %v12057_v19 = vcombine.low %v12031_v46, %v12032_v14 }
0x18b8   : > { %v12089_v8 = vcombine.low %v12081_v42, %v12088_v47 }
0x18b9   : > { %v12064_v44 = vrot.slane %v12056_v58, %v19137_v31  ;;  %v12071_v45 = vrot.slane %v12057_v19, %v19137_v31 }
0x18bb   : > { %v12072_v10 = vcombine.low %v12064_v44, %v12071_v45 }
0x18bd   : > { %12803 = vmatprep.mubr.msk.f32.mxu0 %vm1556_vm1, %v12072_v10 }
0x18be   : > { %12804 = vmatmul.mubr.msk.f32.vlgmr.msra.gmra.mxu0 %vm1556_vm1, %v12089_v8 }
0x197e   : > { %v12805_v7 = vpop.f32.mrf.mxu0 }
0x197f   : > { %v12166_v9 = vadd.f32 %v12805_v7, %v12612_v18 }
0x1980   : > { %v12160_v54 = vpop.f32.mrf.mxu0 }
0x1981   : > { %v12188_v60 = vcombine.high %v12166_v9, %v12166_v9  ;;  %v12195_v20 = vrot.slane %v12166_v9, %v19137_v31  ;;  %v12161_v53 = vadd.f32 %v12612_v18, %v12160_v54 }
0x1983   : > { %v12202_v21 = vrot.slane %v12188_v60, %v19137_v31  ;;  %v12203_v61 = vcombine.high %v12195_v20, %v12195_v20  ;;  %v12218_v23 = vadd.f32 %v12213_v2, %v12195_v20  ;;  %v12171_v11 = vcombine.high %v12161_v53, %v12161_v53 }
0x1984   : > { %v12178_v41 = vrot.slane %v12161_v53, %v19137_v31 }
0x1985   : > { %v12204_v36 = vcombine.high %v12202_v21, %v12202_v21  ;;  %v12219_v4 = vadd.f32 %v12213_v2, %v12203_v61  ;;  %v12220_v5 = vadd.f32 %v12213_v2, %v12202_v21  ;;  %12226 = vst [vmem:[%s1214_s1 + $0x8] sm:$0x3] %v12218_v23  ;;  %v12185_v49 = vrot.slane %v12171_v11, %v19137_v31 }
0x1986   : > { %v12186_v1 = vcombine.high %v12178_v41, %v12178_v41  ;;  %v12214_v29 = vadd.f32 %v12213_v2, %v12178_v41 }
0x1987   : > { %v12221_v43 = vadd.f32 %v12213_v2, %v12204_v36  ;;  %12227 = vst [vmem:[%s1214_s1 + $0xa] sm:$0x3] %v12219_v4  ;;  %12228 = vst [vmem:[%s1214_s1 + $0xc] sm:$0x3] %v12220_v5  ;;  %v12187_v6 = vcombine.high %v12185_v49, %v12185_v49  ;;  %v12216_v0 = vadd.f32 %v12213_v2, %v12185_v49 }
0x1988   : > { %v12215_v30 = vadd.f32 %v12213_v2, %v12186_v1  ;;  %12222 = vst [vmem:[%s1214_s1] sm:$0x3] %v12214_v29 }
0x1989   : > { %12229 = vst [vmem:[%s1214_s1 + $0xe] sm:$0x3] %v12221_v43  ;;  %v12217_v31 = vadd.f32 %v12213_v2, %v12187_v6  ;;  %12224 = vst [vmem:[%s1214_s1 + $0x4] sm:$0x3] %v12216_v0 }
0x198a   : > { %12223 = vst [vmem:[%s1214_s1 + $0x2] sm:$0x3] %v12215_v30 }
0x198b   : > { %12225 = vst [vmem:[%s1214_s1 + $0x6] sm:$0x3] %v12217_v31 }
0x198c   : > { %14124 = shalt.err (!%p14121_p3)
}
0x198d   : > { %s14125_s1 = scalar_lea.hbm %s18426_s4, 256  ;;  %s14129_s2 = scalar_lea.hbm %s19153_s13, 512 }
0x198e   : > { %p14126_p6 = scmp.ne.s32.totalorder %s18426_s4, %s14125_s1  ;;  %p14130_p12 = scmp.lt.s32.totalorder %s18426_s4, %s19153_s13 }
0x198f   : > { %p14131_p7 = scmp.lt.s32.totalorder %s14129_s2, %s14125_s1 }
0x1990   : > { %p14127_p10 = pnand %p14126_p6, %p19154_p5 }
0x1991   : > { %p14132_p4 = por %p14131_p7, %p14130_p12 }
0x1992   : > { %p14128_p11 = pneg %p14127_p10 }
0x1994   : > { %p14133_p2 = pnand %p14132_p4, %p14128_p11 }
0x1996   : > { %14136 = shalt.err (!%p14133_p2)
}
0x1997   : > { %s14282_s5 = smov 32   ;;  %s14283_s6 = smov 2  }
0x1998   : > { %s19155_s18 = scalar_lea.sflag [#allocation4], %s14654_s12 }
0x1999   : > { %12880 = dma.vmem_to_hbm [thread:$0]  (%p19154_p5), %s18428_s3, 256, %s18426_s4, %s19155_s18, %s14282_s5, %s14282_s5, %s14283_s6  }
0x199a PF: > { %s12259_s10 = sand.u32 1, %s14199_s22   ;;  %p19156_p8 = scmp.ne.s32.totalorder %s18737_s16, 0 }
0x199b   : > { %p19157_p0 = scmp.ge.s32.totalorder %s14211_s0, 2  ;;  %s12260_s2 = scalar_lea.sflag [#allocation4], %s12259_s10 }
0x199d   : > { %p12942_p9 = pnand %p19157_p0, %p19156_p8 }
0x199f   : > { %p12943_p13 = pneg %p12942_p9 }
0x19a1   : > { %14194 = dma.done.wait (%p12943_p13), %s12260_s2, 256  }
0x19a2   : > { %14196 = vsyncadd (%p12943_p13), %s12260_s2, 4294967040  ;;  %p85_p1 = scmp.ge.s32.totalorder %s14597_s27, 4   ;;  %s19158_s22 = smov %s14203_s23 }
0x19a3   : > { %s19159_s23 = smov %s14207_s26  ;;  %s19160_s26 = smov %s14608_s8 }
0x19a4   : > { %s19161_s0 = smov %s14597_s27  ;;  %87 = sbr.rel (!%p85_p1) target bundleno = 74 (0x4a), region = 295 }
0x19a9   :  { %12265 = vsyncpa [#allocation3], 1 }
0x19aa   :  { %12267 = vsyncpa [#allocation3 + $0x1], 1 }
0x19ab   :  { %12268 = vsyncpa [#allocation6], 1 }
0x19ac   :  { %12269 = vsyncpa [#allocation9], 1 }
0x19ad   :  { %12270 = vsyncpa [#allocation12], 1 }
0x19ae   :  { %12271 = vsyncpa [#allocation15], 1 }
0x19af   :  { %12272 = vsyncpa [#allocation18], 1 }
0x19b0   :  { %12273 = vsyncpa [#allocation21], 1 }
0x19b1   :  { %12274 = vsyncpa [#allocation24], 1 }
0x19b2   :  { %12275 = vsyncpa [#allocation27], 1 }
0x19b3   :  { %12276 = vsyncpa [#allocation30], 1 }
0x19b4   :  { %12277 = vsyncpa [#allocation4], 1 }
0x19b5   :  { %12279 = vsyncpa [#allocation4 + $0x1], 1 }

</bundles_post_ra>
